<compile_context>
chip_gen: v6e
topology: v6e:2x2x1
jax: 0.10.0
libtpu: 0.0.40
codegen_flags: <defaults>
</compile_context>

<pallas_src>
import functools

import numpy as np
import jax
import jax.numpy as jnp
from jax import lax
from jax.experimental import pallas as pl
from jax.experimental.pallas import tpu as pltpu

SUBLANE = 8      # f32 sublane group
NCLS = 2         # real head classes
HEAD_PAD = 128   # lane-dense padded head width


# ----------------------------------------------------------------------------
# Fused forward kernel (single invocation, no grid)
# ----------------------------------------------------------------------------
def fused_forward_kernel(
    # time-major padded inputs: (T*Bp, n_p + n_ts)
    en_pts_ref, de_pts_ref,
    # packed embedding params: emb_w (2, n_p+n_ts, E) bf16, emb_b (2,1,E) f32,
    # lin_w (2,E,H) bf16, lin_b (2,1,H) f32   (index 0 = encoder, 1 = decoder)
    emb_w_ref, emb_b_ref, lin_w_ref, lin_b_ref,
    # encoder GRU stacks: w_ih/w_hh (L,H,3H) bf16, bias (L,2,3H) f32, ln (L,2,H) f32
    enc_w_ih_ref, enc_w_hh_ref, enc_bias_ref, enc_ln_ref,
    # decoder GRU stacks
    dec_w_ih_ref, dec_w_hh_ref, dec_bias_ref, dec_ln_ref,
    # head: (H, HEAD_PAD) bf16 zero-padded, (1, HEAD_PAD) f32 zero-padded
    head_w_ref, head_b_ref,
    # outputs
    out_ref,     # (Bp, HEAD_PAD) f32 — softmax probs in cols [0, NCLS), 0 elsewhere
    hid_ref,     # (n_enc*T*Bp, H) f32 — raw (pre-LN) encoder GRU outputs
    # scratch
    gi_buf,      # (T*Bp, 3H) f32 — hoisted layer-0 input projection
    *, Bp, T, H, n_enc, n_dec):
    f32 = jnp.float32
    bf16 = jnp.bfloat16

    def ln_relu(x, ln2):
        # ln2: (2, H) value; row 0 = gamma, row 1 = beta. eps=1e-5.
        g = ln2[0:1, :]
        b = ln2[1:2, :]
        mean = jnp.mean(x, axis=-1, keepdims=True)
        xc = x - mean
        var = jnp.mean(xc * xc, axis=-1, keepdims=True)
        return jnp.maximum(xc * lax.rsqrt(var + 1e-5) * g + b, 0.0)

    def embed(pts_ref, idx):
        # ([p|ts] @ [[Wp],[Wts]] + (bp+bts)) @ Wl + bl, on the whole (T*Bp, .) slab
        e = (jnp.dot(pts_ref[...].astype(bf16), emb_w_ref[idx],
                     preferred_element_type=f32) + emb_b_ref[idx])
        return (jnp.dot(e.astype(bf16), lin_w_ref[idx],
                        preferred_element_type=f32) + lin_b_ref[idx])

    def gru_step(gi_t, h, w_hh_ref, l, b_hh):
        # PyTorch GRU cell, gate order [r, z, n].
        gh = jnp.dot(h.astype(bf16), w_hh_ref[l], preferred_element_type=f32) + b_hh
        r = jax.nn.sigmoid(gi_t[:, 0:H] + gh[:, 0:H])
        z = jax.nn.sigmoid(gi_t[:, H:2 * H] + gh[:, H:2 * H])
        n = jnp.tanh(gi_t[:, 2 * H:3 * H] + r * gh[:, 2 * H:3 * H])
        return (1.0 - z) * n + z * h

    # --------------------------- encoder ---------------------------
    # Layer-0 input projection hoisted (one big MXU pass over the whole slab);
    # result parked in VMEM scratch to keep vreg pressure off the recurrence.
    x0 = embed(en_pts_ref, 0)
    gi_buf[...] = (jnp.dot(x0.astype(bf16), enc_w_ih_ref[0],
                           preferred_element_type=f32) + enc_bias_ref[0][0:1, :])

    h_enc = [jnp.zeros((Bp, H), f32) for _ in range(n_enc)]
    for t in range(T):
        for l in range(n_enc):
            bias = enc_bias_ref[l]                       # (2, 3H)
            if l == 0:
                gi_t = gi_buf[t * Bp:(t + 1) * Bp, :]    # 8-row aligned slice
            else:
                # per-timestep LN+ReLU of the layer below (dropout = identity)
                x_t = ln_relu(h_enc[l - 1], enc_ln_ref[l - 1])
                gi_t = (jnp.dot(x_t.astype(bf16), enc_w_ih_ref[l],
                                preferred_element_type=f32) + bias[0:1, :])
            h_enc[l] = gru_step(gi_t, h_enc[l], enc_w_hh_ref, l, bias[1:2, :])
            row = (l * T + t) * Bp                       # 8-row aligned store
            hid_ref[row:row + Bp, :] = h_enc[l]
    hx = h_enc[n_enc - 1]                                # final hidden of last encoder GRU

    # --------------------------- decoder ---------------------------
    x0d = embed(de_pts_ref, 1)
    gi_buf[...] = (jnp.dot(x0d.astype(bf16), dec_w_ih_ref[0],
                           preferred_element_type=f32) + dec_bias_ref[0][0:1, :])

    h_dec = [hx for _ in range(n_dec)]                   # every decoder GRU seeded with hx
    for t in range(T):
        for l in range(n_dec):
            bias = dec_bias_ref[l]
            if l == 0:
                gi_t = gi_buf[t * Bp:(t + 1) * Bp, :]
            else:
                x_t = ln_relu(h_dec[l - 1], dec_ln_ref[l - 1])
                gi_t = (jnp.dot(x_t.astype(bf16), dec_w_ih_ref[l],
                                preferred_element_type=f32) + bias[0:1, :])
            h_dec[l] = gru_step(gi_t, h_dec[l], dec_w_hh_ref, l, bias[1:2, :])

    # --------------------------- head: Linear(H->2) + softmax ------------------
    x_last = ln_relu(h_dec[n_dec - 1], dec_ln_ref[n_dec - 1])   # de_x[:, -1, :]
    logits = (jnp.dot(x_last.astype(bf16), head_w_ref[...],
                      preferred_element_type=f32) + head_b_ref[...])
    col = lax.broadcasted_iota(jnp.int32, logits.shape, 1)
    logits = jnp.where(col < NCLS, logits, -1e30)        # mask padded classes
    m = jnp.max(logits, axis=1, keepdims=True)
    e = jnp.exp(logits - m)
    out_ref[...] = e / jnp.sum(e, axis=1, keepdims=True)


# ----------------------------------------------------------------------------
# Wrapper: one pallas_call for the whole forward pass.
# ----------------------------------------------------------------------------
@functools.partial(jax.jit, static_argnames=("len_seq", "n_hidden"))
def forward(kparams, en_p, en_ts, de_p, de_ts, mask, *, len_seq, n_hidden):
    del mask  # unused by the reference forward
    B = en_p.shape[0]
    T = len_seq
    H = n_hidden
    Bp = max(SUBLANE, ((B + SUBLANE - 1) // SUBLANE) * SUBLANE)
    n_enc = kparams["enc_w_ih"].shape[0]
    n_dec = kparams["dec_w_ih"].shape[0]

    def prep(p, ts):
        # (B,T,Dp)+(B,T,Dts) -> time-major, batch padded to Bp, flat (T*Bp, Dp+Dts)
        x = jnp.concatenate([p, ts], axis=-1)
        x = jnp.swapaxes(x, 0, 1)                          # (T, B, D)
        x = jnp.pad(x, ((0, 0), (0, Bp - B), (0, 0)))      # (T, Bp, D)
        return x.reshape(T * Bp, x.shape[-1])

    kernel = functools.partial(fused_forward_kernel,
                               Bp=Bp, T=T, H=H, n_enc=n_enc, n_dec=n_dec)

    out_pad, hid_flat = pl.pallas_call(
        kernel,
        out_shape=(
            jax.ShapeDtypeStruct((Bp, HEAD_PAD), jnp.float32),
            jax.ShapeDtypeStruct((n_enc * T * Bp, H), jnp.float32),
        ),
        scratch_shapes=[pltpu.VMEM((T * Bp, 3 * H), jnp.float32)],
    )(
        prep(en_p, en_ts), prep(de_p, de_ts),
        kparams["emb_w"], kparams["emb_b"], kparams["lin_w"], kparams["lin_b"],
        kparams["enc_w_ih"], kparams["enc_w_hh"], kparams["enc_bias"], kparams["enc_ln"],
        kparams["dec_w_ih"], kparams["dec_w_hh"], kparams["dec_bias"], kparams["dec_ln"],
        kparams["head_w"], kparams["head_b"],
    )

    out = out_pad[:B, :NCLS]
    hid = hid_flat.reshape(n_enc, T, Bp, H)[:, :, :B, :].transpose(0, 2, 1, 3)
    hidden_list = [hid[i] for i in range(n_enc)]
    return out, hidden_list


# ----------------------------------------------------------------------------
# Parameter construction (PyTorch-style uniform init ranges) + kernel packing.
# Linear / GRU weights stored transposed: (in, out) / (in, 3*hidden).
# ----------------------------------------------------------------------------
def _uniform(key, shape, bound):
    return jax.random.uniform(key, shape, jnp.float32, -bound, bound)


def init_params(key, n_input, layer, n_embedding, n_hidden):
    keys = jax.random.split(key, 11)

    def linear_params(k, fan_in, fan_out):
        k1, k2 = jax.random.split(k)
        bound = 1.0 / np.sqrt(fan_in)
        return _uniform(k1, (fan_in, fan_out), bound), _uniform(k2, (1, fan_out), bound)

    def gru_stack(k, n_layers, n_in, n_hid):
        bound = 1.0 / np.sqrt(n_hid)
        ks = jax.random.split(k, n_layers)
        w_ih, w_hh, b_ih, b_hh = [], [], [], []
        for kk in ks:
            k1, k2, k3, k4 = jax.random.split(kk, 4)
            w_ih.append(_uniform(k1, (n_in, 3 * n_hid), bound))
            w_hh.append(_uniform(k2, (n_hid, 3 * n_hid), bound))
            b_ih.append(_uniform(k3, (1, 3 * n_hid), bound))
            b_hh.append(_uniform(k4, (1, 3 * n_hid), bound))
        return jnp.stack(w_ih), jnp.stack(w_hh), jnp.stack(b_ih), jnp.stack(b_hh)

    def ln_stack(k, n_layers, n_hid):
        ks = jax.random.split(k, n_layers)
        g, b = [], []
        for kk in ks:
            k1, k2 = jax.random.split(kk)
            g.append(1.0 + 0.02 * jax.random.normal(k1, (1, n_hid), jnp.float32))
            b.append(0.02 * jax.random.normal(k2, (1, n_hid), jnp.float32))
        return jnp.stack(g), jnp.stack(b)

    p = {}
    p["en_p_w"], p["en_p_b"] = linear_params(keys[0], n_input[0], n_embedding)
    p["en_ts_w"], p["en_ts_b"] = linear_params(keys[1], n_input[1], n_embedding)
    p["en_lin_w"], p["en_lin_b"] = linear_params(keys[2], n_embedding, n_hidden)
    p["de_p_w"], p["de_p_b"] = linear_params(keys[3], n_input[0], n_embedding)
    p["de_ts_w"], p["de_ts_b"] = linear_params(keys[4], n_input[1], n_embedding)
    p["de_lin_w"], p["de_lin_b"] = linear_params(keys[5], n_embedding, n_hidden)
    (p["enc_w_ih"], p["enc_w_hh"], p["enc_b_ih"], p["enc_b_hh"]) = gru_stack(
        keys[6], layer[0], n_hidden, n_hidden)
    p["enc_ln_g"], p["enc_ln_b"] = ln_stack(keys[7], layer[0], n_hidden)
    (p["dec_w_ih"], p["dec_w_hh"], p["dec_b_ih"], p["dec_b_hh"]) = gru_stack(
        keys[8], layer[1], n_hidden, n_hidden)
    p["dec_ln_g"], p["dec_ln_b"] = ln_stack(keys[9], layer[1], n_hidden)
    p["head_w"], p["head_b"] = linear_params(keys[10], n_hidden, 2)
    return p


def pack_params(p):
    """Consolidate the ~30 module tensors into a few lane-dense kernel slabs."""
    bf = lambda x: x.astype(jnp.bfloat16)
    kp = {}
    # Combined [p|ts] embedding: one matmul instead of two per branch.
    kp["emb_w"] = bf(jnp.stack([
        jnp.concatenate([p["en_p_w"], p["en_ts_w"]], axis=0),
        jnp.concatenate([p["de_p_w"], p["de_ts_w"]], axis=0)]))        # (2, np+nts, E)
    kp["emb_b"] = jnp.stack([p["en_p_b"] + p["en_ts_b"],
                             p["de_p_b"] + p["de_ts_b"]])              # (2, 1, E)
    kp["lin_w"] = bf(jnp.stack([p["en_lin_w"], p["de_lin_w"]]))        # (2, E, H)
    kp["lin_b"] = jnp.stack([p["en_lin_b"], p["de_lin_b"]])            # (2, 1, H)
    kp["enc_w_ih"] = bf(p["enc_w_ih"])                                 # (L, H, 3H)
    kp["enc_w_hh"] = bf(p["enc_w_hh"])
    kp["enc_bias"] = jnp.concatenate([p["enc_b_ih"], p["enc_b_hh"]], axis=1)  # (L, 2, 3H)
    kp["enc_ln"] = jnp.concatenate([p["enc_ln_g"], p["enc_ln_b"]], axis=1)    # (L, 2, H)
    kp["dec_w_ih"] = bf(p["dec_w_ih"])
    kp["dec_w_hh"] = bf(p["dec_w_hh"])
    kp["dec_bias"] = jnp.concatenate([p["dec_b_ih"], p["dec_b_hh"]], axis=1)
    kp["dec_ln"] = jnp.concatenate([p["dec_ln_g"], p["dec_ln_b"]], axis=1)
    kp["head_w"] = bf(jnp.pad(p["head_w"], ((0, 0), (0, HEAD_PAD - NCLS))))   # (H, 128)
    kp["head_b"] = jnp.pad(p["head_b"], ((0, 0), (0, HEAD_PAD - NCLS)))       # (1, 128)
    return kp


# ----------------------------------------------------------------------------
# Pure-JAX (XLA) reference of the same forward, for numerical validation.
# matmul_dtype=bfloat16 reproduces the kernel's MXU numerics (f32 accumulation);
# matmul_dtype=float32 is the full-precision reference.
# ----------------------------------------------------------------------------
def forward_reference(params, en_p, en_ts, de_p, de_ts, *, len_seq, n_hidden,
                      matmul_dtype=jnp.float32):
    B, T, H = en_p.shape[0], len_seq, n_hidden

    def dot(a, b):
        return jnp.dot(a.astype(matmul_dtype), b.astype(matmul_dtype),
                       preferred_element_type=jnp.float32,
                       precision=lax.Precision.HIGHEST)

    def linear(x, w, b):
        return dot(x, w) + b

    def gru(x_bth, h0, w_ih, w_hh, b_ih, b_hh):
        h = h0
        ys = []
        for t in range(T):
            gi = dot(x_bth[:, t, :], w_ih) + b_ih
            gh = dot(h, w_hh) + b_hh
            r = jax.nn.sigmoid(gi[:, :H] + gh[:, :H])
            z = jax.nn.sigmoid(gi[:, H:2 * H] + gh[:, H:2 * H])
            n = jnp.tanh(gi[:, 2 * H:] + r * gh[:, 2 * H:])
            h = (1.0 - z) * n + z * h
            ys.append(h)
        return jnp.stack(ys, axis=1), h

    def ln_relu(x, g, b):
        mean = jnp.mean(x, -1, keepdims=True)
        xc = x - mean
        var = jnp.mean(xc * xc, -1, keepdims=True)
        return jnp.maximum(xc * lax.rsqrt(var + 1e-5) * g + b, 0.0)

    en_x = linear(linear(en_p.reshape(-1, en_p.shape[-1]), params["en_p_w"], params["en_p_b"])
                  + linear(en_ts.reshape(-1, en_ts.shape[-1]), params["en_ts_w"], params["en_ts_b"]),
                  params["en_lin_w"], params["en_lin_b"]).reshape(B, T, H)
    hidden_list = []
    h0 = jnp.zeros((B, H), jnp.float32)
    hx = h0
    for l in range(params["enc_w_ih"].shape[0]):
        y, hx = gru(en_x, h0, params["enc_w_ih"][l], params["enc_w_hh"][l],
                    params["enc_b_ih"][l], params["enc_b_hh"][l])
        hidden_list.append(y)
        en_x = ln_relu(y, params["enc_ln_g"][l], params["enc_ln_b"][l])

    de_x = linear(linear(de_p.reshape(-1, de_p.shape[-1]), params["de_p_w"], params["de_p_b"])
                  + linear(de_ts.reshape(-1, de_ts.shape[-1]), params["de_ts_w"], params["de_ts_b"]),
                  params["de_lin_w"], params["de_lin_b"]).reshape(B, T, H)
    for l in range(params["dec_w_ih"].shape[0]):
        y, _ = gru(de_x, hx, params["dec_w_ih"][l], params["dec_w_hh"][l],
                   params["dec_b_ih"][l], params["dec_b_hh"][l])
        de_x = ln_relu(y, params["dec_ln_g"][l], params["dec_ln_b"][l])

    logits = linear(de_x[:, -1, :], params["head_w"], params["head_b"])
    return jax.nn.softmax(logits, axis=1), hidden_list


if __name__ == "__main__":
    # Small, module-consistent config.
    n_input = [77, 4]
    layer = [3, 2]
    n_embedding = 64
    n_hidden = 128
    len_seq = 5
    B = 2

    key = jax.random.PRNGKey(0)
    k_params, k_ep, k_ets, k_dp, k_dts = jax.random.split(key, 5)

    params = init_params(k_params, n_input, layer, n_embedding, n_hidden)
    kparams = pack_params(params)   # pack & bf16-cast weights once, outside jit

    en_p = jax.random.normal(k_ep, (B, len_seq, n_input[0]), jnp.float32)
    en_ts = jax.random.normal(k_ets, (B, len_seq, n_input[1]), jnp.float32)
    de_p = jax.random.normal(k_dp, (B, len_seq, n_input[0]), jnp.float32)
    de_ts = jax.random.normal(k_dts, (B, len_seq, n_input[1]), jnp.float32)
    mask = jnp.ones((B, len_seq), jnp.float32)

    out, hidden_list = forward(kparams, en_p, en_ts, de_p, de_ts, mask,
                               len_seq=len_seq, n_hidden=n_hidden)
    out = jax.block_until_ready(out)
    hidden_list = [jax.block_until_ready(h) for h in hidden_list]

    # shape / sanity checks
    assert out.shape == (B, 2)
    assert len(hidden_list) == layer[0]
    assert all(h.shape == (B, len_seq, n_hidden) for h in hidden_list)
    assert bool(jnp.all(jnp.isfinite(out)))
    assert bool(jnp.allclose(jnp.sum(out, axis=1), 1.0, atol=1e-5))

    # (1) strict implementation check vs a pure-JAX reference that uses the SAME
    #     bf16-operand / f32-accumulate matmul numerics as the kernel.
    ref_out, ref_hidden = forward_reference(params, en_p, en_ts, de_p, de_ts,
                                            len_seq=len_seq, n_hidden=n_hidden,
                                            matmul_dtype=jnp.bfloat16)
    np.testing.assert_allclose(np.asarray(out), np.asarray(ref_out), rtol=1e-2, atol=1e-2)
    for h, hr in zip(hidden_list, ref_hidden):
        np.testing.assert_allclose(np.asarray(h), np.asarray(hr), rtol=1e-2, atol=1e-2)

    # (2) loose sanity check vs the full-f32 reference (bounds the bf16 drift
    #     accumulated through the 5-layer recurrence).
    f32_out, f32_hidden = forward_reference(params, en_p, en_ts, de_p, de_ts,
                                            len_seq=len_seq, n_hidden=n_hidden,
                                            matmul_dtype=jnp.float32)
    np.testing.assert_allclose(np.asarray(out), np.asarray(f32_out), rtol=2e-1, atol=2e-1)
    for h, hr in zip(hidden_list, f32_hidden):
        np.testing.assert_allclose(np.asarray(h), np.asarray(hr), rtol=2e-1, atol=2e-1)

    print("KERNEL_OK")
</pallas_src>

<mosaic_0001>
module attributes {stable_mosaic.version = 11 : i64} {
  func.func @fused_forward_kernel(%arg0: memref<40x81xf32, #tpu.memory_space<vmem>>, %arg1: memref<40x81xf32, #tpu.memory_space<vmem>>, %arg2: memref<2x81x64xbf16, #tpu.memory_space<vmem>>, %arg3: memref<2x1x64xf32, #tpu.memory_space<vmem>>, %arg4: memref<2x64x128xbf16, #tpu.memory_space<vmem>>, %arg5: memref<2x1x128xf32, #tpu.memory_space<vmem>>, %arg6: memref<3x128x384xbf16, #tpu.memory_space<vmem>>, %arg7: memref<3x128x384xbf16, #tpu.memory_space<vmem>>, %arg8: memref<3x2x384xf32, #tpu.memory_space<vmem>>, %arg9: memref<3x2x128xf32, #tpu.memory_space<vmem>>, %arg10: memref<2x128x384xbf16, #tpu.memory_space<vmem>>, %arg11: memref<2x128x384xbf16, #tpu.memory_space<vmem>>, %arg12: memref<2x2x384xf32, #tpu.memory_space<vmem>>, %arg13: memref<2x2x128xf32, #tpu.memory_space<vmem>>, %arg14: memref<128x128xbf16, #tpu.memory_space<vmem>>, %arg15: memref<1x128xf32, #tpu.memory_space<vmem>>, %arg16: memref<8x128xf32, #tpu.memory_space<vmem>>, %arg17: memref<120x128xf32, #tpu.memory_space<vmem>>, %arg18: memref<40x384xf32, #tpu.memory_space<vmem>>) attributes {dimension_semantics = [], scalar_prefetch = 0 : i64, scratch_operands = 1 : i64, tpu.core_type = #tpu.core_type<tc>} {
    %c0 = arith.constant 0 : index
    %c0_0 = arith.constant 0 : index
    %0 = vector.load %arg0[%c0, %c0_0] : memref<40x81xf32, #tpu.memory_space<vmem>>, vector<40x81xf32>
    %1 = arith.truncf %0 : vector<40x81xf32> to vector<40x81xbf16>
    %c0_1 = arith.constant 0 : index
    %c0_2 = arith.constant 0 : index
    %c0_3 = arith.constant 0 : index
    %2 = vector.load %arg2[%c0_1, %c0_2, %c0_3] : memref<2x81x64xbf16, #tpu.memory_space<vmem>>, vector<1x81x64xbf16>
    %3 = vector.shape_cast %2 : vector<1x81x64xbf16> to vector<81x64xbf16>
    %cst = arith.constant dense<0.000000e+00> : vector<40x64xf32>
    %4 = tpu.matmul %1, %3, %cst {dimension_numbers = #tpu.dot_dimension_numbers<[1], [0], [0], [1], [0, 0, 1, 1], [], []>} : vector<40x81xbf16>, vector<81x64xbf16>, vector<40x64xf32> -> vector<40x64xf32>
    %c0_4 = arith.constant 0 : index
    %c0_5 = arith.constant 0 : index
    %c0_6 = arith.constant 0 : index
    %5 = vector.load %arg3[%c0_4, %c0_5, %c0_6] : memref<2x1x64xf32, #tpu.memory_space<vmem>>, vector<1x1x64xf32>
    %6 = vector.shape_cast %5 : vector<1x1x64xf32> to vector<1x64xf32>
    %7 = vector.broadcast %6 : vector<1x64xf32> to vector<40x64xf32>
    %8 = arith.addf %4, %7 : vector<40x64xf32>
    %9 = arith.truncf %8 : vector<40x64xf32> to vector<40x64xbf16>
    %c0_7 = arith.constant 0 : index
    %c0_8 = arith.constant 0 : index
    %c0_9 = arith.constant 0 : index
    %10 = vector.load %arg4[%c0_7, %c0_8, %c0_9] : memref<2x64x128xbf16, #tpu.memory_space<vmem>>, vector<1x64x128xbf16>
    %11 = vector.shape_cast %10 : vector<1x64x128xbf16> to vector<64x128xbf16>
    %cst_10 = arith.constant dense<0.000000e+00> : vector<40x128xf32>
    %12 = tpu.matmul %9, %11, %cst_10 {dimension_numbers = #tpu.dot_dimension_numbers<[1], [0], [0], [1], [0, 0, 1, 1], [], []>} : vector<40x64xbf16>, vector<64x128xbf16>, vector<40x128xf32> -> vector<40x128xf32>
    %c0_11 = arith.constant 0 : index
    %c0_12 = arith.constant 0 : index
    %c0_13 = arith.constant 0 : index
    %13 = vector.load %arg5[%c0_11, %c0_12, %c0_13] : memref<2x1x128xf32, #tpu.memory_space<vmem>>, vector<1x1x128xf32>
    %14 = vector.shape_cast %13 : vector<1x1x128xf32> to vector<1x128xf32>
    %15 = vector.broadcast %14 : vector<1x128xf32> to vector<40x128xf32>
    %16 = arith.addf %12, %15 : vector<40x128xf32>
    %17 = arith.truncf %16 : vector<40x128xf32> to vector<40x128xbf16>
    %c0_14 = arith.constant 0 : index
    %c0_15 = arith.constant 0 : index
    %c0_16 = arith.constant 0 : index
    %18 = vector.load %arg6[%c0_14, %c0_15, %c0_16] : memref<3x128x384xbf16, #tpu.memory_space<vmem>>, vector<1x128x384xbf16>
    %19 = vector.shape_cast %18 : vector<1x128x384xbf16> to vector<128x384xbf16>
    %cst_17 = arith.constant dense<0.000000e+00> : vector<40x384xf32>
    %20 = tpu.matmul %17, %19, %cst_17 {dimension_numbers = #tpu.dot_dimension_numbers<[1], [0], [0], [1], [0, 0, 1, 1], [], []>} : vector<40x128xbf16>, vector<128x384xbf16>, vector<40x384xf32> -> vector<40x384xf32>
    %c0_18 = arith.constant 0 : index
    %c0_19 = arith.constant 0 : index
    %c0_20 = arith.constant 0 : index
    %21 = vector.load %arg8[%c0_18, %c0_19, %c0_20] : memref<3x2x384xf32, #tpu.memory_space<vmem>>, vector<1x2x384xf32>
    %22 = vector.shape_cast %21 : vector<1x2x384xf32> to vector<2x384xf32>
    %23 = vector.extract_strided_slice %22 {offsets = [0, 0], sizes = [1, 384], strides = [1, 1]} : vector<2x384xf32> to vector<1x384xf32>
    %24 = vector.broadcast %23 : vector<1x384xf32> to vector<40x384xf32>
    %25 = arith.addf %20, %24 : vector<40x384xf32>
    %c0_21 = arith.constant 0 : index
    %c0_22 = arith.constant 0 : index
    %26 = vector.load %arg18[%c0_21, %c0_22] : memref<40x384xf32, #tpu.memory_space<vmem>>, vector<40x384xf32>
    tpu.vector_store %arg18[%c0_21, %c0_22], %25 {strides = array<i32>} : memref<40x384xf32, #tpu.memory_space<vmem>>, vector<40x384xf32>,
    %cst_23 = arith.constant 0.000000e+00 : f32
    %27 = vector.broadcast %cst_23 : f32 to vector<8x128xf32>
    %cst_24 = arith.constant 0.000000e+00 : f32
    %28 = vector.broadcast %cst_24 : f32 to vector<8x128xf32>
    %cst_25 = arith.constant 0.000000e+00 : f32
    %29 = vector.broadcast %cst_25 : f32 to vector<8x128xf32>
    %c0_26 = arith.constant 0 : index
    %c0_27 = arith.constant 0 : index
    %c0_28 = arith.constant 0 : index
    %30 = vector.load %arg8[%c0_26, %c0_27, %c0_28] : memref<3x2x384xf32, #tpu.memory_space<vmem>>, vector<1x2x384xf32>
    %31 = vector.shape_cast %30 : vector<1x2x384xf32> to vector<2x384xf32>
    %c0_29 = arith.constant 0 : index
    %c0_30 = arith.constant 0 : index
    %32 = vector.load %arg18[%c0_29, %c0_30] : memref<40x384xf32, #tpu.memory_space<vmem>>, vector<8x384xf32>
    %33 = vector.extract_strided_slice %31 {offsets = [1, 0], sizes = [1, 384], strides = [1, 1]} : vector<2x384xf32> to vector<1x384xf32>
    %34 = arith.truncf %27 : vector<8x128xf32> to vector<8x128xbf16>
    %c0_31 = arith.constant 0 : index
    %c0_32 = arith.constant 0 : index
    %c0_33 = arith.constant 0 : index
    %35 = vector.load %arg7[%c0_31, %c0_32, %c0_33] : memref<3x128x384xbf16, #tpu.memory_space<vmem>>, vector<1x128x384xbf16>
    %36 = vector.shape_cast %35 : vector<1x128x384xbf16> to vector<128x384xbf16>
    %cst_34 = arith.constant dense<0.000000e+00> : vector<8x384xf32>
    %37 = tpu.matmul %34, %36, %cst_34 {dimension_numbers = #tpu.dot_dimension_numbers<[1], [0], [0], [1], [0, 0, 1, 1], [], []>} : vector<8x128xbf16>, vector<128x384xbf16>, vector<8x384xf32> -> vector<8x384xf32>
    %38 = vector.broadcast %33 : vector<1x384xf32> to vector<8x384xf32>
    %39 = arith.addf %37, %38 : vector<8x384xf32>
    %40 = vector.extract_strided_slice %32 {offsets = [0, 0], sizes = [8, 128], strides = [1, 1]} : vector<8x384xf32> to vector<8x128xf32>
    %41 = vector.extract_strided_slice %39 {offsets = [0, 0], sizes = [8, 128], strides = [1, 1]} : vector<8x384xf32> to vector<8x128xf32>
    %42 = arith.addf %40, %41 : vector<8x128xf32>
    %43 = arith.negf %42 : vector<8x128xf32>
    %44 = math.exp %43 : vector<8x128xf32>
    %cst_35 = arith.constant 1.000000e+00 : f32
    %45 = vector.broadcast %cst_35 : f32 to vector<8x128xf32>
    %46 = arith.addf %45, %44 : vector<8x128xf32>
    %47 = arith.divf %45, %46 : vector<8x128xf32>
    %48 = vector.extract_strided_slice %32 {offsets = [0, 128], sizes = [8, 128], strides = [1, 1]} : vector<8x384xf32> to vector<8x128xf32>
    %49 = vector.extract_strided_slice %39 {offsets = [0, 128], sizes = [8, 128], strides = [1, 1]} : vector<8x384xf32> to vector<8x128xf32>
    %50 = arith.addf %48, %49 : vector<8x128xf32>
    %51 = arith.negf %50 : vector<8x128xf32>
    %52 = math.exp %51 : vector<8x128xf32>
    %cst_36 = arith.constant 1.000000e+00 : f32
    %53 = vector.broadcast %cst_36 : f32 to vector<8x128xf32>
    %54 = arith.addf %53, %52 : vector<8x128xf32>
    %55 = arith.divf %53, %54 : vector<8x128xf32>
    %56 = vector.extract_strided_slice %32 {offsets = [0, 256], sizes = [8, 128], strides = [1, 1]} : vector<8x384xf32> to vector<8x128xf32>
    %57 = vector.extract_strided_slice %39 {offsets = [0, 256], sizes = [8, 128], strides = [1, 1]} : vector<8x384xf32> to vector<8x128xf32>
    %58 = arith.mulf %47, %57 : vector<8x128xf32>
    %59 = arith.addf %56, %58 : vector<8x128xf32>
    %60 = math.tanh %59 : vector<8x128xf32>
    %cst_37 = arith.constant 1.000000e+00 : f32
    %61 = vector.broadcast %cst_37 : f32 to vector<8x128xf32>
    %62 = arith.subf %61, %55 : vector<8x128xf32>
    %63 = arith.mulf %62, %60 : vector<8x128xf32>
    %64 = arith.mulf %55, %27 : vector<8x128xf32>
    %65 = arith.addf %63, %64 : vector<8x128xf32>
    %c0_38 = arith.constant 0 : index
    %c0_39 = arith.constant 0 : index
    %66 = vector.load %arg17[%c0_38, %c0_39] : memref<120x128xf32, #tpu.memory_space<vmem>>, vector<8x128xf32>
    tpu.vector_store %arg17[%c0_38, %c0_39], %65 {strides = array<i32>} : memref<120x128xf32, #tpu.memory_space<vmem>>, vector<8x128xf32>,
    %c1 = arith.constant 1 : index
    %c0_40 = arith.constant 0 : index
    %c0_41 = arith.constant 0 : index
    %67 = vector.load %arg8[%c1, %c0_40, %c0_41] : memref<3x2x384xf32, #tpu.memory_space<vmem>>, vector<1x2x384xf32>
    %68 = vector.shape_cast %67 : vector<1x2x384xf32> to vector<2x384xf32>
    %c0_42 = arith.constant 0 : index
    %c0_43 = arith.constant 0 : index
    %c0_44 = arith.constant 0 : index
    %69 = vector.load %arg9[%c0_42, %c0_43, %c0_44] : memref<3x2x128xf32, #tpu.memory_space<vmem>>, vector<1x2x128xf32>
    %70 = vector.shape_cast %69 : vector<1x2x128xf32> to vector<2x128xf32>
    %71 = vector.extract_strided_slice %70 {offsets = [0, 0], sizes = [1, 128], strides = [1, 1]} : vector<2x128xf32> to vector<1x128xf32>
    %72 = vector.extract_strided_slice %70 {offsets = [1, 0], sizes = [1, 128], strides = [1, 1]} : vector<2x128xf32> to vector<1x128xf32>
    %cst_45 = arith.constant dense<0.000000e+00> : vector<8xf32>
    %73 = vector.multi_reduction <add>, %65, %cst_45 [1] : vector<8x128xf32> to vector<8xf32>
    %74 = vector.shape_cast %73 : vector<8xf32> to vector<8x1xf32>
    %cst_46 = arith.constant 1.280000e+02 : f32
    %75 = vector.broadcast %cst_46 : f32 to vector<8x1xf32>
    %76 = arith.divf %74, %75 : vector<8x1xf32>
    %77 = vector.broadcast %76 : vector<8x1xf32> to vector<8x128xf32>
    %78 = arith.subf %65, %77 : vector<8x128xf32>
    %79 = arith.mulf %78, %78 : vector<8x128xf32>
    %cst_47 = arith.constant dense<0.000000e+00> : vector<8xf32>
    %80 = vector.multi_reduction <add>, %79, %cst_47 [1] : vector<8x128xf32> to vector<8xf32>
    %81 = vector.shape_cast %80 : vector<8xf32> to vector<8x1xf32>
    %cst_48 = arith.constant 1.280000e+02 : f32
    %82 = vector.broadcast %cst_48 : f32 to vector<8x1xf32>
    %83 = arith.divf %81, %82 : vector<8x1xf32>
    %cst_49 = arith.constant 9.99999974E-6 : f32
    %84 = vector.broadcast %cst_49 : f32 to vector<8x1xf32>
    %85 = arith.addf %83, %84 : vector<8x1xf32>
    %86 = math.rsqrt %85 : vector<8x1xf32>
    %87 = vector.broadcast %86 : vector<8x1xf32> to vector<8x128xf32>
    %88 = arith.mulf %78, %87 : vector<8x128xf32>
    %89 = vector.broadcast %71 : vector<1x128xf32> to vector<8x128xf32>
    %90 = arith.mulf %88, %89 : vector<8x128xf32>
    %91 = vector.broadcast %72 : vector<1x128xf32> to vector<8x128xf32>
    %92 = arith.addf %90, %91 : vector<8x128xf32>
    %cst_50 = arith.constant 0.000000e+00 : f32
    %93 = vector.broadcast %cst_50 : f32 to vector<8x128xf32>
    %94 = arith.maximumf %92, %93 : vector<8x128xf32>
    %95 = arith.truncf %94 : vector<8x128xf32> to vector<8x128xbf16>
    %c1_51 = arith.constant 1 : index
    %c0_52 = arith.constant 0 : index
    %c0_53 = arith.constant 0 : index
    %96 = vector.load %arg6[%c1_51, %c0_52, %c0_53] : memref<3x128x384xbf16, #tpu.memory_space<vmem>>, vector<1x128x384xbf16>
    %97 = vector.shape_cast %96 : vector<1x128x384xbf16> to vector<128x384xbf16>
    %cst_54 = arith.constant dense<0.000000e+00> : vector<8x384xf32>
    %98 = tpu.matmul %95, %97, %cst_54 {dimension_numbers = #tpu.dot_dimension_numbers<[1], [0], [0], [1], [0, 0, 1, 1], [], []>} : vector<8x128xbf16>, vector<128x384xbf16>, vector<8x384xf32> -> vector<8x384xf32>
    %99 = vector.extract_strided_slice %68 {offsets = [0, 0], sizes = [1, 384], strides = [1, 1]} : vector<2x384xf32> to vector<1x384xf32>
    %100 = vector.broadcast %99 : vector<1x384xf32> to vector<8x384xf32>
    %101 = arith.addf %98, %100 : vector<8x384xf32>
    %102 = vector.extract_strided_slice %68 {offsets = [1, 0], sizes = [1, 384], strides = [1, 1]} : vector<2x384xf32> to vector<1x384xf32>
    %103 = arith.truncf %28 : vector<8x128xf32> to vector<8x128xbf16>
    %c1_55 = arith.constant 1 : index
    %c0_56 = arith.constant 0 : index
    %c0_57 = arith.constant 0 : index
    %104 = vector.load %arg7[%c1_55, %c0_56, %c0_57] : memref<3x128x384xbf16, #tpu.memory_space<vmem>>, vector<1x128x384xbf16>
    %105 = vector.shape_cast %104 : vector<1x128x384xbf16> to vector<128x384xbf16>
    %cst_58 = arith.constant dense<0.000000e+00> : vector<8x384xf32>
    %106 = tpu.matmul %103, %105, %cst_58 {dimension_numbers = #tpu.dot_dimension_numbers<[1], [0], [0], [1], [0, 0, 1, 1], [], []>} : vector<8x128xbf16>, vector<128x384xbf16>, vector<8x384xf32> -> vector<8x384xf32>
    %107 = vector.broadcast %102 : vector<1x384xf32> to vector<8x384xf32>
    %108 = arith.addf %106, %107 : vector<8x384xf32>
    %109 = vector.extract_strided_slice %101 {offsets = [0, 0], sizes = [8, 128], strides = [1, 1]} : vector<8x384xf32> to vector<8x128xf32>
    %110 = vector.extract_strided_slice %108 {offsets = [0, 0], sizes = [8, 128], strides = [1, 1]} : vector<8x384xf32> to vector<8x128xf32>
    %111 = arith.addf %109, %110 : vector<8x128xf32>
    %112 = arith.negf %111 : vector<8x128xf32>
    %113 = math.exp %112 : vector<8x128xf32>
    %cst_59 = arith.constant 1.000000e+00 : f32
    %114 = vector.broadcast %cst_59 : f32 to vector<8x128xf32>
    %115 = arith.addf %114, %113 : vector<8x128xf32>
    %116 = arith.divf %114, %115 : vector<8x128xf32>
    %117 = vector.extract_strided_slice %101 {offsets = [0, 128], sizes = [8, 128], strides = [1, 1]} : vector<8x384xf32> to vector<8x128xf32>
    %118 = vector.extract_strided_slice %108 {offsets = [0, 128], sizes = [8, 128], strides = [1, 1]} : vector<8x384xf32> to vector<8x128xf32>
    %119 = arith.addf %117, %118 : vector<8x128xf32>
    %120 = arith.negf %119 : vector<8x128xf32>
    %121 = math.exp %120 : vector<8x128xf32>
    %cst_60 = arith.constant 1.000000e+00 : f32
    %122 = vector.broadcast %cst_60 : f32 to vector<8x128xf32>
    %123 = arith.addf %122, %121 : vector<8x128xf32>
    %124 = arith.divf %122, %123 : vector<8x128xf32>
    %125 = vector.extract_strided_slice %101 {offsets = [0, 256], sizes = [8, 128], strides = [1, 1]} : vector<8x384xf32> to vector<8x128xf32>
    %126 = vector.extract_strided_slice %108 {offsets = [0, 256], sizes = [8, 128], strides = [1, 1]} : vector<8x384xf32> to vector<8x128xf32>
    %127 = arith.mulf %116, %126 : vector<8x128xf32>
    %128 = arith.addf %125, %127 : vector<8x128xf32>
    %129 = math.tanh %128 : vector<8x128xf32>
    %cst_61 = arith.constant 1.000000e+00 : f32
    %130 = vector.broadcast %cst_61 : f32 to vector<8x128xf32>
    %131 = arith.subf %130, %124 : vector<8x128xf32>
    %132 = arith.mulf %131, %129 : vector<8x128xf32>
    %133 = arith.mulf %124, %28 : vector<8x128xf32>
    %134 = arith.addf %132, %133 : vector<8x128xf32>
    %c40 = arith.constant 40 : index
    %c0_62 = arith.constant 0 : index
    %135 = vector.load %arg17[%c40, %c0_62] : memref<120x128xf32, #tpu.memory_space<vmem>>, vector<8x128xf32>
    tpu.vector_store %arg17[%c40, %c0_62], %134 {strides = array<i32>} : memref<120x128xf32, #tpu.memory_space<vmem>>, vector<8x128xf32>,
    %c2 = arith.constant 2 : index
    %c0_63 = arith.constant 0 : index
    %c0_64 = arith.constant 0 : index
    %136 = vector.load %arg8[%c2, %c0_63, %c0_64] : memref<3x2x384xf32, #tpu.memory_space<vmem>>, vector<1x2x384xf32>
    %137 = vector.shape_cast %136 : vector<1x2x384xf32> to vector<2x384xf32>
    %c1_65 = arith.constant 1 : index
    %c0_66 = arith.constant 0 : index
    %c0_67 = arith.constant 0 : index
    %138 = vector.load %arg9[%c1_65, %c0_66, %c0_67] : memref<3x2x128xf32, #tpu.memory_space<vmem>>, vector<1x2x128xf32>
    %139 = vector.shape_cast %138 : vector<1x2x128xf32> to vector<2x128xf32>
    %140 = vector.extract_strided_slice %139 {offsets = [0, 0], sizes = [1, 128], strides = [1, 1]} : vector<2x128xf32> to vector<1x128xf32>
    %141 = vector.extract_strided_slice %139 {offsets = [1, 0], sizes = [1, 128], strides = [1, 1]} : vector<2x128xf32> to vector<1x128xf32>
    %cst_68 = arith.constant dense<0.000000e+00> : vector<8xf32>
    %142 = vector.multi_reduction <add>, %134, %cst_68 [1] : vector<8x128xf32> to vector<8xf32>
    %143 = vector.shape_cast %142 : vector<8xf32> to vector<8x1xf32>
    %cst_69 = arith.constant 1.280000e+02 : f32
    %144 = vector.broadcast %cst_69 : f32 to vector<8x1xf32>
    %145 = arith.divf %143, %144 : vector<8x1xf32>
    %146 = vector.broadcast %145 : vector<8x1xf32> to vector<8x128xf32>
    %147 = arith.subf %134, %146 : vector<8x128xf32>
    %148 = arith.mulf %147, %147 : vector<8x128xf32>
    %cst_70 = arith.constant dense<0.000000e+00> : vector<8xf32>
    %149 = vector.multi_reduction <add>, %148, %cst_70 [1] : vector<8x128xf32> to vector<8xf32>
    %150 = vector.shape_cast %149 : vector<8xf32> to vector<8x1xf32>
    %cst_71 = arith.constant 1.280000e+02 : f32
    %151 = vector.broadcast %cst_71 : f32 to vector<8x1xf32>
    %152 = arith.divf %150, %151 : vector<8x1xf32>
    %cst_72 = arith.constant 9.99999974E-6 : f32
    %153 = vector.broadcast %cst_72 : f32 to vector<8x1xf32>
    %154 = arith.addf %152, %153 : vector<8x1xf32>
    %155 = math.rsqrt %154 : vector<8x1xf32>
    %156 = vector.broadcast %155 : vector<8x1xf32> to vector<8x128xf32>
    %157 = arith.mulf %147, %156 : vector<8x128xf32>
    %158 = vector.broadcast %140 : vector<1x128xf32> to vector<8x128xf32>
    %159 = arith.mulf %157, %158 : vector<8x128xf32>
    %160 = vector.broadcast %141 : vector<1x128xf32> to vector<8x128xf32>
    %161 = arith.addf %159, %160 : vector<8x128xf32>
    %cst_73 = arith.constant 0.000000e+00 : f32
    %162 = vector.broadcast %cst_73 : f32 to vector<8x128xf32>
    %163 = arith.maximumf %161, %162 : vector<8x128xf32>
    %164 = arith.truncf %163 : vector<8x128xf32> to vector<8x128xbf16>
    %c2_74 = arith.constant 2 : index
    %c0_75 = arith.constant 0 : index
    %c0_76 = arith.constant 0 : index
    %165 = vector.load %arg6[%c2_74, %c0_75, %c0_76] : memref<3x128x384xbf16, #tpu.memory_space<vmem>>, vector<1x128x384xbf16>
    %166 = vector.shape_cast %165 : vector<1x128x384xbf16> to vector<128x384xbf16>
    %cst_77 = arith.constant dense<0.000000e+00> : vector<8x384xf32>
    %167 = tpu.matmul %164, %166, %cst_77 {dimension_numbers = #tpu.dot_dimension_numbers<[1], [0], [0], [1], [0, 0, 1, 1], [], []>} : vector<8x128xbf16>, vector<128x384xbf16>, vector<8x384xf32> -> vector<8x384xf32>
    %168 = vector.extract_strided_slice %137 {offsets = [0, 0], sizes = [1, 384], strides = [1, 1]} : vector<2x384xf32> to vector<1x384xf32>
    %169 = vector.broadcast %168 : vector<1x384xf32> to vector<8x384xf32>
    %170 = arith.addf %167, %169 : vector<8x384xf32>
    %171 = vector.extract_strided_slice %137 {offsets = [1, 0], sizes = [1, 384], strides = [1, 1]} : vector<2x384xf32> to vector<1x384xf32>
    %172 = arith.truncf %29 : vector<8x128xf32> to vector<8x128xbf16>
    %c2_78 = arith.constant 2 : index
    %c0_79 = arith.constant 0 : index
    %c0_80 = arith.constant 0 : index
    %173 = vector.load %arg7[%c2_78, %c0_79, %c0_80] : memref<3x128x384xbf16, #tpu.memory_space<vmem>>, vector<1x128x384xbf16>
    %174 = vector.shape_cast %173 : vector<1x128x384xbf16> to vector<128x384xbf16>
    %cst_81 = arith.constant dense<0.000000e+00> : vector<8x384xf32>
    %175 = tpu.matmul %172, %174, %cst_81 {dimension_numbers = #tpu.dot_dimension_numbers<[1], [0], [0], [1], [0, 0, 1, 1], [], []>} : vector<8x128xbf16>, vector<128x384xbf16>, vector<8x384xf32> -> vector<8x384xf32>
    %176 = vector.broadcast %171 : vector<1x384xf32> to vector<8x384xf32>
    %177 = arith.addf %175, %176 : vector<8x384xf32>
    %178 = vector.extract_strided_slice %170 {offsets = [0, 0], sizes = [8, 128], strides = [1, 1]} : vector<8x384xf32> to vector<8x128xf32>
    %179 = vector.extract_strided_slice %177 {offsets = [0, 0], sizes = [8, 128], strides = [1, 1]} : vector<8x384xf32> to vector<8x128xf32>
    %180 = arith.addf %178, %179 : vector<8x128xf32>
    %181 = arith.negf %180 : vector<8x128xf32>
    %182 = math.exp %181 : vector<8x128xf32>
    %cst_82 = arith.constant 1.000000e+00 : f32
    %183 = vector.broadcast %cst_82 : f32 to vector<8x128xf32>
    %184 = arith.addf %183, %182 : vector<8x128xf32>
    %185 = arith.divf %183, %184 : vector<8x128xf32>
    %186 = vector.extract_strided_slice %170 {offsets = [0, 128], sizes = [8, 128], strides = [1, 1]} : vector<8x384xf32> to vector<8x128xf32>
    %187 = vector.extract_strided_slice %177 {offsets = [0, 128], sizes = [8, 128], strides = [1, 1]} : vector<8x384xf32> to vector<8x128xf32>
    %188 = arith.addf %186, %187 : vector<8x128xf32>
    %189 = arith.negf %188 : vector<8x128xf32>
    %190 = math.exp %189 : vector<8x128xf32>
    %cst_83 = arith.constant 1.000000e+00 : f32
    %191 = vector.broadcast %cst_83 : f32 to vector<8x128xf32>
    %192 = arith.addf %191, %190 : vector<8x128xf32>
    %193 = arith.divf %191, %192 : vector<8x128xf32>
    %194 = vector.extract_strided_slice %170 {offsets = [0, 256], sizes = [8, 128], strides = [1, 1]} : vector<8x384xf32> to vector<8x128xf32>
    %195 = vector.extract_strided_slice %177 {offsets = [0, 256], sizes = [8, 128], strides = [1, 1]} : vector<8x384xf32> to vector<8x128xf32>
    %196 = arith.mulf %185, %195 : vector<8x128xf32>
    %197 = arith.addf %194, %196 : vector<8x128xf32>
    %198 = math.tanh %197 : vector<8x128xf32>
    %cst_84 = arith.constant 1.000000e+00 : f32
    %199 = vector.broadcast %cst_84 : f32 to vector<8x128xf32>
    %200 = arith.subf %199, %193 : vector<8x128xf32>
    %201 = arith.mulf %200, %198 : vector<8x128xf32>
    %202 = arith.mulf %193, %29 : vector<8x128xf32>
    %203 = arith.addf %201, %202 : vector<8x128xf32>
    %c80 = arith.constant 80 : index
    %c0_85 = arith.constant 0 : index
    %204 = vector.load %arg17[%c80, %c0_85] : memref<120x128xf32, #tpu.memory_space<vmem>>, vector<8x128xf32>
    tpu.vector_store %arg17[%c80, %c0_85], %203 {strides = array<i32>} : memref<120x128xf32, #tpu.memory_space<vmem>>, vector<8x128xf32>,
    %c0_86 = arith.constant 0 : index
    %c0_87 = arith.constant 0 : index
    %c0_88 = arith.constant 0 : index
    %205 = vector.load %arg8[%c0_86, %c0_87, %c0_88] : memref<3x2x384xf32, #tpu.memory_space<vmem>>, vector<1x2x384xf32>
    %206 = vector.shape_cast %205 : vector<1x2x384xf32> to vector<2x384xf32>
    %c8 = arith.constant 8 : index
    %c0_89 = arith.constant 0 : index
    %207 = vector.load %arg18[%c8, %c0_89] : memref<40x384xf32, #tpu.memory_space<vmem>>, vector<8x384xf32>
    %208 = vector.extract_strided_slice %206 {offsets = [1, 0], sizes = [1, 384], strides = [1, 1]} : vector<2x384xf32> to vector<1x384xf32>
    %209 = arith.truncf %65 : vector<8x128xf32> to vector<8x128xbf16>
    %c0_90 = arith.constant 0 : index
    %c0_91 = arith.constant 0 : index
    %c0_92 = arith.constant 0 : index
    %210 = vector.load %arg7[%c0_90, %c0_91, %c0_92] : memref<3x128x384xbf16, #tpu.memory_space<vmem>>, vector<1x128x384xbf16>
    %211 = vector.shape_cast %210 : vector<1x128x384xbf16> to vector<128x384xbf16>
    %cst_93 = arith.constant dense<0.000000e+00> : vector<8x384xf32>
    %212 = tpu.matmul %209, %211, %cst_93 {dimension_numbers = #tpu.dot_dimension_numbers<[1], [0], [0], [1], [0, 0, 1, 1], [], []>} : vector<8x128xbf16>, vector<128x384xbf16>, vector<8x384xf32> -> vector<8x384xf32>
    %213 = vector.broadcast %208 : vector<1x384xf32> to vector<8x384xf32>
    %214 = arith.addf %212, %213 : vector<8x384xf32>
    %215 = vector.extract_strided_slice %207 {offsets = [0, 0], sizes = [8, 128], strides = [1, 1]} : vector<8x384xf32> to vector<8x128xf32>
    %216 = vector.extract_strided_slice %214 {offsets = [0, 0], sizes = [8, 128], strides = [1, 1]} : vector<8x384xf32> to vector<8x128xf32>
    %217 = arith.addf %215, %216 : vector<8x128xf32>
    %218 = arith.negf %217 : vector<8x128xf32>
    %219 = math.exp %218 : vector<8x128xf32>
    %cst_94 = arith.constant 1.000000e+00 : f32
    %220 = vector.broadcast %cst_94 : f32 to vector<8x128xf32>
    %221 = arith.addf %220, %219 : vector<8x128xf32>
    %222 = arith.divf %220, %221 : vector<8x128xf32>
    %223 = vector.extract_strided_slice %207 {offsets = [0, 128], sizes = [8, 128], strides = [1, 1]} : vector<8x384xf32> to vector<8x128xf32>
    %224 = vector.extract_strided_slice %214 {offsets = [0, 128], sizes = [8, 128], strides = [1, 1]} : vector<8x384xf32> to vector<8x128xf32>
    %225 = arith.addf %223, %224 : vector<8x128xf32>
    %226 = arith.negf %225 : vector<8x128xf32>
    %227 = math.exp %226 : vector<8x128xf32>
    %cst_95 = arith.constant 1.000000e+00 : f32
    %228 = vector.broadcast %cst_95 : f32 to vector<8x128xf32>
    %229 = arith.addf %228, %227 : vector<8x128xf32>
    %230 = arith.divf %228, %229 : vector<8x128xf32>
    %231 = vector.extract_strided_slice %207 {offsets = [0, 256], sizes = [8, 128], strides = [1, 1]} : vector<8x384xf32> to vector<8x128xf32>
    %232 = vector.extract_strided_slice %214 {offsets = [0, 256], sizes = [8, 128], strides = [1, 1]} : vector<8x384xf32> to vector<8x128xf32>
    %233 = arith.mulf %222, %232 : vector<8x128xf32>
    %234 = arith.addf %231, %233 : vector<8x128xf32>
    %235 = math.tanh %234 : vector<8x128xf32>
    %cst_96 = arith.constant 1.000000e+00 : f32
    %236 = vector.broadcast %cst_96 : f32 to vector<8x128xf32>
    %237 = arith.subf %236, %230 : vector<8x128xf32>
    %238 = arith.mulf %237, %235 : vector<8x128xf32>
    %239 = arith.mulf %230, %65 : vector<8x128xf32>
    %240 = arith.addf %238, %239 : vector<8x128xf32>
    %c8_97 = arith.constant 8 : index
    %c0_98 = arith.constant 0 : index
    %241 = vector.load %arg17[%c8_97, %c0_98] : memref<120x128xf32, #tpu.memory_space<vmem>>, vector<8x128xf32>
    tpu.vector_store %arg17[%c8_97, %c0_98], %240 {strides = array<i32>} : memref<120x128xf32, #tpu.memory_space<vmem>>, vector<8x128xf32>,
    %c1_99 = arith.constant 1 : index
    %c0_100 = arith.constant 0 : index
    %c0_101 = arith.constant 0 : index
    %242 = vector.load %arg8[%c1_99, %c0_100, %c0_101] : memref<3x2x384xf32, #tpu.memory_space<vmem>>, vector<1x2x384xf32>
    %243 = vector.shape_cast %242 : vector<1x2x384xf32> to vector<2x384xf32>
    %c0_102 = arith.constant 0 : index
    %c0_103 = arith.constant 0 : index
    %c0_104 = arith.constant 0 : index
    %244 = vector.load %arg9[%c0_102, %c0_103, %c0_104] : memref<3x2x128xf32, #tpu.memory_space<vmem>>, vector<1x2x128xf32>
    %245 = vector.shape_cast %244 : vector<1x2x128xf32> to vector<2x128xf32>
    %246 = vector.extract_strided_slice %245 {offsets = [0, 0], sizes = [1, 128], strides = [1, 1]} : vector<2x128xf32> to vector<1x128xf32>
    %247 = vector.extract_strided_slice %245 {offsets = [1, 0], sizes = [1, 128], strides = [1, 1]} : vector<2x128xf32> to vector<1x128xf32>
    %cst_105 = arith.constant dense<0.000000e+00> : vector<8xf32>
    %248 = vector.multi_reduction <add>, %240, %cst_105 [1] : vector<8x128xf32> to vector<8xf32>
    %249 = vector.shape_cast %248 : vector<8xf32> to vector<8x1xf32>
    %cst_106 = arith.constant 1.280000e+02 : f32
    %250 = vector.broadcast %cst_106 : f32 to vector<8x1xf32>
    %251 = arith.divf %249, %250 : vector<8x1xf32>
    %252 = vector.broadcast %251 : vector<8x1xf32> to vector<8x128xf32>
    %253 = arith.subf %240, %252 : vector<8x128xf32>
    %254 = arith.mulf %253, %253 : vector<8x128xf32>
    %cst_107 = arith.constant dense<0.000000e+00> : vector<8xf32>
    %255 = vector.multi_reduction <add>, %254, %cst_107 [1] : vector<8x128xf32> to vector<8xf32>
    %256 = vector.shape_cast %255 : vector<8xf32> to vector<8x1xf32>
    %cst_108 = arith.constant 1.280000e+02 : f32
    %257 = vector.broadcast %cst_108 : f32 to vector<8x1xf32>
    %258 = arith.divf %256, %257 : vector<8x1xf32>
    %cst_109 = arith.constant 9.99999974E-6 : f32
    %259 = vector.broadcast %cst_109 : f32 to vector<8x1xf32>
    %260 = arith.addf %258, %259 : vector<8x1xf32>
    %261 = math.rsqrt %260 : vector<8x1xf32>
    %262 = vector.broadcast %261 : vector<8x1xf32> to vector<8x128xf32>
    %263 = arith.mulf %253, %262 : vector<8x128xf32>
    %264 = vector.broadcast %246 : vector<1x128xf32> to vector<8x128xf32>
    %265 = arith.mulf %263, %264 : vector<8x128xf32>
    %266 = vector.broadcast %247 : vector<1x128xf32> to vector<8x128xf32>
    %267 = arith.addf %265, %266 : vector<8x128xf32>
    %cst_110 = arith.constant 0.000000e+00 : f32
    %268 = vector.broadcast %cst_110 : f32 to vector<8x128xf32>
    %269 = arith.maximumf %267, %268 : vector<8x128xf32>
    %270 = arith.truncf %269 : vector<8x128xf32> to vector<8x128xbf16>
    %c1_111 = arith.constant 1 : index
    %c0_112 = arith.constant 0 : index
    %c0_113 = arith.constant 0 : index
    %271 = vector.load %arg6[%c1_111, %c0_112, %c0_113] : memref<3x128x384xbf16, #tpu.memory_space<vmem>>, vector<1x128x384xbf16>
    %272 = vector.shape_cast %271 : vector<1x128x384xbf16> to vector<128x384xbf16>
    %cst_114 = arith.constant dense<0.000000e+00> : vector<8x384xf32>
    %273 = tpu.matmul %270, %272, %cst_114 {dimension_numbers = #tpu.dot_dimension_numbers<[1], [0], [0], [1], [0, 0, 1, 1], [], []>} : vector<8x128xbf16>, vector<128x384xbf16>, vector<8x384xf32> -> vector<8x384xf32>
    %274 = vector.extract_strided_slice %243 {offsets = [0, 0], sizes = [1, 384], strides = [1, 1]} : vector<2x384xf32> to vector<1x384xf32>
    %275 = vector.broadcast %274 : vector<1x384xf32> to vector<8x384xf32>
    %276 = arith.addf %273, %275 : vector<8x384xf32>
    %277 = vector.extract_strided_slice %243 {offsets = [1, 0], sizes = [1, 384], strides = [1, 1]} : vector<2x384xf32> to vector<1x384xf32>
    %278 = arith.truncf %134 : vector<8x128xf32> to vector<8x128xbf16>
    %c1_115 = arith.constant 1 : index
    %c0_116 = arith.constant 0 : index
    %c0_117 = arith.constant 0 : index
    %279 = vector.load %arg7[%c1_115, %c0_116, %c0_117] : memref<3x128x384xbf16, #tpu.memory_space<vmem>>, vector<1x128x384xbf16>
    %280 = vector.shape_cast %279 : vector<1x128x384xbf16> to vector<128x384xbf16>
    %cst_118 = arith.constant dense<0.000000e+00> : vector<8x384xf32>
    %281 = tpu.matmul %278, %280, %cst_118 {dimension_numbers = #tpu.dot_dimension_numbers<[1], [0], [0], [1], [0, 0, 1, 1], [], []>} : vector<8x128xbf16>, vector<128x384xbf16>, vector<8x384xf32> -> vector<8x384xf32>
    %282 = vector.broadcast %277 : vector<1x384xf32> to vector<8x384xf32>
    %283 = arith.addf %281, %282 : vector<8x384xf32>
    %284 = vector.extract_strided_slice %276 {offsets = [0, 0], sizes = [8, 128], strides = [1, 1]} : vector<8x384xf32> to vector<8x128xf32>
    %285 = vector.extract_strided_slice %283 {offsets = [0, 0], sizes = [8, 128], strides = [1, 1]} : vector<8x384xf32> to vector<8x128xf32>
    %286 = arith.addf %284, %285 : vector<8x128xf32>
    %287 = arith.negf %286 : vector<8x128xf32>
    %288 = math.exp %287 : vector<8x128xf32>
    %cst_119 = arith.constant 1.000000e+00 : f32
    %289 = vector.broadcast %cst_119 : f32 to vector<8x128xf32>
    %290 = arith.addf %289, %288 : vector<8x128xf32>
    %291 = arith.divf %289, %290 : vector<8x128xf32>
    %292 = vector.extract_strided_slice %276 {offsets = [0, 128], sizes = [8, 128], strides = [1, 1]} : vector<8x384xf32> to vector<8x128xf32>
    %293 = vector.extract_strided_slice %283 {offsets = [0, 128], sizes = [8, 128], strides = [1, 1]} : vector<8x384xf32> to vector<8x128xf32>
    %294 = arith.addf %292, %293 : vector<8x128xf32>
    %295 = arith.negf %294 : vector<8x128xf32>
    %296 = math.exp %295 : vector<8x128xf32>
    %cst_120 = arith.constant 1.000000e+00 : f32
    %297 = vector.broadcast %cst_120 : f32 to vector<8x128xf32>
    %298 = arith.addf %297, %296 : vector<8x128xf32>
    %299 = arith.divf %297, %298 : vector<8x128xf32>
    %300 = vector.extract_strided_slice %276 {offsets = [0, 256], sizes = [8, 128], strides = [1, 1]} : vector<8x384xf32> to vector<8x128xf32>
    %301 = vector.extract_strided_slice %283 {offsets = [0, 256], sizes = [8, 128], strides = [1, 1]} : vector<8x384xf32> to vector<8x128xf32>
    %302 = arith.mulf %291, %301 : vector<8x128xf32>
    %303 = arith.addf %300, %302 : vector<8x128xf32>
    %304 = math.tanh %303 : vector<8x128xf32>
    %cst_121 = arith.constant 1.000000e+00 : f32
    %305 = vector.broadcast %cst_121 : f32 to vector<8x128xf32>
    %306 = arith.subf %305, %299 : vector<8x128xf32>
    %307 = arith.mulf %306, %304 : vector<8x128xf32>
    %308 = arith.mulf %299, %134 : vector<8x128xf32>
    %309 = arith.addf %307, %308 : vector<8x128xf32>
    %c48 = arith.constant 48 : index
    %c0_122 = arith.constant 0 : index
    %310 = vector.load %arg17[%c48, %c0_122] : memref<120x128xf32, #tpu.memory_space<vmem>>, vector<8x128xf32>
    tpu.vector_store %arg17[%c48, %c0_122], %309 {strides = array<i32>} : memref<120x128xf32, #tpu.memory_space<vmem>>, vector<8x128xf32>,
    %c2_123 = arith.constant 2 : index
    %c0_124 = arith.constant 0 : index
    %c0_125 = arith.constant 0 : index
    %311 = vector.load %arg8[%c2_123, %c0_124, %c0_125] : memref<3x2x384xf32, #tpu.memory_space<vmem>>, vector<1x2x384xf32>
    %312 = vector.shape_cast %311 : vector<1x2x384xf32> to vector<2x384xf32>
    %c1_126 = arith.constant 1 : index
    %c0_127 = arith.constant 0 : index
    %c0_128 = arith.constant 0 : index
    %313 = vector.load %arg9[%c1_126, %c0_127, %c0_128] : memref<3x2x128xf32, #tpu.memory_space<vmem>>, vector<1x2x128xf32>
    %314 = vector.shape_cast %313 : vector<1x2x128xf32> to vector<2x128xf32>
    %315 = vector.extract_strided_slice %314 {offsets = [0, 0], sizes = [1, 128], strides = [1, 1]} : vector<2x128xf32> to vector<1x128xf32>
    %316 = vector.extract_strided_slice %314 {offsets = [1, 0], sizes = [1, 128], strides = [1, 1]} : vector<2x128xf32> to vector<1x128xf32>
    %cst_129 = arith.constant dense<0.000000e+00> : vector<8xf32>
    %317 = vector.multi_reduction <add>, %309, %cst_129 [1] : vector<8x128xf32> to vector<8xf32>
    %318 = vector.shape_cast %317 : vector<8xf32> to vector<8x1xf32>
    %cst_130 = arith.constant 1.280000e+02 : f32
    %319 = vector.broadcast %cst_130 : f32 to vector<8x1xf32>
    %320 = arith.divf %318, %319 : vector<8x1xf32>
    %321 = vector.broadcast %320 : vector<8x1xf32> to vector<8x128xf32>
    %322 = arith.subf %309, %321 : vector<8x128xf32>
    %323 = arith.mulf %322, %322 : vector<8x128xf32>
    %cst_131 = arith.constant dense<0.000000e+00> : vector<8xf32>
    %324 = vector.multi_reduction <add>, %323, %cst_131 [1] : vector<8x128xf32> to vector<8xf32>
    %325 = vector.shape_cast %324 : vector<8xf32> to vector<8x1xf32>
    %cst_132 = arith.constant 1.280000e+02 : f32
    %326 = vector.broadcast %cst_132 : f32 to vector<8x1xf32>
    %327 = arith.divf %325, %326 : vector<8x1xf32>
    %cst_133 = arith.constant 9.99999974E-6 : f32
    %328 = vector.broadcast %cst_133 : f32 to vector<8x1xf32>
    %329 = arith.addf %327, %328 : vector<8x1xf32>
    %330 = math.rsqrt %329 : vector<8x1xf32>
    %331 = vector.broadcast %330 : vector<8x1xf32> to vector<8x128xf32>
    %332 = arith.mulf %322, %331 : vector<8x128xf32>
    %333 = vector.broadcast %315 : vector<1x128xf32> to vector<8x128xf32>
    %334 = arith.mulf %332, %333 : vector<8x128xf32>
    %335 = vector.broadcast %316 : vector<1x128xf32> to vector<8x128xf32>
    %336 = arith.addf %334, %335 : vector<8x128xf32>
    %cst_134 = arith.constant 0.000000e+00 : f32
    %337 = vector.broadcast %cst_134 : f32 to vector<8x128xf32>
    %338 = arith.maximumf %336, %337 : vector<8x128xf32>
    %339 = arith.truncf %338 : vector<8x128xf32> to vector<8x128xbf16>
    %c2_135 = arith.constant 2 : index
    %c0_136 = arith.constant 0 : index
    %c0_137 = arith.constant 0 : index
    %340 = vector.load %arg6[%c2_135, %c0_136, %c0_137] : memref<3x128x384xbf16, #tpu.memory_space<vmem>>, vector<1x128x384xbf16>
    %341 = vector.shape_cast %340 : vector<1x128x384xbf16> to vector<128x384xbf16>
    %cst_138 = arith.constant dense<0.000000e+00> : vector<8x384xf32>
    %342 = tpu.matmul %339, %341, %cst_138 {dimension_numbers = #tpu.dot_dimension_numbers<[1], [0], [0], [1], [0, 0, 1, 1], [], []>} : vector<8x128xbf16>, vector<128x384xbf16>, vector<8x384xf32> -> vector<8x384xf32>
    %343 = vector.extract_strided_slice %312 {offsets = [0, 0], sizes = [1, 384], strides = [1, 1]} : vector<2x384xf32> to vector<1x384xf32>
    %344 = vector.broadcast %343 : vector<1x384xf32> to vector<8x384xf32>
    %345 = arith.addf %342, %344 : vector<8x384xf32>
    %346 = vector.extract_strided_slice %312 {offsets = [1, 0], sizes = [1, 384], strides = [1, 1]} : vector<2x384xf32> to vector<1x384xf32>
    %347 = arith.truncf %203 : vector<8x128xf32> to vector<8x128xbf16>
    %c2_139 = arith.constant 2 : index
    %c0_140 = arith.constant 0 : index
    %c0_141 = arith.constant 0 : index
    %348 = vector.load %arg7[%c2_139, %c0_140, %c0_141] : memref<3x128x384xbf16, #tpu.memory_space<vmem>>, vector<1x128x384xbf16>
    %349 = vector.shape_cast %348 : vector<1x128x384xbf16> to vector<128x384xbf16>
    %cst_142 = arith.constant dense<0.000000e+00> : vector<8x384xf32>
    %350 = tpu.matmul %347, %349, %cst_142 {dimension_numbers = #tpu.dot_dimension_numbers<[1], [0], [0], [1], [0, 0, 1, 1], [], []>} : vector<8x128xbf16>, vector<128x384xbf16>, vector<8x384xf32> -> vector<8x384xf32>
    %351 = vector.broadcast %346 : vector<1x384xf32> to vector<8x384xf32>
    %352 = arith.addf %350, %351 : vector<8x384xf32>
    %353 = vector.extract_strided_slice %345 {offsets = [0, 0], sizes = [8, 128], strides = [1, 1]} : vector<8x384xf32> to vector<8x128xf32>
    %354 = vector.extract_strided_slice %352 {offsets = [0, 0], sizes = [8, 128], strides = [1, 1]} : vector<8x384xf32> to vector<8x128xf32>
    %355 = arith.addf %353, %354 : vector<8x128xf32>
    %356 = arith.negf %355 : vector<8x128xf32>
    %357 = math.exp %356 : vector<8x128xf32>
    %cst_143 = arith.constant 1.000000e+00 : f32
    %358 = vector.broadcast %cst_143 : f32 to vector<8x128xf32>
    %359 = arith.addf %358, %357 : vector<8x128xf32>
    %360 = arith.divf %358, %359 : vector<8x128xf32>
    %361 = vector.extract_strided_slice %345 {offsets = [0, 128], sizes = [8, 128], strides = [1, 1]} : vector<8x384xf32> to vector<8x128xf32>
    %362 = vector.extract_strided_slice %352 {offsets = [0, 128], sizes = [8, 128], strides = [1, 1]} : vector<8x384xf32> to vector<8x128xf32>
    %363 = arith.addf %361, %362 : vector<8x128xf32>
    %364 = arith.negf %363 : vector<8x128xf32>
    %365 = math.exp %364 : vector<8x128xf32>
    %cst_144 = arith.constant 1.000000e+00 : f32
    %366 = vector.broadcast %cst_144 : f32 to vector<8x128xf32>
    %367 = arith.addf %366, %365 : vector<8x128xf32>
    %368 = arith.divf %366, %367 : vector<8x128xf32>
    %369 = vector.extract_strided_slice %345 {offsets = [0, 256], sizes = [8, 128], strides = [1, 1]} : vector<8x384xf32> to vector<8x128xf32>
    %370 = vector.extract_strided_slice %352 {offsets = [0, 256], sizes = [8, 128], strides = [1, 1]} : vector<8x384xf32> to vector<8x128xf32>
    %371 = arith.mulf %360, %370 : vector<8x128xf32>
    %372 = arith.addf %369, %371 : vector<8x128xf32>
    %373 = math.tanh %372 : vector<8x128xf32>
    %cst_145 = arith.constant 1.000000e+00 : f32
    %374 = vector.broadcast %cst_145 : f32 to vector<8x128xf32>
    %375 = arith.subf %374, %368 : vector<8x128xf32>
    %376 = arith.mulf %375, %373 : vector<8x128xf32>
    %377 = arith.mulf %368, %203 : vector<8x128xf32>
    %378 = arith.addf %376, %377 : vector<8x128xf32>
    %c88 = arith.constant 88 : index
    %c0_146 = arith.constant 0 : index
    %379 = vector.load %arg17[%c88, %c0_146] : memref<120x128xf32, #tpu.memory_space<vmem>>, vector<8x128xf32>
    tpu.vector_store %arg17[%c88, %c0_146], %378 {strides = array<i32>} : memref<120x128xf32, #tpu.memory_space<vmem>>, vector<8x128xf32>,
    %c0_147 = arith.constant 0 : index
    %c0_148 = arith.constant 0 : index
    %c0_149 = arith.constant 0 : index
    %380 = vector.load %arg8[%c0_147, %c0_148, %c0_149] : memref<3x2x384xf32, #tpu.memory_space<vmem>>, vector<1x2x384xf32>
    %381 = vector.shape_cast %380 : vector<1x2x384xf32> to vector<2x384xf32>
    %c16 = arith.constant 16 : index
    %c0_150 = arith.constant 0 : index
    %382 = vector.load %arg18[%c16, %c0_150] : memref<40x384xf32, #tpu.memory_space<vmem>>, vector<8x384xf32>
    %383 = vector.extract_strided_slice %381 {offsets = [1, 0], sizes = [1, 384], strides = [1, 1]} : vector<2x384xf32> to vector<1x384xf32>
    %384 = arith.truncf %240 : vector<8x128xf32> to vector<8x128xbf16>
    %c0_151 = arith.constant 0 : index
    %c0_152 = arith.constant 0 : index
    %c0_153 = arith.constant 0 : index
    %385 = vector.load %arg7[%c0_151, %c0_152, %c0_153] : memref<3x128x384xbf16, #tpu.memory_space<vmem>>, vector<1x128x384xbf16>
    %386 = vector.shape_cast %385 : vector<1x128x384xbf16> to vector<128x384xbf16>
    %cst_154 = arith.constant dense<0.000000e+00> : vector<8x384xf32>
    %387 = tpu.matmul %384, %386, %cst_154 {dimension_numbers = #tpu.dot_dimension_numbers<[1], [0], [0], [1], [0, 0, 1, 1], [], []>} : vector<8x128xbf16>, vector<128x384xbf16>, vector<8x384xf32> -> vector<8x384xf32>
    %388 = vector.broadcast %383 : vector<1x384xf32> to vector<8x384xf32>
    %389 = arith.addf %387, %388 : vector<8x384xf32>
    %390 = vector.extract_strided_slice %382 {offsets = [0, 0], sizes = [8, 128], strides = [1, 1]} : vector<8x384xf32> to vector<8x128xf32>
    %391 = vector.extract_strided_slice %389 {offsets = [0, 0], sizes = [8, 128], strides = [1, 1]} : vector<8x384xf32> to vector<8x128xf32>
    %392 = arith.addf %390, %391 : vector<8x128xf32>
    %393 = arith.negf %392 : vector<8x128xf32>
    %394 = math.exp %393 : vector<8x128xf32>
    %cst_155 = arith.constant 1.000000e+00 : f32
    %395 = vector.broadcast %cst_155 : f32 to vector<8x128xf32>
    %396 = arith.addf %395, %394 : vector<8x128xf32>
    %397 = arith.divf %395, %396 : vector<8x128xf32>
    %398 = vector.extract_strided_slice %382 {offsets = [0, 128], sizes = [8, 128], strides = [1, 1]} : vector<8x384xf32> to vector<8x128xf32>
    %399 = vector.extract_strided_slice %389 {offsets = [0, 128], sizes = [8, 128], strides = [1, 1]} : vector<8x384xf32> to vector<8x128xf32>
    %400 = arith.addf %398, %399 : vector<8x128xf32>
    %401 = arith.negf %400 : vector<8x128xf32>
    %402 = math.exp %401 : vector<8x128xf32>
    %cst_156 = arith.constant 1.000000e+00 : f32
    %403 = vector.broadcast %cst_156 : f32 to vector<8x128xf32>
    %404 = arith.addf %403, %402 : vector<8x128xf32>
    %405 = arith.divf %403, %404 : vector<8x128xf32>
    %406 = vector.extract_strided_slice %382 {offsets = [0, 256], sizes = [8, 128], strides = [1, 1]} : vector<8x384xf32> to vector<8x128xf32>
    %407 = vector.extract_strided_slice %389 {offsets = [0, 256], sizes = [8, 128], strides = [1, 1]} : vector<8x384xf32> to vector<8x128xf32>
    %408 = arith.mulf %397, %407 : vector<8x128xf32>
    %409 = arith.addf %406, %408 : vector<8x128xf32>
    %410 = math.tanh %409 : vector<8x128xf32>
    %cst_157 = arith.constant 1.000000e+00 : f32
    %411 = vector.broadcast %cst_157 : f32 to vector<8x128xf32>
    %412 = arith.subf %411, %405 : vector<8x128xf32>
    %413 = arith.mulf %412, %410 : vector<8x128xf32>
    %414 = arith.mulf %405, %240 : vector<8x128xf32>
    %415 = arith.addf %413, %414 : vector<8x128xf32>
    %c16_158 = arith.constant 16 : index
    %c0_159 = arith.constant 0 : index
    %416 = vector.load %arg17[%c16_158, %c0_159] : memref<120x128xf32, #tpu.memory_space<vmem>>, vector<8x128xf32>
    tpu.vector_store %arg17[%c16_158, %c0_159], %415 {strides = array<i32>} : memref<120x128xf32, #tpu.memory_space<vmem>>, vector<8x128xf32>,
    %c1_160 = arith.constant 1 : index
    %c0_161 = arith.constant 0 : index
    %c0_162 = arith.constant 0 : index
    %417 = vector.load %arg8[%c1_160, %c0_161, %c0_162] : memref<3x2x384xf32, #tpu.memory_space<vmem>>, vector<1x2x384xf32>
    %418 = vector.shape_cast %417 : vector<1x2x384xf32> to vector<2x384xf32>
    %c0_163 = arith.constant 0 : index
    %c0_164 = arith.constant 0 : index
    %c0_165 = arith.constant 0 : index
    %419 = vector.load %arg9[%c0_163, %c0_164, %c0_165] : memref<3x2x128xf32, #tpu.memory_space<vmem>>, vector<1x2x128xf32>
    %420 = vector.shape_cast %419 : vector<1x2x128xf32> to vector<2x128xf32>
    %421 = vector.extract_strided_slice %420 {offsets = [0, 0], sizes = [1, 128], strides = [1, 1]} : vector<2x128xf32> to vector<1x128xf32>
    %422 = vector.extract_strided_slice %420 {offsets = [1, 0], sizes = [1, 128], strides = [1, 1]} : vector<2x128xf32> to vector<1x128xf32>
    %cst_166 = arith.constant dense<0.000000e+00> : vector<8xf32>
    %423 = vector.multi_reduction <add>, %415, %cst_166 [1] : vector<8x128xf32> to vector<8xf32>
    %424 = vector.shape_cast %423 : vector<8xf32> to vector<8x1xf32>
    %cst_167 = arith.constant 1.280000e+02 : f32
    %425 = vector.broadcast %cst_167 : f32 to vector<8x1xf32>
    %426 = arith.divf %424, %425 : vector<8x1xf32>
    %427 = vector.broadcast %426 : vector<8x1xf32> to vector<8x128xf32>
    %428 = arith.subf %415, %427 : vector<8x128xf32>
    %429 = arith.mulf %428, %428 : vector<8x128xf32>
    %cst_168 = arith.constant dense<0.000000e+00> : vector<8xf32>
    %430 = vector.multi_reduction <add>, %429, %cst_168 [1] : vector<8x128xf32> to vector<8xf32>
    %431 = vector.shape_cast %430 : vector<8xf32> to vector<8x1xf32>
    %cst_169 = arith.constant 1.280000e+02 : f32
    %432 = vector.broadcast %cst_169 : f32 to vector<8x1xf32>
    %433 = arith.divf %431, %432 : vector<8x1xf32>
    %cst_170 = arith.constant 9.99999974E-6 : f32
    %434 = vector.broadcast %cst_170 : f32 to vector<8x1xf32>
    %435 = arith.addf %433, %434 : vector<8x1xf32>
    %436 = math.rsqrt %435 : vector<8x1xf32>
    %437 = vector.broadcast %436 : vector<8x1xf32> to vector<8x128xf32>
    %438 = arith.mulf %428, %437 : vector<8x128xf32>
    %439 = vector.broadcast %421 : vector<1x128xf32> to vector<8x128xf32>
    %440 = arith.mulf %438, %439 : vector<8x128xf32>
    %441 = vector.broadcast %422 : vector<1x128xf32> to vector<8x128xf32>
    %442 = arith.addf %440, %441 : vector<8x128xf32>
    %cst_171 = arith.constant 0.000000e+00 : f32
    %443 = vector.broadcast %cst_171 : f32 to vector<8x128xf32>
    %444 = arith.maximumf %442, %443 : vector<8x128xf32>
    %445 = arith.truncf %444 : vector<8x128xf32> to vector<8x128xbf16>
    %c1_172 = arith.constant 1 : index
    %c0_173 = arith.constant 0 : index
    %c0_174 = arith.constant 0 : index
    %446 = vector.load %arg6[%c1_172, %c0_173, %c0_174] : memref<3x128x384xbf16, #tpu.memory_space<vmem>>, vector<1x128x384xbf16>
    %447 = vector.shape_cast %446 : vector<1x128x384xbf16> to vector<128x384xbf16>
    %cst_175 = arith.constant dense<0.000000e+00> : vector<8x384xf32>
    %448 = tpu.matmul %445, %447, %cst_175 {dimension_numbers = #tpu.dot_dimension_numbers<[1], [0], [0], [1], [0, 0, 1, 1], [], []>} : vector<8x128xbf16>, vector<128x384xbf16>, vector<8x384xf32> -> vector<8x384xf32>
    %449 = vector.extract_strided_slice %418 {offsets = [0, 0], sizes = [1, 384], strides = [1, 1]} : vector<2x384xf32> to vector<1x384xf32>
    %450 = vector.broadcast %449 : vector<1x384xf32> to vector<8x384xf32>
    %451 = arith.addf %448, %450 : vector<8x384xf32>
    %452 = vector.extract_strided_slice %418 {offsets = [1, 0], sizes = [1, 384], strides = [1, 1]} : vector<2x384xf32> to vector<1x384xf32>
    %453 = arith.truncf %309 : vector<8x128xf32> to vector<8x128xbf16>
    %c1_176 = arith.constant 1 : index
    %c0_177 = arith.constant 0 : index
    %c0_178 = arith.constant 0 : index
    %454 = vector.load %arg7[%c1_176, %c0_177, %c0_178] : memref<3x128x384xbf16, #tpu.memory_space<vmem>>, vector<1x128x384xbf16>
    %455 = vector.shape_cast %454 : vector<1x128x384xbf16> to vector<128x384xbf16>
    %cst_179 = arith.constant dense<0.000000e+00> : vector<8x384xf32>
    %456 = tpu.matmul %453, %455, %cst_179 {dimension_numbers = #tpu.dot_dimension_numbers<[1], [0], [0], [1], [0, 0, 1, 1], [], []>} : vector<8x128xbf16>, vector<128x384xbf16>, vector<8x384xf32> -> vector<8x384xf32>
    %457 = vector.broadcast %452 : vector<1x384xf32> to vector<8x384xf32>
    %458 = arith.addf %456, %457 : vector<8x384xf32>
    %459 = vector.extract_strided_slice %451 {offsets = [0, 0], sizes = [8, 128], strides = [1, 1]} : vector<8x384xf32> to vector<8x128xf32>
    %460 = vector.extract_strided_slice %458 {offsets = [0, 0], sizes = [8, 128], strides = [1, 1]} : vector<8x384xf32> to vector<8x128xf32>
    %461 = arith.addf %459, %460 : vector<8x128xf32>
    %462 = arith.negf %461 : vector<8x128xf32>
    %463 = math.exp %462 : vector<8x128xf32>
    %cst_180 = arith.constant 1.000000e+00 : f32
    %464 = vector.broadcast %cst_180 : f32 to vector<8x128xf32>
    %465 = arith.addf %464, %463 : vector<8x128xf32>
    %466 = arith.divf %464, %465 : vector<8x128xf32>
    %467 = vector.extract_strided_slice %451 {offsets = [0, 128], sizes = [8, 128], strides = [1, 1]} : vector<8x384xf32> to vector<8x128xf32>
    %468 = vector.extract_strided_slice %458 {offsets = [0, 128], sizes = [8, 128], strides = [1, 1]} : vector<8x384xf32> to vector<8x128xf32>
    %469 = arith.addf %467, %468 : vector<8x128xf32>
    %470 = arith.negf %469 : vector<8x128xf32>
    %471 = math.exp %470 : vector<8x128xf32>
    %cst_181 = arith.constant 1.000000e+00 : f32
    %472 = vector.broadcast %cst_181 : f32 to vector<8x128xf32>
    %473 = arith.addf %472, %471 : vector<8x128xf32>
    %474 = arith.divf %472, %473 : vector<8x128xf32>
    %475 = vector.extract_strided_slice %451 {offsets = [0, 256], sizes = [8, 128], strides = [1, 1]} : vector<8x384xf32> to vector<8x128xf32>
    %476 = vector.extract_strided_slice %458 {offsets = [0, 256], sizes = [8, 128], strides = [1, 1]} : vector<8x384xf32> to vector<8x128xf32>
    %477 = arith.mulf %466, %476 : vector<8x128xf32>
    %478 = arith.addf %475, %477 : vector<8x128xf32>
    %479 = math.tanh %478 : vector<8x128xf32>
    %cst_182 = arith.constant 1.000000e+00 : f32
    %480 = vector.broadcast %cst_182 : f32 to vector<8x128xf32>
    %481 = arith.subf %480, %474 : vector<8x128xf32>
    %482 = arith.mulf %481, %479 : vector<8x128xf32>
    %483 = arith.mulf %474, %309 : vector<8x128xf32>
    %484 = arith.addf %482, %483 : vector<8x128xf32>
    %c56 = arith.constant 56 : index
    %c0_183 = arith.constant 0 : index
    %485 = vector.load %arg17[%c56, %c0_183] : memref<120x128xf32, #tpu.memory_space<vmem>>, vector<8x128xf32>
    tpu.vector_store %arg17[%c56, %c0_183], %484 {strides = array<i32>} : memref<120x128xf32, #tpu.memory_space<vmem>>, vector<8x128xf32>,
    %c2_184 = arith.constant 2 : index
    %c0_185 = arith.constant 0 : index
    %c0_186 = arith.constant 0 : index
    %486 = vector.load %arg8[%c2_184, %c0_185, %c0_186] : memref<3x2x384xf32, #tpu.memory_space<vmem>>, vector<1x2x384xf32>
    %487 = vector.shape_cast %486 : vector<1x2x384xf32> to vector<2x384xf32>
    %c1_187 = arith.constant 1 : index
    %c0_188 = arith.constant 0 : index
    %c0_189 = arith.constant 0 : index
    %488 = vector.load %arg9[%c1_187, %c0_188, %c0_189] : memref<3x2x128xf32, #tpu.memory_space<vmem>>, vector<1x2x128xf32>
    %489 = vector.shape_cast %488 : vector<1x2x128xf32> to vector<2x128xf32>
    %490 = vector.extract_strided_slice %489 {offsets = [0, 0], sizes = [1, 128], strides = [1, 1]} : vector<2x128xf32> to vector<1x128xf32>
    %491 = vector.extract_strided_slice %489 {offsets = [1, 0], sizes = [1, 128], strides = [1, 1]} : vector<2x128xf32> to vector<1x128xf32>
    %cst_190 = arith.constant dense<0.000000e+00> : vector<8xf32>
    %492 = vector.multi_reduction <add>, %484, %cst_190 [1] : vector<8x128xf32> to vector<8xf32>
    %493 = vector.shape_cast %492 : vector<8xf32> to vector<8x1xf32>
    %cst_191 = arith.constant 1.280000e+02 : f32
    %494 = vector.broadcast %cst_191 : f32 to vector<8x1xf32>
    %495 = arith.divf %493, %494 : vector<8x1xf32>
    %496 = vector.broadcast %495 : vector<8x1xf32> to vector<8x128xf32>
    %497 = arith.subf %484, %496 : vector<8x128xf32>
    %498 = arith.mulf %497, %497 : vector<8x128xf32>
    %cst_192 = arith.constant dense<0.000000e+00> : vector<8xf32>
    %499 = vector.multi_reduction <add>, %498, %cst_192 [1] : vector<8x128xf32> to vector<8xf32>
    %500 = vector.shape_cast %499 : vector<8xf32> to vector<8x1xf32>
    %cst_193 = arith.constant 1.280000e+02 : f32
    %501 = vector.broadcast %cst_193 : f32 to vector<8x1xf32>
    %502 = arith.divf %500, %501 : vector<8x1xf32>
    %cst_194 = arith.constant 9.99999974E-6 : f32
    %503 = vector.broadcast %cst_194 : f32 to vector<8x1xf32>
    %504 = arith.addf %502, %503 : vector<8x1xf32>
    %505 = math.rsqrt %504 : vector<8x1xf32>
    %506 = vector.broadcast %505 : vector<8x1xf32> to vector<8x128xf32>
    %507 = arith.mulf %497, %506 : vector<8x128xf32>
    %508 = vector.broadcast %490 : vector<1x128xf32> to vector<8x128xf32>
    %509 = arith.mulf %507, %508 : vector<8x128xf32>
    %510 = vector.broadcast %491 : vector<1x128xf32> to vector<8x128xf32>
    %511 = arith.addf %509, %510 : vector<8x128xf32>
    %cst_195 = arith.constant 0.000000e+00 : f32
    %512 = vector.broadcast %cst_195 : f32 to vector<8x128xf32>
    %513 = arith.maximumf %511, %512 : vector<8x128xf32>
    %514 = arith.truncf %513 : vector<8x128xf32> to vector<8x128xbf16>
    %c2_196 = arith.constant 2 : index
    %c0_197 = arith.constant 0 : index
    %c0_198 = arith.constant 0 : index
    %515 = vector.load %arg6[%c2_196, %c0_197, %c0_198] : memref<3x128x384xbf16, #tpu.memory_space<vmem>>, vector<1x128x384xbf16>
    %516 = vector.shape_cast %515 : vector<1x128x384xbf16> to vector<128x384xbf16>
    %cst_199 = arith.constant dense<0.000000e+00> : vector<8x384xf32>
    %517 = tpu.matmul %514, %516, %cst_199 {dimension_numbers = #tpu.dot_dimension_numbers<[1], [0], [0], [1], [0, 0, 1, 1], [], []>} : vector<8x128xbf16>, vector<128x384xbf16>, vector<8x384xf32> -> vector<8x384xf32>
    %518 = vector.extract_strided_slice %487 {offsets = [0, 0], sizes = [1, 384], strides = [1, 1]} : vector<2x384xf32> to vector<1x384xf32>
    %519 = vector.broadcast %518 : vector<1x384xf32> to vector<8x384xf32>
    %520 = arith.addf %517, %519 : vector<8x384xf32>
    %521 = vector.extract_strided_slice %487 {offsets = [1, 0], sizes = [1, 384], strides = [1, 1]} : vector<2x384xf32> to vector<1x384xf32>
    %522 = arith.truncf %378 : vector<8x128xf32> to vector<8x128xbf16>
    %c2_200 = arith.constant 2 : index
    %c0_201 = arith.constant 0 : index
    %c0_202 = arith.constant 0 : index
    %523 = vector.load %arg7[%c2_200, %c0_201, %c0_202] : memref<3x128x384xbf16, #tpu.memory_space<vmem>>, vector<1x128x384xbf16>
    %524 = vector.shape_cast %523 : vector<1x128x384xbf16> to vector<128x384xbf16>
    %cst_203 = arith.constant dense<0.000000e+00> : vector<8x384xf32>
    %525 = tpu.matmul %522, %524, %cst_203 {dimension_numbers = #tpu.dot_dimension_numbers<[1], [0], [0], [1], [0, 0, 1, 1], [], []>} : vector<8x128xbf16>, vector<128x384xbf16>, vector<8x384xf32> -> vector<8x384xf32>
    %526 = vector.broadcast %521 : vector<1x384xf32> to vector<8x384xf32>
    %527 = arith.addf %525, %526 : vector<8x384xf32>
    %528 = vector.extract_strided_slice %520 {offsets = [0, 0], sizes = [8, 128], strides = [1, 1]} : vector<8x384xf32> to vector<8x128xf32>
    %529 = vector.extract_strided_slice %527 {offsets = [0, 0], sizes = [8, 128], strides = [1, 1]} : vector<8x384xf32> to vector<8x128xf32>
    %530 = arith.addf %528, %529 : vector<8x128xf32>
    %531 = arith.negf %530 : vector<8x128xf32>
    %532 = math.exp %531 : vector<8x128xf32>
    %cst_204 = arith.constant 1.000000e+00 : f32
    %533 = vector.broadcast %cst_204 : f32 to vector<8x128xf32>
    %534 = arith.addf %533, %532 : vector<8x128xf32>
    %535 = arith.divf %533, %534 : vector<8x128xf32>
    %536 = vector.extract_strided_slice %520 {offsets = [0, 128], sizes = [8, 128], strides = [1, 1]} : vector<8x384xf32> to vector<8x128xf32>
    %537 = vector.extract_strided_slice %527 {offsets = [0, 128], sizes = [8, 128], strides = [1, 1]} : vector<8x384xf32> to vector<8x128xf32>
    %538 = arith.addf %536, %537 : vector<8x128xf32>
    %539 = arith.negf %538 : vector<8x128xf32>
    %540 = math.exp %539 : vector<8x128xf32>
    %cst_205 = arith.constant 1.000000e+00 : f32
    %541 = vector.broadcast %cst_205 : f32 to vector<8x128xf32>
    %542 = arith.addf %541, %540 : vector<8x128xf32>
    %543 = arith.divf %541, %542 : vector<8x128xf32>
    %544 = vector.extract_strided_slice %520 {offsets = [0, 256], sizes = [8, 128], strides = [1, 1]} : vector<8x384xf32> to vector<8x128xf32>
    %545 = vector.extract_strided_slice %527 {offsets = [0, 256], sizes = [8, 128], strides = [1, 1]} : vector<8x384xf32> to vector<8x128xf32>
    %546 = arith.mulf %535, %545 : vector<8x128xf32>
    %547 = arith.addf %544, %546 : vector<8x128xf32>
    %548 = math.tanh %547 : vector<8x128xf32>
    %cst_206 = arith.constant 1.000000e+00 : f32
    %549 = vector.broadcast %cst_206 : f32 to vector<8x128xf32>
    %550 = arith.subf %549, %543 : vector<8x128xf32>
    %551 = arith.mulf %550, %548 : vector<8x128xf32>
    %552 = arith.mulf %543, %378 : vector<8x128xf32>
    %553 = arith.addf %551, %552 : vector<8x128xf32>
    %c96 = arith.constant 96 : index
    %c0_207 = arith.constant 0 : index
    %554 = vector.load %arg17[%c96, %c0_207] : memref<120x128xf32, #tpu.memory_space<vmem>>, vector<8x128xf32>
    tpu.vector_store %arg17[%c96, %c0_207], %553 {strides = array<i32>} : memref<120x128xf32, #tpu.memory_space<vmem>>, vector<8x128xf32>,
    %c0_208 = arith.constant 0 : index
    %c0_209 = arith.constant 0 : index
    %c0_210 = arith.constant 0 : index
    %555 = vector.load %arg8[%c0_208, %c0_209, %c0_210] : memref<3x2x384xf32, #tpu.memory_space<vmem>>, vector<1x2x384xf32>
    %556 = vector.shape_cast %555 : vector<1x2x384xf32> to vector<2x384xf32>
    %c24 = arith.constant 24 : index
    %c0_211 = arith.constant 0 : index
    %557 = vector.load %arg18[%c24, %c0_211] : memref<40x384xf32, #tpu.memory_space<vmem>>, vector<8x384xf32>
    %558 = vector.extract_strided_slice %556 {offsets = [1, 0], sizes = [1, 384], strides = [1, 1]} : vector<2x384xf32> to vector<1x384xf32>
    %559 = arith.truncf %415 : vector<8x128xf32> to vector<8x128xbf16>
    %c0_212 = arith.constant 0 : index
    %c0_213 = arith.constant 0 : index
    %c0_214 = arith.constant 0 : index
    %560 = vector.load %arg7[%c0_212, %c0_213, %c0_214] : memref<3x128x384xbf16, #tpu.memory_space<vmem>>, vector<1x128x384xbf16>
    %561 = vector.shape_cast %560 : vector<1x128x384xbf16> to vector<128x384xbf16>
    %cst_215 = arith.constant dense<0.000000e+00> : vector<8x384xf32>
    %562 = tpu.matmul %559, %561, %cst_215 {dimension_numbers = #tpu.dot_dimension_numbers<[1], [0], [0], [1], [0, 0, 1, 1], [], []>} : vector<8x128xbf16>, vector<128x384xbf16>, vector<8x384xf32> -> vector<8x384xf32>
    %563 = vector.broadcast %558 : vector<1x384xf32> to vector<8x384xf32>
    %564 = arith.addf %562, %563 : vector<8x384xf32>
    %565 = vector.extract_strided_slice %557 {offsets = [0, 0], sizes = [8, 128], strides = [1, 1]} : vector<8x384xf32> to vector<8x128xf32>
    %566 = vector.extract_strided_slice %564 {offsets = [0, 0], sizes = [8, 128], strides = [1, 1]} : vector<8x384xf32> to vector<8x128xf32>
    %567 = arith.addf %565, %566 : vector<8x128xf32>
    %568 = arith.negf %567 : vector<8x128xf32>
    %569 = math.exp %568 : vector<8x128xf32>
    %cst_216 = arith.constant 1.000000e+00 : f32
    %570 = vector.broadcast %cst_216 : f32 to vector<8x128xf32>
    %571 = arith.addf %570, %569 : vector<8x128xf32>
    %572 = arith.divf %570, %571 : vector<8x128xf32>
    %573 = vector.extract_strided_slice %557 {offsets = [0, 128], sizes = [8, 128], strides = [1, 1]} : vector<8x384xf32> to vector<8x128xf32>
    %574 = vector.extract_strided_slice %564 {offsets = [0, 128], sizes = [8, 128], strides = [1, 1]} : vector<8x384xf32> to vector<8x128xf32>
    %575 = arith.addf %573, %574 : vector<8x128xf32>
    %576 = arith.negf %575 : vector<8x128xf32>
    %577 = math.exp %576 : vector<8x128xf32>
    %cst_217 = arith.constant 1.000000e+00 : f32
    %578 = vector.broadcast %cst_217 : f32 to vector<8x128xf32>
    %579 = arith.addf %578, %577 : vector<8x128xf32>
    %580 = arith.divf %578, %579 : vector<8x128xf32>
    %581 = vector.extract_strided_slice %557 {offsets = [0, 256], sizes = [8, 128], strides = [1, 1]} : vector<8x384xf32> to vector<8x128xf32>
    %582 = vector.extract_strided_slice %564 {offsets = [0, 256], sizes = [8, 128], strides = [1, 1]} : vector<8x384xf32> to vector<8x128xf32>
    %583 = arith.mulf %572, %582 : vector<8x128xf32>
    %584 = arith.addf %581, %583 : vector<8x128xf32>
    %585 = math.tanh %584 : vector<8x128xf32>
    %cst_218 = arith.constant 1.000000e+00 : f32
    %586 = vector.broadcast %cst_218 : f32 to vector<8x128xf32>
    %587 = arith.subf %586, %580 : vector<8x128xf32>
    %588 = arith.mulf %587, %585 : vector<8x128xf32>
    %589 = arith.mulf %580, %415 : vector<8x128xf32>
    %590 = arith.addf %588, %589 : vector<8x128xf32>
    %c24_219 = arith.constant 24 : index
    %c0_220 = arith.constant 0 : index
    %591 = vector.load %arg17[%c24_219, %c0_220] : memref<120x128xf32, #tpu.memory_space<vmem>>, vector<8x128xf32>
    tpu.vector_store %arg17[%c24_219, %c0_220], %590 {strides = array<i32>} : memref<120x128xf32, #tpu.memory_space<vmem>>, vector<8x128xf32>,
    %c1_221 = arith.constant 1 : index
    %c0_222 = arith.constant 0 : index
    %c0_223 = arith.constant 0 : index
    %592 = vector.load %arg8[%c1_221, %c0_222, %c0_223] : memref<3x2x384xf32, #tpu.memory_space<vmem>>, vector<1x2x384xf32>
    %593 = vector.shape_cast %592 : vector<1x2x384xf32> to vector<2x384xf32>
    %c0_224 = arith.constant 0 : index
    %c0_225 = arith.constant 0 : index
    %c0_226 = arith.constant 0 : index
    %594 = vector.load %arg9[%c0_224, %c0_225, %c0_226] : memref<3x2x128xf32, #tpu.memory_space<vmem>>, vector<1x2x128xf32>
    %595 = vector.shape_cast %594 : vector<1x2x128xf32> to vector<2x128xf32>
    %596 = vector.extract_strided_slice %595 {offsets = [0, 0], sizes = [1, 128], strides = [1, 1]} : vector<2x128xf32> to vector<1x128xf32>
    %597 = vector.extract_strided_slice %595 {offsets = [1, 0], sizes = [1, 128], strides = [1, 1]} : vector<2x128xf32> to vector<1x128xf32>
    %cst_227 = arith.constant dense<0.000000e+00> : vector<8xf32>
    %598 = vector.multi_reduction <add>, %590, %cst_227 [1] : vector<8x128xf32> to vector<8xf32>
    %599 = vector.shape_cast %598 : vector<8xf32> to vector<8x1xf32>
    %cst_228 = arith.constant 1.280000e+02 : f32
    %600 = vector.broadcast %cst_228 : f32 to vector<8x1xf32>
    %601 = arith.divf %599, %600 : vector<8x1xf32>
    %602 = vector.broadcast %601 : vector<8x1xf32> to vector<8x128xf32>
    %603 = arith.subf %590, %602 : vector<8x128xf32>
    %604 = arith.mulf %603, %603 : vector<8x128xf32>
    %cst_229 = arith.constant dense<0.000000e+00> : vector<8xf32>
    %605 = vector.multi_reduction <add>, %604, %cst_229 [1] : vector<8x128xf32> to vector<8xf32>
    %606 = vector.shape_cast %605 : vector<8xf32> to vector<8x1xf32>
    %cst_230 = arith.constant 1.280000e+02 : f32
    %607 = vector.broadcast %cst_230 : f32 to vector<8x1xf32>
    %608 = arith.divf %606, %607 : vector<8x1xf32>
    %cst_231 = arith.constant 9.99999974E-6 : f32
    %609 = vector.broadcast %cst_231 : f32 to vector<8x1xf32>
    %610 = arith.addf %608, %609 : vector<8x1xf32>
    %611 = math.rsqrt %610 : vector<8x1xf32>
    %612 = vector.broadcast %611 : vector<8x1xf32> to vector<8x128xf32>
    %613 = arith.mulf %603, %612 : vector<8x128xf32>
    %614 = vector.broadcast %596 : vector<1x128xf32> to vector<8x128xf32>
    %615 = arith.mulf %613, %614 : vector<8x128xf32>
    %616 = vector.broadcast %597 : vector<1x128xf32> to vector<8x128xf32>
    %617 = arith.addf %615, %616 : vector<8x128xf32>
    %cst_232 = arith.constant 0.000000e+00 : f32
    %618 = vector.broadcast %cst_232 : f32 to vector<8x128xf32>
    %619 = arith.maximumf %617, %618 : vector<8x128xf32>
    %620 = arith.truncf %619 : vector<8x128xf32> to vector<8x128xbf16>
    %c1_233 = arith.constant 1 : index
    %c0_234 = arith.constant 0 : index
    %c0_235 = arith.constant 0 : index
    %621 = vector.load %arg6[%c1_233, %c0_234, %c0_235] : memref<3x128x384xbf16, #tpu.memory_space<vmem>>, vector<1x128x384xbf16>
    %622 = vector.shape_cast %621 : vector<1x128x384xbf16> to vector<128x384xbf16>
    %cst_236 = arith.constant dense<0.000000e+00> : vector<8x384xf32>
    %623 = tpu.matmul %620, %622, %cst_236 {dimension_numbers = #tpu.dot_dimension_numbers<[1], [0], [0], [1], [0, 0, 1, 1], [], []>} : vector<8x128xbf16>, vector<128x384xbf16>, vector<8x384xf32> -> vector<8x384xf32>
    %624 = vector.extract_strided_slice %593 {offsets = [0, 0], sizes = [1, 384], strides = [1, 1]} : vector<2x384xf32> to vector<1x384xf32>
    %625 = vector.broadcast %624 : vector<1x384xf32> to vector<8x384xf32>
    %626 = arith.addf %623, %625 : vector<8x384xf32>
    %627 = vector.extract_strided_slice %593 {offsets = [1, 0], sizes = [1, 384], strides = [1, 1]} : vector<2x384xf32> to vector<1x384xf32>
    %628 = arith.truncf %484 : vector<8x128xf32> to vector<8x128xbf16>
    %c1_237 = arith.constant 1 : index
    %c0_238 = arith.constant 0 : index
    %c0_239 = arith.constant 0 : index
    %629 = vector.load %arg7[%c1_237, %c0_238, %c0_239] : memref<3x128x384xbf16, #tpu.memory_space<vmem>>, vector<1x128x384xbf16>
    %630 = vector.shape_cast %629 : vector<1x128x384xbf16> to vector<128x384xbf16>
    %cst_240 = arith.constant dense<0.000000e+00> : vector<8x384xf32>
    %631 = tpu.matmul %628, %630, %cst_240 {dimension_numbers = #tpu.dot_dimension_numbers<[1], [0], [0], [1], [0, 0, 1, 1], [], []>} : vector<8x128xbf16>, vector<128x384xbf16>, vector<8x384xf32> -> vector<8x384xf32>
    %632 = vector.broadcast %627 : vector<1x384xf32> to vector<8x384xf32>
    %633 = arith.addf %631, %632 : vector<8x384xf32>
    %634 = vector.extract_strided_slice %626 {offsets = [0, 0], sizes = [8, 128], strides = [1, 1]} : vector<8x384xf32> to vector<8x128xf32>
    %635 = vector.extract_strided_slice %633 {offsets = [0, 0], sizes = [8, 128], strides = [1, 1]} : vector<8x384xf32> to vector<8x128xf32>
    %636 = arith.addf %634, %635 : vector<8x128xf32>
    %637 = arith.negf %636 : vector<8x128xf32>
    %638 = math.exp %637 : vector<8x128xf32>
    %cst_241 = arith.constant 1.000000e+00 : f32
    %639 = vector.broadcast %cst_241 : f32 to vector<8x128xf32>
    %640 = arith.addf %639, %638 : vector<8x128xf32>
    %641 = arith.divf %639, %640 : vector<8x128xf32>
    %642 = vector.extract_strided_slice %626 {offsets = [0, 128], sizes = [8, 128], strides = [1, 1]} : vector<8x384xf32> to vector<8x128xf32>
    %643 = vector.extract_strided_slice %633 {offsets = [0, 128], sizes = [8, 128], strides = [1, 1]} : vector<8x384xf32> to vector<8x128xf32>
    %644 = arith.addf %642, %643 : vector<8x128xf32>
    %645 = arith.negf %644 : vector<8x128xf32>
    %646 = math.exp %645 : vector<8x128xf32>
    %cst_242 = arith.constant 1.000000e+00 : f32
    %647 = vector.broadcast %cst_242 : f32 to vector<8x128xf32>
    %648 = arith.addf %647, %646 : vector<8x128xf32>
    %649 = arith.divf %647, %648 : vector<8x128xf32>
    %650 = vector.extract_strided_slice %626 {offsets = [0, 256], sizes = [8, 128], strides = [1, 1]} : vector<8x384xf32> to vector<8x128xf32>
    %651 = vector.extract_strided_slice %633 {offsets = [0, 256], sizes = [8, 128], strides = [1, 1]} : vector<8x384xf32> to vector<8x128xf32>
    %652 = arith.mulf %641, %651 : vector<8x128xf32>
    %653 = arith.addf %650, %652 : vector<8x128xf32>
    %654 = math.tanh %653 : vector<8x128xf32>
    %cst_243 = arith.constant 1.000000e+00 : f32
    %655 = vector.broadcast %cst_243 : f32 to vector<8x128xf32>
    %656 = arith.subf %655, %649 : vector<8x128xf32>
    %657 = arith.mulf %656, %654 : vector<8x128xf32>
    %658 = arith.mulf %649, %484 : vector<8x128xf32>
    %659 = arith.addf %657, %658 : vector<8x128xf32>
    %c64 = arith.constant 64 : index
    %c0_244 = arith.constant 0 : index
    %660 = vector.load %arg17[%c64, %c0_244] : memref<120x128xf32, #tpu.memory_space<vmem>>, vector<8x128xf32>
    tpu.vector_store %arg17[%c64, %c0_244], %659 {strides = array<i32>} : memref<120x128xf32, #tpu.memory_space<vmem>>, vector<8x128xf32>,
    %c2_245 = arith.constant 2 : index
    %c0_246 = arith.constant 0 : index
    %c0_247 = arith.constant 0 : index
    %661 = vector.load %arg8[%c2_245, %c0_246, %c0_247] : memref<3x2x384xf32, #tpu.memory_space<vmem>>, vector<1x2x384xf32>
    %662 = vector.shape_cast %661 : vector<1x2x384xf32> to vector<2x384xf32>
    %c1_248 = arith.constant 1 : index
    %c0_249 = arith.constant 0 : index
    %c0_250 = arith.constant 0 : index
    %663 = vector.load %arg9[%c1_248, %c0_249, %c0_250] : memref<3x2x128xf32, #tpu.memory_space<vmem>>, vector<1x2x128xf32>
    %664 = vector.shape_cast %663 : vector<1x2x128xf32> to vector<2x128xf32>
    %665 = vector.extract_strided_slice %664 {offsets = [0, 0], sizes = [1, 128], strides = [1, 1]} : vector<2x128xf32> to vector<1x128xf32>
    %666 = vector.extract_strided_slice %664 {offsets = [1, 0], sizes = [1, 128], strides = [1, 1]} : vector<2x128xf32> to vector<1x128xf32>
    %cst_251 = arith.constant dense<0.000000e+00> : vector<8xf32>
    %667 = vector.multi_reduction <add>, %659, %cst_251 [1] : vector<8x128xf32> to vector<8xf32>
    %668 = vector.shape_cast %667 : vector<8xf32> to vector<8x1xf32>
    %cst_252 = arith.constant 1.280000e+02 : f32
    %669 = vector.broadcast %cst_252 : f32 to vector<8x1xf32>
    %670 = arith.divf %668, %669 : vector<8x1xf32>
    %671 = vector.broadcast %670 : vector<8x1xf32> to vector<8x128xf32>
    %672 = arith.subf %659, %671 : vector<8x128xf32>
    %673 = arith.mulf %672, %672 : vector<8x128xf32>
    %cst_253 = arith.constant dense<0.000000e+00> : vector<8xf32>
    %674 = vector.multi_reduction <add>, %673, %cst_253 [1] : vector<8x128xf32> to vector<8xf32>
    %675 = vector.shape_cast %674 : vector<8xf32> to vector<8x1xf32>
    %cst_254 = arith.constant 1.280000e+02 : f32
    %676 = vector.broadcast %cst_254 : f32 to vector<8x1xf32>
    %677 = arith.divf %675, %676 : vector<8x1xf32>
    %cst_255 = arith.constant 9.99999974E-6 : f32
    %678 = vector.broadcast %cst_255 : f32 to vector<8x1xf32>
    %679 = arith.addf %677, %678 : vector<8x1xf32>
    %680 = math.rsqrt %679 : vector<8x1xf32>
    %681 = vector.broadcast %680 : vector<8x1xf32> to vector<8x128xf32>
    %682 = arith.mulf %672, %681 : vector<8x128xf32>
    %683 = vector.broadcast %665 : vector<1x128xf32> to vector<8x128xf32>
    %684 = arith.mulf %682, %683 : vector<8x128xf32>
    %685 = vector.broadcast %666 : vector<1x128xf32> to vector<8x128xf32>
    %686 = arith.addf %684, %685 : vector<8x128xf32>
    %cst_256 = arith.constant 0.000000e+00 : f32
    %687 = vector.broadcast %cst_256 : f32 to vector<8x128xf32>
    %688 = arith.maximumf %686, %687 : vector<8x128xf32>
    %689 = arith.truncf %688 : vector<8x128xf32> to vector<8x128xbf16>
    %c2_257 = arith.constant 2 : index
    %c0_258 = arith.constant 0 : index
    %c0_259 = arith.constant 0 : index
    %690 = vector.load %arg6[%c2_257, %c0_258, %c0_259] : memref<3x128x384xbf16, #tpu.memory_space<vmem>>, vector<1x128x384xbf16>
    %691 = vector.shape_cast %690 : vector<1x128x384xbf16> to vector<128x384xbf16>
    %cst_260 = arith.constant dense<0.000000e+00> : vector<8x384xf32>
    %692 = tpu.matmul %689, %691, %cst_260 {dimension_numbers = #tpu.dot_dimension_numbers<[1], [0], [0], [1], [0, 0, 1, 1], [], []>} : vector<8x128xbf16>, vector<128x384xbf16>, vector<8x384xf32> -> vector<8x384xf32>
    %693 = vector.extract_strided_slice %662 {offsets = [0, 0], sizes = [1, 384], strides = [1, 1]} : vector<2x384xf32> to vector<1x384xf32>
    %694 = vector.broadcast %693 : vector<1x384xf32> to vector<8x384xf32>
    %695 = arith.addf %692, %694 : vector<8x384xf32>
    %696 = vector.extract_strided_slice %662 {offsets = [1, 0], sizes = [1, 384], strides = [1, 1]} : vector<2x384xf32> to vector<1x384xf32>
    %697 = arith.truncf %553 : vector<8x128xf32> to vector<8x128xbf16>
    %c2_261 = arith.constant 2 : index
    %c0_262 = arith.constant 0 : index
    %c0_263 = arith.constant 0 : index
    %698 = vector.load %arg7[%c2_261, %c0_262, %c0_263] : memref<3x128x384xbf16, #tpu.memory_space<vmem>>, vector<1x128x384xbf16>
    %699 = vector.shape_cast %698 : vector<1x128x384xbf16> to vector<128x384xbf16>
    %cst_264 = arith.constant dense<0.000000e+00> : vector<8x384xf32>
    %700 = tpu.matmul %697, %699, %cst_264 {dimension_numbers = #tpu.dot_dimension_numbers<[1], [0], [0], [1], [0, 0, 1, 1], [], []>} : vector<8x128xbf16>, vector<128x384xbf16>, vector<8x384xf32> -> vector<8x384xf32>
    %701 = vector.broadcast %696 : vector<1x384xf32> to vector<8x384xf32>
    %702 = arith.addf %700, %701 : vector<8x384xf32>
    %703 = vector.extract_strided_slice %695 {offsets = [0, 0], sizes = [8, 128], strides = [1, 1]} : vector<8x384xf32> to vector<8x128xf32>
    %704 = vector.extract_strided_slice %702 {offsets = [0, 0], sizes = [8, 128], strides = [1, 1]} : vector<8x384xf32> to vector<8x128xf32>
    %705 = arith.addf %703, %704 : vector<8x128xf32>
    %706 = arith.negf %705 : vector<8x128xf32>
    %707 = math.exp %706 : vector<8x128xf32>
    %cst_265 = arith.constant 1.000000e+00 : f32
    %708 = vector.broadcast %cst_265 : f32 to vector<8x128xf32>
    %709 = arith.addf %708, %707 : vector<8x128xf32>
    %710 = arith.divf %708, %709 : vector<8x128xf32>
    %711 = vector.extract_strided_slice %695 {offsets = [0, 128], sizes = [8, 128], strides = [1, 1]} : vector<8x384xf32> to vector<8x128xf32>
    %712 = vector.extract_strided_slice %702 {offsets = [0, 128], sizes = [8, 128], strides = [1, 1]} : vector<8x384xf32> to vector<8x128xf32>
    %713 = arith.addf %711, %712 : vector<8x128xf32>
    %714 = arith.negf %713 : vector<8x128xf32>
    %715 = math.exp %714 : vector<8x128xf32>
    %cst_266 = arith.constant 1.000000e+00 : f32
    %716 = vector.broadcast %cst_266 : f32 to vector<8x128xf32>
    %717 = arith.addf %716, %715 : vector<8x128xf32>
    %718 = arith.divf %716, %717 : vector<8x128xf32>
    %719 = vector.extract_strided_slice %695 {offsets = [0, 256], sizes = [8, 128], strides = [1, 1]} : vector<8x384xf32> to vector<8x128xf32>
    %720 = vector.extract_strided_slice %702 {offsets = [0, 256], sizes = [8, 128], strides = [1, 1]} : vector<8x384xf32> to vector<8x128xf32>
    %721 = arith.mulf %710, %720 : vector<8x128xf32>
    %722 = arith.addf %719, %721 : vector<8x128xf32>
    %723 = math.tanh %722 : vector<8x128xf32>
    %cst_267 = arith.constant 1.000000e+00 : f32
    %724 = vector.broadcast %cst_267 : f32 to vector<8x128xf32>
    %725 = arith.subf %724, %718 : vector<8x128xf32>
    %726 = arith.mulf %725, %723 : vector<8x128xf32>
    %727 = arith.mulf %718, %553 : vector<8x128xf32>
    %728 = arith.addf %726, %727 : vector<8x128xf32>
    %c104 = arith.constant 104 : index
    %c0_268 = arith.constant 0 : index
    %729 = vector.load %arg17[%c104, %c0_268] : memref<120x128xf32, #tpu.memory_space<vmem>>, vector<8x128xf32>
    tpu.vector_store %arg17[%c104, %c0_268], %728 {strides = array<i32>} : memref<120x128xf32, #tpu.memory_space<vmem>>, vector<8x128xf32>,
    %c0_269 = arith.constant 0 : index
    %c0_270 = arith.constant 0 : index
    %c0_271 = arith.constant 0 : index
    %730 = vector.load %arg8[%c0_269, %c0_270, %c0_271] : memref<3x2x384xf32, #tpu.memory_space<vmem>>, vector<1x2x384xf32>
    %731 = vector.shape_cast %730 : vector<1x2x384xf32> to vector<2x384xf32>
    %c32 = arith.constant 32 : index
    %c0_272 = arith.constant 0 : index
    %732 = vector.load %arg18[%c32, %c0_272] : memref<40x384xf32, #tpu.memory_space<vmem>>, vector<8x384xf32>
    %733 = vector.extract_strided_slice %731 {offsets = [1, 0], sizes = [1, 384], strides = [1, 1]} : vector<2x384xf32> to vector<1x384xf32>
    %734 = arith.truncf %590 : vector<8x128xf32> to vector<8x128xbf16>
    %c0_273 = arith.constant 0 : index
    %c0_274 = arith.constant 0 : index
    %c0_275 = arith.constant 0 : index
    %735 = vector.load %arg7[%c0_273, %c0_274, %c0_275] : memref<3x128x384xbf16, #tpu.memory_space<vmem>>, vector<1x128x384xbf16>
    %736 = vector.shape_cast %735 : vector<1x128x384xbf16> to vector<128x384xbf16>
    %cst_276 = arith.constant dense<0.000000e+00> : vector<8x384xf32>
    %737 = tpu.matmul %734, %736, %cst_276 {dimension_numbers = #tpu.dot_dimension_numbers<[1], [0], [0], [1], [0, 0, 1, 1], [], []>} : vector<8x128xbf16>, vector<128x384xbf16>, vector<8x384xf32> -> vector<8x384xf32>
    %738 = vector.broadcast %733 : vector<1x384xf32> to vector<8x384xf32>
    %739 = arith.addf %737, %738 : vector<8x384xf32>
    %740 = vector.extract_strided_slice %732 {offsets = [0, 0], sizes = [8, 128], strides = [1, 1]} : vector<8x384xf32> to vector<8x128xf32>
    %741 = vector.extract_strided_slice %739 {offsets = [0, 0], sizes = [8, 128], strides = [1, 1]} : vector<8x384xf32> to vector<8x128xf32>
    %742 = arith.addf %740, %741 : vector<8x128xf32>
    %743 = arith.negf %742 : vector<8x128xf32>
    %744 = math.exp %743 : vector<8x128xf32>
    %cst_277 = arith.constant 1.000000e+00 : f32
    %745 = vector.broadcast %cst_277 : f32 to vector<8x128xf32>
    %746 = arith.addf %745, %744 : vector<8x128xf32>
    %747 = arith.divf %745, %746 : vector<8x128xf32>
    %748 = vector.extract_strided_slice %732 {offsets = [0, 128], sizes = [8, 128], strides = [1, 1]} : vector<8x384xf32> to vector<8x128xf32>
    %749 = vector.extract_strided_slice %739 {offsets = [0, 128], sizes = [8, 128], strides = [1, 1]} : vector<8x384xf32> to vector<8x128xf32>
    %750 = arith.addf %748, %749 : vector<8x128xf32>
    %751 = arith.negf %750 : vector<8x128xf32>
    %752 = math.exp %751 : vector<8x128xf32>
    %cst_278 = arith.constant 1.000000e+00 : f32
    %753 = vector.broadcast %cst_278 : f32 to vector<8x128xf32>
    %754 = arith.addf %753, %752 : vector<8x128xf32>
    %755 = arith.divf %753, %754 : vector<8x128xf32>
    %756 = vector.extract_strided_slice %732 {offsets = [0, 256], sizes = [8, 128], strides = [1, 1]} : vector<8x384xf32> to vector<8x128xf32>
    %757 = vector.extract_strided_slice %739 {offsets = [0, 256], sizes = [8, 128], strides = [1, 1]} : vector<8x384xf32> to vector<8x128xf32>
    %758 = arith.mulf %747, %757 : vector<8x128xf32>
    %759 = arith.addf %756, %758 : vector<8x128xf32>
    %760 = math.tanh %759 : vector<8x128xf32>
    %cst_279 = arith.constant 1.000000e+00 : f32
    %761 = vector.broadcast %cst_279 : f32 to vector<8x128xf32>
    %762 = arith.subf %761, %755 : vector<8x128xf32>
    %763 = arith.mulf %762, %760 : vector<8x128xf32>
    %764 = arith.mulf %755, %590 : vector<8x128xf32>
    %765 = arith.addf %763, %764 : vector<8x128xf32>
    %c32_280 = arith.constant 32 : index
    %c0_281 = arith.constant 0 : index
    %766 = vector.load %arg17[%c32_280, %c0_281] : memref<120x128xf32, #tpu.memory_space<vmem>>, vector<8x128xf32>
    tpu.vector_store %arg17[%c32_280, %c0_281], %765 {strides = array<i32>} : memref<120x128xf32, #tpu.memory_space<vmem>>, vector<8x128xf32>,
    %c1_282 = arith.constant 1 : index
    %c0_283 = arith.constant 0 : index
    %c0_284 = arith.constant 0 : index
    %767 = vector.load %arg8[%c1_282, %c0_283, %c0_284] : memref<3x2x384xf32, #tpu.memory_space<vmem>>, vector<1x2x384xf32>
    %768 = vector.shape_cast %767 : vector<1x2x384xf32> to vector<2x384xf32>
    %c0_285 = arith.constant 0 : index
    %c0_286 = arith.constant 0 : index
    %c0_287 = arith.constant 0 : index
    %769 = vector.load %arg9[%c0_285, %c0_286, %c0_287] : memref<3x2x128xf32, #tpu.memory_space<vmem>>, vector<1x2x128xf32>
    %770 = vector.shape_cast %769 : vector<1x2x128xf32> to vector<2x128xf32>
    %771 = vector.extract_strided_slice %770 {offsets = [0, 0], sizes = [1, 128], strides = [1, 1]} : vector<2x128xf32> to vector<1x128xf32>
    %772 = vector.extract_strided_slice %770 {offsets = [1, 0], sizes = [1, 128], strides = [1, 1]} : vector<2x128xf32> to vector<1x128xf32>
    %cst_288 = arith.constant dense<0.000000e+00> : vector<8xf32>
    %773 = vector.multi_reduction <add>, %765, %cst_288 [1] : vector<8x128xf32> to vector<8xf32>
    %774 = vector.shape_cast %773 : vector<8xf32> to vector<8x1xf32>
    %cst_289 = arith.constant 1.280000e+02 : f32
    %775 = vector.broadcast %cst_289 : f32 to vector<8x1xf32>
    %776 = arith.divf %774, %775 : vector<8x1xf32>
    %777 = vector.broadcast %776 : vector<8x1xf32> to vector<8x128xf32>
    %778 = arith.subf %765, %777 : vector<8x128xf32>
    %779 = arith.mulf %778, %778 : vector<8x128xf32>
    %cst_290 = arith.constant dense<0.000000e+00> : vector<8xf32>
    %780 = vector.multi_reduction <add>, %779, %cst_290 [1] : vector<8x128xf32> to vector<8xf32>
    %781 = vector.shape_cast %780 : vector<8xf32> to vector<8x1xf32>
    %cst_291 = arith.constant 1.280000e+02 : f32
    %782 = vector.broadcast %cst_291 : f32 to vector<8x1xf32>
    %783 = arith.divf %781, %782 : vector<8x1xf32>
    %cst_292 = arith.constant 9.99999974E-6 : f32
    %784 = vector.broadcast %cst_292 : f32 to vector<8x1xf32>
    %785 = arith.addf %783, %784 : vector<8x1xf32>
    %786 = math.rsqrt %785 : vector<8x1xf32>
    %787 = vector.broadcast %786 : vector<8x1xf32> to vector<8x128xf32>
    %788 = arith.mulf %778, %787 : vector<8x128xf32>
    %789 = vector.broadcast %771 : vector<1x128xf32> to vector<8x128xf32>
    %790 = arith.mulf %788, %789 : vector<8x128xf32>
    %791 = vector.broadcast %772 : vector<1x128xf32> to vector<8x128xf32>
    %792 = arith.addf %790, %791 : vector<8x128xf32>
    %cst_293 = arith.constant 0.000000e+00 : f32
    %793 = vector.broadcast %cst_293 : f32 to vector<8x128xf32>
    %794 = arith.maximumf %792, %793 : vector<8x128xf32>
    %795 = arith.truncf %794 : vector<8x128xf32> to vector<8x128xbf16>
    %c1_294 = arith.constant 1 : index
    %c0_295 = arith.constant 0 : index
    %c0_296 = arith.constant 0 : index
    %796 = vector.load %arg6[%c1_294, %c0_295, %c0_296] : memref<3x128x384xbf16, #tpu.memory_space<vmem>>, vector<1x128x384xbf16>
    %797 = vector.shape_cast %796 : vector<1x128x384xbf16> to vector<128x384xbf16>
    %cst_297 = arith.constant dense<0.000000e+00> : vector<8x384xf32>
    %798 = tpu.matmul %795, %797, %cst_297 {dimension_numbers = #tpu.dot_dimension_numbers<[1], [0], [0], [1], [0, 0, 1, 1], [], []>} : vector<8x128xbf16>, vector<128x384xbf16>, vector<8x384xf32> -> vector<8x384xf32>
    %799 = vector.extract_strided_slice %768 {offsets = [0, 0], sizes = [1, 384], strides = [1, 1]} : vector<2x384xf32> to vector<1x384xf32>
    %800 = vector.broadcast %799 : vector<1x384xf32> to vector<8x384xf32>
    %801 = arith.addf %798, %800 : vector<8x384xf32>
    %802 = vector.extract_strided_slice %768 {offsets = [1, 0], sizes = [1, 384], strides = [1, 1]} : vector<2x384xf32> to vector<1x384xf32>
    %803 = arith.truncf %659 : vector<8x128xf32> to vector<8x128xbf16>
    %c1_298 = arith.constant 1 : index
    %c0_299 = arith.constant 0 : index
    %c0_300 = arith.constant 0 : index
    %804 = vector.load %arg7[%c1_298, %c0_299, %c0_300] : memref<3x128x384xbf16, #tpu.memory_space<vmem>>, vector<1x128x384xbf16>
    %805 = vector.shape_cast %804 : vector<1x128x384xbf16> to vector<128x384xbf16>
    %cst_301 = arith.constant dense<0.000000e+00> : vector<8x384xf32>
    %806 = tpu.matmul %803, %805, %cst_301 {dimension_numbers = #tpu.dot_dimension_numbers<[1], [0], [0], [1], [0, 0, 1, 1], [], []>} : vector<8x128xbf16>, vector<128x384xbf16>, vector<8x384xf32> -> vector<8x384xf32>
    %807 = vector.broadcast %802 : vector<1x384xf32> to vector<8x384xf32>
    %808 = arith.addf %806, %807 : vector<8x384xf32>
    %809 = vector.extract_strided_slice %801 {offsets = [0, 0], sizes = [8, 128], strides = [1, 1]} : vector<8x384xf32> to vector<8x128xf32>
    %810 = vector.extract_strided_slice %808 {offsets = [0, 0], sizes = [8, 128], strides = [1, 1]} : vector<8x384xf32> to vector<8x128xf32>
    %811 = arith.addf %809, %810 : vector<8x128xf32>
    %812 = arith.negf %811 : vector<8x128xf32>
    %813 = math.exp %812 : vector<8x128xf32>
    %cst_302 = arith.constant 1.000000e+00 : f32
    %814 = vector.broadcast %cst_302 : f32 to vector<8x128xf32>
    %815 = arith.addf %814, %813 : vector<8x128xf32>
    %816 = arith.divf %814, %815 : vector<8x128xf32>
    %817 = vector.extract_strided_slice %801 {offsets = [0, 128], sizes = [8, 128], strides = [1, 1]} : vector<8x384xf32> to vector<8x128xf32>
    %818 = vector.extract_strided_slice %808 {offsets = [0, 128], sizes = [8, 128], strides = [1, 1]} : vector<8x384xf32> to vector<8x128xf32>
    %819 = arith.addf %817, %818 : vector<8x128xf32>
    %820 = arith.negf %819 : vector<8x128xf32>
    %821 = math.exp %820 : vector<8x128xf32>
    %cst_303 = arith.constant 1.000000e+00 : f32
    %822 = vector.broadcast %cst_303 : f32 to vector<8x128xf32>
    %823 = arith.addf %822, %821 : vector<8x128xf32>
    %824 = arith.divf %822, %823 : vector<8x128xf32>
    %825 = vector.extract_strided_slice %801 {offsets = [0, 256], sizes = [8, 128], strides = [1, 1]} : vector<8x384xf32> to vector<8x128xf32>
    %826 = vector.extract_strided_slice %808 {offsets = [0, 256], sizes = [8, 128], strides = [1, 1]} : vector<8x384xf32> to vector<8x128xf32>
    %827 = arith.mulf %816, %826 : vector<8x128xf32>
    %828 = arith.addf %825, %827 : vector<8x128xf32>
    %829 = math.tanh %828 : vector<8x128xf32>
    %cst_304 = arith.constant 1.000000e+00 : f32
    %830 = vector.broadcast %cst_304 : f32 to vector<8x128xf32>
    %831 = arith.subf %830, %824 : vector<8x128xf32>
    %832 = arith.mulf %831, %829 : vector<8x128xf32>
    %833 = arith.mulf %824, %659 : vector<8x128xf32>
    %834 = arith.addf %832, %833 : vector<8x128xf32>
    %c72 = arith.constant 72 : index
    %c0_305 = arith.constant 0 : index
    %835 = vector.load %arg17[%c72, %c0_305] : memref<120x128xf32, #tpu.memory_space<vmem>>, vector<8x128xf32>
    tpu.vector_store %arg17[%c72, %c0_305], %834 {strides = array<i32>} : memref<120x128xf32, #tpu.memory_space<vmem>>, vector<8x128xf32>,
    %c2_306 = arith.constant 2 : index
    %c0_307 = arith.constant 0 : index
    %c0_308 = arith.constant 0 : index
    %836 = vector.load %arg8[%c2_306, %c0_307, %c0_308] : memref<3x2x384xf32, #tpu.memory_space<vmem>>, vector<1x2x384xf32>
    %837 = vector.shape_cast %836 : vector<1x2x384xf32> to vector<2x384xf32>
    %c1_309 = arith.constant 1 : index
    %c0_310 = arith.constant 0 : index
    %c0_311 = arith.constant 0 : index
    %838 = vector.load %arg9[%c1_309, %c0_310, %c0_311] : memref<3x2x128xf32, #tpu.memory_space<vmem>>, vector<1x2x128xf32>
    %839 = vector.shape_cast %838 : vector<1x2x128xf32> to vector<2x128xf32>
    %840 = vector.extract_strided_slice %839 {offsets = [0, 0], sizes = [1, 128], strides = [1, 1]} : vector<2x128xf32> to vector<1x128xf32>
    %841 = vector.extract_strided_slice %839 {offsets = [1, 0], sizes = [1, 128], strides = [1, 1]} : vector<2x128xf32> to vector<1x128xf32>
    %cst_312 = arith.constant dense<0.000000e+00> : vector<8xf32>
    %842 = vector.multi_reduction <add>, %834, %cst_312 [1] : vector<8x128xf32> to vector<8xf32>
    %843 = vector.shape_cast %842 : vector<8xf32> to vector<8x1xf32>
    %cst_313 = arith.constant 1.280000e+02 : f32
    %844 = vector.broadcast %cst_313 : f32 to vector<8x1xf32>
    %845 = arith.divf %843, %844 : vector<8x1xf32>
    %846 = vector.broadcast %845 : vector<8x1xf32> to vector<8x128xf32>
    %847 = arith.subf %834, %846 : vector<8x128xf32>
    %848 = arith.mulf %847, %847 : vector<8x128xf32>
    %cst_314 = arith.constant dense<0.000000e+00> : vector<8xf32>
    %849 = vector.multi_reduction <add>, %848, %cst_314 [1] : vector<8x128xf32> to vector<8xf32>
    %850 = vector.shape_cast %849 : vector<8xf32> to vector<8x1xf32>
    %cst_315 = arith.constant 1.280000e+02 : f32
    %851 = vector.broadcast %cst_315 : f32 to vector<8x1xf32>
    %852 = arith.divf %850, %851 : vector<8x1xf32>
    %cst_316 = arith.constant 9.99999974E-6 : f32
    %853 = vector.broadcast %cst_316 : f32 to vector<8x1xf32>
    %854 = arith.addf %852, %853 : vector<8x1xf32>
    %855 = math.rsqrt %854 : vector<8x1xf32>
    %856 = vector.broadcast %855 : vector<8x1xf32> to vector<8x128xf32>
    %857 = arith.mulf %847, %856 : vector<8x128xf32>
    %858 = vector.broadcast %840 : vector<1x128xf32> to vector<8x128xf32>
    %859 = arith.mulf %857, %858 : vector<8x128xf32>
    %860 = vector.broadcast %841 : vector<1x128xf32> to vector<8x128xf32>
    %861 = arith.addf %859, %860 : vector<8x128xf32>
    %cst_317 = arith.constant 0.000000e+00 : f32
    %862 = vector.broadcast %cst_317 : f32 to vector<8x128xf32>
    %863 = arith.maximumf %861, %862 : vector<8x128xf32>
    %864 = arith.truncf %863 : vector<8x128xf32> to vector<8x128xbf16>
    %c2_318 = arith.constant 2 : index
    %c0_319 = arith.constant 0 : index
    %c0_320 = arith.constant 0 : index
    %865 = vector.load %arg6[%c2_318, %c0_319, %c0_320] : memref<3x128x384xbf16, #tpu.memory_space<vmem>>, vector<1x128x384xbf16>
    %866 = vector.shape_cast %865 : vector<1x128x384xbf16> to vector<128x384xbf16>
    %cst_321 = arith.constant dense<0.000000e+00> : vector<8x384xf32>
    %867 = tpu.matmul %864, %866, %cst_321 {dimension_numbers = #tpu.dot_dimension_numbers<[1], [0], [0], [1], [0, 0, 1, 1], [], []>} : vector<8x128xbf16>, vector<128x384xbf16>, vector<8x384xf32> -> vector<8x384xf32>
    %868 = vector.extract_strided_slice %837 {offsets = [0, 0], sizes = [1, 384], strides = [1, 1]} : vector<2x384xf32> to vector<1x384xf32>
    %869 = vector.broadcast %868 : vector<1x384xf32> to vector<8x384xf32>
    %870 = arith.addf %867, %869 : vector<8x384xf32>
    %871 = vector.extract_strided_slice %837 {offsets = [1, 0], sizes = [1, 384], strides = [1, 1]} : vector<2x384xf32> to vector<1x384xf32>
    %872 = arith.truncf %728 : vector<8x128xf32> to vector<8x128xbf16>
    %c2_322 = arith.constant 2 : index
    %c0_323 = arith.constant 0 : index
    %c0_324 = arith.constant 0 : index
    %873 = vector.load %arg7[%c2_322, %c0_323, %c0_324] : memref<3x128x384xbf16, #tpu.memory_space<vmem>>, vector<1x128x384xbf16>
    %874 = vector.shape_cast %873 : vector<1x128x384xbf16> to vector<128x384xbf16>
    %cst_325 = arith.constant dense<0.000000e+00> : vector<8x384xf32>
    %875 = tpu.matmul %872, %874, %cst_325 {dimension_numbers = #tpu.dot_dimension_numbers<[1], [0], [0], [1], [0, 0, 1, 1], [], []>} : vector<8x128xbf16>, vector<128x384xbf16>, vector<8x384xf32> -> vector<8x384xf32>
    %876 = vector.broadcast %871 : vector<1x384xf32> to vector<8x384xf32>
    %877 = arith.addf %875, %876 : vector<8x384xf32>
    %878 = vector.extract_strided_slice %870 {offsets = [0, 0], sizes = [8, 128], strides = [1, 1]} : vector<8x384xf32> to vector<8x128xf32>
    %879 = vector.extract_strided_slice %877 {offsets = [0, 0], sizes = [8, 128], strides = [1, 1]} : vector<8x384xf32> to vector<8x128xf32>
    %880 = arith.addf %878, %879 : vector<8x128xf32>
    %881 = arith.negf %880 : vector<8x128xf32>
    %882 = math.exp %881 : vector<8x128xf32>
    %cst_326 = arith.constant 1.000000e+00 : f32
    %883 = vector.broadcast %cst_326 : f32 to vector<8x128xf32>
    %884 = arith.addf %883, %882 : vector<8x128xf32>
    %885 = arith.divf %883, %884 : vector<8x128xf32>
    %886 = vector.extract_strided_slice %870 {offsets = [0, 128], sizes = [8, 128], strides = [1, 1]} : vector<8x384xf32> to vector<8x128xf32>
    %887 = vector.extract_strided_slice %877 {offsets = [0, 128], sizes = [8, 128], strides = [1, 1]} : vector<8x384xf32> to vector<8x128xf32>
    %888 = arith.addf %886, %887 : vector<8x128xf32>
    %889 = arith.negf %888 : vector<8x128xf32>
    %890 = math.exp %889 : vector<8x128xf32>
    %cst_327 = arith.constant 1.000000e+00 : f32
    %891 = vector.broadcast %cst_327 : f32 to vector<8x128xf32>
    %892 = arith.addf %891, %890 : vector<8x128xf32>
    %893 = arith.divf %891, %892 : vector<8x128xf32>
    %894 = vector.extract_strided_slice %870 {offsets = [0, 256], sizes = [8, 128], strides = [1, 1]} : vector<8x384xf32> to vector<8x128xf32>
    %895 = vector.extract_strided_slice %877 {offsets = [0, 256], sizes = [8, 128], strides = [1, 1]} : vector<8x384xf32> to vector<8x128xf32>
    %896 = arith.mulf %885, %895 : vector<8x128xf32>
    %897 = arith.addf %894, %896 : vector<8x128xf32>
    %898 = math.tanh %897 : vector<8x128xf32>
    %cst_328 = arith.constant 1.000000e+00 : f32
    %899 = vector.broadcast %cst_328 : f32 to vector<8x128xf32>
    %900 = arith.subf %899, %893 : vector<8x128xf32>
    %901 = arith.mulf %900, %898 : vector<8x128xf32>
    %902 = arith.mulf %893, %728 : vector<8x128xf32>
    %903 = arith.addf %901, %902 : vector<8x128xf32>
    %c112 = arith.constant 112 : index
    %c0_329 = arith.constant 0 : index
    %904 = vector.load %arg17[%c112, %c0_329] : memref<120x128xf32, #tpu.memory_space<vmem>>, vector<8x128xf32>
    tpu.vector_store %arg17[%c112, %c0_329], %903 {strides = array<i32>} : memref<120x128xf32, #tpu.memory_space<vmem>>, vector<8x128xf32>,
    %c0_330 = arith.constant 0 : index
    %c0_331 = arith.constant 0 : index
    %905 = vector.load %arg1[%c0_330, %c0_331] : memref<40x81xf32, #tpu.memory_space<vmem>>, vector<40x81xf32>
    %906 = arith.truncf %905 : vector<40x81xf32> to vector<40x81xbf16>
    %c1_332 = arith.constant 1 : index
    %c0_333 = arith.constant 0 : index
    %c0_334 = arith.constant 0 : index
    %907 = vector.load %arg2[%c1_332, %c0_333, %c0_334] : memref<2x81x64xbf16, #tpu.memory_space<vmem>>, vector<1x81x64xbf16>
    %908 = vector.shape_cast %907 : vector<1x81x64xbf16> to vector<81x64xbf16>
    %cst_335 = arith.constant dense<0.000000e+00> : vector<40x64xf32>
    %909 = tpu.matmul %906, %908, %cst_335 {dimension_numbers = #tpu.dot_dimension_numbers<[1], [0], [0], [1], [0, 0, 1, 1], [], []>} : vector<40x81xbf16>, vector<81x64xbf16>, vector<40x64xf32> -> vector<40x64xf32>
    %c1_336 = arith.constant 1 : index
    %c0_337 = arith.constant 0 : index
    %c0_338 = arith.constant 0 : index
    %910 = vector.load %arg3[%c1_336, %c0_337, %c0_338] : memref<2x1x64xf32, #tpu.memory_space<vmem>>, vector<1x1x64xf32>
    %911 = vector.shape_cast %910 : vector<1x1x64xf32> to vector<1x64xf32>
    %912 = vector.broadcast %911 : vector<1x64xf32> to vector<40x64xf32>
    %913 = arith.addf %909, %912 : vector<40x64xf32>
    %914 = arith.truncf %913 : vector<40x64xf32> to vector<40x64xbf16>
    %c1_339 = arith.constant 1 : index
    %c0_340 = arith.constant 0 : index
    %c0_341 = arith.constant 0 : index
    %915 = vector.load %arg4[%c1_339, %c0_340, %c0_341] : memref<2x64x128xbf16, #tpu.memory_space<vmem>>, vector<1x64x128xbf16>
    %916 = vector.shape_cast %915 : vector<1x64x128xbf16> to vector<64x128xbf16>
    %cst_342 = arith.constant dense<0.000000e+00> : vector<40x128xf32>
    %917 = tpu.matmul %914, %916, %cst_342 {dimension_numbers = #tpu.dot_dimension_numbers<[1], [0], [0], [1], [0, 0, 1, 1], [], []>} : vector<40x64xbf16>, vector<64x128xbf16>, vector<40x128xf32> -> vector<40x128xf32>
    %c1_343 = arith.constant 1 : index
    %c0_344 = arith.constant 0 : index
    %c0_345 = arith.constant 0 : index
    %918 = vector.load %arg5[%c1_343, %c0_344, %c0_345] : memref<2x1x128xf32, #tpu.memory_space<vmem>>, vector<1x1x128xf32>
    %919 = vector.shape_cast %918 : vector<1x1x128xf32> to vector<1x128xf32>
    %920 = vector.broadcast %919 : vector<1x128xf32> to vector<40x128xf32>
    %921 = arith.addf %917, %920 : vector<40x128xf32>
    %922 = arith.truncf %921 : vector<40x128xf32> to vector<40x128xbf16>
    %c0_346 = arith.constant 0 : index
    %c0_347 = arith.constant 0 : index
    %c0_348 = arith.constant 0 : index
    %923 = vector.load %arg10[%c0_346, %c0_347, %c0_348] : memref<2x128x384xbf16, #tpu.memory_space<vmem>>, vector<1x128x384xbf16>
    %924 = vector.shape_cast %923 : vector<1x128x384xbf16> to vector<128x384xbf16>
    %cst_349 = arith.constant dense<0.000000e+00> : vector<40x384xf32>
    %925 = tpu.matmul %922, %924, %cst_349 {dimension_numbers = #tpu.dot_dimension_numbers<[1], [0], [0], [1], [0, 0, 1, 1], [], []>} : vector<40x128xbf16>, vector<128x384xbf16>, vector<40x384xf32> -> vector<40x384xf32>
    %c0_350 = arith.constant 0 : index
    %c0_351 = arith.constant 0 : index
    %c0_352 = arith.constant 0 : index
    %926 = vector.load %arg12[%c0_350, %c0_351, %c0_352] : memref<2x2x384xf32, #tpu.memory_space<vmem>>, vector<1x2x384xf32>
    %927 = vector.shape_cast %926 : vector<1x2x384xf32> to vector<2x384xf32>
    %928 = vector.extract_strided_slice %927 {offsets = [0, 0], sizes = [1, 384], strides = [1, 1]} : vector<2x384xf32> to vector<1x384xf32>
    %929 = vector.broadcast %928 : vector<1x384xf32> to vector<40x384xf32>
    %930 = arith.addf %925, %929 : vector<40x384xf32>
    %c0_353 = arith.constant 0 : index
    %c0_354 = arith.constant 0 : index
    %931 = vector.load %arg18[%c0_353, %c0_354] : memref<40x384xf32, #tpu.memory_space<vmem>>, vector<40x384xf32>
    tpu.vector_store %arg18[%c0_353, %c0_354], %930 {strides = array<i32>} : memref<40x384xf32, #tpu.memory_space<vmem>>, vector<40x384xf32>,
    %c0_355 = arith.constant 0 : index
    %c0_356 = arith.constant 0 : index
    %c0_357 = arith.constant 0 : index
    %932 = vector.load %arg12[%c0_355, %c0_356, %c0_357] : memref<2x2x384xf32, #tpu.memory_space<vmem>>, vector<1x2x384xf32>
    %933 = vector.shape_cast %932 : vector<1x2x384xf32> to vector<2x384xf32>
    %c0_358 = arith.constant 0 : index
    %c0_359 = arith.constant 0 : index
    %934 = vector.load %arg18[%c0_358, %c0_359] : memref<40x384xf32, #tpu.memory_space<vmem>>, vector<8x384xf32>
    %935 = vector.extract_strided_slice %933 {offsets = [1, 0], sizes = [1, 384], strides = [1, 1]} : vector<2x384xf32> to vector<1x384xf32>
    %936 = arith.truncf %903 : vector<8x128xf32> to vector<8x128xbf16>
    %c0_360 = arith.constant 0 : index
    %c0_361 = arith.constant 0 : index
    %c0_362 = arith.constant 0 : index
    %937 = vector.load %arg11[%c0_360, %c0_361, %c0_362] : memref<2x128x384xbf16, #tpu.memory_space<vmem>>, vector<1x128x384xbf16>
    %938 = vector.shape_cast %937 : vector<1x128x384xbf16> to vector<128x384xbf16>
    %cst_363 = arith.constant dense<0.000000e+00> : vector<8x384xf32>
    %939 = tpu.matmul %936, %938, %cst_363 {dimension_numbers = #tpu.dot_dimension_numbers<[1], [0], [0], [1], [0, 0, 1, 1], [], []>} : vector<8x128xbf16>, vector<128x384xbf16>, vector<8x384xf32> -> vector<8x384xf32>
    %940 = vector.broadcast %935 : vector<1x384xf32> to vector<8x384xf32>
    %941 = arith.addf %939, %940 : vector<8x384xf32>
    %942 = vector.extract_strided_slice %934 {offsets = [0, 0], sizes = [8, 128], strides = [1, 1]} : vector<8x384xf32> to vector<8x128xf32>
    %943 = vector.extract_strided_slice %941 {offsets = [0, 0], sizes = [8, 128], strides = [1, 1]} : vector<8x384xf32> to vector<8x128xf32>
    %944 = arith.addf %942, %943 : vector<8x128xf32>
    %945 = arith.negf %944 : vector<8x128xf32>
    %946 = math.exp %945 : vector<8x128xf32>
    %cst_364 = arith.constant 1.000000e+00 : f32
    %947 = vector.broadcast %cst_364 : f32 to vector<8x128xf32>
    %948 = arith.addf %947, %946 : vector<8x128xf32>
    %949 = arith.divf %947, %948 : vector<8x128xf32>
    %950 = vector.extract_strided_slice %934 {offsets = [0, 128], sizes = [8, 128], strides = [1, 1]} : vector<8x384xf32> to vector<8x128xf32>
    %951 = vector.extract_strided_slice %941 {offsets = [0, 128], sizes = [8, 128], strides = [1, 1]} : vector<8x384xf32> to vector<8x128xf32>
    %952 = arith.addf %950, %951 : vector<8x128xf32>
    %953 = arith.negf %952 : vector<8x128xf32>
    %954 = math.exp %953 : vector<8x128xf32>
    %cst_365 = arith.constant 1.000000e+00 : f32
    %955 = vector.broadcast %cst_365 : f32 to vector<8x128xf32>
    %956 = arith.addf %955, %954 : vector<8x128xf32>
    %957 = arith.divf %955, %956 : vector<8x128xf32>
    %958 = vector.extract_strided_slice %934 {offsets = [0, 256], sizes = [8, 128], strides = [1, 1]} : vector<8x384xf32> to vector<8x128xf32>
    %959 = vector.extract_strided_slice %941 {offsets = [0, 256], sizes = [8, 128], strides = [1, 1]} : vector<8x384xf32> to vector<8x128xf32>
    %960 = arith.mulf %949, %959 : vector<8x128xf32>
    %961 = arith.addf %958, %960 : vector<8x128xf32>
    %962 = math.tanh %961 : vector<8x128xf32>
    %cst_366 = arith.constant 1.000000e+00 : f32
    %963 = vector.broadcast %cst_366 : f32 to vector<8x128xf32>
    %964 = arith.subf %963, %957 : vector<8x128xf32>
    %965 = arith.mulf %964, %962 : vector<8x128xf32>
    %966 = arith.mulf %957, %903 : vector<8x128xf32>
    %967 = arith.addf %965, %966 : vector<8x128xf32>
    %c1_367 = arith.constant 1 : index
    %c0_368 = arith.constant 0 : index
    %c0_369 = arith.constant 0 : index
    %968 = vector.load %arg12[%c1_367, %c0_368, %c0_369] : memref<2x2x384xf32, #tpu.memory_space<vmem>>, vector<1x2x384xf32>
    %969 = vector.shape_cast %968 : vector<1x2x384xf32> to vector<2x384xf32>
    %c0_370 = arith.constant 0 : index
    %c0_371 = arith.constant 0 : index
    %c0_372 = arith.constant 0 : index
    %970 = vector.load %arg13[%c0_370, %c0_371, %c0_372] : memref<2x2x128xf32, #tpu.memory_space<vmem>>, vector<1x2x128xf32>
    %971 = vector.shape_cast %970 : vector<1x2x128xf32> to vector<2x128xf32>
    %972 = vector.extract_strided_slice %971 {offsets = [0, 0], sizes = [1, 128], strides = [1, 1]} : vector<2x128xf32> to vector<1x128xf32>
    %973 = vector.extract_strided_slice %971 {offsets = [1, 0], sizes = [1, 128], strides = [1, 1]} : vector<2x128xf32> to vector<1x128xf32>
    %cst_373 = arith.constant dense<0.000000e+00> : vector<8xf32>
    %974 = vector.multi_reduction <add>, %967, %cst_373 [1] : vector<8x128xf32> to vector<8xf32>
    %975 = vector.shape_cast %974 : vector<8xf32> to vector<8x1xf32>
    %cst_374 = arith.constant 1.280000e+02 : f32
    %976 = vector.broadcast %cst_374 : f32 to vector<8x1xf32>
    %977 = arith.divf %975, %976 : vector<8x1xf32>
    %978 = vector.broadcast %977 : vector<8x1xf32> to vector<8x128xf32>
    %979 = arith.subf %967, %978 : vector<8x128xf32>
    %980 = arith.mulf %979, %979 : vector<8x128xf32>
    %cst_375 = arith.constant dense<0.000000e+00> : vector<8xf32>
    %981 = vector.multi_reduction <add>, %980, %cst_375 [1] : vector<8x128xf32> to vector<8xf32>
    %982 = vector.shape_cast %981 : vector<8xf32> to vector<8x1xf32>
    %cst_376 = arith.constant 1.280000e+02 : f32
    %983 = vector.broadcast %cst_376 : f32 to vector<8x1xf32>
    %984 = arith.divf %982, %983 : vector<8x1xf32>
    %cst_377 = arith.constant 9.99999974E-6 : f32
    %985 = vector.broadcast %cst_377 : f32 to vector<8x1xf32>
    %986 = arith.addf %984, %985 : vector<8x1xf32>
    %987 = math.rsqrt %986 : vector<8x1xf32>
    %988 = vector.broadcast %987 : vector<8x1xf32> to vector<8x128xf32>
    %989 = arith.mulf %979, %988 : vector<8x128xf32>
    %990 = vector.broadcast %972 : vector<1x128xf32> to vector<8x128xf32>
    %991 = arith.mulf %989, %990 : vector<8x128xf32>
    %992 = vector.broadcast %973 : vector<1x128xf32> to vector<8x128xf32>
    %993 = arith.addf %991, %992 : vector<8x128xf32>
    %cst_378 = arith.constant 0.000000e+00 : f32
    %994 = vector.broadcast %cst_378 : f32 to vector<8x128xf32>
    %995 = arith.maximumf %993, %994 : vector<8x128xf32>
    %996 = arith.truncf %995 : vector<8x128xf32> to vector<8x128xbf16>
    %c1_379 = arith.constant 1 : index
    %c0_380 = arith.constant 0 : index
    %c0_381 = arith.constant 0 : index
    %997 = vector.load %arg10[%c1_379, %c0_380, %c0_381] : memref<2x128x384xbf16, #tpu.memory_space<vmem>>, vector<1x128x384xbf16>
    %998 = vector.shape_cast %997 : vector<1x128x384xbf16> to vector<128x384xbf16>
    %cst_382 = arith.constant dense<0.000000e+00> : vector<8x384xf32>
    %999 = tpu.matmul %996, %998, %cst_382 {dimension_numbers = #tpu.dot_dimension_numbers<[1], [0], [0], [1], [0, 0, 1, 1], [], []>} : vector<8x128xbf16>, vector<128x384xbf16>, vector<8x384xf32> -> vector<8x384xf32>
    %1000 = vector.extract_strided_slice %969 {offsets = [0, 0], sizes = [1, 384], strides = [1, 1]} : vector<2x384xf32> to vector<1x384xf32>
    %1001 = vector.broadcast %1000 : vector<1x384xf32> to vector<8x384xf32>
    %1002 = arith.addf %999, %1001 : vector<8x384xf32>
    %1003 = vector.extract_strided_slice %969 {offsets = [1, 0], sizes = [1, 384], strides = [1, 1]} : vector<2x384xf32> to vector<1x384xf32>
    %1004 = arith.truncf %903 : vector<8x128xf32> to vector<8x128xbf16>
    %c1_383 = arith.constant 1 : index
    %c0_384 = arith.constant 0 : index
    %c0_385 = arith.constant 0 : index
    %1005 = vector.load %arg11[%c1_383, %c0_384, %c0_385] : memref<2x128x384xbf16, #tpu.memory_space<vmem>>, vector<1x128x384xbf16>
    %1006 = vector.shape_cast %1005 : vector<1x128x384xbf16> to vector<128x384xbf16>
    %cst_386 = arith.constant dense<0.000000e+00> : vector<8x384xf32>
    %1007 = tpu.matmul %1004, %1006, %cst_386 {dimension_numbers = #tpu.dot_dimension_numbers<[1], [0], [0], [1], [0, 0, 1, 1], [], []>} : vector<8x128xbf16>, vector<128x384xbf16>, vector<8x384xf32> -> vector<8x384xf32>
    %1008 = vector.broadcast %1003 : vector<1x384xf32> to vector<8x384xf32>
    %1009 = arith.addf %1007, %1008 : vector<8x384xf32>
    %1010 = vector.extract_strided_slice %1002 {offsets = [0, 0], sizes = [8, 128], strides = [1, 1]} : vector<8x384xf32> to vector<8x128xf32>
    %1011 = vector.extract_strided_slice %1009 {offsets = [0, 0], sizes = [8, 128], strides = [1, 1]} : vector<8x384xf32> to vector<8x128xf32>
    %1012 = arith.addf %1010, %1011 : vector<8x128xf32>
    %1013 = arith.negf %1012 : vector<8x128xf32>
    %1014 = math.exp %1013 : vector<8x128xf32>
    %cst_387 = arith.constant 1.000000e+00 : f32
    %1015 = vector.broadcast %cst_387 : f32 to vector<8x128xf32>
    %1016 = arith.addf %1015, %1014 : vector<8x128xf32>
    %1017 = arith.divf %1015, %1016 : vector<8x128xf32>
    %1018 = vector.extract_strided_slice %1002 {offsets = [0, 128], sizes = [8, 128], strides = [1, 1]} : vector<8x384xf32> to vector<8x128xf32>
    %1019 = vector.extract_strided_slice %1009 {offsets = [0, 128], sizes = [8, 128], strides = [1, 1]} : vector<8x384xf32> to vector<8x128xf32>
    %1020 = arith.addf %1018, %1019 : vector<8x128xf32>
    %1021 = arith.negf %1020 : vector<8x128xf32>
    %1022 = math.exp %1021 : vector<8x128xf32>
    %cst_388 = arith.constant 1.000000e+00 : f32
    %1023 = vector.broadcast %cst_388 : f32 to vector<8x128xf32>
    %1024 = arith.addf %1023, %1022 : vector<8x128xf32>
    %1025 = arith.divf %1023, %1024 : vector<8x128xf32>
    %1026 = vector.extract_strided_slice %1002 {offsets = [0, 256], sizes = [8, 128], strides = [1, 1]} : vector<8x384xf32> to vector<8x128xf32>
    %1027 = vector.extract_strided_slice %1009 {offsets = [0, 256], sizes = [8, 128], strides = [1, 1]} : vector<8x384xf32> to vector<8x128xf32>
    %1028 = arith.mulf %1017, %1027 : vector<8x128xf32>
    %1029 = arith.addf %1026, %1028 : vector<8x128xf32>
    %1030 = math.tanh %1029 : vector<8x128xf32>
    %cst_389 = arith.constant 1.000000e+00 : f32
    %1031 = vector.broadcast %cst_389 : f32 to vector<8x128xf32>
    %1032 = arith.subf %1031, %1025 : vector<8x128xf32>
    %1033 = arith.mulf %1032, %1030 : vector<8x128xf32>
    %1034 = arith.mulf %1025, %903 : vector<8x128xf32>
    %1035 = arith.addf %1033, %1034 : vector<8x128xf32>
    %c0_390 = arith.constant 0 : index
    %c0_391 = arith.constant 0 : index
    %c0_392 = arith.constant 0 : index
    %1036 = vector.load %arg12[%c0_390, %c0_391, %c0_392] : memref<2x2x384xf32, #tpu.memory_space<vmem>>, vector<1x2x384xf32>
    %1037 = vector.shape_cast %1036 : vector<1x2x384xf32> to vector<2x384xf32>
    %c8_393 = arith.constant 8 : index
    %c0_394 = arith.constant 0 : index
    %1038 = vector.load %arg18[%c8_393, %c0_394] : memref<40x384xf32, #tpu.memory_space<vmem>>, vector<8x384xf32>
    %1039 = vector.extract_strided_slice %1037 {offsets = [1, 0], sizes = [1, 384], strides = [1, 1]} : vector<2x384xf32> to vector<1x384xf32>
    %1040 = arith.truncf %967 : vector<8x128xf32> to vector<8x128xbf16>
    %c0_395 = arith.constant 0 : index
    %c0_396 = arith.constant 0 : index
    %c0_397 = arith.constant 0 : index
    %1041 = vector.load %arg11[%c0_395, %c0_396, %c0_397] : memref<2x128x384xbf16, #tpu.memory_space<vmem>>, vector<1x128x384xbf16>
    %1042 = vector.shape_cast %1041 : vector<1x128x384xbf16> to vector<128x384xbf16>
    %cst_398 = arith.constant dense<0.000000e+00> : vector<8x384xf32>
    %1043 = tpu.matmul %1040, %1042, %cst_398 {dimension_numbers = #tpu.dot_dimension_numbers<[1], [0], [0], [1], [0, 0, 1, 1], [], []>} : vector<8x128xbf16>, vector<128x384xbf16>, vector<8x384xf32> -> vector<8x384xf32>
    %1044 = vector.broadcast %1039 : vector<1x384xf32> to vector<8x384xf32>
    %1045 = arith.addf %1043, %1044 : vector<8x384xf32>
    %1046 = vector.extract_strided_slice %1038 {offsets = [0, 0], sizes = [8, 128], strides = [1, 1]} : vector<8x384xf32> to vector<8x128xf32>
    %1047 = vector.extract_strided_slice %1045 {offsets = [0, 0], sizes = [8, 128], strides = [1, 1]} : vector<8x384xf32> to vector<8x128xf32>
    %1048 = arith.addf %1046, %1047 : vector<8x128xf32>
    %1049 = arith.negf %1048 : vector<8x128xf32>
    %1050 = math.exp %1049 : vector<8x128xf32>
    %cst_399 = arith.constant 1.000000e+00 : f32
    %1051 = vector.broadcast %cst_399 : f32 to vector<8x128xf32>
    %1052 = arith.addf %1051, %1050 : vector<8x128xf32>
    %1053 = arith.divf %1051, %1052 : vector<8x128xf32>
    %1054 = vector.extract_strided_slice %1038 {offsets = [0, 128], sizes = [8, 128], strides = [1, 1]} : vector<8x384xf32> to vector<8x128xf32>
    %1055 = vector.extract_strided_slice %1045 {offsets = [0, 128], sizes = [8, 128], strides = [1, 1]} : vector<8x384xf32> to vector<8x128xf32>
    %1056 = arith.addf %1054, %1055 : vector<8x128xf32>
    %1057 = arith.negf %1056 : vector<8x128xf32>
    %1058 = math.exp %1057 : vector<8x128xf32>
    %cst_400 = arith.constant 1.000000e+00 : f32
    %1059 = vector.broadcast %cst_400 : f32 to vector<8x128xf32>
    %1060 = arith.addf %1059, %1058 : vector<8x128xf32>
    %1061 = arith.divf %1059, %1060 : vector<8x128xf32>
    %1062 = vector.extract_strided_slice %1038 {offsets = [0, 256], sizes = [8, 128], strides = [1, 1]} : vector<8x384xf32> to vector<8x128xf32>
    %1063 = vector.extract_strided_slice %1045 {offsets = [0, 256], sizes = [8, 128], strides = [1, 1]} : vector<8x384xf32> to vector<8x128xf32>
    %1064 = arith.mulf %1053, %1063 : vector<8x128xf32>
    %1065 = arith.addf %1062, %1064 : vector<8x128xf32>
    %1066 = math.tanh %1065 : vector<8x128xf32>
    %cst_401 = arith.constant 1.000000e+00 : f32
    %1067 = vector.broadcast %cst_401 : f32 to vector<8x128xf32>
    %1068 = arith.subf %1067, %1061 : vector<8x128xf32>
    %1069 = arith.mulf %1068, %1066 : vector<8x128xf32>
    %1070 = arith.mulf %1061, %967 : vector<8x128xf32>
    %1071 = arith.addf %1069, %1070 : vector<8x128xf32>
    %c1_402 = arith.constant 1 : index
    %c0_403 = arith.constant 0 : index
    %c0_404 = arith.constant 0 : index
    %1072 = vector.load %arg12[%c1_402, %c0_403, %c0_404] : memref<2x2x384xf32, #tpu.memory_space<vmem>>, vector<1x2x384xf32>
    %1073 = vector.shape_cast %1072 : vector<1x2x384xf32> to vector<2x384xf32>
    %c0_405 = arith.constant 0 : index
    %c0_406 = arith.constant 0 : index
    %c0_407 = arith.constant 0 : index
    %1074 = vector.load %arg13[%c0_405, %c0_406, %c0_407] : memref<2x2x128xf32, #tpu.memory_space<vmem>>, vector<1x2x128xf32>
    %1075 = vector.shape_cast %1074 : vector<1x2x128xf32> to vector<2x128xf32>
    %1076 = vector.extract_strided_slice %1075 {offsets = [0, 0], sizes = [1, 128], strides = [1, 1]} : vector<2x128xf32> to vector<1x128xf32>
    %1077 = vector.extract_strided_slice %1075 {offsets = [1, 0], sizes = [1, 128], strides = [1, 1]} : vector<2x128xf32> to vector<1x128xf32>
    %cst_408 = arith.constant dense<0.000000e+00> : vector<8xf32>
    %1078 = vector.multi_reduction <add>, %1071, %cst_408 [1] : vector<8x128xf32> to vector<8xf32>
    %1079 = vector.shape_cast %1078 : vector<8xf32> to vector<8x1xf32>
    %cst_409 = arith.constant 1.280000e+02 : f32
    %1080 = vector.broadcast %cst_409 : f32 to vector<8x1xf32>
    %1081 = arith.divf %1079, %1080 : vector<8x1xf32>
    %1082 = vector.broadcast %1081 : vector<8x1xf32> to vector<8x128xf32>
    %1083 = arith.subf %1071, %1082 : vector<8x128xf32>
    %1084 = arith.mulf %1083, %1083 : vector<8x128xf32>
    %cst_410 = arith.constant dense<0.000000e+00> : vector<8xf32>
    %1085 = vector.multi_reduction <add>, %1084, %cst_410 [1] : vector<8x128xf32> to vector<8xf32>
    %1086 = vector.shape_cast %1085 : vector<8xf32> to vector<8x1xf32>
    %cst_411 = arith.constant 1.280000e+02 : f32
    %1087 = vector.broadcast %cst_411 : f32 to vector<8x1xf32>
    %1088 = arith.divf %1086, %1087 : vector<8x1xf32>
    %cst_412 = arith.constant 9.99999974E-6 : f32
    %1089 = vector.broadcast %cst_412 : f32 to vector<8x1xf32>
    %1090 = arith.addf %1088, %1089 : vector<8x1xf32>
    %1091 = math.rsqrt %1090 : vector<8x1xf32>
    %1092 = vector.broadcast %1091 : vector<8x1xf32> to vector<8x128xf32>
    %1093 = arith.mulf %1083, %1092 : vector<8x128xf32>
    %1094 = vector.broadcast %1076 : vector<1x128xf32> to vector<8x128xf32>
    %1095 = arith.mulf %1093, %1094 : vector<8x128xf32>
    %1096 = vector.broadcast %1077 : vector<1x128xf32> to vector<8x128xf32>
    %1097 = arith.addf %1095, %1096 : vector<8x128xf32>
    %cst_413 = arith.constant 0.000000e+00 : f32
    %1098 = vector.broadcast %cst_413 : f32 to vector<8x128xf32>
    %1099 = arith.maximumf %1097, %1098 : vector<8x128xf32>
    %1100 = arith.truncf %1099 : vector<8x128xf32> to vector<8x128xbf16>
    %c1_414 = arith.constant 1 : index
    %c0_415 = arith.constant 0 : index
    %c0_416 = arith.constant 0 : index
    %1101 = vector.load %arg10[%c1_414, %c0_415, %c0_416] : memref<2x128x384xbf16, #tpu.memory_space<vmem>>, vector<1x128x384xbf16>
    %1102 = vector.shape_cast %1101 : vector<1x128x384xbf16> to vector<128x384xbf16>
    %cst_417 = arith.constant dense<0.000000e+00> : vector<8x384xf32>
    %1103 = tpu.matmul %1100, %1102, %cst_417 {dimension_numbers = #tpu.dot_dimension_numbers<[1], [0], [0], [1], [0, 0, 1, 1], [], []>} : vector<8x128xbf16>, vector<128x384xbf16>, vector<8x384xf32> -> vector<8x384xf32>
    %1104 = vector.extract_strided_slice %1073 {offsets = [0, 0], sizes = [1, 384], strides = [1, 1]} : vector<2x384xf32> to vector<1x384xf32>
    %1105 = vector.broadcast %1104 : vector<1x384xf32> to vector<8x384xf32>
    %1106 = arith.addf %1103, %1105 : vector<8x384xf32>
    %1107 = vector.extract_strided_slice %1073 {offsets = [1, 0], sizes = [1, 384], strides = [1, 1]} : vector<2x384xf32> to vector<1x384xf32>
    %1108 = arith.truncf %1035 : vector<8x128xf32> to vector<8x128xbf16>
    %c1_418 = arith.constant 1 : index
    %c0_419 = arith.constant 0 : index
    %c0_420 = arith.constant 0 : index
    %1109 = vector.load %arg11[%c1_418, %c0_419, %c0_420] : memref<2x128x384xbf16, #tpu.memory_space<vmem>>, vector<1x128x384xbf16>
    %1110 = vector.shape_cast %1109 : vector<1x128x384xbf16> to vector<128x384xbf16>
    %cst_421 = arith.constant dense<0.000000e+00> : vector<8x384xf32>
    %1111 = tpu.matmul %1108, %1110, %cst_421 {dimension_numbers = #tpu.dot_dimension_numbers<[1], [0], [0], [1], [0, 0, 1, 1], [], []>} : vector<8x128xbf16>, vector<128x384xbf16>, vector<8x384xf32> -> vector<8x384xf32>
    %1112 = vector.broadcast %1107 : vector<1x384xf32> to vector<8x384xf32>
    %1113 = arith.addf %1111, %1112 : vector<8x384xf32>
    %1114 = vector.extract_strided_slice %1106 {offsets = [0, 0], sizes = [8, 128], strides = [1, 1]} : vector<8x384xf32> to vector<8x128xf32>
    %1115 = vector.extract_strided_slice %1113 {offsets = [0, 0], sizes = [8, 128], strides = [1, 1]} : vector<8x384xf32> to vector<8x128xf32>
    %1116 = arith.addf %1114, %1115 : vector<8x128xf32>
    %1117 = arith.negf %1116 : vector<8x128xf32>
    %1118 = math.exp %1117 : vector<8x128xf32>
    %cst_422 = arith.constant 1.000000e+00 : f32
    %1119 = vector.broadcast %cst_422 : f32 to vector<8x128xf32>
    %1120 = arith.addf %1119, %1118 : vector<8x128xf32>
    %1121 = arith.divf %1119, %1120 : vector<8x128xf32>
    %1122 = vector.extract_strided_slice %1106 {offsets = [0, 128], sizes = [8, 128], strides = [1, 1]} : vector<8x384xf32> to vector<8x128xf32>
    %1123 = vector.extract_strided_slice %1113 {offsets = [0, 128], sizes = [8, 128], strides = [1, 1]} : vector<8x384xf32> to vector<8x128xf32>
    %1124 = arith.addf %1122, %1123 : vector<8x128xf32>
    %1125 = arith.negf %1124 : vector<8x128xf32>
    %1126 = math.exp %1125 : vector<8x128xf32>
    %cst_423 = arith.constant 1.000000e+00 : f32
    %1127 = vector.broadcast %cst_423 : f32 to vector<8x128xf32>
    %1128 = arith.addf %1127, %1126 : vector<8x128xf32>
    %1129 = arith.divf %1127, %1128 : vector<8x128xf32>
    %1130 = vector.extract_strided_slice %1106 {offsets = [0, 256], sizes = [8, 128], strides = [1, 1]} : vector<8x384xf32> to vector<8x128xf32>
    %1131 = vector.extract_strided_slice %1113 {offsets = [0, 256], sizes = [8, 128], strides = [1, 1]} : vector<8x384xf32> to vector<8x128xf32>
    %1132 = arith.mulf %1121, %1131 : vector<8x128xf32>
    %1133 = arith.addf %1130, %1132 : vector<8x128xf32>
    %1134 = math.tanh %1133 : vector<8x128xf32>
    %cst_424 = arith.constant 1.000000e+00 : f32
    %1135 = vector.broadcast %cst_424 : f32 to vector<8x128xf32>
    %1136 = arith.subf %1135, %1129 : vector<8x128xf32>
    %1137 = arith.mulf %1136, %1134 : vector<8x128xf32>
    %1138 = arith.mulf %1129, %1035 : vector<8x128xf32>
    %1139 = arith.addf %1137, %1138 : vector<8x128xf32>
    %c0_425 = arith.constant 0 : index
    %c0_426 = arith.constant 0 : index
    %c0_427 = arith.constant 0 : index
    %1140 = vector.load %arg12[%c0_425, %c0_426, %c0_427] : memref<2x2x384xf32, #tpu.memory_space<vmem>>, vector<1x2x384xf32>
    %1141 = vector.shape_cast %1140 : vector<1x2x384xf32> to vector<2x384xf32>
    %c16_428 = arith.constant 16 : index
    %c0_429 = arith.constant 0 : index
    %1142 = vector.load %arg18[%c16_428, %c0_429] : memref<40x384xf32, #tpu.memory_space<vmem>>, vector<8x384xf32>
    %1143 = vector.extract_strided_slice %1141 {offsets = [1, 0], sizes = [1, 384], strides = [1, 1]} : vector<2x384xf32> to vector<1x384xf32>
    %1144 = arith.truncf %1071 : vector<8x128xf32> to vector<8x128xbf16>
    %c0_430 = arith.constant 0 : index
    %c0_431 = arith.constant 0 : index
    %c0_432 = arith.constant 0 : index
    %1145 = vector.load %arg11[%c0_430, %c0_431, %c0_432] : memref<2x128x384xbf16, #tpu.memory_space<vmem>>, vector<1x128x384xbf16>
    %1146 = vector.shape_cast %1145 : vector<1x128x384xbf16> to vector<128x384xbf16>
    %cst_433 = arith.constant dense<0.000000e+00> : vector<8x384xf32>
    %1147 = tpu.matmul %1144, %1146, %cst_433 {dimension_numbers = #tpu.dot_dimension_numbers<[1], [0], [0], [1], [0, 0, 1, 1], [], []>} : vector<8x128xbf16>, vector<128x384xbf16>, vector<8x384xf32> -> vector<8x384xf32>
    %1148 = vector.broadcast %1143 : vector<1x384xf32> to vector<8x384xf32>
    %1149 = arith.addf %1147, %1148 : vector<8x384xf32>
    %1150 = vector.extract_strided_slice %1142 {offsets = [0, 0], sizes = [8, 128], strides = [1, 1]} : vector<8x384xf32> to vector<8x128xf32>
    %1151 = vector.extract_strided_slice %1149 {offsets = [0, 0], sizes = [8, 128], strides = [1, 1]} : vector<8x384xf32> to vector<8x128xf32>
    %1152 = arith.addf %1150, %1151 : vector<8x128xf32>
    %1153 = arith.negf %1152 : vector<8x128xf32>
    %1154 = math.exp %1153 : vector<8x128xf32>
    %cst_434 = arith.constant 1.000000e+00 : f32
    %1155 = vector.broadcast %cst_434 : f32 to vector<8x128xf32>
    %1156 = arith.addf %1155, %1154 : vector<8x128xf32>
    %1157 = arith.divf %1155, %1156 : vector<8x128xf32>
    %1158 = vector.extract_strided_slice %1142 {offsets = [0, 128], sizes = [8, 128], strides = [1, 1]} : vector<8x384xf32> to vector<8x128xf32>
    %1159 = vector.extract_strided_slice %1149 {offsets = [0, 128], sizes = [8, 128], strides = [1, 1]} : vector<8x384xf32> to vector<8x128xf32>
    %1160 = arith.addf %1158, %1159 : vector<8x128xf32>
    %1161 = arith.negf %1160 : vector<8x128xf32>
    %1162 = math.exp %1161 : vector<8x128xf32>
    %cst_435 = arith.constant 1.000000e+00 : f32
    %1163 = vector.broadcast %cst_435 : f32 to vector<8x128xf32>
    %1164 = arith.addf %1163, %1162 : vector<8x128xf32>
    %1165 = arith.divf %1163, %1164 : vector<8x128xf32>
    %1166 = vector.extract_strided_slice %1142 {offsets = [0, 256], sizes = [8, 128], strides = [1, 1]} : vector<8x384xf32> to vector<8x128xf32>
    %1167 = vector.extract_strided_slice %1149 {offsets = [0, 256], sizes = [8, 128], strides = [1, 1]} : vector<8x384xf32> to vector<8x128xf32>
    %1168 = arith.mulf %1157, %1167 : vector<8x128xf32>
    %1169 = arith.addf %1166, %1168 : vector<8x128xf32>
    %1170 = math.tanh %1169 : vector<8x128xf32>
    %cst_436 = arith.constant 1.000000e+00 : f32
    %1171 = vector.broadcast %cst_436 : f32 to vector<8x128xf32>
    %1172 = arith.subf %1171, %1165 : vector<8x128xf32>
    %1173 = arith.mulf %1172, %1170 : vector<8x128xf32>
    %1174 = arith.mulf %1165, %1071 : vector<8x128xf32>
    %1175 = arith.addf %1173, %1174 : vector<8x128xf32>
    %c1_437 = arith.constant 1 : index
    %c0_438 = arith.constant 0 : index
    %c0_439 = arith.constant 0 : index
    %1176 = vector.load %arg12[%c1_437, %c0_438, %c0_439] : memref<2x2x384xf32, #tpu.memory_space<vmem>>, vector<1x2x384xf32>
    %1177 = vector.shape_cast %1176 : vector<1x2x384xf32> to vector<2x384xf32>
    %c0_440 = arith.constant 0 : index
    %c0_441 = arith.constant 0 : index
    %c0_442 = arith.constant 0 : index
    %1178 = vector.load %arg13[%c0_440, %c0_441, %c0_442] : memref<2x2x128xf32, #tpu.memory_space<vmem>>, vector<1x2x128xf32>
    %1179 = vector.shape_cast %1178 : vector<1x2x128xf32> to vector<2x128xf32>
    %1180 = vector.extract_strided_slice %1179 {offsets = [0, 0], sizes = [1, 128], strides = [1, 1]} : vector<2x128xf32> to vector<1x128xf32>
    %1181 = vector.extract_strided_slice %1179 {offsets = [1, 0], sizes = [1, 128], strides = [1, 1]} : vector<2x128xf32> to vector<1x128xf32>
    %cst_443 = arith.constant dense<0.000000e+00> : vector<8xf32>
    %1182 = vector.multi_reduction <add>, %1175, %cst_443 [1] : vector<8x128xf32> to vector<8xf32>
    %1183 = vector.shape_cast %1182 : vector<8xf32> to vector<8x1xf32>
    %cst_444 = arith.constant 1.280000e+02 : f32
    %1184 = vector.broadcast %cst_444 : f32 to vector<8x1xf32>
    %1185 = arith.divf %1183, %1184 : vector<8x1xf32>
    %1186 = vector.broadcast %1185 : vector<8x1xf32> to vector<8x128xf32>
    %1187 = arith.subf %1175, %1186 : vector<8x128xf32>
    %1188 = arith.mulf %1187, %1187 : vector<8x128xf32>
    %cst_445 = arith.constant dense<0.000000e+00> : vector<8xf32>
    %1189 = vector.multi_reduction <add>, %1188, %cst_445 [1] : vector<8x128xf32> to vector<8xf32>
    %1190 = vector.shape_cast %1189 : vector<8xf32> to vector<8x1xf32>
    %cst_446 = arith.constant 1.280000e+02 : f32
    %1191 = vector.broadcast %cst_446 : f32 to vector<8x1xf32>
    %1192 = arith.divf %1190, %1191 : vector<8x1xf32>
    %cst_447 = arith.constant 9.99999974E-6 : f32
    %1193 = vector.broadcast %cst_447 : f32 to vector<8x1xf32>
    %1194 = arith.addf %1192, %1193 : vector<8x1xf32>
    %1195 = math.rsqrt %1194 : vector<8x1xf32>
    %1196 = vector.broadcast %1195 : vector<8x1xf32> to vector<8x128xf32>
    %1197 = arith.mulf %1187, %1196 : vector<8x128xf32>
    %1198 = vector.broadcast %1180 : vector<1x128xf32> to vector<8x128xf32>
    %1199 = arith.mulf %1197, %1198 : vector<8x128xf32>
    %1200 = vector.broadcast %1181 : vector<1x128xf32> to vector<8x128xf32>
    %1201 = arith.addf %1199, %1200 : vector<8x128xf32>
    %cst_448 = arith.constant 0.000000e+00 : f32
    %1202 = vector.broadcast %cst_448 : f32 to vector<8x128xf32>
    %1203 = arith.maximumf %1201, %1202 : vector<8x128xf32>
    %1204 = arith.truncf %1203 : vector<8x128xf32> to vector<8x128xbf16>
    %c1_449 = arith.constant 1 : index
    %c0_450 = arith.constant 0 : index
    %c0_451 = arith.constant 0 : index
    %1205 = vector.load %arg10[%c1_449, %c0_450, %c0_451] : memref<2x128x384xbf16, #tpu.memory_space<vmem>>, vector<1x128x384xbf16>
    %1206 = vector.shape_cast %1205 : vector<1x128x384xbf16> to vector<128x384xbf16>
    %cst_452 = arith.constant dense<0.000000e+00> : vector<8x384xf32>
    %1207 = tpu.matmul %1204, %1206, %cst_452 {dimension_numbers = #tpu.dot_dimension_numbers<[1], [0], [0], [1], [0, 0, 1, 1], [], []>} : vector<8x128xbf16>, vector<128x384xbf16>, vector<8x384xf32> -> vector<8x384xf32>
    %1208 = vector.extract_strided_slice %1177 {offsets = [0, 0], sizes = [1, 384], strides = [1, 1]} : vector<2x384xf32> to vector<1x384xf32>
    %1209 = vector.broadcast %1208 : vector<1x384xf32> to vector<8x384xf32>
    %1210 = arith.addf %1207, %1209 : vector<8x384xf32>
    %1211 = vector.extract_strided_slice %1177 {offsets = [1, 0], sizes = [1, 384], strides = [1, 1]} : vector<2x384xf32> to vector<1x384xf32>
    %1212 = arith.truncf %1139 : vector<8x128xf32> to vector<8x128xbf16>
    %c1_453 = arith.constant 1 : index
    %c0_454 = arith.constant 0 : index
    %c0_455 = arith.constant 0 : index
    %1213 = vector.load %arg11[%c1_453, %c0_454, %c0_455] : memref<2x128x384xbf16, #tpu.memory_space<vmem>>, vector<1x128x384xbf16>
    %1214 = vector.shape_cast %1213 : vector<1x128x384xbf16> to vector<128x384xbf16>
    %cst_456 = arith.constant dense<0.000000e+00> : vector<8x384xf32>
    %1215 = tpu.matmul %1212, %1214, %cst_456 {dimension_numbers = #tpu.dot_dimension_numbers<[1], [0], [0], [1], [0, 0, 1, 1], [], []>} : vector<8x128xbf16>, vector<128x384xbf16>, vector<8x384xf32> -> vector<8x384xf32>
    %1216 = vector.broadcast %1211 : vector<1x384xf32> to vector<8x384xf32>
    %1217 = arith.addf %1215, %1216 : vector<8x384xf32>
    %1218 = vector.extract_strided_slice %1210 {offsets = [0, 0], sizes = [8, 128], strides = [1, 1]} : vector<8x384xf32> to vector<8x128xf32>
    %1219 = vector.extract_strided_slice %1217 {offsets = [0, 0], sizes = [8, 128], strides = [1, 1]} : vector<8x384xf32> to vector<8x128xf32>
    %1220 = arith.addf %1218, %1219 : vector<8x128xf32>
    %1221 = arith.negf %1220 : vector<8x128xf32>
    %1222 = math.exp %1221 : vector<8x128xf32>
    %cst_457 = arith.constant 1.000000e+00 : f32
    %1223 = vector.broadcast %cst_457 : f32 to vector<8x128xf32>
    %1224 = arith.addf %1223, %1222 : vector<8x128xf32>
    %1225 = arith.divf %1223, %1224 : vector<8x128xf32>
    %1226 = vector.extract_strided_slice %1210 {offsets = [0, 128], sizes = [8, 128], strides = [1, 1]} : vector<8x384xf32> to vector<8x128xf32>
    %1227 = vector.extract_strided_slice %1217 {offsets = [0, 128], sizes = [8, 128], strides = [1, 1]} : vector<8x384xf32> to vector<8x128xf32>
    %1228 = arith.addf %1226, %1227 : vector<8x128xf32>
    %1229 = arith.negf %1228 : vector<8x128xf32>
    %1230 = math.exp %1229 : vector<8x128xf32>
    %cst_458 = arith.constant 1.000000e+00 : f32
    %1231 = vector.broadcast %cst_458 : f32 to vector<8x128xf32>
    %1232 = arith.addf %1231, %1230 : vector<8x128xf32>
    %1233 = arith.divf %1231, %1232 : vector<8x128xf32>
    %1234 = vector.extract_strided_slice %1210 {offsets = [0, 256], sizes = [8, 128], strides = [1, 1]} : vector<8x384xf32> to vector<8x128xf32>
    %1235 = vector.extract_strided_slice %1217 {offsets = [0, 256], sizes = [8, 128], strides = [1, 1]} : vector<8x384xf32> to vector<8x128xf32>
    %1236 = arith.mulf %1225, %1235 : vector<8x128xf32>
    %1237 = arith.addf %1234, %1236 : vector<8x128xf32>
    %1238 = math.tanh %1237 : vector<8x128xf32>
    %cst_459 = arith.constant 1.000000e+00 : f32
    %1239 = vector.broadcast %cst_459 : f32 to vector<8x128xf32>
    %1240 = arith.subf %1239, %1233 : vector<8x128xf32>
    %1241 = arith.mulf %1240, %1238 : vector<8x128xf32>
    %1242 = arith.mulf %1233, %1139 : vector<8x128xf32>
    %1243 = arith.addf %1241, %1242 : vector<8x128xf32>
    %c0_460 = arith.constant 0 : index
    %c0_461 = arith.constant 0 : index
    %c0_462 = arith.constant 0 : index
    %1244 = vector.load %arg12[%c0_460, %c0_461, %c0_462] : memref<2x2x384xf32, #tpu.memory_space<vmem>>, vector<1x2x384xf32>
    %1245 = vector.shape_cast %1244 : vector<1x2x384xf32> to vector<2x384xf32>
    %c24_463 = arith.constant 24 : index
    %c0_464 = arith.constant 0 : index
    %1246 = vector.load %arg18[%c24_463, %c0_464] : memref<40x384xf32, #tpu.memory_space<vmem>>, vector<8x384xf32>
    %1247 = vector.extract_strided_slice %1245 {offsets = [1, 0], sizes = [1, 384], strides = [1, 1]} : vector<2x384xf32> to vector<1x384xf32>
    %1248 = arith.truncf %1175 : vector<8x128xf32> to vector<8x128xbf16>
    %c0_465 = arith.constant 0 : index
    %c0_466 = arith.constant 0 : index
    %c0_467 = arith.constant 0 : index
    %1249 = vector.load %arg11[%c0_465, %c0_466, %c0_467] : memref<2x128x384xbf16, #tpu.memory_space<vmem>>, vector<1x128x384xbf16>
    %1250 = vector.shape_cast %1249 : vector<1x128x384xbf16> to vector<128x384xbf16>
    %cst_468 = arith.constant dense<0.000000e+00> : vector<8x384xf32>
    %1251 = tpu.matmul %1248, %1250, %cst_468 {dimension_numbers = #tpu.dot_dimension_numbers<[1], [0], [0], [1], [0, 0, 1, 1], [], []>} : vector<8x128xbf16>, vector<128x384xbf16>, vector<8x384xf32> -> vector<8x384xf32>
    %1252 = vector.broadcast %1247 : vector<1x384xf32> to vector<8x384xf32>
    %1253 = arith.addf %1251, %1252 : vector<8x384xf32>
    %1254 = vector.extract_strided_slice %1246 {offsets = [0, 0], sizes = [8, 128], strides = [1, 1]} : vector<8x384xf32> to vector<8x128xf32>
    %1255 = vector.extract_strided_slice %1253 {offsets = [0, 0], sizes = [8, 128], strides = [1, 1]} : vector<8x384xf32> to vector<8x128xf32>
    %1256 = arith.addf %1254, %1255 : vector<8x128xf32>
    %1257 = arith.negf %1256 : vector<8x128xf32>
    %1258 = math.exp %1257 : vector<8x128xf32>
    %cst_469 = arith.constant 1.000000e+00 : f32
    %1259 = vector.broadcast %cst_469 : f32 to vector<8x128xf32>
    %1260 = arith.addf %1259, %1258 : vector<8x128xf32>
    %1261 = arith.divf %1259, %1260 : vector<8x128xf32>
    %1262 = vector.extract_strided_slice %1246 {offsets = [0, 128], sizes = [8, 128], strides = [1, 1]} : vector<8x384xf32> to vector<8x128xf32>
    %1263 = vector.extract_strided_slice %1253 {offsets = [0, 128], sizes = [8, 128], strides = [1, 1]} : vector<8x384xf32> to vector<8x128xf32>
    %1264 = arith.addf %1262, %1263 : vector<8x128xf32>
    %1265 = arith.negf %1264 : vector<8x128xf32>
    %1266 = math.exp %1265 : vector<8x128xf32>
    %cst_470 = arith.constant 1.000000e+00 : f32
    %1267 = vector.broadcast %cst_470 : f32 to vector<8x128xf32>
    %1268 = arith.addf %1267, %1266 : vector<8x128xf32>
    %1269 = arith.divf %1267, %1268 : vector<8x128xf32>
    %1270 = vector.extract_strided_slice %1246 {offsets = [0, 256], sizes = [8, 128], strides = [1, 1]} : vector<8x384xf32> to vector<8x128xf32>
    %1271 = vector.extract_strided_slice %1253 {offsets = [0, 256], sizes = [8, 128], strides = [1, 1]} : vector<8x384xf32> to vector<8x128xf32>
    %1272 = arith.mulf %1261, %1271 : vector<8x128xf32>
    %1273 = arith.addf %1270, %1272 : vector<8x128xf32>
    %1274 = math.tanh %1273 : vector<8x128xf32>
    %cst_471 = arith.constant 1.000000e+00 : f32
    %1275 = vector.broadcast %cst_471 : f32 to vector<8x128xf32>
    %1276 = arith.subf %1275, %1269 : vector<8x128xf32>
    %1277 = arith.mulf %1276, %1274 : vector<8x128xf32>
    %1278 = arith.mulf %1269, %1175 : vector<8x128xf32>
    %1279 = arith.addf %1277, %1278 : vector<8x128xf32>
    %c1_472 = arith.constant 1 : index
    %c0_473 = arith.constant 0 : index
    %c0_474 = arith.constant 0 : index
    %1280 = vector.load %arg12[%c1_472, %c0_473, %c0_474] : memref<2x2x384xf32, #tpu.memory_space<vmem>>, vector<1x2x384xf32>
    %1281 = vector.shape_cast %1280 : vector<1x2x384xf32> to vector<2x384xf32>
    %c0_475 = arith.constant 0 : index
    %c0_476 = arith.constant 0 : index
    %c0_477 = arith.constant 0 : index
    %1282 = vector.load %arg13[%c0_475, %c0_476, %c0_477] : memref<2x2x128xf32, #tpu.memory_space<vmem>>, vector<1x2x128xf32>
    %1283 = vector.shape_cast %1282 : vector<1x2x128xf32> to vector<2x128xf32>
    %1284 = vector.extract_strided_slice %1283 {offsets = [0, 0], sizes = [1, 128], strides = [1, 1]} : vector<2x128xf32> to vector<1x128xf32>
    %1285 = vector.extract_strided_slice %1283 {offsets = [1, 0], sizes = [1, 128], strides = [1, 1]} : vector<2x128xf32> to vector<1x128xf32>
    %cst_478 = arith.constant dense<0.000000e+00> : vector<8xf32>
    %1286 = vector.multi_reduction <add>, %1279, %cst_478 [1] : vector<8x128xf32> to vector<8xf32>
    %1287 = vector.shape_cast %1286 : vector<8xf32> to vector<8x1xf32>
    %cst_479 = arith.constant 1.280000e+02 : f32
    %1288 = vector.broadcast %cst_479 : f32 to vector<8x1xf32>
    %1289 = arith.divf %1287, %1288 : vector<8x1xf32>
    %1290 = vector.broadcast %1289 : vector<8x1xf32> to vector<8x128xf32>
    %1291 = arith.subf %1279, %1290 : vector<8x128xf32>
    %1292 = arith.mulf %1291, %1291 : vector<8x128xf32>
    %cst_480 = arith.constant dense<0.000000e+00> : vector<8xf32>
    %1293 = vector.multi_reduction <add>, %1292, %cst_480 [1] : vector<8x128xf32> to vector<8xf32>
    %1294 = vector.shape_cast %1293 : vector<8xf32> to vector<8x1xf32>
    %cst_481 = arith.constant 1.280000e+02 : f32
    %1295 = vector.broadcast %cst_481 : f32 to vector<8x1xf32>
    %1296 = arith.divf %1294, %1295 : vector<8x1xf32>
    %cst_482 = arith.constant 9.99999974E-6 : f32
    %1297 = vector.broadcast %cst_482 : f32 to vector<8x1xf32>
    %1298 = arith.addf %1296, %1297 : vector<8x1xf32>
    %1299 = math.rsqrt %1298 : vector<8x1xf32>
    %1300 = vector.broadcast %1299 : vector<8x1xf32> to vector<8x128xf32>
    %1301 = arith.mulf %1291, %1300 : vector<8x128xf32>
    %1302 = vector.broadcast %1284 : vector<1x128xf32> to vector<8x128xf32>
    %1303 = arith.mulf %1301, %1302 : vector<8x128xf32>
    %1304 = vector.broadcast %1285 : vector<1x128xf32> to vector<8x128xf32>
    %1305 = arith.addf %1303, %1304 : vector<8x128xf32>
    %cst_483 = arith.constant 0.000000e+00 : f32
    %1306 = vector.broadcast %cst_483 : f32 to vector<8x128xf32>
    %1307 = arith.maximumf %1305, %1306 : vector<8x128xf32>
    %1308 = arith.truncf %1307 : vector<8x128xf32> to vector<8x128xbf16>
    %c1_484 = arith.constant 1 : index
    %c0_485 = arith.constant 0 : index
    %c0_486 = arith.constant 0 : index
    %1309 = vector.load %arg10[%c1_484, %c0_485, %c0_486] : memref<2x128x384xbf16, #tpu.memory_space<vmem>>, vector<1x128x384xbf16>
    %1310 = vector.shape_cast %1309 : vector<1x128x384xbf16> to vector<128x384xbf16>
    %cst_487 = arith.constant dense<0.000000e+00> : vector<8x384xf32>
    %1311 = tpu.matmul %1308, %1310, %cst_487 {dimension_numbers = #tpu.dot_dimension_numbers<[1], [0], [0], [1], [0, 0, 1, 1], [], []>} : vector<8x128xbf16>, vector<128x384xbf16>, vector<8x384xf32> -> vector<8x384xf32>
    %1312 = vector.extract_strided_slice %1281 {offsets = [0, 0], sizes = [1, 384], strides = [1, 1]} : vector<2x384xf32> to vector<1x384xf32>
    %1313 = vector.broadcast %1312 : vector<1x384xf32> to vector<8x384xf32>
    %1314 = arith.addf %1311, %1313 : vector<8x384xf32>
    %1315 = vector.extract_strided_slice %1281 {offsets = [1, 0], sizes = [1, 384], strides = [1, 1]} : vector<2x384xf32> to vector<1x384xf32>
    %1316 = arith.truncf %1243 : vector<8x128xf32> to vector<8x128xbf16>
    %c1_488 = arith.constant 1 : index
    %c0_489 = arith.constant 0 : index
    %c0_490 = arith.constant 0 : index
    %1317 = vector.load %arg11[%c1_488, %c0_489, %c0_490] : memref<2x128x384xbf16, #tpu.memory_space<vmem>>, vector<1x128x384xbf16>
    %1318 = vector.shape_cast %1317 : vector<1x128x384xbf16> to vector<128x384xbf16>
    %cst_491 = arith.constant dense<0.000000e+00> : vector<8x384xf32>
    %1319 = tpu.matmul %1316, %1318, %cst_491 {dimension_numbers = #tpu.dot_dimension_numbers<[1], [0], [0], [1], [0, 0, 1, 1], [], []>} : vector<8x128xbf16>, vector<128x384xbf16>, vector<8x384xf32> -> vector<8x384xf32>
    %1320 = vector.broadcast %1315 : vector<1x384xf32> to vector<8x384xf32>
    %1321 = arith.addf %1319, %1320 : vector<8x384xf32>
    %1322 = vector.extract_strided_slice %1314 {offsets = [0, 0], sizes = [8, 128], strides = [1, 1]} : vector<8x384xf32> to vector<8x128xf32>
    %1323 = vector.extract_strided_slice %1321 {offsets = [0, 0], sizes = [8, 128], strides = [1, 1]} : vector<8x384xf32> to vector<8x128xf32>
    %1324 = arith.addf %1322, %1323 : vector<8x128xf32>
    %1325 = arith.negf %1324 : vector<8x128xf32>
    %1326 = math.exp %1325 : vector<8x128xf32>
    %cst_492 = arith.constant 1.000000e+00 : f32
    %1327 = vector.broadcast %cst_492 : f32 to vector<8x128xf32>
    %1328 = arith.addf %1327, %1326 : vector<8x128xf32>
    %1329 = arith.divf %1327, %1328 : vector<8x128xf32>
    %1330 = vector.extract_strided_slice %1314 {offsets = [0, 128], sizes = [8, 128], strides = [1, 1]} : vector<8x384xf32> to vector<8x128xf32>
    %1331 = vector.extract_strided_slice %1321 {offsets = [0, 128], sizes = [8, 128], strides = [1, 1]} : vector<8x384xf32> to vector<8x128xf32>
    %1332 = arith.addf %1330, %1331 : vector<8x128xf32>
    %1333 = arith.negf %1332 : vector<8x128xf32>
    %1334 = math.exp %1333 : vector<8x128xf32>
    %cst_493 = arith.constant 1.000000e+00 : f32
    %1335 = vector.broadcast %cst_493 : f32 to vector<8x128xf32>
    %1336 = arith.addf %1335, %1334 : vector<8x128xf32>
    %1337 = arith.divf %1335, %1336 : vector<8x128xf32>
    %1338 = vector.extract_strided_slice %1314 {offsets = [0, 256], sizes = [8, 128], strides = [1, 1]} : vector<8x384xf32> to vector<8x128xf32>
    %1339 = vector.extract_strided_slice %1321 {offsets = [0, 256], sizes = [8, 128], strides = [1, 1]} : vector<8x384xf32> to vector<8x128xf32>
    %1340 = arith.mulf %1329, %1339 : vector<8x128xf32>
    %1341 = arith.addf %1338, %1340 : vector<8x128xf32>
    %1342 = math.tanh %1341 : vector<8x128xf32>
    %cst_494 = arith.constant 1.000000e+00 : f32
    %1343 = vector.broadcast %cst_494 : f32 to vector<8x128xf32>
    %1344 = arith.subf %1343, %1337 : vector<8x128xf32>
    %1345 = arith.mulf %1344, %1342 : vector<8x128xf32>
    %1346 = arith.mulf %1337, %1243 : vector<8x128xf32>
    %1347 = arith.addf %1345, %1346 : vector<8x128xf32>
    %c0_495 = arith.constant 0 : index
    %c0_496 = arith.constant 0 : index
    %c0_497 = arith.constant 0 : index
    %1348 = vector.load %arg12[%c0_495, %c0_496, %c0_497] : memref<2x2x384xf32, #tpu.memory_space<vmem>>, vector<1x2x384xf32>
    %1349 = vector.shape_cast %1348 : vector<1x2x384xf32> to vector<2x384xf32>
    %c32_498 = arith.constant 32 : index
    %c0_499 = arith.constant 0 : index
    %1350 = vector.load %arg18[%c32_498, %c0_499] : memref<40x384xf32, #tpu.memory_space<vmem>>, vector<8x384xf32>
    %1351 = vector.extract_strided_slice %1349 {offsets = [1, 0], sizes = [1, 384], strides = [1, 1]} : vector<2x384xf32> to vector<1x384xf32>
    %1352 = arith.truncf %1279 : vector<8x128xf32> to vector<8x128xbf16>
    %c0_500 = arith.constant 0 : index
    %c0_501 = arith.constant 0 : index
    %c0_502 = arith.constant 0 : index
    %1353 = vector.load %arg11[%c0_500, %c0_501, %c0_502] : memref<2x128x384xbf16, #tpu.memory_space<vmem>>, vector<1x128x384xbf16>
    %1354 = vector.shape_cast %1353 : vector<1x128x384xbf16> to vector<128x384xbf16>
    %cst_503 = arith.constant dense<0.000000e+00> : vector<8x384xf32>
    %1355 = tpu.matmul %1352, %1354, %cst_503 {dimension_numbers = #tpu.dot_dimension_numbers<[1], [0], [0], [1], [0, 0, 1, 1], [], []>} : vector<8x128xbf16>, vector<128x384xbf16>, vector<8x384xf32> -> vector<8x384xf32>
    %1356 = vector.broadcast %1351 : vector<1x384xf32> to vector<8x384xf32>
    %1357 = arith.addf %1355, %1356 : vector<8x384xf32>
    %1358 = vector.extract_strided_slice %1350 {offsets = [0, 0], sizes = [8, 128], strides = [1, 1]} : vector<8x384xf32> to vector<8x128xf32>
    %1359 = vector.extract_strided_slice %1357 {offsets = [0, 0], sizes = [8, 128], strides = [1, 1]} : vector<8x384xf32> to vector<8x128xf32>
    %1360 = arith.addf %1358, %1359 : vector<8x128xf32>
    %1361 = arith.negf %1360 : vector<8x128xf32>
    %1362 = math.exp %1361 : vector<8x128xf32>
    %cst_504 = arith.constant 1.000000e+00 : f32
    %1363 = vector.broadcast %cst_504 : f32 to vector<8x128xf32>
    %1364 = arith.addf %1363, %1362 : vector<8x128xf32>
    %1365 = arith.divf %1363, %1364 : vector<8x128xf32>
    %1366 = vector.extract_strided_slice %1350 {offsets = [0, 128], sizes = [8, 128], strides = [1, 1]} : vector<8x384xf32> to vector<8x128xf32>
    %1367 = vector.extract_strided_slice %1357 {offsets = [0, 128], sizes = [8, 128], strides = [1, 1]} : vector<8x384xf32> to vector<8x128xf32>
    %1368 = arith.addf %1366, %1367 : vector<8x128xf32>
    %1369 = arith.negf %1368 : vector<8x128xf32>
    %1370 = math.exp %1369 : vector<8x128xf32>
    %cst_505 = arith.constant 1.000000e+00 : f32
    %1371 = vector.broadcast %cst_505 : f32 to vector<8x128xf32>
    %1372 = arith.addf %1371, %1370 : vector<8x128xf32>
    %1373 = arith.divf %1371, %1372 : vector<8x128xf32>
    %1374 = vector.extract_strided_slice %1350 {offsets = [0, 256], sizes = [8, 128], strides = [1, 1]} : vector<8x384xf32> to vector<8x128xf32>
    %1375 = vector.extract_strided_slice %1357 {offsets = [0, 256], sizes = [8, 128], strides = [1, 1]} : vector<8x384xf32> to vector<8x128xf32>
    %1376 = arith.mulf %1365, %1375 : vector<8x128xf32>
    %1377 = arith.addf %1374, %1376 : vector<8x128xf32>
    %1378 = math.tanh %1377 : vector<8x128xf32>
    %cst_506 = arith.constant 1.000000e+00 : f32
    %1379 = vector.broadcast %cst_506 : f32 to vector<8x128xf32>
    %1380 = arith.subf %1379, %1373 : vector<8x128xf32>
    %1381 = arith.mulf %1380, %1378 : vector<8x128xf32>
    %1382 = arith.mulf %1373, %1279 : vector<8x128xf32>
    %1383 = arith.addf %1381, %1382 : vector<8x128xf32>
    %c1_507 = arith.constant 1 : index
    %c0_508 = arith.constant 0 : index
    %c0_509 = arith.constant 0 : index
    %1384 = vector.load %arg12[%c1_507, %c0_508, %c0_509] : memref<2x2x384xf32, #tpu.memory_space<vmem>>, vector<1x2x384xf32>
    %1385 = vector.shape_cast %1384 : vector<1x2x384xf32> to vector<2x384xf32>
    %c0_510 = arith.constant 0 : index
    %c0_511 = arith.constant 0 : index
    %c0_512 = arith.constant 0 : index
    %1386 = vector.load %arg13[%c0_510, %c0_511, %c0_512] : memref<2x2x128xf32, #tpu.memory_space<vmem>>, vector<1x2x128xf32>
    %1387 = vector.shape_cast %1386 : vector<1x2x128xf32> to vector<2x128xf32>
    %1388 = vector.extract_strided_slice %1387 {offsets = [0, 0], sizes = [1, 128], strides = [1, 1]} : vector<2x128xf32> to vector<1x128xf32>
    %1389 = vector.extract_strided_slice %1387 {offsets = [1, 0], sizes = [1, 128], strides = [1, 1]} : vector<2x128xf32> to vector<1x128xf32>
    %cst_513 = arith.constant dense<0.000000e+00> : vector<8xf32>
    %1390 = vector.multi_reduction <add>, %1383, %cst_513 [1] : vector<8x128xf32> to vector<8xf32>
    %1391 = vector.shape_cast %1390 : vector<8xf32> to vector<8x1xf32>
    %cst_514 = arith.constant 1.280000e+02 : f32
    %1392 = vector.broadcast %cst_514 : f32 to vector<8x1xf32>
    %1393 = arith.divf %1391, %1392 : vector<8x1xf32>
    %1394 = vector.broadcast %1393 : vector<8x1xf32> to vector<8x128xf32>
    %1395 = arith.subf %1383, %1394 : vector<8x128xf32>
    %1396 = arith.mulf %1395, %1395 : vector<8x128xf32>
    %cst_515 = arith.constant dense<0.000000e+00> : vector<8xf32>
    %1397 = vector.multi_reduction <add>, %1396, %cst_515 [1] : vector<8x128xf32> to vector<8xf32>
    %1398 = vector.shape_cast %1397 : vector<8xf32> to vector<8x1xf32>
    %cst_516 = arith.constant 1.280000e+02 : f32
    %1399 = vector.broadcast %cst_516 : f32 to vector<8x1xf32>
    %1400 = arith.divf %1398, %1399 : vector<8x1xf32>
    %cst_517 = arith.constant 9.99999974E-6 : f32
    %1401 = vector.broadcast %cst_517 : f32 to vector<8x1xf32>
    %1402 = arith.addf %1400, %1401 : vector<8x1xf32>
    %1403 = math.rsqrt %1402 : vector<8x1xf32>
    %1404 = vector.broadcast %1403 : vector<8x1xf32> to vector<8x128xf32>
    %1405 = arith.mulf %1395, %1404 : vector<8x128xf32>
    %1406 = vector.broadcast %1388 : vector<1x128xf32> to vector<8x128xf32>
    %1407 = arith.mulf %1405, %1406 : vector<8x128xf32>
    %1408 = vector.broadcast %1389 : vector<1x128xf32> to vector<8x128xf32>
    %1409 = arith.addf %1407, %1408 : vector<8x128xf32>
    %cst_518 = arith.constant 0.000000e+00 : f32
    %1410 = vector.broadcast %cst_518 : f32 to vector<8x128xf32>
    %1411 = arith.maximumf %1409, %1410 : vector<8x128xf32>
    %1412 = arith.truncf %1411 : vector<8x128xf32> to vector<8x128xbf16>
    %c1_519 = arith.constant 1 : index
    %c0_520 = arith.constant 0 : index
    %c0_521 = arith.constant 0 : index
    %1413 = vector.load %arg10[%c1_519, %c0_520, %c0_521] : memref<2x128x384xbf16, #tpu.memory_space<vmem>>, vector<1x128x384xbf16>
    %1414 = vector.shape_cast %1413 : vector<1x128x384xbf16> to vector<128x384xbf16>
    %cst_522 = arith.constant dense<0.000000e+00> : vector<8x384xf32>
    %1415 = tpu.matmul %1412, %1414, %cst_522 {dimension_numbers = #tpu.dot_dimension_numbers<[1], [0], [0], [1], [0, 0, 1, 1], [], []>} : vector<8x128xbf16>, vector<128x384xbf16>, vector<8x384xf32> -> vector<8x384xf32>
    %1416 = vector.extract_strided_slice %1385 {offsets = [0, 0], sizes = [1, 384], strides = [1, 1]} : vector<2x384xf32> to vector<1x384xf32>
    %1417 = vector.broadcast %1416 : vector<1x384xf32> to vector<8x384xf32>
    %1418 = arith.addf %1415, %1417 : vector<8x384xf32>
    %1419 = vector.extract_strided_slice %1385 {offsets = [1, 0], sizes = [1, 384], strides = [1, 1]} : vector<2x384xf32> to vector<1x384xf32>
    %1420 = arith.truncf %1347 : vector<8x128xf32> to vector<8x128xbf16>
    %c1_523 = arith.constant 1 : index
    %c0_524 = arith.constant 0 : index
    %c0_525 = arith.constant 0 : index
    %1421 = vector.load %arg11[%c1_523, %c0_524, %c0_525] : memref<2x128x384xbf16, #tpu.memory_space<vmem>>, vector<1x128x384xbf16>
    %1422 = vector.shape_cast %1421 : vector<1x128x384xbf16> to vector<128x384xbf16>
    %cst_526 = arith.constant dense<0.000000e+00> : vector<8x384xf32>
    %1423 = tpu.matmul %1420, %1422, %cst_526 {dimension_numbers = #tpu.dot_dimension_numbers<[1], [0], [0], [1], [0, 0, 1, 1], [], []>} : vector<8x128xbf16>, vector<128x384xbf16>, vector<8x384xf32> -> vector<8x384xf32>
    %1424 = vector.broadcast %1419 : vector<1x384xf32> to vector<8x384xf32>
    %1425 = arith.addf %1423, %1424 : vector<8x384xf32>
    %1426 = vector.extract_strided_slice %1418 {offsets = [0, 0], sizes = [8, 128], strides = [1, 1]} : vector<8x384xf32> to vector<8x128xf32>
    %1427 = vector.extract_strided_slice %1425 {offsets = [0, 0], sizes = [8, 128], strides = [1, 1]} : vector<8x384xf32> to vector<8x128xf32>
    %1428 = arith.addf %1426, %1427 : vector<8x128xf32>
    %1429 = arith.negf %1428 : vector<8x128xf32>
    %1430 = math.exp %1429 : vector<8x128xf32>
    %cst_527 = arith.constant 1.000000e+00 : f32
    %1431 = vector.broadcast %cst_527 : f32 to vector<8x128xf32>
    %1432 = arith.addf %1431, %1430 : vector<8x128xf32>
    %1433 = arith.divf %1431, %1432 : vector<8x128xf32>
    %1434 = vector.extract_strided_slice %1418 {offsets = [0, 128], sizes = [8, 128], strides = [1, 1]} : vector<8x384xf32> to vector<8x128xf32>
    %1435 = vector.extract_strided_slice %1425 {offsets = [0, 128], sizes = [8, 128], strides = [1, 1]} : vector<8x384xf32> to vector<8x128xf32>
    %1436 = arith.addf %1434, %1435 : vector<8x128xf32>
    %1437 = arith.negf %1436 : vector<8x128xf32>
    %1438 = math.exp %1437 : vector<8x128xf32>
    %cst_528 = arith.constant 1.000000e+00 : f32
    %1439 = vector.broadcast %cst_528 : f32 to vector<8x128xf32>
    %1440 = arith.addf %1439, %1438 : vector<8x128xf32>
    %1441 = arith.divf %1439, %1440 : vector<8x128xf32>
    %1442 = vector.extract_strided_slice %1418 {offsets = [0, 256], sizes = [8, 128], strides = [1, 1]} : vector<8x384xf32> to vector<8x128xf32>
    %1443 = vector.extract_strided_slice %1425 {offsets = [0, 256], sizes = [8, 128], strides = [1, 1]} : vector<8x384xf32> to vector<8x128xf32>
    %1444 = arith.mulf %1433, %1443 : vector<8x128xf32>
    %1445 = arith.addf %1442, %1444 : vector<8x128xf32>
    %1446 = math.tanh %1445 : vector<8x128xf32>
    %cst_529 = arith.constant 1.000000e+00 : f32
    %1447 = vector.broadcast %cst_529 : f32 to vector<8x128xf32>
    %1448 = arith.subf %1447, %1441 : vector<8x128xf32>
    %1449 = arith.mulf %1448, %1446 : vector<8x128xf32>
    %1450 = arith.mulf %1441, %1347 : vector<8x128xf32>
    %1451 = arith.addf %1449, %1450 : vector<8x128xf32>
    %c1_530 = arith.constant 1 : index
    %c0_531 = arith.constant 0 : index
    %c0_532 = arith.constant 0 : index
    %1452 = vector.load %arg13[%c1_530, %c0_531, %c0_532] : memref<2x2x128xf32, #tpu.memory_space<vmem>>, vector<1x2x128xf32>
    %1453 = vector.shape_cast %1452 : vector<1x2x128xf32> to vector<2x128xf32>
    %1454 = vector.extract_strided_slice %1453 {offsets = [0, 0], sizes = [1, 128], strides = [1, 1]} : vector<2x128xf32> to vector<1x128xf32>
    %1455 = vector.extract_strided_slice %1453 {offsets = [1, 0], sizes = [1, 128], strides = [1, 1]} : vector<2x128xf32> to vector<1x128xf32>
    %cst_533 = arith.constant dense<0.000000e+00> : vector<8xf32>
    %1456 = vector.multi_reduction <add>, %1451, %cst_533 [1] : vector<8x128xf32> to vector<8xf32>
    %1457 = vector.shape_cast %1456 : vector<8xf32> to vector<8x1xf32>
    %cst_534 = arith.constant 1.280000e+02 : f32
    %1458 = vector.broadcast %cst_534 : f32 to vector<8x1xf32>
    %1459 = arith.divf %1457, %1458 : vector<8x1xf32>
    %1460 = vector.broadcast %1459 : vector<8x1xf32> to vector<8x128xf32>
    %1461 = arith.subf %1451, %1460 : vector<8x128xf32>
    %1462 = arith.mulf %1461, %1461 : vector<8x128xf32>
    %cst_535 = arith.constant dense<0.000000e+00> : vector<8xf32>
    %1463 = vector.multi_reduction <add>, %1462, %cst_535 [1] : vector<8x128xf32> to vector<8xf32>
    %1464 = vector.shape_cast %1463 : vector<8xf32> to vector<8x1xf32>
    %cst_536 = arith.constant 1.280000e+02 : f32
    %1465 = vector.broadcast %cst_536 : f32 to vector<8x1xf32>
    %1466 = arith.divf %1464, %1465 : vector<8x1xf32>
    %cst_537 = arith.constant 9.99999974E-6 : f32
    %1467 = vector.broadcast %cst_537 : f32 to vector<8x1xf32>
    %1468 = arith.addf %1466, %1467 : vector<8x1xf32>
    %1469 = math.rsqrt %1468 : vector<8x1xf32>
    %1470 = vector.broadcast %1469 : vector<8x1xf32> to vector<8x128xf32>
    %1471 = arith.mulf %1461, %1470 : vector<8x128xf32>
    %1472 = vector.broadcast %1454 : vector<1x128xf32> to vector<8x128xf32>
    %1473 = arith.mulf %1471, %1472 : vector<8x128xf32>
    %1474 = vector.broadcast %1455 : vector<1x128xf32> to vector<8x128xf32>
    %1475 = arith.addf %1473, %1474 : vector<8x128xf32>
    %cst_538 = arith.constant 0.000000e+00 : f32
    %1476 = vector.broadcast %cst_538 : f32 to vector<8x128xf32>
    %1477 = arith.maximumf %1475, %1476 : vector<8x128xf32>
    %1478 = arith.truncf %1477 : vector<8x128xf32> to vector<8x128xbf16>
    %c0_539 = arith.constant 0 : index
    %c0_540 = arith.constant 0 : index
    %1479 = vector.load %arg14[%c0_539, %c0_540] : memref<128x128xbf16, #tpu.memory_space<vmem>>, vector<128x128xbf16>
    %cst_541 = arith.constant dense<0.000000e+00> : vector<8x128xf32>
    %1480 = tpu.matmul %1478, %1479, %cst_541 {dimension_numbers = #tpu.dot_dimension_numbers<[1], [0], [0], [1], [0, 0, 1, 1], [], []>} : vector<8x128xbf16>, vector<128x128xbf16>, vector<8x128xf32> -> vector<8x128xf32>
    %c0_542 = arith.constant 0 : index
    %c0_543 = arith.constant 0 : index
    %1481 = vector.load %arg15[%c0_542, %c0_543] : memref<1x128xf32, #tpu.memory_space<vmem>>, vector<1x128xf32>
    %1482 = vector.broadcast %1481 : vector<1x128xf32> to vector<8x128xf32>
    %1483 = arith.addf %1480, %1482 : vector<8x128xf32>
    %1484 = tpu.iota {dimensions = array<i32: 1>} : vector<8x128xi32>
    %c2_i32 = arith.constant 2 : i32
    %1485 = vector.broadcast %c2_i32 : i32 to vector<8x128xi32>
    %1486 = arith.cmpi slt, %1484, %1485 : vector<8x128xi32>
    %cst_544 = arith.constant -1.000000e+30 : f32
    %1487 = vector.broadcast %cst_544 : f32 to vector<8x128xf32>
    %1488 = arith.select %1486, %1483, %1487 : vector<8x128xi1>, vector<8x128xf32>
    %cst_545 = arith.constant dense<0xFF800000> : vector<8xf32>
    %1489 = vector.multi_reduction <maximumf>, %1488, %cst_545 [1] : vector<8x128xf32> to vector<8xf32>
    %1490 = vector.shape_cast %1489 : vector<8xf32> to vector<8x1xf32>
    %1491 = vector.broadcast %1490 : vector<8x1xf32> to vector<8x128xf32>
    %1492 = arith.subf %1488, %1491 : vector<8x128xf32>
    %1493 = math.exp %1492 : vector<8x128xf32>
    %cst_546 = arith.constant dense<0.000000e+00> : vector<8xf32>
    %1494 = vector.multi_reduction <add>, %1493, %cst_546 [1] : vector<8x128xf32> to vector<8xf32>
    %1495 = vector.shape_cast %1494 : vector<8xf32> to vector<8x1xf32>
    %1496 = vector.broadcast %1495 : vector<8x1xf32> to vector<8x128xf32>
    %1497 = arith.divf %1493, %1496 : vector<8x128xf32>
    %c0_547 = arith.constant 0 : index
    %c0_548 = arith.constant 0 : index
    %1498 = vector.load %arg16[%c0_547, %c0_548] : memref<8x128xf32, #tpu.memory_space<vmem>>, vector<8x128xf32>
    tpu.vector_store %arg16[%c0_547, %c0_548], %1497 {strides = array<i32>} : memref<8x128xf32, #tpu.memory_space<vmem>>, vector<8x128xf32>,
    return
  }
}

</mosaic_0001>

<bundles_post_ra>
// kernel: forward.1
= control target key start
LH: loop header
LB: loop body
LE: loop exit
PB: predicated region body
PF: predicated region fallthrough
CT: control target
= control target key end

     0   :  { %s16663_s0 = inlined_call_operand.vmem [shape: f32[40,81], index: 0, kind: input, shape index: {}]   ;;  %s16664_s1 = inlined_call_operand.vmem [shape: f32[40,81], index: 1, kind: input, shape index: {}]   ;;  %s16665_s2 = inlined_call_operand.vmem [shape: bf16[2,81,64], index: 2, kind: input, shape index: {}]   ;;  %s16666_s3 = inlined_call_operand.vmem [shape: f32[2,1,64], index: 3, kind: input, shape index: {}]   ;;  %s16667_s4 = inlined_call_operand.vmem [shape: bf16[2,64,128], index: 4, kind: input, shape index: {}]   ;;  %s16668_s5 = inlined_call_operand.vmem [shape: f32[2,1,128], index: 5, kind: input, shape index: {}]   ;;  %s16669_s6 = inlined_call_operand.hbm [shape: bf16[3,128,384], index: 6, kind: input, shape index: {}]   ;;  %s16670_s7 = inlined_call_operand.hbm [shape: bf16[3,128,384], index: 7, kind: input, shape index: {}]   ;;  %s16671_s8 = inlined_call_operand.vmem [shape: f32[3,2,384], index: 8, kind: input, shape index: {}]   ;;  %s16672_s9 = inlined_call_operand.vmem [shape: f32[3,2,128], index: 9, kind: input, shape index: {}]   ;;  %s16673_s10 = inlined_call_operand.hbm [shape: bf16[2,128,384], index: 10, kind: input, shape index: {}]   ;;  %s16674_s11 = inlined_call_operand.hbm [shape: bf16[2,128,384], index: 11, kind: input, shape index: {}]   ;;  %s16675_s12 = inlined_call_operand.vmem [shape: f32[2,2,384], index: 12, kind: input, shape index: {}]   ;;  %s16676_s13 = inlined_call_operand.vmem [shape: f32[2,2,128], index: 13, kind: input, shape index: {}]   ;;  %s16677_s14 = inlined_call_operand.vmem [shape: bf16[128,128], index: 14, kind: input, shape index: {}]   ;;  %s16678_s15 = inlined_call_operand.vmem [shape: f32[1,128], index: 15, kind: input, shape index: {}]   ;;  %s16679_s16 = inlined_call_operand.vmem [shape: f32[8,128], index: 16, kind: output, shape index: {0}]   ;;  %s16680_s17 = inlined_call_operand.vmem [shape: f32[120,128], index: 17, kind: output, shape index: {1}]  }
   0x1   :  { %16779 = sst [smem:[#allocation66_spill]] %s16663_s0 }
   0x2   :  { %16780 = sst [smem:[#allocation67_spill]] %s16664_s1 }
   0x3   :  { %23 = vsyncpa [#allocation4], 0 }
   0x4   :  { %24 = vsyncpa [#allocation6], 0 }
   0x5   :  { %25 = vsyncpa [#allocation9], 0  ;;  %s14515_s24 = smov [#allocation5]   ;;  %s14516_s26 = smov [#allocation3]  }
   0x6   :  { %s55_s25 = sshll.u32 %s14515_s24, 4  ;;  %s43_s27 = sshll.u32 %s14516_s26, 4  ;;  %s56_s25 = int_to_ptr.vmem [resolvable:$true] %s55_s25  ;;  %s44_s27 = int_to_ptr.vmem [resolvable:$true] %s43_s27 }
   0x7   :  { %s14437_s28 = scalar_lea.vmem %s56_s25, 9216  ;;  %p14442_p1 = scmp.lt.s32.totalorder %s56_s25, %s56_s25 }
   0x8   :  { %p14438_p0 = scmp.ne.s32.totalorder %s56_s25, %s14437_s28  ;;  %p14443_p2 = scmp.lt.s32.totalorder %s14437_s28, %s14437_s28 }
   0xa   :  { %p14444_p3 = por %p14443_p2, %p14442_p1 }
   0xc   :  { %p14445_p4 = pnand %p14444_p3, %p14438_p0 }
   0xe   :  { %14448 = shalt.err (!%p14445_p4)
}
   0xf   :  { %s14517_s29 = smov 192   ;;  %s14518_s0 = smov 12  }
  0x10   :  { %61 = dma.hbm_to_vmem [thread:$0]  %s16670_s7, 9216, %s56_s25, [#allocation6], %s14517_s29, %s14517_s29, %s14518_s0  }
  0x11   :  { %s14457_s19 = scalar_lea.vmem %s44_s27, 9216  ;;  %p14462_p6 = scmp.lt.s32.totalorder %s44_s27, %s44_s27 }
  0x12   :  { %p14458_p5 = scmp.ne.s32.totalorder %s44_s27, %s14457_s19  ;;  %p14463_p7 = scmp.lt.s32.totalorder %s14457_s19, %s14457_s19 }
  0x14   :  { %p14464_p8 = por %p14463_p7, %p14462_p6 }
  0x16   :  { %p14465_p9 = pnand %p14464_p8, %p14458_p5 }
  0x18   :  { %14468 = shalt.err (!%p14465_p9)
}
  0x19   :  { %49 = dma.hbm_to_vmem [thread:$0]  %s16669_s6, 9216, %s44_s27, [#allocation4], %s14517_s29, %s14517_s29, %s14518_s0  }
  0x1a   :  { %s14519_s21 = smov [#allocation7]   ;;  %s14520_s23 = smov [#allocation8]  }
  0x1b   :  { %s71_s22 = sshll.u32 %s14519_s21, 4  ;;  %s83_s24 = sshll.u32 %s14520_s23, 4  ;;  %s72_s22 = int_to_ptr.vmem [resolvable:$true] %s71_s22  ;;  %s84_s24 = int_to_ptr.vmem [resolvable:$true] %s83_s24 }
  0x1c   :  { %s14477_s7 = scalar_lea.vmem %s72_s22, 6144  ;;  %p14482_p11 = scmp.lt.s32.totalorder %s72_s22, %s72_s22 }
  0x1d   :  { %p14478_p10 = scmp.ne.s32.totalorder %s72_s22, %s14477_s7  ;;  %p14483_p12 = scmp.lt.s32.totalorder %s14477_s7, %s14477_s7 }
  0x1f   :  { %p14484_p13 = por %p14483_p12, %p14482_p11 }
  0x21   :  { %p14485_p0 = pnand %p14484_p13, %p14478_p10 }
  0x23   :  { %14488 = shalt.err (!%p14485_p0)
}
  0x24   :  { %77 = dma.hbm_to_vmem [thread:$0]  %s16673_s10, 6144, %s72_s22, [#allocation6], %s14517_s29, %s14517_s29, %s14518_s0  }
  0x25   :  { %s14497_s6 = scalar_lea.vmem %s84_s24, 6144  ;;  %p14502_p2 = scmp.lt.s32.totalorder %s84_s24, %s84_s24 }
  0x26   :  { %p14498_p1 = scmp.ne.s32.totalorder %s84_s24, %s14497_s6  ;;  %p14503_p3 = scmp.lt.s32.totalorder %s14497_s6, %s14497_s6 }
  0x28   :  { %p14504_p4 = por %p14503_p3, %p14502_p2 }
  0x2a   :  { %p14505_p5 = pnand %p14504_p4, %p14498_p1 }
  0x2c   :  { %14508 = shalt.err (!%p14505_p5)
}
  0x2d   :  { %89 = dma.hbm_to_vmem [thread:$0]  %s16674_s11, 6144, %s84_s24, [#allocation9], %s14517_s29, %s14517_s29, %s14518_s0  }
  0x2e   :  { %14509 = dma.done.wait [#allocation4], 9216  }
  0x2f   :  { %14510 = vsyncadd [#allocation4], 4294958080 }
  0x30   :  { %14511 = dma.done.wait [#allocation6], 15360  }
  0x31   :  { %14512 = vsyncadd [#allocation6], 4294951936 }
  0x32   :  { %14513 = dma.done.wait [#allocation9], 6144  }
  0x33   :  { %14514 = vsyncadd [#allocation9], 4294961152  ;;  %v16686_v0 = vmov 0.0   ;;  %vm14522_vm0 = vmmov 0   ;;  %vm180_vm1 = vcmask 1040384   ;;  %v16684_v1 = vmov 0  }
  0x34   :  { %12109 = vmatprep.subr.bf16.mxu0 %v16686_v0  ;;  %12121 = vmatprep.mubr.msk.bf16.mxu0 %vm14522_vm0, %v16686_v0  ;;  %v14645_v2 = vsel %vm180_vm1, 65535, %v16684_v1  ;;  %v13082_v3 = vld [vmem:[%s16665_s2 + $0x28] ss:$0 sps:$4 sm:$0x11]   ;;  %v13084_v5 = vld [vmem:[%s16665_s2 + $0x20] sm:$0xff]   ;;  %v13085_v6 = vld [vmem:[%s16665_s2 + $0x18] sm:$0xff]  }
  0x35   :  { %12133 = vmatprep.subr.bf16.mxu1 %v16686_v0  ;;  %12141 = vmatprep.mubr.msk.bf16.mxu1 %vm14522_vm0, %v16686_v0  ;;  %v184_v4 = vand.u32 %v13082_v3, %v14645_v2  ;;  %v13089_v7 = vld [vmem:[%s16667_s4 + $0x18] sm:$0xff]   ;;  %v13086_v8 = vld [vmem:[%s16665_s2 + $0x10] sm:$0xff]   ;;  %v13087_v10 = vld [vmem:[%s16665_s2 + $0x8] sm:$0xff]   ;;  %s16781_s28 = sld [smem:[#allocation66_spill]]  ;;  %vm170_vm2 = vcmask 662528   ;;  %vm284_vm3 = vcmask 523264  }
  0x36   :  { %12134 = vmatpush3.bf16.msra.mxu1 %v13089_v7  ;;  %v13090_v9 = vld [vmem:[%s16667_s4 + $0x10] sm:$0xff]   ;;  %v13088_v11 = vld [vmem:[%s16665_s2] sm:$0xff]   ;;  %v13091_v20 = vld [vmem:[%s16667_s4 + $0x8] sm:$0xff]   ;;  %s16788_s24 = sld [smem:[#allocation67_spill]] }
  0x37   :  { %12110 = vmatpush3.bf16.msra.mxu0 %v184_v4  ;;  %12135 = vmatprep.subr.bf16.mxu1 %v16686_v0  ;;  %v13092_v21 = vld [vmem:[%s16667_s4] sm:$0xff]   ;;  %v13095_v22 = vld [vmem:[#allocation3 + $0xac] ss:$12 sps:$4 sm:$0xff]   ;;  %v13096_v23 = vld [vmem:[#allocation3 + $0xb0] ss:$12 sps:$4 sm:$0xff]  }
  0x38   :  { %12111 = vmatprep.subr.bf16.mxu0 %v16686_v0  ;;  %v13100_v24 = vld [vmem:[#allocation3 + $0x98] ss:$12 sps:$4 sm:$0xff]   ;;  %v13104_v25 = vld [vmem:[#allocation3 + $0x80] ss:$12 sps:$4 sm:$0xff]   ;;  %v13108_v26 = vld [vmem:[#allocation3 + $0x68] ss:$12 sps:$4 sm:$0xff]  }
  0x39   :  { %v13112_v27 = vld [vmem:[#allocation3 + $0x50] ss:$12 sps:$4 sm:$0xff]   ;;  %v13116_v28 = vld [vmem:[#allocation3 + $0x38] ss:$12 sps:$4 sm:$0xff]   ;;  %v10833_v29 = vld [vmem:[%s16666_s3] ss:$0 sm:$0xff] }
  0x3a   :  { %12136 = vmatpush3.bf16.msra.mxu1 %v13090_v9  ;;  %v13093_v33 = vld [vmem:[#allocation3 + $0xa8] ss:$12 sps:$4 sm:$0xff]   ;;  %v13097_v40 = vld [vmem:[#allocation3 + $0x90] ss:$12 sps:$4 sm:$0xff]   ;;  %v13101_v45 = vld [vmem:[#allocation3 + $0x78] ss:$12 sps:$4 sm:$0xff]  }
  0x3b   :  { %12112 = vmatpush3.bf16.msra.mxu0 %v13084_v5  ;;  %12137 = vmatprep.subr.bf16.mxu1 %v16686_v0  ;;  %v111_v12 = vld [vmem:[%s16781_s28] sm:$0xff]  ;;  %v112_v13 = vld [vmem:[%s16781_s28 + $0x8] sm:$0xff]  ;;  %v113_v15 = vld [vmem:[%s16781_s28 + $0x10] sm:$0xff] }
  0x3c   :  { %12113 = vmatprep.subr.bf16.mxu0 %v16686_v0  ;;  %v116_v14 = vpack.c.bf16 %v112_v13, %v111_v12  ;;  %v114_v16 = vld [vmem:[%s16781_s28 + $0x18] sm:$0xff]  ;;  %v115_v18 = vld [vmem:[%s16781_s28 + $0x20] sm:$0xff]  ;;  %v13109_v56 = vld [vmem:[#allocation3 + $0x48] ss:$12 sps:$4 sm:$0xff]  }
  0x3d   :  { %v117_v17 = vpack.c.bf16 %v114_v16, %v113_v15  ;;  %v118_v19 = vpack.c.bf16 %v115_v18, %v115_v18  ;;  %v13099_v36 = vld [vmem:[#allocation3 + $0x94] ss:$12 sps:$4 sm:$0xff]   ;;  %v13103_v41 = vld [vmem:[#allocation3 + $0x7c] ss:$12 sps:$4 sm:$0xff]   ;;  %v13107_v47 = vld [vmem:[#allocation3 + $0x64] ss:$12 sps:$4 sm:$0xff]  }
  0x3e   :  { %12138 = vmatpush3.bf16.msra.mxu1 %v13091_v20  ;;  %v13105_v51 = vld [vmem:[#allocation3 + $0x60] ss:$12 sps:$4 sm:$0xff]   ;;  %v13113_v60 = vld [vmem:[#allocation3 + $0x30] ss:$12 sps:$4 sm:$0xff]   ;;  %v13117_v62 = vld [vmem:[#allocation3 + $0x18] ss:$12 sps:$4 sm:$0xff]  }
  0x3f   :  { %12114 = vmatpush3.bf16.msra.mxu0 %v13085_v6  ;;  %12139 = vmatprep.subr.bf16.mxu1 %v16686_v0  ;;  %v13111_v53 = vld [vmem:[#allocation3 + $0x4c] ss:$12 sps:$4 sm:$0xff]   ;;  %v13115_v58 = vld [vmem:[#allocation3 + $0x34] ss:$12 sps:$4 sm:$0xff]   ;;  %v13119_v61 = vld [vmem:[#allocation3 + $0x1c] ss:$12 sps:$4 sm:$0xff]  }
  0x40   :  { %12115 = vmatprep.subr.bf16.mxu0 %v16686_v0  ;;  %v13120_v63 = vld [vmem:[#allocation3 + $0x20] ss:$12 sps:$4 sm:$0xff]   ;;  %v13123_v3 = vld [vmem:[#allocation3 + $0x4] ss:$12 sps:$4 sm:$0xff]   ;;  %v13124_v5 = vld [vmem:[#allocation3 + $0x8] ss:$12 sps:$4 sm:$0xff]  }
  0x41   :  { %v13121_v4 = vld [vmem:[#allocation3] ss:$12 sps:$4 sm:$0xff]   ;;  %v13149_v18 = vld [vmem:[#allocation5 + $0xb0] ss:$12 sps:$4 sm:$0xff]  }
  0x42   :  { %12140 = vmatpush3.bf16.msra.mxu1 %v13092_v21  ;;  %v13127_v6 = vld [vmem:[#allocation5 + $0xac] ss:$12 sps:$4 sm:$0xff]   ;;  %v13130_v16 = vld [vmem:[#allocation5 + $0x94] ss:$12 sps:$4 sm:$0xff]   ;;  %v13128_v20 = vld [vmem:[#allocation5 + $0x90] ss:$12 sps:$4 sm:$0xff]  }
  0x43   :  { %12116 = vmatpush3.bf16.msra.mxu0 %v13086_v8  ;;  %542 = vmatprep.subr.bf16.mxu1 %v13095_v22  ;;  %v10843_v8 = vld [vmem:[%s16668_s5] ss:$0 sm:$0xff]  ;;  %v13133_v22 = vld [vmem:[#allocation5 + $0x7c] ss:$12 sps:$4 sm:$0xff]  }
  0x44   :  { %12117 = vmatprep.subr.bf16.mxu0 %v16686_v0 }
  0x47   :  { %12118 = vmatpush3.bf16.msra.mxu0 %v13087_v10 }
  0x48   :  { %12119 = vmatprep.subr.bf16.mxu0 %v16686_v0 }
  0x4b   :  { %12120 = vmatpush3.bf16.msra.mxu0 %v13088_v11 }
  0x4c   :  { %12153 = vmatprep.subr.bf16.mxu0 %v16686_v0 }
  0x4e   :  { %12122 = vmatmul.mubr.msk.bf16.vlgmr.msra.gmra.mxu0 %vm170_vm2, %v116_v14  ;;  %v13125_v14 = vld [vmem:[#allocation5 + $0xa8] ss:$12 sps:$4 sm:$0xff]  }
  0x4f   :  { %12125 = vmatprep.mubr.msk.bf16.mxu0 %vm14522_vm0, %v16686_v0  ;;  %12154 = vmatpush3.bf16.msra.mxu0 %v13096_v23 }
  0x50   :  { %12155 = vmatprep.subr.bf16.mxu0 %v16686_v0 }
  0x53   :  { %12156 = vmatpush3.bf16.msra.mxu0 %v13100_v24  ;;  %v13150_v24 = vld [vmem:[#allocation5 + $0x98] ss:$12 sps:$4 sm:$0xff]  }
  0x54   :  { %12157 = vmatprep.subr.bf16.mxu0 %v16686_v0 }
  0x56   :  { %12126 = vmatmul.mubr.msk.bf16.gmra.mxu0 %vm170_vm2, %v117_v17 }
  0x57   :  { %12129 = vmatprep.mubr.msk.bf16.mxu0 %vm14522_vm0, %v16686_v0  ;;  %12158 = vmatpush3.bf16.msra.mxu0 %v13104_v25 }
  0x58   :  { %12159 = vmatprep.subr.bf16.mxu0 %v16686_v0 }
  0x5b   :  { %12160 = vmatpush3.bf16.msra.mxu0 %v13108_v26 }
  0x5c   :  { %12161 = vmatprep.subr.bf16.mxu0 %v16686_v0 }
  0x5e   :  { %12130 = vmatmul.mubr.msk.bf16.gmra.mxu0 %vm170_vm2, %v118_v19 }
  0x5f   :  { %12169 = vmatprep.mubr.msk.bf16.mxu0 %vm14522_vm0, %v16686_v0  ;;  %12162 = vmatpush3.bf16.msra.mxu0 %v13112_v27  ;;  %v13131_v27 = vld [vmem:[#allocation5 + $0x78] ss:$12 sps:$4 sm:$0xff]  }
  0x60   :  { %12163 = vmatprep.subr.bf16.mxu0 %v16686_v0 }
  0x63   :  { %12164 = vmatpush3.bf16.msra.mxu0 %v13116_v28 }
  0x64   :  { %12165 = vmatprep.subr.bf16.mxu0 %v16686_v0 }
  0x67   :  { %12166 = vmatpush3.bf16.msra.mxu0 %v13120_v63 }
  0x68   :  { %12167 = vmatprep.subr.bf16.mxu0 %v16686_v0 }
  0x6b   :  { %12168 = vmatpush3.bf16.msra.mxu0 %v13124_v5 }
  0x6c   :  { %12181 = vmatprep.subr.bf16.mxu0 %v16686_v0 }
 0x10e   :  { %v220_v30 = vpop.f32.mrf.mxu0 }
 0x10f   :  { %v221_v34 = vadd.f32 %v10833_v29, %v220_v30 }
 0x110   :  { %v12123_v31 = vpop.f32.mrf.mxu0 }
 0x112   :  { %v223_v32 = vpop.f32.mrf.mxu0 }
 0x113   :  { %v224_v35 = vadd.f32 %v10833_v29, %v223_v32  ;;  %v13151_v32 = vld [vmem:[#allocation5 + $0x80] ss:$12 sps:$4 sm:$0xff]  }
 0x114   :  { %v12124_v37 = vpop.f32.mrf.mxu0 }
 0x115   :  { %v242_v38 = vpack.c.bf16 %v224_v35, %v221_v34  ;;  %v13139_v35 = vld [vmem:[#allocation5 + $0x4c] ss:$12 sps:$4 sm:$0xff]  }
 0x116   :  { %v228_v39 = vpop.f32.mrf.mxu0 }
 0x117   :  { %12142 = vmatmul.mubr.msk.bf16.vlgmr.msra.gmra.mxu1 %vm284_vm3, %v242_v38  ;;  %v229_v43 = vadd.f32 %v10833_v29, %v228_v39  ;;  %v13137_v38 = vld [vmem:[#allocation5 + $0x48] ss:$12 sps:$4 sm:$0xff]  }
 0x118   :  { %v12127_v42 = vpop.f32.mrf.mxu0  ;;  %12145 = vmatprep.mubr.msk.bf16.mxu1 %vm14522_vm0, %v16686_v0  ;;  %543 = vmatpush1.bf16.msra.mxu1 %v13093_v33  ;;  %v13134_v33 = vld [vmem:[#allocation5 + $0x60] ss:$12 sps:$4 sm:$0xff]  }
 0x119   :  { %544 = vmatprep.subr.bf16.mxu1 %v13099_v36  ;;  %v13140_v42 = vld [vmem:[#allocation5 + $0x30] ss:$12 sps:$4 sm:$0xff]  }
 0x11a   :  { %v231_v44 = vpop.f32.mrf.mxu0 }
 0x11b   :  { %v232_v46 = vadd.f32 %v10833_v29, %v231_v44  ;;  %v13153_v44 = vld [vmem:[#allocation5 + $0x50] ss:$12 sps:$4 sm:$0xff]  }
 0x11c   :  { %v12128_v48 = vpop.f32.mrf.mxu0  ;;  %545 = vmatpush1.bf16.msra.mxu1 %v13097_v40  ;;  %v13142_v40 = vld [vmem:[#allocation5 + $0x34] ss:$12 sps:$4 sm:$0xff]  }
 0x11d   :  { %v243_v49 = vpack.c.bf16 %v232_v46, %v229_v43  ;;  %546 = vmatprep.subr.bf16.mxu1 %v13103_v41  ;;  %v13152_v41 = vld [vmem:[#allocation5 + $0x68] ss:$12 sps:$4 sm:$0xff]   ;;  %v13148_v46 = vld [vmem:[#allocation5 + $0x4] ss:$12 sps:$4 sm:$0xff]   ;;  %v13146_v48 = vld [vmem:[#allocation5] ss:$12 sps:$4 sm:$0xff]  }
 0x11e   :  { %v236_v50 = vpop.f32.mrf.mxu0  ;;  %v13145_v43 = vld [vmem:[#allocation5 + $0x1c] ss:$12 sps:$4 sm:$0xff]  }
 0x11f   :  { %12146 = vmatmul.mubr.msk.bf16.gmra.mxu1 %vm284_vm3, %v243_v49  ;;  %v237_v52 = vadd.f32 %v10833_v29, %v236_v50  ;;  %v13136_v29 = vld [vmem:[#allocation5 + $0x64] ss:$12 sps:$4 sm:$0xff]   ;;  %v13155_v49 = vld [vmem:[#allocation5 + $0x20] ss:$12 sps:$4 sm:$0xff]   ;;  %v13156_v50 = vld [vmem:[#allocation5 + $0x8] ss:$12 sps:$4 sm:$0xff]  }
 0x120   :  { %v12131_v54 = vpop.f32.mrf.mxu0  ;;  %12149 = vmatprep.mubr.msk.bf16.mxu1 %vm14522_vm0, %v16686_v0  ;;  %547 = vmatpush1.bf16.msra.mxu1 %v13101_v45  ;;  %v13143_v45 = vld [vmem:[#allocation5 + $0x18] ss:$12 sps:$4 sm:$0xff]  }
 0x121   :  { %548 = vmatprep.subr.bf16.mxu1 %v13107_v47  ;;  %v244_v57 = vpack.c.bf16 %v237_v52, %v237_v52  ;;  %v13154_v47 = vld [vmem:[#allocation5 + $0x38] ss:$12 sps:$4 sm:$0xff]  }
 0x122   :  { %v239_v55 = vpop.f32.mrf.mxu0 }
 0x123   :  { %v385_v55 = vld [vmem:[%s16671_s8] sm:$0x3f] }
 0x124   :  { %v12132_v59 = vpop.f32.mrf.mxu0  ;;  %549 = vmatpush1.bf16.msra.mxu1 %v13105_v51  ;;  %v16683_v51 = vlaneseq }
 0x125   :  { %550 = vmatprep.subr.bf16.mxu1 %v13111_v53 }
 0x126   :  { %v14756_v52 = vshrl.u32 %v16683_v51, 7 }
 0x127   :  { %12150 = vmatmul.mubr.msk.bf16.gmra.mxu1 %vm284_vm3, %v244_v57 }
 0x128   :  { %551 = vmatpush1.bf16.msra.mxu1 %v13109_v56  ;;  %574 = vmatprep.mubr.bf16.mxu1 %v16684_v1  ;;  %v14759_v53 = vsub.s32 0, %v14756_v52  ;;  %v14762_v54 = vsub.s32 4, %v14756_v52 }
 0x129   :  { %552 = vmatprep.subr.bf16.mxu1 %v13115_v58 }
 0x12a   :  { %16782 = vst [vmem:[#allocation13_spill] sm:$0xff] %v14759_v53  ;;  %16783 = vst [vmem:[#allocation14_spill] sm:$0xff] %v14762_v54  ;;  %v390_v56 = vrot.slane %v385_v55, %v14759_v53  ;;  %v398_v57 = vrot.slane %v385_v55, %v14762_v54 }
 0x12c   :  { %553 = vmatpush1.bf16.msra.mxu1 %v13113_v60  ;;  %v14772_v60 = vsub.s32 2, %v14756_v52  ;;  %v405_v63 = vrot.slane %v390_v56, %v14759_v53 }
 0x12d   :  { %554 = vmatprep.subr.bf16.mxu1 %v13119_v61 }
 0x12e   :  { %16784 = vst [vmem:[#allocation15_spill] sm:$0xff] %v14772_v60 }
 0x130   :  { %555 = vmatpush1.bf16.msra.mxu1 %v13117_v62 }
 0x131   :  { %556 = vmatprep.subr.bf16.mxu1 %v13123_v3  ;;  %v14776_v3 = vrot.slane %v398_v57, %v14759_v53 }
 0x134   :  { %557 = vmatpush1.bf16.msra.mxu1 %v13121_v4 }
 0x135   :  { %866 = vmatprep.subr.bf16.mxu1 %v13127_v6  ;;  %v394_v6 = vrot.slane %v385_v55, %v14772_v60 }
 0x1d7   :  { %v328_v7 = vpop.f32.mrf.mxu1 }
 0x1d8   :  { %v329_v11 = vadd.f32 %v10843_v8, %v328_v7 }
 0x1d9   :  { %v12143_v9 = vpop.f32.mrf.mxu1 }
 0x1db   :  { %v331_v10 = vpop.f32.mrf.mxu1 }
 0x1dc   :  { %v332_v12 = vadd.f32 %v10843_v8, %v331_v10 }
 0x1dd   :  { %v12144_v13 = vpop.f32.mrf.mxu1 }
 0x1de   :  { %v350_v15 = vpack.c.bf16 %v332_v12, %v329_v11  ;;  %v14787_v13 = vrot.slane %v394_v6, %v14759_v53 }
 0x1df   :  { %v336_v17 = vpop.f32.mrf.mxu1 }
 0x1e0   :  { %575 = vmatmul.mubr.bf16.vlgmr.msra.gmra.mxu1 %v350_v15  ;;  %12170 = vmatmul.mubr.bf16.vlgmr.msra.gmra.mxu0 %v350_v15  ;;  %v337_v21 = vadd.f32 %v10843_v8, %v336_v17 }
 0x1e1   :  { %867 = vmatpush1.bf16.msra.mxu1 %v13125_v14  ;;  %v12147_v19 = vpop.f32.mrf.mxu1  ;;  %584 = vmatprep.mubr.bf16.mxu1 %v16684_v1 }
 0x1e2   :  { %868 = vmatprep.subr.bf16.mxu1 %v13130_v16  ;;  %12173 = vmatprep.mubr.msk.bf16.mxu0 %vm14522_vm0, %v16686_v0 }
 0x1e3   :  { %v339_v23 = vpop.f32.mrf.mxu1  ;;  %12182 = vmatpush3.bf16.msra.mxu0 %v13149_v18 }
 0x1e4   :  { %v340_v25 = vadd.f32 %v10843_v8, %v339_v23  ;;  %12183 = vmatprep.subr.bf16.mxu0 %v16686_v0 }
 0x1e5   :  { %869 = vmatpush1.bf16.msra.mxu1 %v13128_v20  ;;  %v12148_v26 = vpop.f32.mrf.mxu1 }
 0x1e6   :  { %v351_v28 = vpack.c.bf16 %v340_v25, %v337_v21  ;;  %870 = vmatprep.subr.bf16.mxu1 %v13133_v22 }
 0x1e7   :  { %v344_v30 = vpop.f32.mrf.mxu1  ;;  %12184 = vmatpush3.bf16.msra.mxu0 %v13150_v24 }
 0x1e8   :  { %585 = vmatmul.mubr.bf16.gmra.mxu1 %v351_v28  ;;  %12174 = vmatmul.mubr.bf16.gmra.mxu0 %v351_v28  ;;  %v345_v31 = vadd.f32 %v10843_v8, %v344_v30 }
 0x1e9   :  { %871 = vmatpush1.bf16.msra.mxu1 %v13131_v27  ;;  %v12151_v34 = vpop.f32.mrf.mxu1  ;;  %594 = vmatprep.mubr.bf16.mxu1 %v16684_v1 }
 0x1ea   :  { %872 = vmatprep.subr.bf16.mxu1 %v13136_v29  ;;  %12177 = vmatprep.mubr.msk.bf16.mxu0 %vm14522_vm0, %v16686_v0  ;;  %v352_v37 = vpack.c.bf16 %v345_v31, %v345_v31  ;;  %v14813_v34 = vsub.s32 1, %v14756_v52 }
 0x1eb   :  { %v347_v36 = vpop.f32.mrf.mxu1  ;;  %12185 = vmatprep.subr.bf16.mxu0 %v16686_v0 }
 0x1ec   :  { %12186 = vmatpush3.bf16.msra.mxu0 %v13151_v32  ;;  %16785 = vst [vmem:[#allocation16_spill] sm:$0xff] %v14813_v34 }
 0x1ed   :  { %873 = vmatpush1.bf16.msra.mxu1 %v13134_v33  ;;  %v12152_v39 = vpop.f32.mrf.mxu1  ;;  %12187 = vmatprep.subr.bf16.mxu0 %v16686_v0 }
 0x1ee   :  { %874 = vmatprep.subr.bf16.mxu1 %v13139_v35 }
 0x1f0   :  { %595 = vmatmul.mubr.bf16.gmra.mxu1 %v352_v37  ;;  %12178 = vmatmul.mubr.bf16.gmra.mxu0 %v352_v37  ;;  %v674_v37 = vld [vmem:[%s16671_s8] sm:$0x3f] }
 0x1f1   :  { %875 = vmatpush1.bf16.msra.mxu1 %v13137_v38  ;;  %898 = vmatprep.mubr.bf16.mxu1 %v16684_v1  ;;  %v14819_v38 = vsub.s32 3, %v14756_v52  ;;  %v714_v39 = vrot.slane %v674_v37, %v14813_v34 }
 0x1f2   :  { %876 = vmatprep.subr.bf16.mxu1 %v13142_v40  ;;  %12188 = vmatpush3.bf16.msra.mxu0 %v13152_v41 }
 0x1f3   :  { %12189 = vmatprep.subr.bf16.mxu0 %v16686_v0  ;;  %12197 = vmatprep.mubr.msk.bf16.mxu0 %vm14522_vm0, %v16686_v0  ;;  %16786 = vst [vmem:[#allocation17_spill] sm:$0xff] %v14819_v38  ;;  %v729_v40 = vrot.slane %v714_v39, %v14813_v34  ;;  %v718_v41 = vrot.slane %v674_v37, %v14819_v38  ;;  %v13161_v39 = vld [vmem:[#allocation3 + $0x150] ss:$12 sps:$4 sm:$0xff]  }
 0x1f5   :  { %877 = vmatpush1.bf16.msra.mxu1 %v13140_v42 }
 0x1f6   :  { %878 = vmatprep.subr.bf16.mxu1 %v13145_v43  ;;  %12190 = vmatpush3.bf16.msra.mxu0 %v13153_v44 }
 0x1f7   :  { %12191 = vmatprep.subr.bf16.mxu0 %v16686_v0 }
 0x1f9   :  { %879 = vmatpush1.bf16.msra.mxu1 %v13143_v45  ;;  %v733_v45 = vrot.slane %v718_v41, %v14813_v34 }
 0x1fa   :  { %880 = vmatprep.subr.bf16.mxu1 %v13148_v46  ;;  %12192 = vmatpush3.bf16.msra.mxu0 %v13154_v47 }
 0x1fb   :  { %12193 = vmatprep.subr.bf16.mxu0 %v16686_v0 }
 0x1fd   :  { %881 = vmatpush1.bf16.msra.mxu1 %v13146_v48 }
 0x1fe   :  { %12194 = vmatpush3.bf16.msra.mxu0 %v13155_v49 }
 0x1ff   :  { %12195 = vmatprep.subr.bf16.mxu0 %v16686_v0 }
 0x200   :  { %899 = vmatmul.mubr.bf16.vlgmr.msra.gmra.mxu1 %v16684_v1 }
 0x201   :  { %1217 = vmatprep.mubr.bf16.mxu1 %v16684_v1 }
 0x202   :  { %12196 = vmatpush3.bf16.msra.mxu0 %v13156_v50 }
 0x203   :  { %12201 = vmatprep.subr.bf16.mxu0 %v16686_v0 }
 0x205   :  { %12198 = vmatmul.mubr.bf16.vlgmr.msra.gmra.mxu0 %v16684_v1 }
 0x206   :  { %12217 = vmatprep.mubr.msk.bf16.mxu0 %vm14522_vm0, %v16686_v0 }
 0x2a0   :  { %v576_v58 = vpop.f32.mrf.mxu1  ;;  %v14769_v59 = vpop.f32.mrf.mxu0 }
 0x2a1   :  { %v577_v43 = vadd.f32 %v576_v58, %v405_v63 }
 0x2a2   :  { %v578_v61 = vpop.f32.mrf.mxu1  ;;  %v12171_v62 = vpop.f32.mrf.mxu0 }
 0x2a3   :  { %v579_v57 = vadd.f32 %v578_v61, %v14787_v13 }
 0x2a4   :  { %v580_v4 = vpop.f32.mrf.mxu1  ;;  %v640_v5 = vpop.f32.mrf.mxu0 }
 0x2a5   :  { %v14779_v7 = vadd.f32 %v580_v4, %v405_v63  ;;  %v14782_v8 = vadd.f32 %v640_v5, %v14776_v3 }
 0x2a6   :  { %v14784_v9 = vpop.f32.mrf.mxu1  ;;  %v12172_v10 = vpop.f32.mrf.mxu0 }
 0x2a8   :  { %v586_v11 = vpop.f32.mrf.mxu1  ;;  %v645_v12 = vpop.f32.mrf.mxu0 }
 0x2a9   :  { %v14789_v14 = vadd.f32 %v586_v11, %v405_v63  ;;  %v14792_v15 = vadd.f32 %v645_v12, %v14776_v3 }
 0x2aa   :  { %v588_v16 = vpop.f32.mrf.mxu1  ;;  %v12175_v17 = vpop.f32.mrf.mxu0 }
 0x2ab   :  { %v14795_v18 = vadd.f32 %v588_v16, %v14787_v13 }
 0x2ac   :  { %v590_v19 = vpop.f32.mrf.mxu1  ;;  %v648_v20 = vpop.f32.mrf.mxu0 }
 0x2ad   :  { %v14797_v21 = vadd.f32 %v590_v19, %v405_v63  ;;  %v14800_v22 = vadd.f32 %v648_v20, %v14776_v3 }
 0x2ae   :  { %v14802_v23 = vpop.f32.mrf.mxu1  ;;  %v12176_v24 = vpop.f32.mrf.mxu0 }
 0x2af   :  { %v638_v24 = vadd.f32 %v14769_v59, %v14776_v3  ;;  %v13159_v59 = vld [vmem:[#allocation3 + $0x16c] ss:$12 sps:$4 sm:$0xff]  }
 0x2b0   :  { %v596_v25 = vpop.f32.mrf.mxu1  ;;  %v653_v26 = vpop.f32.mrf.mxu0  ;;  %1185 = vmatprep.subr.bf16.mxu1 %v13159_v59  ;;  %v13213_v59 = vld [vmem:[#allocation5 + $0x170] ss:$12 sps:$4 sm:$0xff]  }
 0x2b1   :  { %v14804_v27 = vadd.f32 %v596_v25, %v405_v63  ;;  %v14807_v28 = vadd.f32 %v653_v26, %v14776_v3  ;;  %v14827_v63 = vsub.s32 5, %v14756_v52  ;;  %v13160_v3 = vld [vmem:[#allocation3 + $0x170] ss:$12 sps:$4 sm:$0xff]  }
 0x2b2   :  { %v598_v29 = vpop.f32.mrf.mxu1  ;;  %v12179_v30 = vpop.f32.mrf.mxu0  ;;  %12202 = vmatpush3.bf16.msra.mxu0 %v13160_v3 }
 0x2b3   :  { %v14810_v31 = vadd.f32 %v598_v29, %v14787_v13  ;;  %16787 = vst [vmem:[#allocation18_spill] sm:$0xff] %v14827_v63  ;;  %v722_v12 = vrot.slane %v674_v37, %v14827_v63  ;;  %v13163_v37 = vld [vmem:[#allocation3 + $0x154] ss:$12 sps:$4 sm:$0xff]   ;;  %12203 = vmatprep.subr.bf16.mxu0 %v16686_v0 }
 0x2b4   :  { %v600_v32 = vpop.f32.mrf.mxu1  ;;  %v656_v33 = vpop.f32.mrf.mxu0 }
 0x2b5   :  { %v737_v16 = vrot.slane %v722_v12, %v14813_v34  ;;  %v13185_v12 = vld [vmem:[#allocation3 + $0xc0] ss:$12 sps:$4 sm:$0xff]  }
 0x2b6   :  { %v601_v35 = vpop.f32.mrf.mxu1  ;;  %v12180_v36 = vpop.f32.mrf.mxu0 }
 0x2b7   :  { %v13157_v36 = vld [vmem:[#allocation3 + $0x168] ss:$12 sps:$4 sm:$0xff]  }
 0x2b8   :  { %1186 = vmatpush1.bf16.msra.mxu1 %v13157_v36  ;;  %v13189_v36 = vld [vmem:[#allocation5 + $0x168] ss:$12 sps:$4 sm:$0xff]  }
 0x2b9   :  { %1187 = vmatprep.subr.bf16.mxu1 %v13163_v37  ;;  %v13194_v37 = vld [vmem:[#allocation5 + $0x154] ss:$12 sps:$4 sm:$0xff]  }
 0x2bc   :  { %1188 = vmatpush1.bf16.msra.mxu1 %v13161_v39  ;;  %v13192_v39 = vld [vmem:[#allocation5 + $0x150] ss:$12 sps:$4 sm:$0xff]  }
 0x2c0   :  { %v900_v42 = vpop.f32.mrf.mxu1 }
 0x2c1   :  { %v901_v44 = vadd.f32 %v900_v42, %v729_v40 }
 0x2c2   :  { %v902_v46 = vpop.f32.mrf.mxu1 }
 0x2c3   :  { %v947_v47 = vadd.f32 %v901_v44, %v577_v43  ;;  %v903_v50 = vadd.f32 %v902_v46, %v733_v45  ;;  %v13164_v44 = vld [vmem:[#allocation3 + $0x158] ss:$12 sps:$4 sm:$0xff]   ;;  %v13167_v45 = vld [vmem:[#allocation3 + $0x13c] ss:$12 sps:$4 sm:$0xff]  }
 0x2c4   :  { %v904_v48 = vpop.f32.mrf.mxu1  ;;  %12204 = vmatpush3.bf16.msra.mxu0 %v13164_v44  ;;  %v13165_v46 = vld [vmem:[#allocation3 + $0x138] ss:$12 sps:$4 sm:$0xff]   ;;  %1189 = vmatprep.subr.bf16.mxu1 %v13167_v45  ;;  %v13198_v45 = vld [vmem:[#allocation5 + $0x120] ss:$12 sps:$4 sm:$0xff]  }
 0x2c5   :  { %v10899_v49 = vmul.f32 -1.442695, %v947_v47  ;;  %v941_v55 = vpop.f32.mrf.mxu0  ;;  %v954_v4 = vadd.f32 %v903_v50, %v579_v57  ;;  %12205 = vmatprep.subr.bf16.mxu0 %v16686_v0  ;;  %v13168_v47 = vld [vmem:[#allocation3 + $0x140] ss:$12 sps:$4 sm:$0xff]   ;;  %1190 = vmatpush1.bf16.msra.mxu1 %v13165_v46  ;;  %v13172_v50 = vld [vmem:[#allocation3 + $0x128] ss:$12 sps:$4 sm:$0xff]  }
 0x2c6   :  { %v905_v56 = vpop.f32.mrf.mxu1  ;;  %v942_v61 = vadd.f32 %v941_v55, %v737_v16  ;;  %v13169_v48 = vld [vmem:[#allocation3 + $0x120] ss:$12 sps:$4 sm:$0xff]   ;;  %v13176_v57 = vld [vmem:[#allocation3 + $0x110] ss:$12 sps:$4 sm:$0xff]   ;;  %v13188_v16 = vld [vmem:[#allocation3 + $0xc8] ss:$12 sps:$4 sm:$0xff]  }
 0x2c7   :  { %14070 = vpow2.f32 %v10899_v49  ;;  %v12199_v62 = vpop.f32.mrf.mxu0  ;;  %v10900_v10 = vmul.f32 -1.442695, %v954_v4  ;;  %v13171_v49 = vld [vmem:[#allocation3 + $0x124] ss:$12 sps:$4 sm:$0xff]   ;;  %v13175_v55 = vld [vmem:[#allocation3 + $0x10c] ss:$12 sps:$4 sm:$0xff]  }
 0x2c8   :  { %12206 = vmatpush3.bf16.msra.mxu0 %v13168_v47  ;;  %1191 = vmatprep.subr.bf16.mxu1 %v13171_v49  ;;  %v13173_v56 = vld [vmem:[#allocation3 + $0x108] ss:$12 sps:$4 sm:$0xff]   ;;  %v13177_v4 = vld [vmem:[#allocation3 + $0xf0] ss:$12 sps:$4 sm:$0xff]   ;;  %v13203_v47 = vld [vmem:[#allocation5 + $0x10c] ss:$12 sps:$4 sm:$0xff]  }
 0x2c9   :  { %v944_v5 = vpop.f32.mrf.mxu0  ;;  %14072 = vpow2.f32 %v10900_v10  ;;  %12207 = vmatprep.subr.bf16.mxu0 %v16686_v0  ;;  %1192 = vmatpush1.bf16.msra.mxu1 %v13169_v48  ;;  %v13179_v62 = vld [vmem:[#allocation3 + $0xf4] ss:$12 sps:$4 sm:$0xff]   ;;  %v13181_v10 = vld [vmem:[#allocation3 + $0xd8] ss:$12 sps:$4 sm:$0xff]   ;;  %v13217_v49 = vld [vmem:[#allocation5 + $0x110] ss:$12 sps:$4 sm:$0xff]  }
 0x2ca   :  { %1193 = vmatprep.subr.bf16.mxu1 %v13175_v55  ;;  %v13180_v5 = vld [vmem:[#allocation3 + $0xf8] ss:$12 sps:$4 sm:$0xff]   ;;  %v13216_v46 = vld [vmem:[#allocation5 + $0x128] ss:$12 sps:$4 sm:$0xff]   ;;  %v13204_v55 = vld [vmem:[#allocation5 + $0xf0] ss:$12 sps:$4 sm:$0xff]  }
 0x2cb   :  { %v12200_v6 = vpop.f32.mrf.mxu0  ;;  %v13200_v44 = vld [vmem:[#allocation5 + $0x124] ss:$12 sps:$4 sm:$0xff]   ;;  %v13201_v48 = vld [vmem:[#allocation5 + $0x108] ss:$12 sps:$4 sm:$0xff]  }
 0x2cc   :  { %12208 = vmatpush3.bf16.msra.mxu0 %v13172_v50  ;;  %v13183_v6 = vld [vmem:[#allocation3 + $0xdc] ss:$12 sps:$4 sm:$0xff]   ;;  %v13206_v50 = vld [vmem:[#allocation5 + $0xf4] ss:$12 sps:$4 sm:$0xff]  }
 0x2cd   :  { %12209 = vmatprep.subr.bf16.mxu0 %v16686_v0  ;;  %1194 = vmatpush1.bf16.msra.mxu1 %v13173_v56  ;;  %v13218_v56 = vld [vmem:[#allocation5 + $0xf8] ss:$12 sps:$4 sm:$0xff]  }
 0x2ce   :  { %1195 = vmatprep.subr.bf16.mxu1 %v13179_v62  ;;  %v13207_v62 = vld [vmem:[#allocation5 + $0xd8] ss:$12 sps:$4 sm:$0xff]  }
 0x2d0   :  { %12210 = vmatpush3.bf16.msra.mxu0 %v13176_v57  ;;  %v13209_v57 = vld [vmem:[#allocation5 + $0xdc] ss:$12 sps:$4 sm:$0xff]  }
 0x2d1   :  { %12211 = vmatprep.subr.bf16.mxu0 %v16686_v0  ;;  %1196 = vmatpush1.bf16.msra.mxu1 %v13177_v4  ;;  %v13219_v4 = vld [vmem:[#allocation5 + $0xe0] ss:$12 sps:$4 sm:$0xff]  }
 0x2d2   :  { %1197 = vmatprep.subr.bf16.mxu1 %v13183_v6  ;;  %v13210_v6 = vld [vmem:[#allocation5 + $0xc0] ss:$12 sps:$4 sm:$0xff]  }
 0x2d4   :  { %v14071_v58 = vpop.eup %14070  ;;  %12212 = vmatpush3.bf16.msra.mxu0 %v13180_v5  ;;  %v13212_v5 = vld [vmem:[#allocation5 + $0xc4] ss:$12 sps:$4 sm:$0xff]  }
 0x2d5   :  { %v951_v11 = vadd.f32 1.0, %v14071_v58  ;;  %v13184_v58 = vld [vmem:[#allocation3 + $0xe0] ss:$12 sps:$4 sm:$0xff]   ;;  %12213 = vmatprep.subr.bf16.mxu0 %v16686_v0  ;;  %1198 = vmatpush1.bf16.msra.mxu1 %v13181_v10  ;;  %v13220_v10 = vld [vmem:[#allocation5 + $0xc8] ss:$12 sps:$4 sm:$0xff]  }
 0x2d6   :  { %v14073_v17 = vpop.eup %14072 }
 0x2d7   :  { %14074 = vrcp.f32 %v951_v11  ;;  %v958_v19 = vadd.f32 1.0, %v14073_v17  ;;  %v13187_v11 = vld [vmem:[#allocation3 + $0xc4] ss:$12 sps:$4 sm:$0xff]   ;;  %v13191_v17 = vld [vmem:[#allocation5 + $0x16c] ss:$12 sps:$4 sm:$0xff]  }
 0x2d8   :  { %12214 = vmatpush3.bf16.msra.mxu0 %v13184_v58  ;;  %1199 = vmatprep.subr.bf16.mxu1 %v13187_v11 }
 0x2d9   :  { %14076 = vrcp.f32 %v958_v19  ;;  %12215 = vmatprep.subr.bf16.mxu0 %v16686_v0  ;;  %1200 = vmatpush1.bf16.msra.mxu1 %v13185_v12 }
 0x2da   :  { %1454 = vmatprep.subr.bf16.mxu1 %v13191_v17 }
 0x2dc   :  { %12216 = vmatpush3.bf16.msra.mxu0 %v13188_v16 }
 0x2dd   :  { %12221 = vmatprep.subr.bf16.mxu0 %v16686_v0 }
 0x2e4   :  { %v14075_v20 = vpop.eup %14074 }
 0x2e5   :  { %v961_v25 = vmul.f32 %v14075_v20, %v942_v61 }
 0x2e6   :  { %v14077_v29 = vpop.eup %14076 }
 0x2e7   :  { %v962_v26 = vadd.f32 %v961_v25, %v638_v24  ;;  %v964_v52 = vsub.f32 1.0, %v14077_v29  ;;  %v966_v33 = vmul.f32 0.0, %v14077_v29  ;;  %v971_v24 = vld [vmem:[%s16672_s9] sm:$0x3] }
 0x2e8   :  { %v987_v25 = vrot.slane %v971_v24, %v14759_v53 }
 0x2e9   :  { %14078 = vtanh.f32 %v962_v26 }
 0x2f6   :  { %v14079_v30 = vpop.eup %14078 }
 0x2f7   :  { %v965_v32 = vmul.f32 %v14079_v30, %v964_v52  ;;  %v992_v52 = vrot.slane %v971_v24, %v14813_v34  ;;  %v10901_v24 = vld [vmem:[%s16671_s8 + $0x6] sm:$0x3f] }
 0x2f9   :  { %v14833_v35 = vadd.f32 %v966_v33, %v965_v32 }
 0x2fb   :  { %972 = vadd.xlane.f32.xlu0 %v14833_v35  ;;  %968 = vst [vmem:[%s16680_s17] sm:$0xff] %v14833_v35 }
 0x384   :  { %v973_v40 = vpop.xlane.xlu0 %972 }
 0x385   :  { %v975_v41 = vmul.f32 0.0078125, %v973_v40  ;;  %v13214_v40 = vld [vmem:[#allocation5 + $0x158] ss:$12 sps:$4 sm:$0xff]  }
 0x387   :  { %v976_v42 = vsub.f32 %v14833_v35, %v975_v41  ;;  %v13197_v41 = vld [vmem:[#allocation5 + $0x13c] ss:$12 sps:$4 sm:$0xff]  }
 0x389   :  { %v977_v43 = vmul.f32 %v976_v42, %v976_v42 }
 0x38b   :  { %978 = vadd.xlane.f32.xlu0 %v977_v43  ;;  %v13215_v43 = vld [vmem:[#allocation5 + $0x140] ss:$12 sps:$4 sm:$0xff]  }
 0x414   :  { %v979_v19 = vpop.xlane.xlu0 %978 }
 0x415   :  { %v980_v61 = vmul.f32 0.0078125, %v979_v19 }
 0x417   :  { %v981_v20 = vadd.f32 1e-05, %v980_v61 }
 0x419   :  { %14080 = vrsqrt.f32 %v981_v20 }
 0x426   :  { %v14081_v26 = vpop.eup %14080 }
 0x427   :  { %v983_v29 = vmul.f32 %v14081_v26, %v976_v42  ;;  %v13195_v42 = vld [vmem:[#allocation5 + $0x138] ss:$12 sps:$4 sm:$0xff]   ;;  %v1302_v26 = vrot.slane %v10901_v24, %v14813_v34 }
 0x429   :  { %v988_v30 = vmul.f32 %v987_v25, %v983_v29  ;;  %v1033_v25 = vrot.slane %v10901_v24, %v14759_v53 }
 0x42b   :  { %v993_v32 = vadd.f32 %v992_v52, %v988_v30  ;;  %v1048_v29 = vrot.slane %v1033_v25, %v14759_v53  ;;  %v1317_v52 = vrot.slane %v1302_v26, %v14813_v34  ;;  %v1306_v30 = vrot.slane %v10901_v24, %v14819_v38 }
 0x42d   :  { %v994_v33 = vmax.f32 %v993_v32, 0.0  ;;  %v1037_v32 = vrot.slane %v10901_v24, %v14772_v60 }
 0x42f   :  { %v995_v3 = vpack.c.bf16 %v994_v33, %v994_v33 }
 0x431   :  { %1218 = vmatmul.mubr.bf16.vlgmr.msra.gmra.mxu1 %v995_v3  ;;  %12218 = vmatmul.mubr.bf16.vlgmr.msra.gmra.mxu0 %v995_v3 }
 0x432   :  { %1455 = vmatpush1.bf16.msra.mxu1 %v13189_v36  ;;  %12222 = vmatpush3.bf16.msra.mxu0 %v13213_v59 }
 0x433   :  { %1456 = vmatprep.subr.bf16.mxu1 %v13194_v37  ;;  %1486 = vmatprep.mubr.bf16.mxu1 %v16684_v1  ;;  %v1321_v37 = vrot.slane %v1306_v30, %v14813_v34 }
 0x434   :  { %12223 = vmatprep.subr.bf16.mxu0 %v16686_v0  ;;  %12237 = vmatprep.mubr.msk.bf16.mxu0 %vm14522_vm0, %v16686_v0 }
 0x436   :  { %1457 = vmatpush1.bf16.msra.mxu1 %v13192_v39  ;;  %12224 = vmatpush3.bf16.msra.mxu0 %v13214_v40 }
 0x437   :  { %1458 = vmatprep.subr.bf16.mxu1 %v13197_v41  ;;  %12225 = vmatprep.subr.bf16.mxu0 %v16686_v0  ;;  %v1052_v41 = vrot.slane %v1037_v32, %v14759_v53  ;;  %v13224_v32 = vld [vmem:[#allocation3 + $0x230] ss:$12 sps:$4 sm:$0xff]  }
 0x43a   :  { %1459 = vmatpush1.bf16.msra.mxu1 %v13195_v42  ;;  %12226 = vmatpush3.bf16.msra.mxu0 %v13215_v43 }
 0x43b   :  { %1460 = vmatprep.subr.bf16.mxu1 %v13200_v44  ;;  %12227 = vmatprep.subr.bf16.mxu0 %v16686_v0 }
 0x43e   :  { %1461 = vmatpush1.bf16.msra.mxu1 %v13198_v45  ;;  %12228 = vmatpush3.bf16.msra.mxu0 %v13216_v46 }
 0x43f   :  { %1462 = vmatprep.subr.bf16.mxu1 %v13203_v47  ;;  %12229 = vmatprep.subr.bf16.mxu0 %v16686_v0 }
 0x442   :  { %1463 = vmatpush1.bf16.msra.mxu1 %v13201_v48  ;;  %12230 = vmatpush3.bf16.msra.mxu0 %v13217_v49 }
 0x443   :  { %1464 = vmatprep.subr.bf16.mxu1 %v13206_v50  ;;  %12231 = vmatprep.subr.bf16.mxu0 %v16686_v0 }
 0x446   :  { %1465 = vmatpush1.bf16.msra.mxu1 %v13204_v55  ;;  %12232 = vmatpush3.bf16.msra.mxu0 %v13218_v56 }
 0x447   :  { %1466 = vmatprep.subr.bf16.mxu1 %v13209_v57  ;;  %12233 = vmatprep.subr.bf16.mxu0 %v16686_v0 }
 0x44a   :  { %1467 = vmatpush1.bf16.msra.mxu1 %v13207_v62  ;;  %12234 = vmatpush3.bf16.msra.mxu0 %v13219_v4  ;;  %v1310_v62 = vrot.slane %v10901_v24, %v14827_v63  ;;  %v1041_v4 = vrot.slane %v10901_v24, %v14762_v54  ;;  %v13221_v24 = vld [vmem:[#allocation3 + $0x228] ss:$12 sps:$4 sm:$0xff]  }
 0x44b   :  { %1468 = vmatprep.subr.bf16.mxu1 %v13212_v5  ;;  %12235 = vmatprep.subr.bf16.mxu0 %v16686_v0 }
 0x44c   :  { %v1325_v5 = vrot.slane %v1310_v62, %v14813_v34  ;;  %v13245_v62 = vld [vmem:[#allocation3 + $0x198] ss:$12 sps:$4 sm:$0xff]  }
 0x44e   :  { %1469 = vmatpush1.bf16.msra.mxu1 %v13210_v6  ;;  %12236 = vmatpush3.bf16.msra.mxu0 %v13220_v10  ;;  %v1056_v10 = vrot.slane %v1041_v4, %v14759_v53  ;;  %v13248_v4 = vld [vmem:[#allocation3 + $0x1a0] ss:$12 sps:$4 sm:$0xff]  }
 0x44f   :  { %12241 = vmatprep.subr.bf16.mxu0 %v16686_v0 }
 0x451   :  { %1487 = vmatmul.mubr.bf16.vlgmr.msra.gmra.mxu1 %v16684_v1  ;;  %12238 = vmatmul.mubr.bf16.vlgmr.msra.gmra.mxu0 %v16684_v1 }
 0x452   :  { %1805 = vmatprep.mubr.bf16.mxu1 %v16684_v1  ;;  %12257 = vmatprep.mubr.msk.bf16.mxu0 %vm14522_vm0, %v16686_v0 }
 0x453   :  { %12242 = vmatpush3.bf16.msra.mxu0 %v13224_v32  ;;  %v13256_v32 = vld [vmem:[#allocation5 + $0x230] ss:$12 sps:$4 sm:$0xff]  }
 0x454   :  { %12243 = vmatprep.subr.bf16.mxu0 %v16686_v0 }
 0x4f1   :  { %v1219_v58 = vpop.f32.mrf.mxu1  ;;  %v1260_v11 = vpop.f32.mrf.mxu0 }
 0x4f2   :  { %v1220_v59 = vadd.f32 %v1219_v58, %v1048_v29 }
 0x4f3   :  { %v1221_v12 = vpop.f32.mrf.mxu1  ;;  %v12219_v16 = vpop.f32.mrf.mxu0 }
 0x4f4   :  { %v1222_v49 = vadd.f32 %v1221_v12, %v1052_v41  ;;  %v1261_v12 = vadd.f32 %v1260_v11, %v1056_v10  ;;  %v13223_v11 = vld [vmem:[#allocation3 + $0x22c] ss:$12 sps:$4 sm:$0xff]   ;;  %v13231_v41 = vld [vmem:[#allocation3 + $0x1fc] ss:$12 sps:$4 sm:$0xff]  }
 0x4f5   :  { %v1223_v17 = vpop.f32.mrf.mxu1  ;;  %v1263_v19 = vpop.f32.mrf.mxu0  ;;  %1773 = vmatprep.subr.bf16.mxu1 %v13223_v11  ;;  %v13252_v10 = vld [vmem:[#allocation3 + $0x188] ss:$12 sps:$4 sm:$0xff]  }
 0x4f6   :  { %1774 = vmatpush1.bf16.msra.mxu1 %v13221_v24  ;;  %v13253_v11 = vld [vmem:[#allocation5 + $0x228] ss:$12 sps:$4 sm:$0xff]  }
 0x4f7   :  { %v1224_v61 = vpop.f32.mrf.mxu1  ;;  %v12220_v20 = vpop.f32.mrf.mxu0 }
 0x511   :  { %v1488_v33 = vpop.f32.mrf.mxu1  ;;  %v1529_v36 = vpop.f32.mrf.mxu0 }
 0x512   :  { %v1489_v3 = vadd.f32 %v1488_v33, %v1317_v52  ;;  %v1530_v16 = vadd.f32 %v1529_v36, %v1325_v5  ;;  %v13227_v33 = vld [vmem:[#allocation3 + $0x214] ss:$12 sps:$4 sm:$0xff]   ;;  %v13225_v36 = vld [vmem:[#allocation3 + $0x210] ss:$12 sps:$4 sm:$0xff]  }
 0x513   :  { %v1490_v39 = vpop.f32.mrf.mxu1  ;;  %v12239_v40 = vpop.f32.mrf.mxu0  ;;  %1775 = vmatprep.subr.bf16.mxu1 %v13227_v33  ;;  %v13251_v5 = vld [vmem:[#allocation3 + $0x184] ss:$12 sps:$4 sm:$0xff]  }
 0x514   :  { %v1535_v42 = vadd.f32 %v1489_v3, %v1220_v59  ;;  %v1491_v46 = vadd.f32 %v1490_v39, %v1321_v37  ;;  %1776 = vmatpush1.bf16.msra.mxu1 %v13225_v36  ;;  %v13228_v40 = vld [vmem:[#allocation3 + $0x218] ss:$12 sps:$4 sm:$0xff]   ;;  %v13259_v36 = vld [vmem:[#allocation5 + $0x214] ss:$12 sps:$4 sm:$0xff]  }
 0x515   :  { %v1492_v43 = vpop.f32.mrf.mxu1  ;;  %v1532_v44 = vpop.f32.mrf.mxu0  ;;  %12244 = vmatpush3.bf16.msra.mxu0 %v13228_v40  ;;  %1777 = vmatprep.subr.bf16.mxu1 %v13231_v41  ;;  %v13264_v40 = vld [vmem:[#allocation5 + $0x200] ss:$12 sps:$4 sm:$0xff]   ;;  %v13267_v41 = vld [vmem:[#allocation5 + $0x1e4] ss:$12 sps:$4 sm:$0xff]  }
 0x516   :  { %v10950_v45 = vmul.f32 -1.442695, %v1535_v42  ;;  %v1542_v50 = vadd.f32 %v1491_v46, %v1222_v49  ;;  %12245 = vmatprep.subr.bf16.mxu0 %v16686_v0  ;;  %v13229_v42 = vld [vmem:[#allocation3 + $0x1f8] ss:$12 sps:$4 sm:$0xff]   ;;  %v13232_v43 = vld [vmem:[#allocation3 + $0x200] ss:$12 sps:$4 sm:$0xff]  }
 0x517   :  { %v1493_v47 = vpop.f32.mrf.mxu1  ;;  %v12240_v48 = vpop.f32.mrf.mxu0  ;;  %v13233_v44 = vld [vmem:[#allocation3 + $0x1e0] ss:$12 sps:$4 sm:$0xff]   ;;  %v13236_v46 = vld [vmem:[#allocation3 + $0x1e8] ss:$12 sps:$4 sm:$0xff]   ;;  %v13240_v49 = vld [vmem:[#allocation3 + $0x1d0] ss:$12 sps:$4 sm:$0xff]  }
 0x518   :  { %14082 = vpow2.f32 %v10950_v45  ;;  %v10951_v55 = vmul.f32 -1.442695, %v1542_v50  ;;  %1778 = vmatpush1.bf16.msra.mxu1 %v13229_v42  ;;  %v13235_v45 = vld [vmem:[#allocation3 + $0x1e4] ss:$12 sps:$4 sm:$0xff]   ;;  %v13239_v47 = vld [vmem:[#allocation3 + $0x1cc] ss:$12 sps:$4 sm:$0xff]  }
 0x519   :  { %12246 = vmatpush3.bf16.msra.mxu0 %v13232_v43  ;;  %1779 = vmatprep.subr.bf16.mxu1 %v13235_v45  ;;  %v13237_v48 = vld [vmem:[#allocation3 + $0x1c8] ss:$12 sps:$4 sm:$0xff]   ;;  %v13265_v42 = vld [vmem:[#allocation5 + $0x1e0] ss:$12 sps:$4 sm:$0xff]  }
 0x51a   :  { %14084 = vpow2.f32 %v10951_v55  ;;  %12247 = vmatprep.subr.bf16.mxu0 %v16686_v0  ;;  %v13243_v50 = vld [vmem:[#allocation3 + $0x1b4] ss:$12 sps:$4 sm:$0xff]   ;;  %v13241_v55 = vld [vmem:[#allocation3 + $0x1b0] ss:$12 sps:$4 sm:$0xff]  }
 0x51b   :  { %v13268_v43 = vld [vmem:[#allocation5 + $0x1e8] ss:$12 sps:$4 sm:$0xff]  }
 0x51c   :  { %1780 = vmatpush1.bf16.msra.mxu1 %v13233_v44  ;;  %v13271_v44 = vld [vmem:[#allocation5 + $0x1cc] ss:$12 sps:$4 sm:$0xff]   ;;  %v13269_v45 = vld [vmem:[#allocation5 + $0x1c8] ss:$12 sps:$4 sm:$0xff]  }
 0x51d   :  { %12248 = vmatpush3.bf16.msra.mxu0 %v13236_v46  ;;  %1781 = vmatprep.subr.bf16.mxu1 %v13239_v47  ;;  %v13272_v46 = vld [vmem:[#allocation5 + $0x1d0] ss:$12 sps:$4 sm:$0xff]   ;;  %v13275_v47 = vld [vmem:[#allocation5 + $0x1b4] ss:$12 sps:$4 sm:$0xff]  }
 0x51e   :  { %12249 = vmatprep.subr.bf16.mxu0 %v16686_v0 }
 0x520   :  { %1782 = vmatpush1.bf16.msra.mxu1 %v13237_v48  ;;  %v13273_v48 = vld [vmem:[#allocation5 + $0x1b0] ss:$12 sps:$4 sm:$0xff]  }
 0x521   :  { %12250 = vmatpush3.bf16.msra.mxu0 %v13240_v49  ;;  %1783 = vmatprep.subr.bf16.mxu1 %v13243_v50  ;;  %v13276_v49 = vld [vmem:[#allocation5 + $0x1b8] ss:$12 sps:$4 sm:$0xff]   ;;  %v13279_v50 = vld [vmem:[#allocation5 + $0x19c] ss:$12 sps:$4 sm:$0xff]  }
 0x522   :  { %12251 = vmatprep.subr.bf16.mxu0 %v16686_v0 }
 0x524   :  { %1784 = vmatpush1.bf16.msra.mxu1 %v13241_v55  ;;  %v13277_v55 = vld [vmem:[#allocation5 + $0x198] ss:$12 sps:$4 sm:$0xff]  }
 0x525   :  { %v14083_v56 = vpop.eup %14082 }
 0x526   :  { %v1539_v57 = vadd.f32 1.0, %v14083_v56  ;;  %v13244_v56 = vld [vmem:[#allocation3 + $0x1b8] ss:$12 sps:$4 sm:$0xff]  }
 0x527   :  { %v14085_v6 = vpop.eup %14084  ;;  %12252 = vmatpush3.bf16.msra.mxu0 %v13244_v56  ;;  %v13280_v56 = vld [vmem:[#allocation5 + $0x1a0] ss:$12 sps:$4 sm:$0xff]  }
 0x528   :  { %14086 = vrcp.f32 %v1539_v57  ;;  %v1546_v58 = vadd.f32 1.0, %v14085_v6  ;;  %v13247_v57 = vld [vmem:[#allocation3 + $0x19c] ss:$12 sps:$4 sm:$0xff]   ;;  %12253 = vmatprep.subr.bf16.mxu0 %v16686_v0  ;;  %v13249_v6 = vld [vmem:[#allocation3 + $0x180] ss:$12 sps:$4 sm:$0xff]  }
 0x529   :  { %1785 = vmatprep.subr.bf16.mxu1 %v13247_v57  ;;  %v13283_v57 = vld [vmem:[#allocation5 + $0x184] ss:$12 sps:$4 sm:$0xff]  }
 0x52a   :  { %14088 = vrcp.f32 %v1546_v58  ;;  %1786 = vmatpush1.bf16.msra.mxu1 %v13245_v62  ;;  %v13255_v58 = vld [vmem:[#allocation5 + $0x22c] ss:$12 sps:$4 sm:$0xff]  }
 0x52b   :  { %12254 = vmatpush3.bf16.msra.mxu0 %v13248_v4  ;;  %1787 = vmatprep.subr.bf16.mxu1 %v13251_v5  ;;  %v13281_v62 = vld [vmem:[#allocation5 + $0x180] ss:$12 sps:$4 sm:$0xff]   ;;  %v13284_v4 = vld [vmem:[#allocation5 + $0x188] ss:$12 sps:$4 sm:$0xff]  }
 0x52c   :  { %12255 = vmatprep.subr.bf16.mxu0 %v16686_v0  ;;  %v13287_v5 = vld [vmem:[#allocation5 + $0xac] ss:$12 sps:$4 sm:$0xff]  }
 0x52e   :  { %1788 = vmatpush1.bf16.msra.mxu1 %v13249_v6  ;;  %v13285_v6 = vld [vmem:[#allocation5 + $0xa8] ss:$12 sps:$4 sm:$0xff]  }
 0x52f   :  { %12256 = vmatpush3.bf16.msra.mxu0 %v13252_v10  ;;  %2042 = vmatprep.subr.bf16.mxu1 %v13255_v58  ;;  %v13288_v10 = vld [vmem:[#allocation5 + $0xb0] ss:$12 sps:$4 sm:$0xff]   ;;  %v13291_v58 = vld [vmem:[#allocation5 + $0x94] ss:$12 sps:$4 sm:$0xff]  }
 0x530   :  { %12261 = vmatprep.subr.bf16.mxu0 %v16686_v0 }
 0x535   :  { %v14087_v17 = vpop.eup %14086 }
 0x536   :  { %v1549_v19 = vmul.f32 %v14087_v17, %v1530_v16 }
 0x537   :  { %v14089_v20 = vpop.eup %14088 }
 0x538   :  { %v1550_v61 = vadd.f32 %v1549_v19, %v1261_v12  ;;  %v1552_v25 = vsub.f32 1.0, %v14089_v20  ;;  %v1554_v52 = vmul.f32 0.0, %v14089_v20  ;;  %v10953_v19 = vld [vmem:[%s16672_s9 + $0x2] sm:$0x3] }
 0x53a   :  { %14090 = vtanh.f32 %v1550_v61  ;;  %v1575_v61 = vrot.slane %v10953_v19, %v14759_v53 }
 0x547   :  { %v14091_v26 = vpop.eup %14090 }
 0x548   :  { %v1553_v29 = vmul.f32 %v14091_v26, %v1552_v25  ;;  %v1580_v26 = vrot.slane %v10953_v19, %v14813_v34  ;;  %v13293_v19 = vld [vmem:[#allocation5 + $0x78] ss:$12 sps:$4 sm:$0xff]  }
 0x54a   :  { %v14885_v30 = vadd.f32 %v1554_v52, %v1553_v29 }
 0x54c   :  { %1561 = vadd.xlane.f32.xlu1 %v14885_v30  ;;  %1556 = vst [vmem:[%s16680_s17 + $0x28] sm:$0xff] %v14885_v30 }
 0x5d5   :  { %v1562_v59 = vpop.xlane.xlu1 %1561 }
 0x5d6   :  { %v1563_v3 = vmul.f32 0.0078125, %v1562_v59  ;;  %v13257_v59 = vld [vmem:[#allocation5 + $0x210] ss:$12 sps:$4 sm:$0xff]  }
 0x5d8   :  { %v1564_v37 = vsub.f32 %v14885_v30, %v1563_v3  ;;  %v13260_v3 = vld [vmem:[#allocation5 + $0x218] ss:$12 sps:$4 sm:$0xff]  }
 0x5da   :  { %v1565_v39 = vmul.f32 %v1564_v37, %v1564_v37 }
 0x5dc   :  { %1566 = vadd.xlane.f32.xlu1 %v1565_v39  ;;  %v13263_v39 = vld [vmem:[#allocation5 + $0x1fc] ss:$12 sps:$4 sm:$0xff]  }
 0x665   :  { %v1567_v16 = vpop.xlane.xlu1 %1566 }
 0x666   :  { %v1568_v17 = vmul.f32 0.0078125, %v1567_v16  ;;  %v13289_v16 = vld [vmem:[#allocation5 + $0x90] ss:$12 sps:$4 sm:$0xff]  }
 0x668   :  { %v1569_v12 = vadd.f32 1e-05, %v1568_v17  ;;  %v13292_v17 = vld [vmem:[#allocation5 + $0x98] ss:$12 sps:$4 sm:$0xff]  }
 0x66a   :  { %14092 = vrsqrt.f32 %v1569_v12  ;;  %v13295_v12 = vld [vmem:[#allocation5 + $0x7c] ss:$12 sps:$4 sm:$0xff]  }
 0x677   :  { %v14093_v20 = vpop.eup %14092 }
 0x678   :  { %v1571_v25 = vmul.f32 %v14093_v20, %v1564_v37  ;;  %v13261_v37 = vld [vmem:[#allocation5 + $0x1f8] ss:$12 sps:$4 sm:$0xff]  }
 0x679   :  { %v13299_v20 = vld [vmem:[#allocation5 + $0x64] ss:$12 sps:$4 sm:$0xff]  }
 0x67a   :  { %v1576_v29 = vmul.f32 %v1575_v61, %v1571_v25  ;;  %v13296_v61 = vld [vmem:[#allocation5 + $0x80] ss:$12 sps:$4 sm:$0xff]  }
 0x67b   :  { %v13297_v25 = vld [vmem:[#allocation5 + $0x60] ss:$12 sps:$4 sm:$0xff]  }
 0x67c   :  { %v1581_v52 = vadd.f32 %v1580_v26, %v1576_v29  ;;  %v13300_v26 = vld [vmem:[#allocation5 + $0x68] ss:$12 sps:$4 sm:$0xff]   ;;  %v13303_v29 = vld [vmem:[#allocation5 + $0x4c] ss:$12 sps:$4 sm:$0xff]  }
 0x67e   :  { %v1582_v24 = vmax.f32 %v1581_v52, 0.0  ;;  %v13301_v52 = vld [vmem:[#allocation5 + $0x48] ss:$12 sps:$4 sm:$0xff]  }
 0x680   :  { %v1583_v33 = vpack.c.bf16 %v1582_v24, %v1582_v24  ;;  %v13304_v24 = vld [vmem:[#allocation5 + $0x50] ss:$12 sps:$4 sm:$0xff]  }
 0x682   :  { %1806 = vmatmul.mubr.bf16.vlgmr.msra.gmra.mxu1 %v1583_v33  ;;  %12258 = vmatmul.mubr.bf16.vlgmr.msra.gmra.mxu0 %v1583_v33  ;;  %v13308_v33 = vld [vmem:[#allocation5 + $0x38] ss:$12 sps:$4 sm:$0xff]  }
 0x683   :  { %2043 = vmatpush1.bf16.msra.mxu1 %v13253_v11  ;;  %12262 = vmatpush3.bf16.msra.mxu0 %v13256_v32  ;;  %v13307_v11 = vld [vmem:[#allocation5 + $0x34] ss:$12 sps:$4 sm:$0xff]   ;;  %v13305_v32 = vld [vmem:[#allocation5 + $0x30] ss:$12 sps:$4 sm:$0xff]  }
 0x684   :  { %2044 = vmatprep.subr.bf16.mxu1 %v13259_v36  ;;  %12263 = vmatprep.subr.bf16.mxu0 %v16686_v0  ;;  %v13311_v36 = vld [vmem:[#allocation5 + $0x1c] ss:$12 sps:$4 sm:$0xff]  }
 0x685   :  { %2074 = vmatprep.mubr.bf16.mxu1 %v16684_v1  ;;  %12277 = vmatprep.mubr.msk.bf16.mxu0 %vm14522_vm0, %v16686_v0 }
 0x687   :  { %2045 = vmatpush1.bf16.msra.mxu1 %v13257_v59  ;;  %12264 = vmatpush3.bf16.msra.mxu0 %v13260_v3  ;;  %v13309_v59 = vld [vmem:[#allocation5 + $0x18] ss:$12 sps:$4 sm:$0xff]   ;;  %v13312_v3 = vld [vmem:[#allocation5 + $0x20] ss:$12 sps:$4 sm:$0xff]  }
 0x688   :  { %2046 = vmatprep.subr.bf16.mxu1 %v13263_v39  ;;  %12265 = vmatprep.subr.bf16.mxu0 %v16686_v0  ;;  %v13315_v39 = vld [vmem:[#allocation5 + $0x4] ss:$12 sps:$4 sm:$0xff]  }
 0x68b   :  { %2047 = vmatpush1.bf16.msra.mxu1 %v13261_v37  ;;  %12266 = vmatpush3.bf16.msra.mxu0 %v13264_v40  ;;  %v13313_v37 = vld [vmem:[#allocation5] ss:$12 sps:$4 sm:$0xff]   ;;  %v13316_v40 = vld [vmem:[#allocation5 + $0x8] ss:$12 sps:$4 sm:$0xff]  }
 0x68c   :  { %2048 = vmatprep.subr.bf16.mxu1 %v13267_v41  ;;  %12267 = vmatprep.subr.bf16.mxu0 %v16686_v0  ;;  %v2149_v41 = vpack.c.bf16 %v14833_v35, %v14833_v35 }
 0x68f   :  { %2049 = vmatpush1.bf16.msra.mxu1 %v13265_v42  ;;  %12268 = vmatpush3.bf16.msra.mxu0 %v13268_v43 }
 0x690   :  { %2050 = vmatprep.subr.bf16.mxu1 %v13271_v44  ;;  %12269 = vmatprep.subr.bf16.mxu0 %v16686_v0 }
 0x693   :  { %2051 = vmatpush1.bf16.msra.mxu1 %v13269_v45  ;;  %12270 = vmatpush3.bf16.msra.mxu0 %v13272_v46 }
 0x694   :  { %2052 = vmatprep.subr.bf16.mxu1 %v13275_v47  ;;  %12271 = vmatprep.subr.bf16.mxu0 %v16686_v0 }
 0x697   :  { %2053 = vmatpush1.bf16.msra.mxu1 %v13273_v48  ;;  %12272 = vmatpush3.bf16.msra.mxu0 %v13276_v49 }
 0x698   :  { %2054 = vmatprep.subr.bf16.mxu1 %v13279_v50  ;;  %12273 = vmatprep.subr.bf16.mxu0 %v16686_v0  ;;  %v10952_v50 = vld [vmem:[%s16671_s8 + $0xc] sm:$0x3f] }
 0x69b   :  { %2055 = vmatpush1.bf16.msra.mxu1 %v13277_v55  ;;  %12274 = vmatpush3.bf16.msra.mxu0 %v13280_v56  ;;  %v1621_v55 = vrot.slane %v10952_v50, %v14759_v53  ;;  %v1890_v56 = vrot.slane %v10952_v50, %v14813_v34 }
 0x69c   :  { %2056 = vmatprep.subr.bf16.mxu1 %v13283_v57  ;;  %12275 = vmatprep.subr.bf16.mxu0 %v16686_v0 }
 0x69d   :  { %v1636_v57 = vrot.slane %v1621_v55, %v14759_v53 }
 0x69f   :  { %2057 = vmatpush1.bf16.msra.mxu1 %v13281_v62  ;;  %12276 = vmatpush3.bf16.msra.mxu0 %v13284_v4  ;;  %v1905_v62 = vrot.slane %v1890_v56, %v14813_v34  ;;  %v1894_v4 = vrot.slane %v10952_v50, %v14819_v38 }
 0x6a0   :  { %2338 = vmatprep.subr.bf16.mxu1 %v13287_v5  ;;  %12281 = vmatprep.subr.bf16.mxu0 %v16686_v0  ;;  %v1625_v5 = vrot.slane %v10952_v50, %v14772_v60 }
 0x6a2   :  { %2075 = vmatmul.mubr.bf16.vlgmr.msra.gmra.mxu1 %v16684_v1  ;;  %12278 = vmatmul.mubr.bf16.vlgmr.msra.gmra.mxu0 %v16684_v1 }
 0x6a3   :  { %2339 = vmatpush1.bf16.msra.mxu1 %v13285_v6  ;;  %12282 = vmatpush3.bf16.msra.mxu0 %v13288_v10 }
 0x6a4   :  { %2340 = vmatprep.subr.bf16.mxu1 %v13291_v58  ;;  %12283 = vmatprep.subr.bf16.mxu0 %v16686_v0 }
 0x6a5   :  { %2370 = vmatprep.mubr.bf16.mxu1 %v16684_v1  ;;  %12297 = vmatprep.mubr.msk.bf16.mxu0 %vm14522_vm0, %v16686_v0 }
 0x6a7   :  { %2341 = vmatpush1.bf16.msra.mxu1 %v13289_v16  ;;  %12284 = vmatpush3.bf16.msra.mxu0 %v13292_v17  ;;  %v1909_v17 = vrot.slane %v1894_v4, %v14813_v34 }
 0x6a8   :  { %2342 = vmatprep.subr.bf16.mxu1 %v13295_v12  ;;  %12285 = vmatprep.subr.bf16.mxu0 %v16686_v0 }
 0x6ab   :  { %2343 = vmatpush1.bf16.msra.mxu1 %v13293_v19  ;;  %12286 = vmatpush3.bf16.msra.mxu0 %v13296_v61  ;;  %v1640_v61 = vrot.slane %v1625_v5, %v14759_v53 }
 0x6ac   :  { %2344 = vmatprep.subr.bf16.mxu1 %v13299_v20  ;;  %12287 = vmatprep.subr.bf16.mxu0 %v16686_v0 }
 0x6af   :  { %2345 = vmatpush1.bf16.msra.mxu1 %v13297_v25  ;;  %12288 = vmatpush3.bf16.msra.mxu0 %v13300_v26 }
 0x6b0   :  { %2346 = vmatprep.subr.bf16.mxu1 %v13303_v29  ;;  %12289 = vmatprep.subr.bf16.mxu0 %v16686_v0 }
 0x6b3   :  { %2347 = vmatpush1.bf16.msra.mxu1 %v13301_v52  ;;  %12290 = vmatpush3.bf16.msra.mxu0 %v13304_v24 }
 0x6b4   :  { %2348 = vmatprep.subr.bf16.mxu1 %v13307_v11  ;;  %12291 = vmatprep.subr.bf16.mxu0 %v16686_v0 }
 0x6b7   :  { %2349 = vmatpush1.bf16.msra.mxu1 %v13305_v32  ;;  %12292 = vmatpush3.bf16.msra.mxu0 %v13308_v33 }
 0x6b8   :  { %2350 = vmatprep.subr.bf16.mxu1 %v13311_v36  ;;  %12293 = vmatprep.subr.bf16.mxu0 %v16686_v0 }
 0x6bb   :  { %2351 = vmatpush1.bf16.msra.mxu1 %v13309_v59  ;;  %12294 = vmatpush3.bf16.msra.mxu0 %v13312_v3 }
 0x6bc   :  { %2352 = vmatprep.subr.bf16.mxu1 %v13315_v39  ;;  %12295 = vmatprep.subr.bf16.mxu0 %v16686_v0  ;;  %v2145_v39 = vld [vmem:[%s16671_s8] sm:$0x3f] }
 0x6bf   :  { %2353 = vmatpush1.bf16.msra.mxu1 %v13313_v37  ;;  %12296 = vmatpush3.bf16.msra.mxu0 %v13316_v40  ;;  %v1898_v37 = vrot.slane %v10952_v50, %v14827_v63  ;;  %v2186_v40 = vrot.slane %v2145_v39, %v14813_v34 }
 0x6c0   :  { %12301 = vmatprep.subr.bf16.mxu0 %v16686_v0 }
 0x6c2   :  { %2371 = vmatmul.mubr.bf16.vlgmr.msra.gmra.mxu1 %v2149_v41  ;;  %12298 = vmatmul.mubr.bf16.vlgmr.msra.gmra.mxu0 %v2149_v41  ;;  %v1629_v41 = vrot.slane %v10952_v50, %v14762_v54 }
 0x6c3   :  { %2686 = vmatprep.mubr.bf16.mxu1 %v16684_v1  ;;  %12317 = vmatprep.mubr.msk.bf16.mxu0 %vm14522_vm0, %v16686_v0 }
 0x742   :  { %v1807_v42 = vpop.f32.mrf.mxu1  ;;  %v1848_v43 = vpop.f32.mrf.mxu0 }
 0x743   :  { %v1808_v58 = vadd.f32 %v1807_v42, %v1636_v57  ;;  %v1913_v42 = vrot.slane %v1898_v37, %v14813_v34 }
 0x744   :  { %v1809_v44 = vpop.f32.mrf.mxu1  ;;  %v12259_v45 = vpop.f32.mrf.mxu0 }
 0x745   :  { %v1810_v32 = vadd.f32 %v1809_v44, %v1640_v61  ;;  %v2201_v44 = vrot.slane %v2186_v40, %v14813_v34  ;;  %v2190_v45 = vrot.slane %v2145_v39, %v14819_v38 }
 0x746   :  { %v1811_v46 = vpop.f32.mrf.mxu1  ;;  %v1851_v47 = vpop.f32.mrf.mxu0 }
 0x747   :  { %v1644_v47 = vrot.slane %v1629_v41, %v14759_v53 }
 0x748   :  { %v1812_v48 = vpop.f32.mrf.mxu1  ;;  %v12260_v49 = vpop.f32.mrf.mxu0 }
 0x762   :  { %v2076_v6 = vpop.f32.mrf.mxu1  ;;  %v2117_v10 = vpop.f32.mrf.mxu0 }
 0x763   :  { %v2077_v16 = vadd.f32 %v2076_v6, %v1905_v62  ;;  %v2118_v56 = vadd.f32 %v2117_v10, %v1913_v42  ;;  %v2205_v62 = vrot.slane %v2190_v45, %v14813_v34  ;;  %v583_v10 = vadd.f32 %v14784_v9, %v14787_v13 }
 0x764   :  { %v2078_v12 = vpop.f32.mrf.mxu1  ;;  %v12279_v19 = vpop.f32.mrf.mxu0 }
 0x765   :  { %v2123_v20 = vadd.f32 %v2077_v16, %v1808_v58  ;;  %v2079_v52 = vadd.f32 %v2078_v12, %v1909_v17  ;;  %v1849_v58 = vadd.f32 %v1848_v43, %v1644_v47 }
 0x766   :  { %v2080_v25 = vpop.f32.mrf.mxu1  ;;  %v2120_v26 = vpop.f32.mrf.mxu0 }
 0x767   :  { %v11002_v29 = vmul.f32 -1.442695, %v2123_v20  ;;  %v2130_v33 = vadd.f32 %v2079_v52, %v1810_v32 }
 0x768   :  { %v2081_v24 = vpop.f32.mrf.mxu1  ;;  %v12280_v11 = vpop.f32.mrf.mxu0 }
 0x769   :  { %14094 = vpow2.f32 %v11002_v29  ;;  %v11003_v36 = vmul.f32 -1.442695, %v2130_v33 }
 0x76b   :  { %14096 = vpow2.f32 %v11003_v36 }
 0x776   :  { %v14095_v59 = vpop.eup %14094 }
 0x777   :  { %v2127_v3 = vadd.f32 1.0, %v14095_v59 }
 0x778   :  { %v14097_v46 = vpop.eup %14096 }
 0x779   :  { %14098 = vrcp.f32 %v2127_v3  ;;  %v2134_v55 = vadd.f32 1.0, %v14097_v46  ;;  %v2194_v3 = vrot.slane %v2145_v39, %v14827_v63 }
 0x77b   :  { %14100 = vrcp.f32 %v2134_v55  ;;  %v2209_v37 = vrot.slane %v2194_v3, %v14813_v34  ;;  %v13351_v3 = vld [vmem:[#allocation5 + $0x16c] ss:$12 sps:$4 sm:$0xff]  }
 0x782   :  { %v2372_v48 = vpop.f32.mrf.mxu1  ;;  %v2413_v49 = vpop.f32.mrf.mxu0 }
 0x783   :  { %v2373_v57 = vadd.f32 %v2372_v48, %v2201_v44  ;;  %v2414_v41 = vadd.f32 %v2413_v49, %v2209_v37  ;;  %v13317_v49 = vld [vmem:[#allocation3 + $0x168] ss:$12 sps:$4 sm:$0xff]  }
 0x784   :  { %v2374_v4 = vpop.f32.mrf.mxu1  ;;  %v12299_v5 = vpop.f32.mrf.mxu0 }
 0x785   :  { %v2419_v50 = vadd.f32 %v2373_v57, %v14779_v7  ;;  %v2375_v61 = vadd.f32 %v2374_v4, %v2205_v62  ;;  %v13319_v57 = vld [vmem:[#allocation3 + $0x16c] ss:$12 sps:$4 sm:$0xff]   ;;  %v13320_v62 = vld [vmem:[#allocation3 + $0x170] ss:$12 sps:$4 sm:$0xff]  }
 0x786   :  { %v14099_v6 = vpop.eup %14098  ;;  %v2376_v16 = vpop.f32.mrf.mxu1  ;;  %2654 = vmatprep.subr.bf16.mxu1 %v13319_v57  ;;  %12302 = vmatpush3.bf16.msra.mxu0 %v13320_v62  ;;  %v13321_v4 = vld [vmem:[#allocation3 + $0x150] ss:$12 sps:$4 sm:$0xff]   ;;  %v13355_v62 = vld [vmem:[#allocation5 + $0x154] ss:$12 sps:$4 sm:$0xff]  }
 0x787   :  { %v2416_v17 = vpop.f32.mrf.mxu0  ;;  %v2137_v12 = vmul.f32 %v14099_v6, %v2118_v56  ;;  %v11028_v19 = vmul.f32 -1.442695, %v2419_v50  ;;  %v2426_v29 = vadd.f32 %v2375_v61, %v583_v10  ;;  %2655 = vmatpush1.bf16.msra.mxu1 %v13317_v49  ;;  %12303 = vmatprep.subr.bf16.mxu0 %v16686_v0  ;;  %v13327_v16 = vld [vmem:[#allocation3 + $0x13c] ss:$12 sps:$4 sm:$0xff]   ;;  %v13329_v61 = vld [vmem:[#allocation3 + $0x120] ss:$12 sps:$4 sm:$0xff]  }
 0x788   :  { %v2377_v20 = vpop.f32.mrf.mxu1  ;;  %v14101_v7 = vpop.eup %14100  ;;  %v13325_v17 = vld [vmem:[#allocation3 + $0x138] ss:$12 sps:$4 sm:$0xff]   ;;  %v13333_v10 = vld [vmem:[#allocation3 + $0x108] ss:$12 sps:$4 sm:$0xff]   ;;  %v13352_v49 = vld [vmem:[#allocation5 + $0x170] ss:$12 sps:$4 sm:$0xff]  }
 0x789   :  { %v12300_v25 = vpop.f32.mrf.mxu0  ;;  %v2138_v26 = vadd.f32 %v2137_v12, %v1849_v58  ;;  %14102 = vpow2.f32 %v11028_v19  ;;  %v11029_v52 = vmul.f32 -1.442695, %v2426_v29  ;;  %v2140_v11 = vsub.f32 1.0, %v14101_v7  ;;  %v13324_v58 = vld [vmem:[#allocation3 + $0x158] ss:$12 sps:$4 sm:$0xff]  }
 0x78a   :  { %v2142_v36 = vmul.f32 0.0, %v14101_v7  ;;  %12304 = vmatpush3.bf16.msra.mxu0 %v13324_v58  ;;  %v13328_v12 = vld [vmem:[#allocation3 + $0x140] ss:$12 sps:$4 sm:$0xff]   ;;  %v13331_v19 = vld [vmem:[#allocation3 + $0x124] ss:$12 sps:$4 sm:$0xff]  }
 0x78b   :  { %14104 = vtanh.f32 %v2138_v26  ;;  %12305 = vmatprep.subr.bf16.mxu0 %v16686_v0  ;;  %v13332_v20 = vld [vmem:[#allocation3 + $0x128] ss:$12 sps:$4 sm:$0xff]   ;;  %v13335_v25 = vld [vmem:[#allocation3 + $0x10c] ss:$12 sps:$4 sm:$0xff]   ;;  %v13336_v26 = vld [vmem:[#allocation3 + $0x110] ss:$12 sps:$4 sm:$0xff]  }
 0x78c   :  { %14106 = vpow2.f32 %v11029_v52  ;;  %v13339_v29 = vld [vmem:[#allocation3 + $0xf4] ss:$12 sps:$4 sm:$0xff]   ;;  %v13337_v52 = vld [vmem:[#allocation3 + $0xf0] ss:$12 sps:$4 sm:$0xff]   ;;  %v13340_v7 = vld [vmem:[#allocation3 + $0xf8] ss:$12 sps:$4 sm:$0xff]  }
 0x78d   :  { %v13361_v58 = vld [vmem:[#allocation5 + $0x120] ss:$12 sps:$4 sm:$0xff]  }
 0x78e   :  { %12306 = vmatpush3.bf16.msra.mxu0 %v13328_v12  ;;  %v13365_v12 = vld [vmem:[#allocation5 + $0x108] ss:$12 sps:$4 sm:$0xff]  }
 0x78f   :  { %12307 = vmatprep.subr.bf16.mxu0 %v16686_v0 }
 0x792   :  { %12308 = vmatpush3.bf16.msra.mxu0 %v13332_v20  ;;  %v13369_v20 = vld [vmem:[#allocation5 + $0xf0] ss:$12 sps:$4 sm:$0xff]  }
 0x793   :  { %12309 = vmatprep.subr.bf16.mxu0 %v16686_v0 }
 0x796   :  { %v14103_v24 = vpop.eup %14102  ;;  %12310 = vmatpush3.bf16.msra.mxu0 %v13336_v26  ;;  %v13373_v26 = vld [vmem:[#allocation5 + $0xd8] ss:$12 sps:$4 sm:$0xff]  }
 0x797   :  { %v2423_v43 = vadd.f32 1.0, %v14103_v24  ;;  %12311 = vmatprep.subr.bf16.mxu0 %v16686_v0  ;;  %v13343_v24 = vld [vmem:[#allocation3 + $0xdc] ss:$12 sps:$4 sm:$0xff]  }
 0x798   :  { %v14105_v32 = vpop.eup %14104 }
 0x799   :  { %14108 = vrcp.f32 %v2423_v43  ;;  %v2141_v33 = vmul.f32 %v14105_v32, %v2140_v11  ;;  %v14107_v9 = vpop.eup %14106  ;;  %v13341_v43 = vld [vmem:[#allocation3 + $0xd8] ss:$12 sps:$4 sm:$0xff]   ;;  %v13344_v11 = vld [vmem:[#allocation3 + $0xe0] ss:$12 sps:$4 sm:$0xff]  }
 0x79a   :  { %v2430_v40 = vadd.f32 1.0, %v14107_v9  ;;  %12312 = vmatpush3.bf16.msra.mxu0 %v13340_v7  ;;  %v13347_v32 = vld [vmem:[#allocation3 + $0xc4] ss:$12 sps:$4 sm:$0xff]   ;;  %v13377_v7 = vld [vmem:[#allocation5 + $0xc0] ss:$12 sps:$4 sm:$0xff]  }
 0x79b   :  { %v14960_v59 = vadd.f32 %v2142_v36, %v2141_v33  ;;  %12313 = vmatprep.subr.bf16.mxu0 %v16686_v0  ;;  %v13345_v33 = vld [vmem:[#allocation3 + $0xc0] ss:$12 sps:$4 sm:$0xff]   ;;  %v13348_v36 = vld [vmem:[#allocation3 + $0xc8] ss:$12 sps:$4 sm:$0xff]  }
 0x79c   :  { %14110 = vrcp.f32 %v2430_v40 }
 0x79d   :  { %2144 = vst [vmem:[%s16680_s17 + $0x50] sm:$0xff] %v14960_v59 }
 0x79e   :  { %12314 = vmatpush3.bf16.msra.mxu0 %v13344_v11 }
 0x79f   :  { %12315 = vmatprep.subr.bf16.mxu0 %v16686_v0 }
 0x7a2   :  { %12316 = vmatpush3.bf16.msra.mxu0 %v13348_v36 }
 0x7a3   :  { %12321 = vmatprep.subr.bf16.mxu0 %v16686_v0 }
 0x7a6   :  { %v14109_v42 = vpop.eup %14108 }
 0x7a7   :  { %v2433_v44 = vmul.f32 %v14109_v42, %v2414_v41  ;;  %v2442_v41 = vld [vmem:[%s16672_s9] sm:$0x3] }
 0x7a8   :  { %v2457_v42 = vrot.slane %v2442_v41, %v14759_v53 }
 0x7a9   :  { %v2434_v45 = vadd.f32 %v2433_v44, %v14782_v8  ;;  %v14111_v46 = vpop.eup %14110  ;;  %v13323_v8 = vld [vmem:[#allocation3 + $0x154] ss:$12 sps:$4 sm:$0xff]  }
 0x7aa   :  { %v2436_v47 = vsub.f32 1.0, %v14111_v46  ;;  %v2438_v55 = vmul.f32 %v14111_v46, %v14833_v35  ;;  %2656 = vmatprep.subr.bf16.mxu1 %v13323_v8  ;;  %v2462_v46 = vrot.slane %v2442_v41, %v14813_v34  ;;  %v13353_v8 = vld [vmem:[#allocation5 + $0x150] ss:$12 sps:$4 sm:$0xff]   ;;  %v11030_v41 = vld [vmem:[%s16671_s8 + $0x6] sm:$0x3f] }
 0x7ab   :  { %14112 = vtanh.f32 %v2434_v45  ;;  %2657 = vmatpush1.bf16.msra.mxu1 %v13321_v4  ;;  %v13356_v4 = vld [vmem:[#allocation5 + $0x158] ss:$12 sps:$4 sm:$0xff]  }
 0x7ac   :  { %2658 = vmatprep.subr.bf16.mxu1 %v13327_v16  ;;  %v13364_v16 = vld [vmem:[#allocation5 + $0x128] ss:$12 sps:$4 sm:$0xff]  }
 0x7af   :  { %2659 = vmatpush1.bf16.msra.mxu1 %v13325_v17  ;;  %v13367_v17 = vld [vmem:[#allocation5 + $0x10c] ss:$12 sps:$4 sm:$0xff]  }
 0x7b0   :  { %2660 = vmatprep.subr.bf16.mxu1 %v13331_v19  ;;  %v13368_v19 = vld [vmem:[#allocation5 + $0x110] ss:$12 sps:$4 sm:$0xff]  }
 0x7b3   :  { %2661 = vmatpush1.bf16.msra.mxu1 %v13329_v61  ;;  %v13371_v61 = vld [vmem:[#allocation5 + $0xf4] ss:$12 sps:$4 sm:$0xff]  }
 0x7b4   :  { %2662 = vmatprep.subr.bf16.mxu1 %v13335_v25  ;;  %v13372_v25 = vld [vmem:[#allocation5 + $0xf8] ss:$12 sps:$4 sm:$0xff]  }
 0x7b7   :  { %2663 = vmatpush1.bf16.msra.mxu1 %v13333_v10  ;;  %v13375_v10 = vld [vmem:[#allocation5 + $0xdc] ss:$12 sps:$4 sm:$0xff]  }
 0x7b8   :  { %v14113_v48 = vpop.eup %14112  ;;  %2664 = vmatprep.subr.bf16.mxu1 %v13339_v29  ;;  %v13376_v29 = vld [vmem:[#allocation5 + $0xe0] ss:$12 sps:$4 sm:$0xff]  }
 0x7b9   :  { %v2437_v39 = vmul.f32 %v14113_v48, %v2436_v47 }
 0x7bb   :  { %v14970_v56 = vadd.f32 %v2438_v55, %v2437_v39  ;;  %2665 = vmatpush1.bf16.msra.mxu1 %v13337_v52  ;;  %v13349_v55 = vld [vmem:[#allocation5 + $0x168] ss:$12 sps:$4 sm:$0xff]   ;;  %v13379_v52 = vld [vmem:[#allocation5 + $0xc4] ss:$12 sps:$4 sm:$0xff]  }
 0x7bc   :  { %2666 = vmatprep.subr.bf16.mxu1 %v13343_v24  ;;  %v13380_v24 = vld [vmem:[#allocation5 + $0xc8] ss:$12 sps:$4 sm:$0xff]  }
 0x7bd   :  { %2443 = vadd.xlane.f32.xlu0 %v14970_v56  ;;  %2440 = vst [vmem:[%s16680_s17 + $0x8] sm:$0xff] %v14970_v56 }
 0x7bf   :  { %2667 = vmatpush1.bf16.msra.mxu1 %v13341_v43  ;;  %v2735_v43 = vpack.c.bf16 %v14885_v30, %v14885_v30 }
 0x7c0   :  { %2668 = vmatprep.subr.bf16.mxu1 %v13347_v32 }
 0x7c3   :  { %2669 = vmatpush1.bf16.msra.mxu1 %v13345_v33 }
 0x7c4   :  { %2923 = vmatprep.subr.bf16.mxu1 %v13351_v3 }
 0x846   :  { %v2444_v35 = vpop.xlane.xlu0 %2443 }
 0x847   :  { %v2445_v5 = vmul.f32 0.0078125, %v2444_v35  ;;  %v13359_v35 = vld [vmem:[#allocation5 + $0x13c] ss:$12 sps:$4 sm:$0xff]  }
 0x849   :  { %v2446_v50 = vsub.f32 %v14970_v56, %v2445_v5  ;;  %v13357_v5 = vld [vmem:[#allocation5 + $0x138] ss:$12 sps:$4 sm:$0xff]  }
 0x84b   :  { %v2447_v6 = vmul.f32 %v2446_v50, %v2446_v50 }
 0x84d   :  { %2448 = vadd.xlane.f32.xlu1 %v2447_v6  ;;  %v13363_v6 = vld [vmem:[#allocation5 + $0x124] ss:$12 sps:$4 sm:$0xff]  }
 0x8d6   :  { %v2449_v9 = vpop.xlane.xlu1 %2448 }
 0x8d7   :  { %v2450_v37 = vmul.f32 0.0078125, %v2449_v9 }
 0x8d9   :  { %v2451_v40 = vadd.f32 1e-05, %v2450_v37 }
 0x8db   :  { %14114 = vrsqrt.f32 %v2451_v40 }
 0x8e8   :  { %v14115_v44 = vpop.eup %14114 }
 0x8e9   :  { %v2453_v45 = vmul.f32 %v14115_v44, %v2446_v50  ;;  %v13360_v50 = vld [vmem:[#allocation5 + $0x140] ss:$12 sps:$4 sm:$0xff]   ;;  %v2771_v44 = vrot.slane %v11030_v41, %v14813_v34 }
 0x8eb   :  { %v2458_v47 = vmul.f32 %v2457_v42, %v2453_v45  ;;  %v2502_v42 = vrot.slane %v11030_v41, %v14759_v53 }
 0x8ed   :  { %v2463_v48 = vadd.f32 %v2462_v46, %v2458_v47  ;;  %v2517_v45 = vrot.slane %v2502_v42, %v14759_v53  ;;  %v2786_v46 = vrot.slane %v2771_v44, %v14813_v34  ;;  %v2775_v47 = vrot.slane %v11030_v41, %v14819_v38 }
 0x8ef   :  { %v2464_v39 = vmax.f32 %v2463_v48, 0.0  ;;  %v2506_v48 = vrot.slane %v11030_v41, %v14772_v60 }
 0x8f1   :  { %v2465_v57 = vpack.c.bf16 %v2464_v39, %v2464_v39 }
 0x8f3   :  { %2687 = vmatmul.mubr.bf16.vlgmr.msra.gmra.mxu1 %v2465_v57  ;;  %12318 = vmatmul.mubr.bf16.vlgmr.msra.gmra.mxu0 %v2465_v57 }
 0x8f4   :  { %2924 = vmatpush1.bf16.msra.mxu1 %v13349_v55  ;;  %12322 = vmatpush3.bf16.msra.mxu0 %v13352_v49 }
 0x8f5   :  { %2925 = vmatprep.subr.bf16.mxu1 %v13355_v62  ;;  %12323 = vmatprep.subr.bf16.mxu0 %v16686_v0  ;;  %v2790_v62 = vrot.slane %v2775_v47, %v14813_v34  ;;  %v13384_v47 = vld [vmem:[#allocation3 + $0x230] ss:$12 sps:$4 sm:$0xff]  }
 0x8f6   :  { %2955 = vmatprep.mubr.bf16.mxu1 %v16684_v1  ;;  %12337 = vmatprep.mubr.msk.bf16.mxu0 %vm14522_vm0, %v16686_v0 }
 0x8f8   :  { %2926 = vmatpush1.bf16.msra.mxu1 %v13353_v8  ;;  %12324 = vmatpush3.bf16.msra.mxu0 %v13356_v4 }
 0x8f9   :  { %2927 = vmatprep.subr.bf16.mxu1 %v13359_v35  ;;  %12325 = vmatprep.subr.bf16.mxu0 %v16686_v0  ;;  %v2521_v35 = vrot.slane %v2506_v48, %v14759_v53  ;;  %v13387_v48 = vld [vmem:[#allocation3 + $0x214] ss:$12 sps:$4 sm:$0xff]  }
 0x8fc   :  { %2928 = vmatpush1.bf16.msra.mxu1 %v13357_v5  ;;  %12326 = vmatpush3.bf16.msra.mxu0 %v13360_v50 }
 0x8fd   :  { %2929 = vmatprep.subr.bf16.mxu1 %v13363_v6  ;;  %12327 = vmatprep.subr.bf16.mxu0 %v16686_v0 }
 0x900   :  { %2930 = vmatpush1.bf16.msra.mxu1 %v13361_v58  ;;  %12328 = vmatpush3.bf16.msra.mxu0 %v13364_v16 }
 0x901   :  { %2931 = vmatprep.subr.bf16.mxu1 %v13367_v17  ;;  %12329 = vmatprep.subr.bf16.mxu0 %v16686_v0 }
 0x904   :  { %2932 = vmatpush1.bf16.msra.mxu1 %v13365_v12  ;;  %12330 = vmatpush3.bf16.msra.mxu0 %v13368_v19 }
 0x905   :  { %2933 = vmatprep.subr.bf16.mxu1 %v13371_v61  ;;  %12331 = vmatprep.subr.bf16.mxu0 %v16686_v0 }
 0x908   :  { %2934 = vmatpush1.bf16.msra.mxu1 %v13369_v20  ;;  %12332 = vmatpush3.bf16.msra.mxu0 %v13372_v25 }
 0x909   :  { %2935 = vmatprep.subr.bf16.mxu1 %v13375_v10  ;;  %12333 = vmatprep.subr.bf16.mxu0 %v16686_v0 }
 0x90c   :  { %2936 = vmatpush1.bf16.msra.mxu1 %v13373_v26  ;;  %12334 = vmatpush3.bf16.msra.mxu0 %v13376_v29  ;;  %v2779_v26 = vrot.slane %v11030_v41, %v14827_v63  ;;  %v2510_v29 = vrot.slane %v11030_v41, %v14762_v54 }
 0x90d   :  { %2937 = vmatprep.subr.bf16.mxu1 %v13379_v52  ;;  %12335 = vmatprep.subr.bf16.mxu0 %v16686_v0 }
 0x910   :  { %2938 = vmatpush1.bf16.msra.mxu1 %v13377_v7  ;;  %12336 = vmatpush3.bf16.msra.mxu0 %v13380_v24  ;;  %v2794_v7 = vrot.slane %v2779_v26, %v14813_v34  ;;  %v2525_v24 = vrot.slane %v2510_v29, %v14759_v53  ;;  %v13411_v26 = vld [vmem:[#allocation3 + $0x184] ss:$12 sps:$4 sm:$0xff]   ;;  %v13409_v29 = vld [vmem:[#allocation3 + $0x180] ss:$12 sps:$4 sm:$0xff]  }
 0x911   :  { %12341 = vmatprep.subr.bf16.mxu0 %v16686_v0 }
 0x913   :  { %2956 = vmatmul.mubr.bf16.vlgmr.msra.gmra.mxu1 %v2735_v43  ;;  %12338 = vmatmul.mubr.bf16.vlgmr.msra.gmra.mxu0 %v2735_v43 }
 0x914   :  { %3271 = vmatprep.mubr.bf16.mxu1 %v16684_v1  ;;  %12357 = vmatprep.mubr.msk.bf16.mxu0 %vm14522_vm0, %v16686_v0 }
 0x915   :  { %12342 = vmatpush3.bf16.msra.mxu0 %v13384_v47  ;;  %v13419_v47 = vld [vmem:[#allocation5 + $0x214] ss:$12 sps:$4 sm:$0xff]  }
 0x916   :  { %12343 = vmatprep.subr.bf16.mxu0 %v16686_v0 }
 0x9b3   :  { %v2688_v11 = vpop.f32.mrf.mxu1  ;;  %v2729_v32 = vpop.f32.mrf.mxu0 }
 0x9b4   :  { %v2689_v49 = vadd.f32 %v2688_v11, %v2517_v45 }
 0x9b5   :  { %v2690_v33 = vpop.f32.mrf.mxu1  ;;  %v12319_v36 = vpop.f32.mrf.mxu0 }
 0x9b6   :  { %v2691_v19 = vadd.f32 %v2690_v33, %v2521_v35  ;;  %v2730_v33 = vadd.f32 %v2729_v32, %v2525_v24  ;;  %v13381_v32 = vld [vmem:[#allocation3 + $0x228] ss:$12 sps:$4 sm:$0xff]   ;;  %v13392_v35 = vld [vmem:[#allocation3 + $0x200] ss:$12 sps:$4 sm:$0xff]  }
 0x9b7   :  { %v2692_v3 = vpop.f32.mrf.mxu1  ;;  %v2732_v9 = vpop.f32.mrf.mxu0 }
 0x9b9   :  { %v2693_v37 = vpop.f32.mrf.mxu1  ;;  %v12320_v40 = vpop.f32.mrf.mxu0 }
 0x9d3   :  { %v2957_v39 = vpop.f32.mrf.mxu1  ;;  %v2998_v55 = vpop.f32.mrf.mxu0 }
 0x9d4   :  { %v2958_v57 = vadd.f32 %v2957_v39, %v2786_v46  ;;  %v2999_v11 = vadd.f32 %v2998_v55, %v2794_v7  ;;  %v13383_v46 = vld [vmem:[#allocation3 + $0x22c] ss:$12 sps:$4 sm:$0xff]   ;;  %v13385_v39 = vld [vmem:[#allocation3 + $0x210] ss:$12 sps:$4 sm:$0xff]  }
 0x9d5   :  { %v2959_v8 = vpop.f32.mrf.mxu1  ;;  %v12339_v4 = vpop.f32.mrf.mxu0  ;;  %3239 = vmatprep.subr.bf16.mxu1 %v13383_v46  ;;  %v13415_v7 = vld [vmem:[#allocation5 + $0x22c] ss:$12 sps:$4 sm:$0xff]  }
 0x9d6   :  { %v3004_v5 = vadd.f32 %v2958_v57, %v2689_v49  ;;  %v2960_v16 = vadd.f32 %v2959_v8, %v2790_v62  ;;  %3240 = vmatpush1.bf16.msra.mxu1 %v13381_v32  ;;  %v13388_v62 = vld [vmem:[#allocation3 + $0x218] ss:$12 sps:$4 sm:$0xff]   ;;  %v13391_v8 = vld [vmem:[#allocation3 + $0x1fc] ss:$12 sps:$4 sm:$0xff]  }
 0x9d7   :  { %v2961_v50 = vpop.f32.mrf.mxu1  ;;  %v3001_v6 = vpop.f32.mrf.mxu0  ;;  %3241 = vmatprep.subr.bf16.mxu1 %v13387_v48  ;;  %12344 = vmatpush3.bf16.msra.mxu0 %v13388_v62  ;;  %v13389_v4 = vld [vmem:[#allocation3 + $0x1f8] ss:$12 sps:$4 sm:$0xff]   ;;  %v13416_v32 = vld [vmem:[#allocation5 + $0x230] ss:$12 sps:$4 sm:$0xff]   ;;  %v13425_v62 = vld [vmem:[#allocation5 + $0x1e0] ss:$12 sps:$4 sm:$0xff]  }
 0x9d8   :  { %v11079_v58 = vmul.f32 -1.442695, %v3004_v5  ;;  %v3011_v61 = vadd.f32 %v2960_v16, %v2691_v19  ;;  %12345 = vmatprep.subr.bf16.mxu0 %v16686_v0  ;;  %v13393_v5 = vld [vmem:[#allocation3 + $0x1e0] ss:$12 sps:$4 sm:$0xff]   ;;  %v13395_v50 = vld [vmem:[#allocation3 + $0x1e4] ss:$12 sps:$4 sm:$0xff]  }
 0x9d9   :  { %v2962_v17 = vpop.f32.mrf.mxu1  ;;  %v12340_v12 = vpop.f32.mrf.mxu0  ;;  %v13396_v6 = vld [vmem:[#allocation3 + $0x1e8] ss:$12 sps:$4 sm:$0xff]   ;;  %v13401_v19 = vld [vmem:[#allocation3 + $0x1b0] ss:$12 sps:$4 sm:$0xff]  }
 0x9da   :  { %14116 = vpow2.f32 %v11079_v58  ;;  %v11080_v20 = vmul.f32 -1.442695, %v3011_v61  ;;  %3242 = vmatpush1.bf16.msra.mxu1 %v13385_v39  ;;  %v13399_v58 = vld [vmem:[#allocation3 + $0x1cc] ss:$12 sps:$4 sm:$0xff]   ;;  %v13397_v16 = vld [vmem:[#allocation3 + $0x1c8] ss:$12 sps:$4 sm:$0xff]  }
 0x9db   :  { %3243 = vmatprep.subr.bf16.mxu1 %v13391_v8  ;;  %12346 = vmatpush3.bf16.msra.mxu0 %v13392_v35  ;;  %v13400_v17 = vld [vmem:[#allocation3 + $0x1d0] ss:$12 sps:$4 sm:$0xff]   ;;  %v13403_v12 = vld [vmem:[#allocation3 + $0x1b4] ss:$12 sps:$4 sm:$0xff]   ;;  %v13404_v61 = vld [vmem:[#allocation3 + $0x1b8] ss:$12 sps:$4 sm:$0xff]  }
 0x9dc   :  { %14118 = vpow2.f32 %v11080_v20  ;;  %12347 = vmatprep.subr.bf16.mxu0 %v16686_v0  ;;  %v13407_v20 = vld [vmem:[#allocation3 + $0x19c] ss:$12 sps:$4 sm:$0xff]   ;;  %v13420_v39 = vld [vmem:[#allocation5 + $0x218] ss:$12 sps:$4 sm:$0xff]  }
 0x9dd   :  { %v13417_v48 = vld [vmem:[#allocation5 + $0x210] ss:$12 sps:$4 sm:$0xff]   ;;  %v13428_v8 = vld [vmem:[#allocation5 + $0x1e8] ss:$12 sps:$4 sm:$0xff]  }
 0x9de   :  { %3244 = vmatpush1.bf16.msra.mxu1 %v13389_v4  ;;  %v13431_v4 = vld [vmem:[#allocation5 + $0x1cc] ss:$12 sps:$4 sm:$0xff]   ;;  %v13429_v35 = vld [vmem:[#allocation5 + $0x1c8] ss:$12 sps:$4 sm:$0xff]  }
 0x9df   :  { %3245 = vmatprep.subr.bf16.mxu1 %v13395_v50  ;;  %12348 = vmatpush3.bf16.msra.mxu0 %v13396_v6  ;;  %v13435_v50 = vld [vmem:[#allocation5 + $0x1b4] ss:$12 sps:$4 sm:$0xff]   ;;  %v13433_v6 = vld [vmem:[#allocation5 + $0x1b0] ss:$12 sps:$4 sm:$0xff]  }
 0x9e0   :  { %12349 = vmatprep.subr.bf16.mxu0 %v16686_v0 }
 0x9e2   :  { %3246 = vmatpush1.bf16.msra.mxu1 %v13393_v5  ;;  %v13432_v5 = vld [vmem:[#allocation5 + $0x1d0] ss:$12 sps:$4 sm:$0xff]  }
 0x9e3   :  { %3247 = vmatprep.subr.bf16.mxu1 %v13399_v58  ;;  %12350 = vmatpush3.bf16.msra.mxu0 %v13400_v17  ;;  %v13436_v58 = vld [vmem:[#allocation5 + $0x1b8] ss:$12 sps:$4 sm:$0xff]  }
 0x9e4   :  { %12351 = vmatprep.subr.bf16.mxu0 %v16686_v0  ;;  %v13437_v17 = vld [vmem:[#allocation5 + $0x198] ss:$12 sps:$4 sm:$0xff]  }
 0x9e6   :  { %3248 = vmatpush1.bf16.msra.mxu1 %v13397_v16  ;;  %v13439_v16 = vld [vmem:[#allocation5 + $0x19c] ss:$12 sps:$4 sm:$0xff]  }
 0x9e7   :  { %v14117_v25 = vpop.eup %14116  ;;  %3249 = vmatprep.subr.bf16.mxu1 %v13403_v12  ;;  %12352 = vmatpush3.bf16.msra.mxu0 %v13404_v61  ;;  %v13440_v12 = vld [vmem:[#allocation5 + $0x1a0] ss:$12 sps:$4 sm:$0xff]  }
 0x9e8   :  { %v3008_v10 = vadd.f32 1.0, %v14117_v25  ;;  %v13405_v25 = vld [vmem:[#allocation3 + $0x198] ss:$12 sps:$4 sm:$0xff]   ;;  %12353 = vmatprep.subr.bf16.mxu0 %v16686_v0  ;;  %v13441_v61 = vld [vmem:[#allocation5 + $0x180] ss:$12 sps:$4 sm:$0xff]  }
 0x9e9   :  { %v14119_v52 = vpop.eup %14118 }
 0x9ea   :  { %14120 = vrcp.f32 %v3008_v10  ;;  %v3015_v43 = vadd.f32 1.0, %v14119_v52  ;;  %3250 = vmatpush1.bf16.msra.mxu1 %v13401_v19  ;;  %v13408_v10 = vld [vmem:[#allocation3 + $0x1a0] ss:$12 sps:$4 sm:$0xff]   ;;  %v13412_v52 = vld [vmem:[#allocation3 + $0x188] ss:$12 sps:$4 sm:$0xff]  }
 0x9eb   :  { %3251 = vmatprep.subr.bf16.mxu1 %v13407_v20  ;;  %12354 = vmatpush3.bf16.msra.mxu0 %v13408_v10  ;;  %v13443_v19 = vld [vmem:[#allocation5 + $0x184] ss:$12 sps:$4 sm:$0xff]   ;;  %v13444_v20 = vld [vmem:[#allocation5 + $0x188] ss:$12 sps:$4 sm:$0xff]  }
 0x9ec   :  { %14122 = vrcp.f32 %v3015_v43  ;;  %12355 = vmatprep.subr.bf16.mxu0 %v16686_v0  ;;  %v13445_v10 = vld [vmem:[#allocation5 + $0xa8] ss:$12 sps:$4 sm:$0xff]  }
 0x9ee   :  { %3252 = vmatpush1.bf16.msra.mxu1 %v13405_v25  ;;  %v13447_v25 = vld [vmem:[#allocation5 + $0xac] ss:$12 sps:$4 sm:$0xff]  }
 0x9ef   :  { %3253 = vmatprep.subr.bf16.mxu1 %v13411_v26  ;;  %12356 = vmatpush3.bf16.msra.mxu0 %v13412_v52  ;;  %v13448_v26 = vld [vmem:[#allocation5 + $0xb0] ss:$12 sps:$4 sm:$0xff]   ;;  %v13451_v52 = vld [vmem:[#allocation5 + $0x94] ss:$12 sps:$4 sm:$0xff]  }
 0x9f0   :  { %12361 = vmatprep.subr.bf16.mxu0 %v16686_v0 }
 0x9f2   :  { %3254 = vmatpush1.bf16.msra.mxu1 %v13409_v29  ;;  %v3320_v29 = vpack.c.bf16 %v14960_v59, %v14960_v59 }
 0x9f3   :  { %3508 = vmatprep.subr.bf16.mxu1 %v13415_v7  ;;  %v13449_v7 = vld [vmem:[#allocation5 + $0x90] ss:$12 sps:$4 sm:$0xff]  }
 0x9f7   :  { %v14121_v36 = vpop.eup %14120 }
 0x9f8   :  { %v3018_v3 = vmul.f32 %v14121_v36, %v2999_v11  ;;  %v11082_v36 = vld [vmem:[%s16672_s9 + $0x2] sm:$0x3] }
 0x9f9   :  { %v14123_v37 = vpop.eup %14122 }
 0x9fa   :  { %v3019_v9 = vadd.f32 %v3018_v3, %v2730_v33  ;;  %v3021_v40 = vsub.f32 1.0, %v14123_v37  ;;  %v3023_v45 = vmul.f32 %v14123_v37, %v14885_v30  ;;  %v3042_v33 = vrot.slane %v11082_v36, %v14759_v53 }
 0x9fb   :  { %v3047_v37 = vrot.slane %v11082_v36, %v14813_v34  ;;  %v13456_v36 = vld [vmem:[#allocation5 + $0x80] ss:$12 sps:$4 sm:$0xff]  }
 0x9fc   :  { %14124 = vtanh.f32 %v3019_v9 }
 0xa09   :  { %v14125_v42 = vpop.eup %14124 }
 0xa0a   :  { %v3022_v44 = vmul.f32 %v14125_v42, %v3021_v40 }
 0xa0c   :  { %v15023_v41 = vadd.f32 %v3023_v45, %v3022_v44  ;;  %v13413_v45 = vld [vmem:[#allocation5 + $0x228] ss:$12 sps:$4 sm:$0xff]  }
 0xa0e   :  { %3028 = vadd.xlane.f32.xlu0 %v15023_v41  ;;  %3025 = vst [vmem:[%s16680_s17 + $0x30] sm:$0xff] %v15023_v41 }
 0xa97   :  { %v3029_v30 = vpop.xlane.xlu0 %3028 }
 0xa98   :  { %v3030_v55 = vmul.f32 0.0078125, %v3029_v30  ;;  %v13423_v30 = vld [vmem:[#allocation5 + $0x1fc] ss:$12 sps:$4 sm:$0xff]  }
 0xa9a   :  { %v3031_v49 = vsub.f32 %v15023_v41, %v3030_v55  ;;  %v13421_v55 = vld [vmem:[#allocation5 + $0x1f8] ss:$12 sps:$4 sm:$0xff]  }
 0xa9c   :  { %v3032_v57 = vmul.f32 %v3031_v49, %v3031_v49 }
 0xa9e   :  { %3033 = vadd.xlane.f32.xlu1 %v3032_v57  ;;  %v13427_v57 = vld [vmem:[#allocation5 + $0x1e4] ss:$12 sps:$4 sm:$0xff]  }
 0xb27   :  { %v3034_v24 = vpop.xlane.xlu1 %3033 }
 0xb28   :  { %v3035_v43 = vmul.f32 0.0078125, %v3034_v24  ;;  %v13452_v24 = vld [vmem:[#allocation5 + $0x98] ss:$12 sps:$4 sm:$0xff]  }
 0xb2a   :  { %v3036_v11 = vadd.f32 1e-05, %v3035_v43  ;;  %v13455_v43 = vld [vmem:[#allocation5 + $0x7c] ss:$12 sps:$4 sm:$0xff]  }
 0xb2c   :  { %14126 = vrsqrt.f32 %v3036_v11  ;;  %v13453_v11 = vld [vmem:[#allocation5 + $0x78] ss:$12 sps:$4 sm:$0xff]  }
 0xb39   :  { %v14127_v3 = vpop.eup %14126 }
 0xb3a   :  { %v3038_v9 = vmul.f32 %v14127_v3, %v3031_v49  ;;  %v13424_v49 = vld [vmem:[#allocation5 + $0x200] ss:$12 sps:$4 sm:$0xff]  }
 0xb3b   :  { %v13457_v3 = vld [vmem:[#allocation5 + $0x60] ss:$12 sps:$4 sm:$0xff]  }
 0xb3c   :  { %v3043_v40 = vmul.f32 %v3042_v33, %v3038_v9  ;;  %v13459_v33 = vld [vmem:[#allocation5 + $0x64] ss:$12 sps:$4 sm:$0xff]   ;;  %v13460_v9 = vld [vmem:[#allocation5 + $0x68] ss:$12 sps:$4 sm:$0xff]  }
 0xb3e   :  { %v3048_v42 = vadd.f32 %v3047_v37, %v3043_v40  ;;  %v13463_v37 = vld [vmem:[#allocation5 + $0x4c] ss:$12 sps:$4 sm:$0xff]   ;;  %v13461_v40 = vld [vmem:[#allocation5 + $0x48] ss:$12 sps:$4 sm:$0xff]  }
 0xb40   :  { %v3049_v44 = vmax.f32 %v3048_v42, 0.0  ;;  %v13464_v42 = vld [vmem:[#allocation5 + $0x50] ss:$12 sps:$4 sm:$0xff]  }
 0xb42   :  { %v3050_v46 = vpack.c.bf16 %v3049_v44, %v3049_v44  ;;  %v13467_v44 = vld [vmem:[#allocation5 + $0x34] ss:$12 sps:$4 sm:$0xff]  }
 0xb44   :  { %3272 = vmatmul.mubr.bf16.vlgmr.msra.gmra.mxu1 %v3050_v46  ;;  %12358 = vmatmul.mubr.bf16.vlgmr.msra.gmra.mxu0 %v3050_v46  ;;  %v13471_v46 = vld [vmem:[#allocation5 + $0x1c] ss:$12 sps:$4 sm:$0xff]  }
 0xb45   :  { %3509 = vmatpush1.bf16.msra.mxu1 %v13413_v45  ;;  %12362 = vmatpush3.bf16.msra.mxu0 %v13416_v32  ;;  %v13465_v45 = vld [vmem:[#allocation5 + $0x30] ss:$12 sps:$4 sm:$0xff]   ;;  %v13468_v32 = vld [vmem:[#allocation5 + $0x38] ss:$12 sps:$4 sm:$0xff]  }
 0xb46   :  { %3510 = vmatprep.subr.bf16.mxu1 %v13419_v47  ;;  %12363 = vmatprep.subr.bf16.mxu0 %v16686_v0  ;;  %v13469_v47 = vld [vmem:[#allocation5 + $0x18] ss:$12 sps:$4 sm:$0xff]  }
 0xb47   :  { %3540 = vmatprep.mubr.bf16.mxu1 %v16684_v1  ;;  %12377 = vmatprep.mubr.msk.bf16.mxu0 %vm14522_vm0, %v16686_v0 }
 0xb49   :  { %3511 = vmatpush1.bf16.msra.mxu1 %v13417_v48  ;;  %12364 = vmatpush3.bf16.msra.mxu0 %v13420_v39  ;;  %v13472_v48 = vld [vmem:[#allocation5 + $0x20] ss:$12 sps:$4 sm:$0xff]   ;;  %v13475_v39 = vld [vmem:[#allocation5 + $0x4] ss:$12 sps:$4 sm:$0xff]  }
 0xb4a   :  { %3512 = vmatprep.subr.bf16.mxu1 %v13423_v30  ;;  %12365 = vmatprep.subr.bf16.mxu0 %v16686_v0  ;;  %v13473_v30 = vld [vmem:[#allocation5] ss:$12 sps:$4 sm:$0xff]  }
 0xb4d   :  { %3513 = vmatpush1.bf16.msra.mxu1 %v13421_v55  ;;  %12366 = vmatpush3.bf16.msra.mxu0 %v13424_v49  ;;  %v13476_v55 = vld [vmem:[#allocation5 + $0x8] ss:$12 sps:$4 sm:$0xff]   ;;  %v3615_v49 = vpack.c.bf16 %v14970_v56, %v14970_v56 }
 0xb4e   :  { %3514 = vmatprep.subr.bf16.mxu1 %v13427_v57  ;;  %12367 = vmatprep.subr.bf16.mxu0 %v16686_v0 }
 0xb51   :  { %3515 = vmatpush1.bf16.msra.mxu1 %v13425_v62  ;;  %12368 = vmatpush3.bf16.msra.mxu0 %v13428_v8 }
 0xb52   :  { %3516 = vmatprep.subr.bf16.mxu1 %v13431_v4  ;;  %12369 = vmatprep.subr.bf16.mxu0 %v16686_v0 }
 0xb55   :  { %3517 = vmatpush1.bf16.msra.mxu1 %v13429_v35  ;;  %12370 = vmatpush3.bf16.msra.mxu0 %v13432_v5 }
 0xb56   :  { %3518 = vmatprep.subr.bf16.mxu1 %v13435_v50  ;;  %12371 = vmatprep.subr.bf16.mxu0 %v16686_v0 }
 0xb59   :  { %3519 = vmatpush1.bf16.msra.mxu1 %v13433_v6  ;;  %12372 = vmatpush3.bf16.msra.mxu0 %v13436_v58  ;;  %v11081_v58 = vld [vmem:[%s16671_s8 + $0xc] sm:$0x3f] }
 0xb5a   :  { %3520 = vmatprep.subr.bf16.mxu1 %v13439_v16  ;;  %12373 = vmatprep.subr.bf16.mxu0 %v16686_v0  ;;  %v3087_v16 = vrot.slane %v11081_v58, %v14759_v53 }
 0xb5d   :  { %3521 = vmatpush1.bf16.msra.mxu1 %v13437_v17  ;;  %12374 = vmatpush3.bf16.msra.mxu0 %v13440_v12  ;;  %v3356_v17 = vrot.slane %v11081_v58, %v14813_v34  ;;  %v3102_v12 = vrot.slane %v3087_v16, %v14759_v53 }
 0xb5e   :  { %3522 = vmatprep.subr.bf16.mxu1 %v13443_v19  ;;  %12375 = vmatprep.subr.bf16.mxu0 %v16686_v0 }
 0xb5f   :  { %v3371_v19 = vrot.slane %v3356_v17, %v14813_v34 }
 0xb61   :  { %3523 = vmatpush1.bf16.msra.mxu1 %v13441_v61  ;;  %12376 = vmatpush3.bf16.msra.mxu0 %v13444_v20  ;;  %v3360_v61 = vrot.slane %v11081_v58, %v14819_v38  ;;  %v3091_v20 = vrot.slane %v11081_v58, %v14772_v60 }
 0xb62   :  { %3804 = vmatprep.subr.bf16.mxu1 %v13447_v25  ;;  %12381 = vmatprep.subr.bf16.mxu0 %v16686_v0 }
 0xb64   :  { %3541 = vmatmul.mubr.bf16.vlgmr.msra.gmra.mxu1 %v3320_v29  ;;  %12378 = vmatmul.mubr.bf16.vlgmr.msra.gmra.mxu0 %v3320_v29 }
 0xb65   :  { %3805 = vmatpush1.bf16.msra.mxu1 %v13445_v10  ;;  %12382 = vmatpush3.bf16.msra.mxu0 %v13448_v26 }
 0xb66   :  { %3806 = vmatprep.subr.bf16.mxu1 %v13451_v52  ;;  %12383 = vmatprep.subr.bf16.mxu0 %v16686_v0  ;;  %v3375_v52 = vrot.slane %v3360_v61, %v14813_v34 }
 0xb67   :  { %3836 = vmatprep.mubr.bf16.mxu1 %v16684_v1  ;;  %12397 = vmatprep.mubr.msk.bf16.mxu0 %vm14522_vm0, %v16686_v0 }
 0xb69   :  { %3807 = vmatpush1.bf16.msra.mxu1 %v13449_v7  ;;  %12384 = vmatpush3.bf16.msra.mxu0 %v13452_v24 }
 0xb6a   :  { %3808 = vmatprep.subr.bf16.mxu1 %v13455_v43  ;;  %12385 = vmatprep.subr.bf16.mxu0 %v16686_v0  ;;  %v3106_v43 = vrot.slane %v3091_v20, %v14759_v53 }
 0xb6d   :  { %3809 = vmatpush1.bf16.msra.mxu1 %v13453_v11  ;;  %12386 = vmatpush3.bf16.msra.mxu0 %v13456_v36 }
 0xb6e   :  { %3810 = vmatprep.subr.bf16.mxu1 %v13459_v33  ;;  %12387 = vmatprep.subr.bf16.mxu0 %v16686_v0 }
 0xb71   :  { %3811 = vmatpush1.bf16.msra.mxu1 %v13457_v3  ;;  %12388 = vmatpush3.bf16.msra.mxu0 %v13460_v9 }
 0xb72   :  { %3812 = vmatprep.subr.bf16.mxu1 %v13463_v37  ;;  %12389 = vmatprep.subr.bf16.mxu0 %v16686_v0 }
 0xb75   :  { %3813 = vmatpush1.bf16.msra.mxu1 %v13461_v40  ;;  %12390 = vmatpush3.bf16.msra.mxu0 %v13464_v42 }
 0xb76   :  { %3814 = vmatprep.subr.bf16.mxu1 %v13467_v44  ;;  %12391 = vmatprep.subr.bf16.mxu0 %v16686_v0 }
 0xb79   :  { %3815 = vmatpush1.bf16.msra.mxu1 %v13465_v45  ;;  %12392 = vmatpush3.bf16.msra.mxu0 %v13468_v32 }
 0xb7a   :  { %3816 = vmatprep.subr.bf16.mxu1 %v13471_v46  ;;  %12393 = vmatprep.subr.bf16.mxu0 %v16686_v0 }
 0xb7d   :  { %3817 = vmatpush1.bf16.msra.mxu1 %v13469_v47  ;;  %12394 = vmatpush3.bf16.msra.mxu0 %v13472_v48  ;;  %v3611_v47 = vld [vmem:[%s16671_s8] sm:$0x3f] }
 0xb7e   :  { %3818 = vmatprep.subr.bf16.mxu1 %v13475_v39  ;;  %12395 = vmatprep.subr.bf16.mxu0 %v16686_v0  ;;  %v3652_v48 = vrot.slane %v3611_v47, %v14813_v34  ;;  %v3364_v39 = vrot.slane %v11081_v58, %v14827_v63 }
 0xb81   :  { %3819 = vmatpush1.bf16.msra.mxu1 %v13473_v30  ;;  %12396 = vmatpush3.bf16.msra.mxu0 %v13476_v55  ;;  %v3095_v30 = vrot.slane %v11081_v58, %v14762_v54  ;;  %v3667_v55 = vrot.slane %v3652_v48, %v14813_v34 }
 0xb82   :  { %12401 = vmatprep.subr.bf16.mxu0 %v16686_v0 }
 0xb84   :  { %3837 = vmatmul.mubr.bf16.vlgmr.msra.gmra.mxu1 %v3615_v49  ;;  %12398 = vmatmul.mubr.bf16.vlgmr.msra.gmra.mxu0 %v3615_v49  ;;  %v3656_v49 = vrot.slane %v3611_v47, %v14819_v38 }
 0xb85   :  { %4152 = vmatprep.mubr.bf16.mxu1 %v16684_v1  ;;  %12417 = vmatprep.mubr.msk.bf16.mxu0 %vm14522_vm0, %v16686_v0 }
 0xb86   :  { %v3671_v16 = vrot.slane %v3656_v49, %v14813_v34 }
 0xc04   :  { %v3273_v57 = vpop.f32.mrf.mxu1  ;;  %v3314_v62 = vpop.f32.mrf.mxu0 }
 0xc05   :  { %v3274_v26 = vadd.f32 %v3273_v57, %v3102_v12 }
 0xc06   :  { %v3275_v8 = vpop.f32.mrf.mxu1  ;;  %v12359_v4 = vpop.f32.mrf.mxu0 }
 0xc07   :  { %v3276_v42 = vadd.f32 %v3275_v8, %v3106_v43  ;;  %v3379_v8 = vrot.slane %v3364_v39, %v14813_v34  ;;  %v3110_v4 = vrot.slane %v3095_v30, %v14759_v53 }
 0xc08   :  { %v3277_v35 = vpop.f32.mrf.mxu1  ;;  %v3317_v5 = vpop.f32.mrf.mxu0 }
 0xc09   :  { %v3315_v20 = vadd.f32 %v3314_v62, %v3110_v4  ;;  %v13477_v4 = vld [vmem:[#allocation3 + $0x168] ss:$12 sps:$4 sm:$0xff]  }
 0xc0a   :  { %v3278_v50 = vpop.f32.mrf.mxu1  ;;  %v12360_v6 = vpop.f32.mrf.mxu0 }
 0xc24   :  { %v3542_v25 = vpop.f32.mrf.mxu1  ;;  %v3583_v10 = vpop.f32.mrf.mxu0 }
 0xc25   :  { %v3543_v29 = vadd.f32 %v3542_v25, %v3371_v19  ;;  %v3584_v19 = vadd.f32 %v3583_v10, %v3379_v8 }
 0xc26   :  { %v3544_v7 = vpop.f32.mrf.mxu1  ;;  %v12379_v24 = vpop.f32.mrf.mxu0 }
 0xc27   :  { %v3589_v11 = vadd.f32 %v3543_v29, %v3274_v26  ;;  %v3545_v9 = vadd.f32 %v3544_v7, %v3375_v52 }
 0xc28   :  { %v3546_v36 = vpop.f32.mrf.mxu1  ;;  %v3586_v33 = vpop.f32.mrf.mxu0 }
 0xc29   :  { %v11131_v3 = vmul.f32 -1.442695, %v3589_v11  ;;  %v3596_v44 = vadd.f32 %v3545_v9, %v3276_v42 }
 0xc2a   :  { %v3547_v37 = vpop.f32.mrf.mxu1  ;;  %v12380_v40 = vpop.f32.mrf.mxu0 }
 0xc2b   :  { %14128 = vpow2.f32 %v11131_v3  ;;  %v11132_v45 = vmul.f32 -1.442695, %v3596_v44  ;;  %v3660_v44 = vrot.slane %v3611_v47, %v14827_v63 }
 0xc2d   :  { %14130 = vpow2.f32 %v11132_v45  ;;  %v3675_v45 = vrot.slane %v3660_v44, %v14813_v34 }
 0xc38   :  { %v14129_v32 = vpop.eup %14128 }
 0xc39   :  { %v3593_v46 = vadd.f32 1.0, %v14129_v32 }
 0xc3a   :  { %v14131_v57 = vpop.eup %14130 }
 0xc3b   :  { %14132 = vrcp.f32 %v3593_v46  ;;  %v3600_v50 = vadd.f32 1.0, %v14131_v57 }
 0xc3d   :  { %14134 = vrcp.f32 %v3600_v50  ;;  %v13481_v50 = vld [vmem:[#allocation3 + $0x150] ss:$12 sps:$4 sm:$0xff]  }
 0xc44   :  { %v3838_v35 = vpop.f32.mrf.mxu1  ;;  %v3879_v5 = vpop.f32.mrf.mxu0 }
 0xc45   :  { %v3839_v6 = vadd.f32 %v3838_v35, %v3667_v55  ;;  %v3880_v46 = vadd.f32 %v3879_v5, %v3675_v45  ;;  %v13479_v35 = vld [vmem:[#allocation3 + $0x16c] ss:$12 sps:$4 sm:$0xff]   ;;  %v13480_v5 = vld [vmem:[#allocation3 + $0x170] ss:$12 sps:$4 sm:$0xff]  }
 0xc46   :  { %v3840_v17 = vpop.f32.mrf.mxu1  ;;  %v12399_v12 = vpop.f32.mrf.mxu0  ;;  %4120 = vmatprep.subr.bf16.mxu1 %v13479_v35  ;;  %12402 = vmatpush3.bf16.msra.mxu0 %v13480_v5  ;;  %v13516_v35 = vld [vmem:[#allocation5 + $0x158] ss:$12 sps:$4 sm:$0xff]   ;;  %v13519_v5 = vld [vmem:[#allocation5 + $0x13c] ss:$12 sps:$4 sm:$0xff]  }
 0xc47   :  { %v3885_v58 = vadd.f32 %v3839_v6, %v14789_v14  ;;  %v3841_v7 = vadd.f32 %v3840_v17, %v3671_v16  ;;  %4121 = vmatpush1.bf16.msra.mxu1 %v13477_v4  ;;  %12403 = vmatprep.subr.bf16.mxu0 %v16686_v0  ;;  %v13484_v12 = vld [vmem:[#allocation3 + $0x158] ss:$12 sps:$4 sm:$0xff]   ;;  %v13513_v4 = vld [vmem:[#allocation5 + $0x150] ss:$12 sps:$4 sm:$0xff]  }
 0xc48   :  { %v14133_v61 = vpop.eup %14132  ;;  %v3842_v25 = vpop.f32.mrf.mxu1 }
 0xc49   :  { %v3882_v26 = vpop.f32.mrf.mxu0  ;;  %v3603_v29 = vmul.f32 %v14133_v61, %v3584_v19  ;;  %v11157_v52 = vmul.f32 -1.442695, %v3885_v58  ;;  %v3892_v36 = vadd.f32 %v3841_v7, %v14795_v18  ;;  %v13487_v19 = vld [vmem:[#allocation3 + $0x13c] ss:$12 sps:$4 sm:$0xff]   ;;  %v13485_v58 = vld [vmem:[#allocation3 + $0x138] ss:$12 sps:$4 sm:$0xff]  }
 0xc4a   :  { %v3843_v24 = vpop.f32.mrf.mxu1  ;;  %v14135_v10 = vpop.eup %14134  ;;  %12404 = vmatpush3.bf16.msra.mxu0 %v13484_v12  ;;  %v13488_v61 = vld [vmem:[#allocation3 + $0x140] ss:$12 sps:$4 sm:$0xff]   ;;  %v13492_v26 = vld [vmem:[#allocation3 + $0x128] ss:$12 sps:$4 sm:$0xff]   ;;  %v13496_v7 = vld [vmem:[#allocation3 + $0x110] ss:$12 sps:$4 sm:$0xff]  }
 0xc4b   :  { %v12400_v43 = vpop.f32.mrf.mxu0  ;;  %v3604_v11 = vadd.f32 %v3603_v29, %v3315_v20  ;;  %14136 = vpow2.f32 %v11157_v52  ;;  %v11158_v33 = vmul.f32 -1.442695, %v3892_v36  ;;  %v3606_v9 = vsub.f32 1.0, %v14135_v10  ;;  %12405 = vmatprep.subr.bf16.mxu0 %v16686_v0  ;;  %v13491_v20 = vld [vmem:[#allocation3 + $0x124] ss:$12 sps:$4 sm:$0xff]  }
 0xc4c   :  { %v3608_v40 = vmul.f32 %v14135_v10, %v14960_v59  ;;  %v13489_v25 = vld [vmem:[#allocation3 + $0x120] ss:$12 sps:$4 sm:$0xff]   ;;  %v13493_v52 = vld [vmem:[#allocation3 + $0x108] ss:$12 sps:$4 sm:$0xff]   ;;  %v13497_v43 = vld [vmem:[#allocation3 + $0xf0] ss:$12 sps:$4 sm:$0xff]  }
 0xc4d   :  { %14138 = vtanh.f32 %v3604_v11  ;;  %v13495_v29 = vld [vmem:[#allocation3 + $0x10c] ss:$12 sps:$4 sm:$0xff]   ;;  %v13499_v24 = vld [vmem:[#allocation3 + $0xf4] ss:$12 sps:$4 sm:$0xff]   ;;  %v13503_v36 = vld [vmem:[#allocation3 + $0xdc] ss:$12 sps:$4 sm:$0xff]  }
 0xc4e   :  { %14140 = vpow2.f32 %v11158_v33  ;;  %12406 = vmatpush3.bf16.msra.mxu0 %v13488_v61  ;;  %v13500_v11 = vld [vmem:[#allocation3 + $0xf8] ss:$12 sps:$4 sm:$0xff]   ;;  %v13504_v10 = vld [vmem:[#allocation3 + $0xe0] ss:$12 sps:$4 sm:$0xff]   ;;  %v13525_v12 = vld [vmem:[#allocation5 + $0x108] ss:$12 sps:$4 sm:$0xff]  }
 0xc4f   :  { %12407 = vmatprep.subr.bf16.mxu0 %v16686_v0  ;;  %v13501_v33 = vld [vmem:[#allocation3 + $0xd8] ss:$12 sps:$4 sm:$0xff]   ;;  %v13529_v61 = vld [vmem:[#allocation5 + $0xf0] ss:$12 sps:$4 sm:$0xff]  }
 0xc52   :  { %12408 = vmatpush3.bf16.msra.mxu0 %v13492_v26  ;;  %v13533_v26 = vld [vmem:[#allocation5 + $0xd8] ss:$12 sps:$4 sm:$0xff]  }
 0xc53   :  { %12409 = vmatprep.subr.bf16.mxu0 %v16686_v0 }
 0xc56   :  { %12410 = vmatpush3.bf16.msra.mxu0 %v13496_v7  ;;  %v13537_v7 = vld [vmem:[#allocation5 + $0xc0] ss:$12 sps:$4 sm:$0xff]  }
 0xc57   :  { %12411 = vmatprep.subr.bf16.mxu0 %v16686_v0 }
 0xc58   :  { %v14137_v3 = vpop.eup %14136 }
 0xc59   :  { %v3889_v14 = vadd.f32 1.0, %v14137_v3  ;;  %v13507_v3 = vld [vmem:[#allocation3 + $0xc4] ss:$12 sps:$4 sm:$0xff]  }
 0xc5a   :  { %v14139_v62 = vpop.eup %14138  ;;  %12412 = vmatpush3.bf16.msra.mxu0 %v13500_v11 }
 0xc5b   :  { %14142 = vrcp.f32 %v3889_v14  ;;  %v3607_v37 = vmul.f32 %v14139_v62, %v3606_v9  ;;  %v14141_v18 = vpop.eup %14140  ;;  %12413 = vmatprep.subr.bf16.mxu0 %v16686_v0  ;;  %v13505_v14 = vld [vmem:[#allocation3 + $0xc0] ss:$12 sps:$4 sm:$0xff]   ;;  %v13508_v9 = vld [vmem:[#allocation3 + $0xc8] ss:$12 sps:$4 sm:$0xff]  }
 0xc5c   :  { %v3896_v32 = vadd.f32 1.0, %v14141_v18  ;;  %v13511_v62 = vld [vmem:[#allocation5 + $0x16c] ss:$12 sps:$4 sm:$0xff]   ;;  %v3908_v18 = vld [vmem:[%s16672_s9] sm:$0x3] }
 0xc5d   :  { %v15098_v42 = vadd.f32 %v3608_v40, %v3607_v37  ;;  %v3923_v45 = vrot.slane %v3908_v18, %v14759_v53 }
 0xc5e   :  { %14144 = vrcp.f32 %v3896_v32  ;;  %12414 = vmatpush3.bf16.msra.mxu0 %v13504_v10 }
 0xc5f   :  { %3610 = vst [vmem:[%s16680_s17 + $0x58] sm:$0xff] %v15098_v42  ;;  %12415 = vmatprep.subr.bf16.mxu0 %v16686_v0 }
 0xc62   :  { %12416 = vmatpush3.bf16.msra.mxu0 %v13508_v9 }
 0xc63   :  { %12421 = vmatprep.subr.bf16.mxu0 %v16686_v0 }
 0xc68   :  { %v14143_v48 = vpop.eup %14142 }
 0xc69   :  { %v3899_v39 = vmul.f32 %v14143_v48, %v3880_v46  ;;  %v3928_v48 = vrot.slane %v3908_v18, %v14813_v34 }
 0xc6b   :  { %v3900_v30 = vadd.f32 %v3899_v39, %v14792_v15  ;;  %v14145_v59 = vpop.eup %14144  ;;  %v13483_v15 = vld [vmem:[#allocation3 + $0x154] ss:$12 sps:$4 sm:$0xff]  }
 0xc6c   :  { %v3902_v55 = vsub.f32 1.0, %v14145_v59  ;;  %v3904_v57 = vmul.f32 %v14145_v59, %v14970_v56  ;;  %4122 = vmatprep.subr.bf16.mxu1 %v13483_v15  ;;  %v13517_v15 = vld [vmem:[#allocation5 + $0x138] ss:$12 sps:$4 sm:$0xff]  }
 0xc6d   :  { %14146 = vtanh.f32 %v3900_v30  ;;  %4123 = vmatpush1.bf16.msra.mxu1 %v13481_v50  ;;  %v13520_v50 = vld [vmem:[#allocation5 + $0x140] ss:$12 sps:$4 sm:$0xff]  }
 0xc6e   :  { %4124 = vmatprep.subr.bf16.mxu1 %v13487_v19  ;;  %v13528_v19 = vld [vmem:[#allocation5 + $0x110] ss:$12 sps:$4 sm:$0xff]  }
 0xc71   :  { %4125 = vmatpush1.bf16.msra.mxu1 %v13485_v58  ;;  %v13531_v58 = vld [vmem:[#allocation5 + $0xf4] ss:$12 sps:$4 sm:$0xff]  }
 0xc72   :  { %4126 = vmatprep.subr.bf16.mxu1 %v13491_v20  ;;  %v13532_v20 = vld [vmem:[#allocation5 + $0xf8] ss:$12 sps:$4 sm:$0xff]  }
 0xc75   :  { %4127 = vmatpush1.bf16.msra.mxu1 %v13489_v25  ;;  %v13535_v25 = vld [vmem:[#allocation5 + $0xdc] ss:$12 sps:$4 sm:$0xff]  }
 0xc76   :  { %4128 = vmatprep.subr.bf16.mxu1 %v13495_v29  ;;  %v13536_v29 = vld [vmem:[#allocation5 + $0xe0] ss:$12 sps:$4 sm:$0xff]  }
 0xc79   :  { %4129 = vmatpush1.bf16.msra.mxu1 %v13493_v52  ;;  %v13539_v52 = vld [vmem:[#allocation5 + $0xc4] ss:$12 sps:$4 sm:$0xff]  }
 0xc7a   :  { %v14147_v49 = vpop.eup %14146  ;;  %4130 = vmatprep.subr.bf16.mxu1 %v13499_v24  ;;  %v13540_v24 = vld [vmem:[#allocation5 + $0xc8] ss:$12 sps:$4 sm:$0xff]  }
 0xc7b   :  { %v3903_v47 = vmul.f32 %v14147_v49, %v3902_v55  ;;  %v13509_v55 = vld [vmem:[#allocation5 + $0x168] ss:$12 sps:$4 sm:$0xff]   ;;  %v13512_v49 = vld [vmem:[#allocation5 + $0x170] ss:$12 sps:$4 sm:$0xff]  }
 0xc7d   :  { %v15108_v8 = vadd.f32 %v3904_v57, %v3903_v47  ;;  %4131 = vmatpush1.bf16.msra.mxu1 %v13497_v43  ;;  %v13515_v57 = vld [vmem:[#allocation5 + $0x154] ss:$12 sps:$4 sm:$0xff]   ;;  %v4201_v43 = vpack.c.bf16 %v15023_v41, %v15023_v41 }
 0xc7e   :  { %4132 = vmatprep.subr.bf16.mxu1 %v13503_v36 }
 0xc7f   :  { %3909 = vadd.xlane.f32.xlu0 %v15108_v8  ;;  %3906 = vst [vmem:[%s16680_s17 + $0x10] sm:$0xff] %v15108_v8 }
 0xc81   :  { %4133 = vmatpush1.bf16.msra.mxu1 %v13501_v33 }
 0xc82   :  { %4134 = vmatprep.subr.bf16.mxu1 %v13507_v3 }
 0xc85   :  { %4135 = vmatpush1.bf16.msra.mxu1 %v13505_v14 }
 0xc86   :  { %4389 = vmatprep.subr.bf16.mxu1 %v13511_v62 }
 0xd08   :  { %v3910_v56 = vpop.xlane.xlu0 %3909 }
 0xd09   :  { %v3911_v6 = vmul.f32 0.0078125, %v3910_v56  ;;  %v13523_v56 = vld [vmem:[#allocation5 + $0x124] ss:$12 sps:$4 sm:$0xff]  }
 0xd0b   :  { %v3912_v16 = vsub.f32 %v15108_v8, %v3911_v6  ;;  %v13521_v6 = vld [vmem:[#allocation5 + $0x120] ss:$12 sps:$4 sm:$0xff]  }
 0xd0d   :  { %v3913_v17 = vmul.f32 %v3912_v16, %v3912_v16 }
 0xd0f   :  { %3914 = vadd.xlane.f32.xlu1 %v3913_v17  ;;  %v13527_v17 = vld [vmem:[#allocation5 + $0x10c] ss:$12 sps:$4 sm:$0xff]  }
 0xd98   :  { %v3915_v37 = vpop.xlane.xlu1 %3914 }
 0xd99   :  { %v3916_v40 = vmul.f32 0.0078125, %v3915_v37  ;;  %v11159_v37 = vld [vmem:[%s16671_s8 + $0x6] sm:$0x3f] }
 0xd9b   :  { %v3917_v44 = vadd.f32 1e-05, %v3916_v40  ;;  %v3968_v40 = vrot.slane %v11159_v37, %v14759_v53 }
 0xd9d   :  { %14148 = vrsqrt.f32 %v3917_v44  ;;  %v4237_v44 = vrot.slane %v11159_v37, %v14813_v34  ;;  %v3983_v18 = vrot.slane %v3968_v40, %v14759_v53  ;;  %v13543_v40 = vld [vmem:[#allocation3 + $0x22c] ss:$12 sps:$4 sm:$0xff]  }
 0xdaa   :  { %v14149_v32 = vpop.eup %14148 }
 0xdab   :  { %v3919_v46 = vmul.f32 %v14149_v32, %v3912_v16  ;;  %v13524_v16 = vld [vmem:[#allocation5 + $0x128] ss:$12 sps:$4 sm:$0xff]   ;;  %v4241_v32 = vrot.slane %v11159_v37, %v14819_v38 }
 0xdad   :  { %v3924_v39 = vmul.f32 %v3923_v45, %v3919_v46  ;;  %v4252_v45 = vrot.slane %v4237_v44, %v14813_v34  ;;  %v3972_v46 = vrot.slane %v11159_v37, %v14772_v60  ;;  %v13544_v44 = vld [vmem:[#allocation3 + $0x230] ss:$12 sps:$4 sm:$0xff]  }
 0xdaf   :  { %v3929_v30 = vadd.f32 %v3928_v48, %v3924_v39 }
 0xdb1   :  { %v3930_v59 = vmax.f32 %v3929_v30, 0.0 }
 0xdb3   :  { %v3931_v47 = vpack.c.bf16 %v3930_v59, %v3930_v59 }
 0xdb5   :  { %4153 = vmatmul.mubr.bf16.vlgmr.msra.gmra.mxu1 %v3931_v47  ;;  %12418 = vmatmul.mubr.bf16.vlgmr.msra.gmra.mxu0 %v3931_v47 }
 0xdb6   :  { %4390 = vmatpush1.bf16.msra.mxu1 %v13509_v55  ;;  %12422 = vmatpush3.bf16.msra.mxu0 %v13512_v49  ;;  %v4256_v55 = vrot.slane %v4241_v32, %v14813_v34 }
 0xdb7   :  { %4391 = vmatprep.subr.bf16.mxu1 %v13515_v57  ;;  %12423 = vmatprep.subr.bf16.mxu0 %v16686_v0  ;;  %v3987_v57 = vrot.slane %v3972_v46, %v14759_v53 }
 0xdb8   :  { %4421 = vmatprep.mubr.bf16.mxu1 %v16684_v1  ;;  %12437 = vmatprep.mubr.msk.bf16.mxu0 %vm14522_vm0, %v16686_v0 }
 0xdba   :  { %4392 = vmatpush1.bf16.msra.mxu1 %v13513_v4  ;;  %12424 = vmatpush3.bf16.msra.mxu0 %v13516_v35 }
 0xdbb   :  { %4393 = vmatprep.subr.bf16.mxu1 %v13519_v5  ;;  %12425 = vmatprep.subr.bf16.mxu0 %v16686_v0 }
 0xdbe   :  { %4394 = vmatpush1.bf16.msra.mxu1 %v13517_v15  ;;  %12426 = vmatpush3.bf16.msra.mxu0 %v13520_v50 }
 0xdbf   :  { %4395 = vmatprep.subr.bf16.mxu1 %v13523_v56  ;;  %12427 = vmatprep.subr.bf16.mxu0 %v16686_v0 }
 0xdc2   :  { %4396 = vmatpush1.bf16.msra.mxu1 %v13521_v6  ;;  %12428 = vmatpush3.bf16.msra.mxu0 %v13524_v16 }
 0xdc3   :  { %4397 = vmatprep.subr.bf16.mxu1 %v13527_v17  ;;  %12429 = vmatprep.subr.bf16.mxu0 %v16686_v0 }
 0xdc6   :  { %4398 = vmatpush1.bf16.msra.mxu1 %v13525_v12  ;;  %12430 = vmatpush3.bf16.msra.mxu0 %v13528_v19 }
 0xdc7   :  { %4399 = vmatprep.subr.bf16.mxu1 %v13531_v58  ;;  %12431 = vmatprep.subr.bf16.mxu0 %v16686_v0 }
 0xdca   :  { %4400 = vmatpush1.bf16.msra.mxu1 %v13529_v61  ;;  %12432 = vmatpush3.bf16.msra.mxu0 %v13532_v20  ;;  %v4245_v61 = vrot.slane %v11159_v37, %v14827_v63  ;;  %v3976_v20 = vrot.slane %v11159_v37, %v14762_v54 }
 0xdcb   :  { %4401 = vmatprep.subr.bf16.mxu1 %v13535_v25  ;;  %12433 = vmatprep.subr.bf16.mxu0 %v16686_v0 }
 0xdce   :  { %4402 = vmatpush1.bf16.msra.mxu1 %v13533_v26  ;;  %12434 = vmatpush3.bf16.msra.mxu0 %v13536_v29  ;;  %v4260_v26 = vrot.slane %v4245_v61, %v14813_v34  ;;  %v3991_v29 = vrot.slane %v3976_v20, %v14759_v53  ;;  %v13575_v61 = vld [vmem:[#allocation5 + $0x22c] ss:$12 sps:$4 sm:$0xff]  }
 0xdcf   :  { %4403 = vmatprep.subr.bf16.mxu1 %v13539_v52  ;;  %12435 = vmatprep.subr.bf16.mxu0 %v16686_v0 }
 0xdd2   :  { %4404 = vmatpush1.bf16.msra.mxu1 %v13537_v7  ;;  %12436 = vmatpush3.bf16.msra.mxu0 %v13540_v24 }
 0xdd3   :  { %12441 = vmatprep.subr.bf16.mxu0 %v16686_v0  ;;  %4705 = vmatprep.subr.bf16.mxu1 %v13543_v40  ;;  %v13580_v40 = vld [vmem:[#allocation5 + $0x218] ss:$12 sps:$4 sm:$0xff]  }
 0xdd5   :  { %4422 = vmatmul.mubr.bf16.vlgmr.msra.gmra.mxu1 %v4201_v43  ;;  %12438 = vmatmul.mubr.bf16.vlgmr.msra.gmra.mxu0 %v4201_v43 }
 0xdd6   :  { %4737 = vmatprep.mubr.bf16.mxu1 %v16684_v1  ;;  %12457 = vmatprep.mubr.msk.bf16.mxu0 %vm14522_vm0, %v16686_v0 }
 0xdd7   :  { %12442 = vmatpush3.bf16.msra.mxu0 %v13544_v44  ;;  %v13583_v44 = vld [vmem:[#allocation5 + $0x1fc] ss:$12 sps:$4 sm:$0xff]  }
 0xdd8   :  { %12443 = vmatprep.subr.bf16.mxu0 %v16686_v0 }
 0xe75   :  { %v4154_v11 = vpop.f32.mrf.mxu1  ;;  %v4195_v36 = vpop.f32.mrf.mxu0 }
 0xe76   :  { %v4155_v30 = vadd.f32 %v4154_v11, %v3983_v18  ;;  %v4196_v43 = vadd.f32 %v4195_v36, %v3991_v29  ;;  %v13541_v36 = vld [vmem:[#allocation3 + $0x228] ss:$12 sps:$4 sm:$0xff]   ;;  %v11211_v29 = vld [vmem:[%s16672_s9 + $0x2] sm:$0x3] }
 0xe77   :  { %v4156_v33 = vpop.f32.mrf.mxu1  ;;  %v12419_v10 = vpop.f32.mrf.mxu0  ;;  %v13547_v18 = vld [vmem:[#allocation3 + $0x214] ss:$12 sps:$4 sm:$0xff]   ;;  %4706 = vmatpush1.bf16.msra.mxu1 %v13541_v36  ;;  %v13577_v36 = vld [vmem:[#allocation5 + $0x210] ss:$12 sps:$4 sm:$0xff]  }
 0xe78   :  { %v4157_v16 = vadd.f32 %v4156_v33, %v3987_v57  ;;  %4707 = vmatprep.subr.bf16.mxu1 %v13547_v18  ;;  %v13556_v57 = vld [vmem:[#allocation3 + $0x1e8] ss:$12 sps:$4 sm:$0xff]   ;;  %v13581_v18 = vld [vmem:[#allocation5 + $0x1f8] ss:$12 sps:$4 sm:$0xff]  }
 0xe79   :  { %v4158_v3 = vpop.f32.mrf.mxu1  ;;  %v4198_v14 = vpop.f32.mrf.mxu0 }
 0xe7b   :  { %v4159_v9 = vpop.f32.mrf.mxu1  ;;  %v12420_v62 = vpop.f32.mrf.mxu0 }
 0xe95   :  { %v4423_v48 = vpop.f32.mrf.mxu1  ;;  %v4464_v39 = vpop.f32.mrf.mxu0 }
 0xe96   :  { %v4424_v59 = vadd.f32 %v4423_v48, %v4252_v45  ;;  %v4465_v7 = vadd.f32 %v4464_v39, %v4260_v26  ;;  %v13545_v45 = vld [vmem:[#allocation3 + $0x210] ss:$12 sps:$4 sm:$0xff]   ;;  %v13548_v39 = vld [vmem:[#allocation3 + $0x218] ss:$12 sps:$4 sm:$0xff]  }
 0xe97   :  { %v4425_v49 = vpop.f32.mrf.mxu1  ;;  %v12439_v47 = vpop.f32.mrf.mxu0  ;;  %4708 = vmatpush1.bf16.msra.mxu1 %v13545_v45  ;;  %12444 = vmatpush3.bf16.msra.mxu0 %v13548_v39  ;;  %v13584_v45 = vld [vmem:[#allocation5 + $0x200] ss:$12 sps:$4 sm:$0xff]   ;;  %v13589_v39 = vld [vmem:[#allocation5 + $0x1c8] ss:$12 sps:$4 sm:$0xff]  }
 0xe98   :  { %v4470_v4 = vadd.f32 %v4424_v59, %v4155_v30  ;;  %v4426_v50 = vadd.f32 %v4425_v49, %v4256_v55  ;;  %v13551_v30 = vld [vmem:[#allocation3 + $0x1fc] ss:$12 sps:$4 sm:$0xff]   ;;  %12445 = vmatprep.subr.bf16.mxu0 %v16686_v0  ;;  %v13549_v59 = vld [vmem:[#allocation3 + $0x1f8] ss:$12 sps:$4 sm:$0xff]   ;;  %v13552_v55 = vld [vmem:[#allocation3 + $0x200] ss:$12 sps:$4 sm:$0xff]  }
 0xe99   :  { %v4427_v35 = vpop.f32.mrf.mxu1  ;;  %v4467_v5 = vpop.f32.mrf.mxu0  ;;  %4709 = vmatprep.subr.bf16.mxu1 %v13551_v30  ;;  %v13553_v49 = vld [vmem:[#allocation3 + $0x1e0] ss:$12 sps:$4 sm:$0xff]   ;;  %v13555_v47 = vld [vmem:[#allocation3 + $0x1e4] ss:$12 sps:$4 sm:$0xff]  }
 0xe9a   :  { %v11208_v15 = vmul.f32 -1.442695, %v4470_v4  ;;  %v4477_v17 = vadd.f32 %v4426_v50, %v4157_v16  ;;  %v13559_v4 = vld [vmem:[#allocation3 + $0x1cc] ss:$12 sps:$4 sm:$0xff]   ;;  %v13557_v35 = vld [vmem:[#allocation3 + $0x1c8] ss:$12 sps:$4 sm:$0xff]  }
 0xe9b   :  { %v4428_v56 = vpop.f32.mrf.mxu1  ;;  %v12440_v6 = vpop.f32.mrf.mxu0  ;;  %4710 = vmatpush1.bf16.msra.mxu1 %v13549_v59  ;;  %12446 = vmatpush3.bf16.msra.mxu0 %v13552_v55  ;;  %v13560_v5 = vld [vmem:[#allocation3 + $0x1d0] ss:$12 sps:$4 sm:$0xff]   ;;  %v13565_v16 = vld [vmem:[#allocation3 + $0x198] ss:$12 sps:$4 sm:$0xff]   ;;  %v13595_v59 = vld [vmem:[#allocation5 + $0x1b4] ss:$12 sps:$4 sm:$0xff]  }
 0xe9c   :  { %14150 = vpow2.f32 %v11208_v15  ;;  %v11209_v12 = vmul.f32 -1.442695, %v4477_v17  ;;  %12447 = vmatprep.subr.bf16.mxu0 %v16686_v0  ;;  %4711 = vmatprep.subr.bf16.mxu1 %v13555_v47  ;;  %v13563_v15 = vld [vmem:[#allocation3 + $0x1b4] ss:$12 sps:$4 sm:$0xff]   ;;  %v13561_v50 = vld [vmem:[#allocation3 + $0x1b0] ss:$12 sps:$4 sm:$0xff]  }
 0xe9d   :  { %v13564_v56 = vld [vmem:[#allocation3 + $0x1b8] ss:$12 sps:$4 sm:$0xff]   ;;  %v13567_v6 = vld [vmem:[#allocation3 + $0x19c] ss:$12 sps:$4 sm:$0xff]   ;;  %v13568_v17 = vld [vmem:[#allocation3 + $0x1a0] ss:$12 sps:$4 sm:$0xff]  }
 0xe9e   :  { %14152 = vpow2.f32 %v11209_v12  ;;  %v13571_v12 = vld [vmem:[#allocation3 + $0x184] ss:$12 sps:$4 sm:$0xff]   ;;  %v13599_v47 = vld [vmem:[#allocation5 + $0x19c] ss:$12 sps:$4 sm:$0xff]  }
 0xe9f   :  { %4712 = vmatpush1.bf16.msra.mxu1 %v13553_v49  ;;  %12448 = vmatpush3.bf16.msra.mxu0 %v13556_v57  ;;  %v13592_v30 = vld [vmem:[#allocation5 + $0x1d0] ss:$12 sps:$4 sm:$0xff]   ;;  %v13596_v49 = vld [vmem:[#allocation5 + $0x1b8] ss:$12 sps:$4 sm:$0xff]  }
 0xea0   :  { %4713 = vmatprep.subr.bf16.mxu1 %v13559_v4  ;;  %12449 = vmatprep.subr.bf16.mxu0 %v16686_v0  ;;  %v13593_v55 = vld [vmem:[#allocation5 + $0x1b0] ss:$12 sps:$4 sm:$0xff]   ;;  %v13597_v57 = vld [vmem:[#allocation5 + $0x198] ss:$12 sps:$4 sm:$0xff]   ;;  %v13600_v4 = vld [vmem:[#allocation5 + $0x1a0] ss:$12 sps:$4 sm:$0xff]  }
 0xea3   :  { %4714 = vmatpush1.bf16.msra.mxu1 %v13557_v35  ;;  %12450 = vmatpush3.bf16.msra.mxu0 %v13560_v5  ;;  %v13603_v35 = vld [vmem:[#allocation5 + $0x184] ss:$12 sps:$4 sm:$0xff]   ;;  %v13601_v5 = vld [vmem:[#allocation5 + $0x180] ss:$12 sps:$4 sm:$0xff]  }
 0xea4   :  { %4715 = vmatprep.subr.bf16.mxu1 %v13563_v15  ;;  %12451 = vmatprep.subr.bf16.mxu0 %v16686_v0  ;;  %v13604_v15 = vld [vmem:[#allocation5 + $0x188] ss:$12 sps:$4 sm:$0xff]  }
 0xea7   :  { %4716 = vmatpush1.bf16.msra.mxu1 %v13561_v50  ;;  %12452 = vmatpush3.bf16.msra.mxu0 %v13564_v56  ;;  %v13607_v50 = vld [vmem:[#allocation5 + $0xac] ss:$12 sps:$4 sm:$0xff]   ;;  %v13605_v56 = vld [vmem:[#allocation5 + $0xa8] ss:$12 sps:$4 sm:$0xff]  }
 0xea8   :  { %4717 = vmatprep.subr.bf16.mxu1 %v13567_v6  ;;  %12453 = vmatprep.subr.bf16.mxu0 %v16686_v0  ;;  %v13608_v6 = vld [vmem:[#allocation5 + $0xb0] ss:$12 sps:$4 sm:$0xff]  }
 0xea9   :  { %v14151_v19 = vpop.eup %14150 }
 0xeaa   :  { %v4474_v58 = vadd.f32 1.0, %v14151_v19  ;;  %v13569_v19 = vld [vmem:[#allocation3 + $0x180] ss:$12 sps:$4 sm:$0xff]  }
 0xeab   :  { %v14153_v25 = vpop.eup %14152  ;;  %4718 = vmatpush1.bf16.msra.mxu1 %v13565_v16  ;;  %12454 = vmatpush3.bf16.msra.mxu0 %v13568_v17  ;;  %v4786_v16 = vpack.c.bf16 %v15098_v42, %v15098_v42  ;;  %v13611_v17 = vld [vmem:[#allocation5 + $0x94] ss:$12 sps:$4 sm:$0xff]  }
 0xeac   :  { %14154 = vrcp.f32 %v4474_v58  ;;  %v4481_v52 = vadd.f32 1.0, %v14153_v25  ;;  %v13572_v58 = vld [vmem:[#allocation3 + $0x188] ss:$12 sps:$4 sm:$0xff]   ;;  %4719 = vmatprep.subr.bf16.mxu1 %v13571_v12  ;;  %12455 = vmatprep.subr.bf16.mxu0 %v16686_v0  ;;  %v13609_v12 = vld [vmem:[#allocation5 + $0x90] ss:$12 sps:$4 sm:$0xff]  }
 0xeae   :  { %14156 = vrcp.f32 %v4481_v52  ;;  %v4508_v52 = vrot.slane %v11211_v29, %v14759_v53 }
 0xeaf   :  { %4720 = vmatpush1.bf16.msra.mxu1 %v13569_v19  ;;  %12456 = vmatpush3.bf16.msra.mxu0 %v13572_v58  ;;  %v13612_v19 = vld [vmem:[#allocation5 + $0x98] ss:$12 sps:$4 sm:$0xff]   ;;  %v13615_v58 = vld [vmem:[#allocation5 + $0x7c] ss:$12 sps:$4 sm:$0xff]  }
 0xeb0   :  { %4974 = vmatprep.subr.bf16.mxu1 %v13575_v61  ;;  %12461 = vmatprep.subr.bf16.mxu0 %v16686_v0  ;;  %v13613_v61 = vld [vmem:[#allocation5 + $0x78] ss:$12 sps:$4 sm:$0xff]  }
 0xeb9   :  { %v14155_v24 = vpop.eup %14154 }
 0xeba   :  { %v4484_v11 = vmul.f32 %v14155_v24, %v4465_v7 }
 0xebb   :  { %v14157_v10 = vpop.eup %14156 }
 0xebc   :  { %v4485_v33 = vadd.f32 %v4484_v11, %v4196_v43  ;;  %v4487_v3 = vsub.f32 1.0, %v14157_v10  ;;  %v4489_v62 = vmul.f32 %v14157_v10, %v15023_v41  ;;  %v4513_v43 = vrot.slane %v11211_v29, %v14813_v34  ;;  %v13620_v29 = vld [vmem:[#allocation5 + $0x68] ss:$12 sps:$4 sm:$0xff]  }
 0xebe   :  { %14158 = vtanh.f32 %v4485_v33 }
 0xecb   :  { %v14159_v14 = vpop.eup %14158 }
 0xecc   :  { %v4488_v9 = vmul.f32 %v14159_v14, %v4487_v3  ;;  %v13573_v3 = vld [vmem:[#allocation5 + $0x228] ss:$12 sps:$4 sm:$0xff]   ;;  %v13576_v14 = vld [vmem:[#allocation5 + $0x230] ss:$12 sps:$4 sm:$0xff]  }
 0xece   :  { %v15161_v37 = vadd.f32 %v4489_v62, %v4488_v9  ;;  %v13579_v62 = vld [vmem:[#allocation5 + $0x214] ss:$12 sps:$4 sm:$0xff]  }
 0xed0   :  { %4494 = vadd.xlane.f32.xlu0 %v15161_v37  ;;  %4491 = vst [vmem:[%s16680_s17 + $0x38] sm:$0xff] %v15161_v37 }
 0xf59   :  { %v4495_v41 = vpop.xlane.xlu0 %4494 }
 0xf5a   :  { %v4496_v32 = vmul.f32 0.0078125, %v4495_v41  ;;  %v13587_v41 = vld [vmem:[#allocation5 + $0x1e4] ss:$12 sps:$4 sm:$0xff]  }
 0xf5c   :  { %v4497_v46 = vsub.f32 %v15161_v37, %v4496_v32  ;;  %v13585_v32 = vld [vmem:[#allocation5 + $0x1e0] ss:$12 sps:$4 sm:$0xff]  }
 0xf5e   :  { %v4498_v48 = vmul.f32 %v4497_v46, %v4497_v46 }
 0xf60   :  { %4499 = vadd.xlane.f32.xlu1 %v4498_v48  ;;  %v13591_v48 = vld [vmem:[#allocation5 + $0x1cc] ss:$12 sps:$4 sm:$0xff]  }
 0xfe9   :  { %v4500_v20 = vpop.xlane.xlu1 %4499 }
 0xfea   :  { %v4501_v25 = vmul.f32 0.0078125, %v4500_v20  ;;  %v13616_v20 = vld [vmem:[#allocation5 + $0x80] ss:$12 sps:$4 sm:$0xff]  }
 0xfec   :  { %v4502_v26 = vadd.f32 1e-05, %v4501_v25  ;;  %v13619_v25 = vld [vmem:[#allocation5 + $0x64] ss:$12 sps:$4 sm:$0xff]  }
 0xfee   :  { %14160 = vrsqrt.f32 %v4502_v26  ;;  %v13617_v26 = vld [vmem:[#allocation5 + $0x60] ss:$12 sps:$4 sm:$0xff]  }
 0xffb   :  { %v14161_v7 = vpop.eup %14160 }
 0xffc   :  { %v4504_v24 = vmul.f32 %v14161_v7, %v4497_v46  ;;  %v13588_v46 = vld [vmem:[#allocation5 + $0x1e8] ss:$12 sps:$4 sm:$0xff]  }
 0xffd   :  { %v13621_v7 = vld [vmem:[#allocation5 + $0x48] ss:$12 sps:$4 sm:$0xff]  }
 0xffe   :  { %v4509_v11 = vmul.f32 %v4508_v52, %v4504_v24  ;;  %v13623_v52 = vld [vmem:[#allocation5 + $0x4c] ss:$12 sps:$4 sm:$0xff]   ;;  %v13624_v24 = vld [vmem:[#allocation5 + $0x50] ss:$12 sps:$4 sm:$0xff]  }
0x1000   :  { %v4514_v33 = vadd.f32 %v4513_v43, %v4509_v11  ;;  %v13627_v43 = vld [vmem:[#allocation5 + $0x34] ss:$12 sps:$4 sm:$0xff]   ;;  %v13625_v11 = vld [vmem:[#allocation5 + $0x30] ss:$12 sps:$4 sm:$0xff]  }
0x1002   :  { %v4515_v10 = vmax.f32 %v4514_v33, 0.0  ;;  %v13628_v33 = vld [vmem:[#allocation5 + $0x38] ss:$12 sps:$4 sm:$0xff]  }
0x1004   :  { %v4516_v9 = vpack.c.bf16 %v4515_v10, %v4515_v10  ;;  %v13631_v10 = vld [vmem:[#allocation5 + $0x1c] ss:$12 sps:$4 sm:$0xff]  }
0x1006   :  { %4738 = vmatmul.mubr.bf16.vlgmr.msra.gmra.mxu1 %v4516_v9  ;;  %12458 = vmatmul.mubr.bf16.vlgmr.msra.gmra.mxu0 %v4516_v9  ;;  %v13635_v9 = vld [vmem:[#allocation5 + $0x4] ss:$12 sps:$4 sm:$0xff]  }
0x1007   :  { %4975 = vmatpush1.bf16.msra.mxu1 %v13573_v3  ;;  %12462 = vmatpush3.bf16.msra.mxu0 %v13576_v14  ;;  %v13629_v3 = vld [vmem:[#allocation5 + $0x18] ss:$12 sps:$4 sm:$0xff]   ;;  %v13632_v14 = vld [vmem:[#allocation5 + $0x20] ss:$12 sps:$4 sm:$0xff]  }
0x1008   :  { %4976 = vmatprep.subr.bf16.mxu1 %v13579_v62  ;;  %12463 = vmatprep.subr.bf16.mxu0 %v16686_v0  ;;  %v13633_v62 = vld [vmem:[#allocation5] ss:$12 sps:$4 sm:$0xff]  }
0x1009   :  { %5006 = vmatprep.mubr.bf16.mxu1 %v16684_v1  ;;  %12477 = vmatprep.mubr.msk.bf16.mxu0 %vm14522_vm0, %v16686_v0 }
0x100b   :  { %4977 = vmatpush1.bf16.msra.mxu1 %v13577_v36  ;;  %12464 = vmatpush3.bf16.msra.mxu0 %v13580_v40  ;;  %v13636_v36 = vld [vmem:[#allocation5 + $0x8] ss:$12 sps:$4 sm:$0xff]   ;;  %v5081_v40 = vpack.c.bf16 %v15108_v8, %v15108_v8 }
0x100c   :  { %4978 = vmatprep.subr.bf16.mxu1 %v13583_v44  ;;  %12465 = vmatprep.subr.bf16.mxu0 %v16686_v0 }
0x100f   :  { %4979 = vmatpush1.bf16.msra.mxu1 %v13581_v18  ;;  %12466 = vmatpush3.bf16.msra.mxu0 %v13584_v45 }
0x1010   :  { %4980 = vmatprep.subr.bf16.mxu1 %v13587_v41  ;;  %12467 = vmatprep.subr.bf16.mxu0 %v16686_v0 }
0x1013   :  { %4981 = vmatpush1.bf16.msra.mxu1 %v13585_v32  ;;  %12468 = vmatpush3.bf16.msra.mxu0 %v13588_v46 }
0x1014   :  { %4982 = vmatprep.subr.bf16.mxu1 %v13591_v48  ;;  %12469 = vmatprep.subr.bf16.mxu0 %v16686_v0 }
0x1017   :  { %4983 = vmatpush1.bf16.msra.mxu1 %v13589_v39  ;;  %12470 = vmatpush3.bf16.msra.mxu0 %v13592_v30  ;;  %v11210_v30 = vld [vmem:[%s16671_s8 + $0xc] sm:$0x3f] }
0x1018   :  { %4984 = vmatprep.subr.bf16.mxu1 %v13595_v59  ;;  %12471 = vmatprep.subr.bf16.mxu0 %v16686_v0  ;;  %v4553_v59 = vrot.slane %v11210_v30, %v14759_v53 }
0x101b   :  { %4985 = vmatpush1.bf16.msra.mxu1 %v13593_v55  ;;  %12472 = vmatpush3.bf16.msra.mxu0 %v13596_v49  ;;  %v4822_v55 = vrot.slane %v11210_v30, %v14813_v34  ;;  %v4568_v49 = vrot.slane %v4553_v59, %v14759_v53 }
0x101c   :  { %4986 = vmatprep.subr.bf16.mxu1 %v13599_v47  ;;  %12473 = vmatprep.subr.bf16.mxu0 %v16686_v0 }
0x101d   :  { %v4837_v47 = vrot.slane %v4822_v55, %v14813_v34 }
0x101f   :  { %4987 = vmatpush1.bf16.msra.mxu1 %v13597_v57  ;;  %12474 = vmatpush3.bf16.msra.mxu0 %v13600_v4  ;;  %v4826_v57 = vrot.slane %v11210_v30, %v14819_v38  ;;  %v4557_v4 = vrot.slane %v11210_v30, %v14772_v60 }
0x1020   :  { %4988 = vmatprep.subr.bf16.mxu1 %v13603_v35  ;;  %12475 = vmatprep.subr.bf16.mxu0 %v16686_v0 }
0x1023   :  { %4989 = vmatpush1.bf16.msra.mxu1 %v13601_v5  ;;  %12476 = vmatpush3.bf16.msra.mxu0 %v13604_v15 }
0x1024   :  { %5270 = vmatprep.subr.bf16.mxu1 %v13607_v50  ;;  %12481 = vmatprep.subr.bf16.mxu0 %v16686_v0 }
0x1026   :  { %5007 = vmatmul.mubr.bf16.vlgmr.msra.gmra.mxu1 %v4786_v16  ;;  %12478 = vmatmul.mubr.bf16.vlgmr.msra.gmra.mxu0 %v4786_v16 }
0x1027   :  { %5271 = vmatpush1.bf16.msra.mxu1 %v13605_v56  ;;  %12482 = vmatpush3.bf16.msra.mxu0 %v13608_v6  ;;  %v4841_v56 = vrot.slane %v4826_v57, %v14813_v34 }
0x1028   :  { %5272 = vmatprep.subr.bf16.mxu1 %v13611_v17  ;;  %12483 = vmatprep.subr.bf16.mxu0 %v16686_v0  ;;  %v4572_v17 = vrot.slane %v4557_v4, %v14759_v53 }
0x1029   :  { %5302 = vmatprep.mubr.bf16.mxu1 %v16684_v1  ;;  %12497 = vmatprep.mubr.msk.bf16.mxu0 %vm14522_vm0, %v16686_v0 }
0x102b   :  { %5273 = vmatpush1.bf16.msra.mxu1 %v13609_v12  ;;  %12484 = vmatpush3.bf16.msra.mxu0 %v13612_v19 }
0x102c   :  { %5274 = vmatprep.subr.bf16.mxu1 %v13615_v58  ;;  %12485 = vmatprep.subr.bf16.mxu0 %v16686_v0 }
0x102f   :  { %5275 = vmatpush1.bf16.msra.mxu1 %v13613_v61  ;;  %12486 = vmatpush3.bf16.msra.mxu0 %v13616_v20 }
0x1030   :  { %5276 = vmatprep.subr.bf16.mxu1 %v13619_v25  ;;  %12487 = vmatprep.subr.bf16.mxu0 %v16686_v0 }
0x1033   :  { %5277 = vmatpush1.bf16.msra.mxu1 %v13617_v26  ;;  %12488 = vmatpush3.bf16.msra.mxu0 %v13620_v29 }
0x1034   :  { %5278 = vmatprep.subr.bf16.mxu1 %v13623_v52  ;;  %12489 = vmatprep.subr.bf16.mxu0 %v16686_v0 }
0x1037   :  { %5279 = vmatpush1.bf16.msra.mxu1 %v13621_v7  ;;  %12490 = vmatpush3.bf16.msra.mxu0 %v13624_v24 }
0x1038   :  { %5280 = vmatprep.subr.bf16.mxu1 %v13627_v43  ;;  %12491 = vmatprep.subr.bf16.mxu0 %v16686_v0 }
0x103b   :  { %5281 = vmatpush1.bf16.msra.mxu1 %v13625_v11  ;;  %12492 = vmatpush3.bf16.msra.mxu0 %v13628_v33  ;;  %v5077_v11 = vld [vmem:[%s16671_s8] sm:$0x3f] }
0x103c   :  { %5282 = vmatprep.subr.bf16.mxu1 %v13631_v10  ;;  %12493 = vmatprep.subr.bf16.mxu0 %v16686_v0  ;;  %v5118_v33 = vrot.slane %v5077_v11, %v14813_v34  ;;  %v4830_v10 = vrot.slane %v11210_v30, %v14827_v63 }
0x103f   :  { %5283 = vmatpush1.bf16.msra.mxu1 %v13629_v3  ;;  %12494 = vmatpush3.bf16.msra.mxu0 %v13632_v14  ;;  %v4561_v3 = vrot.slane %v11210_v30, %v14762_v54  ;;  %v5133_v14 = vrot.slane %v5118_v33, %v14813_v34 }
0x1040   :  { %5284 = vmatprep.subr.bf16.mxu1 %v13635_v9  ;;  %12495 = vmatprep.subr.bf16.mxu0 %v16686_v0  ;;  %v5122_v9 = vrot.slane %v5077_v11, %v14819_v38 }
0x1043   :  { %5285 = vmatpush1.bf16.msra.mxu1 %v13633_v62  ;;  %12496 = vmatpush3.bf16.msra.mxu0 %v13636_v36  ;;  %v4845_v36 = vrot.slane %v4830_v10, %v14813_v34 }
0x1044   :  { %12501 = vmatprep.subr.bf16.mxu0 %v16686_v0 }
0x1046   :  { %5303 = vmatmul.mubr.bf16.vlgmr.msra.gmra.mxu1 %v5081_v40  ;;  %12498 = vmatmul.mubr.bf16.vlgmr.msra.gmra.mxu0 %v5081_v40  ;;  %v4576_v40 = vrot.slane %v4561_v3, %v14759_v53 }
0x1047   :  { %5618 = vmatprep.mubr.bf16.mxu1 %v16684_v1  ;;  %12517 = vmatprep.mubr.msk.bf16.mxu0 %vm14522_vm0, %v16686_v0 }
0x10c6   :  { %v4739_v44 = vpop.f32.mrf.mxu1  ;;  %v4780_v18 = vpop.f32.mrf.mxu0 }
0x10c7   :  { %v4740_v15 = vadd.f32 %v4739_v44, %v4568_v49  ;;  %v4781_v49 = vadd.f32 %v4780_v18, %v4576_v40  ;;  %v13641_v40 = vld [vmem:[#allocation3 + $0x150] ss:$12 sps:$4 sm:$0xff]  }
0x10c8   :  { %v4741_v45 = vpop.f32.mrf.mxu1  ;;  %v12459_v41 = vpop.f32.mrf.mxu0 }
0x10c9   :  { %v4742_v29 = vadd.f32 %v4741_v45, %v4572_v17 }
0x10ca   :  { %v4743_v32 = vpop.f32.mrf.mxu1  ;;  %v4783_v46 = vpop.f32.mrf.mxu0 }
0x10cb   :  { %v5137_v46 = vrot.slane %v5122_v9, %v14813_v34  ;;  %v13637_v9 = vld [vmem:[#allocation3 + $0x168] ss:$12 sps:$4 sm:$0xff]  }
0x10cc   :  { %v4744_v48 = vpop.f32.mrf.mxu1  ;;  %v12460_v39 = vpop.f32.mrf.mxu0 }
0x10e6   :  { %v5008_v35 = vpop.f32.mrf.mxu1  ;;  %v5049_v5 = vpop.f32.mrf.mxu0 }
0x10e7   :  { %v5009_v50 = vadd.f32 %v5008_v35, %v4837_v47  ;;  %v5050_v59 = vadd.f32 %v5049_v5, %v4845_v36  ;;  %v13640_v36 = vld [vmem:[#allocation3 + $0x170] ss:$12 sps:$4 sm:$0xff]  }
0x10e8   :  { %v5010_v6 = vpop.f32.mrf.mxu1  ;;  %v12479_v16 = vpop.f32.mrf.mxu0  ;;  %12502 = vmatpush3.bf16.msra.mxu0 %v13640_v36  ;;  %v13681_v36 = vld [vmem:[#allocation5 + $0x120] ss:$12 sps:$4 sm:$0xff]  }
0x10e9   :  { %v5055_v12 = vadd.f32 %v5009_v50, %v4740_v15  ;;  %v5011_v20 = vadd.f32 %v5010_v6, %v4841_v56  ;;  %v593_v6 = vadd.f32 %v14802_v23, %v14787_v13  ;;  %12503 = vmatprep.subr.bf16.mxu0 %v16686_v0 }
0x10ea   :  { %v5012_v19 = vpop.f32.mrf.mxu1  ;;  %v5052_v58 = vpop.f32.mrf.mxu0 }
0x10eb   :  { %v11260_v61 = vmul.f32 -1.442695, %v5055_v12  ;;  %v5062_v52 = vadd.f32 %v5011_v20, %v4742_v29 }
0x10ec   :  { %v5013_v25 = vpop.f32.mrf.mxu1  ;;  %v12480_v26 = vpop.f32.mrf.mxu0 }
0x10ed   :  { %14162 = vpow2.f32 %v11260_v61  ;;  %v11261_v7 = vmul.f32 -1.442695, %v5062_v52  ;;  %v5126_v26 = vrot.slane %v5077_v11, %v14827_v63 }
0x10ef   :  { %14164 = vpow2.f32 %v11261_v7  ;;  %v5141_v23 = vrot.slane %v5126_v26, %v14813_v34 }
0x10fa   :  { %v14163_v24 = vpop.eup %14162 }
0x10fb   :  { %v5059_v43 = vadd.f32 1.0, %v14163_v24 }
0x10fc   :  { %v14165_v62 = vpop.eup %14164 }
0x10fd   :  { %14166 = vrcp.f32 %v5059_v43  ;;  %v5066_v41 = vadd.f32 1.0, %v14165_v62  ;;  %v13639_v62 = vld [vmem:[#allocation3 + $0x16c] ss:$12 sps:$4 sm:$0xff]  }
0x10fe   :  { %5586 = vmatprep.subr.bf16.mxu1 %v13639_v62  ;;  %v13683_v62 = vld [vmem:[#allocation5 + $0x124] ss:$12 sps:$4 sm:$0xff]  }
0x10ff   :  { %14168 = vrcp.f32 %v5066_v41  ;;  %5587 = vmatpush1.bf16.msra.mxu1 %v13637_v9  ;;  %v13680_v9 = vld [vmem:[#allocation5 + $0x140] ss:$12 sps:$4 sm:$0xff]  }
0x1106   :  { %v5304_v44 = vpop.f32.mrf.mxu1  ;;  %v5345_v45 = vpop.f32.mrf.mxu0 }
0x1107   :  { %v5305_v32 = vadd.f32 %v5304_v44, %v5133_v14  ;;  %v5346_v52 = vadd.f32 %v5345_v45, %v5141_v23 }
0x1108   :  { %v5306_v48 = vpop.f32.mrf.mxu1  ;;  %v12499_v39 = vpop.f32.mrf.mxu0 }
0x1109   :  { %v5351_v30 = vadd.f32 %v5305_v32, %v14797_v21  ;;  %v5307_v15 = vadd.f32 %v5306_v48, %v5137_v46  ;;  %v13644_v32 = vld [vmem:[#allocation3 + $0x158] ss:$12 sps:$4 sm:$0xff]   ;;  %v13647_v46 = vld [vmem:[#allocation3 + $0x13c] ss:$12 sps:$4 sm:$0xff]   ;;  %v13648_v39 = vld [vmem:[#allocation3 + $0x140] ss:$12 sps:$4 sm:$0xff]  }
0x110a   :  { %v14167_v55 = vpop.eup %14166  ;;  %v5308_v47 = vpop.f32.mrf.mxu1  ;;  %12504 = vmatpush3.bf16.msra.mxu0 %v13644_v32  ;;  %v13645_v48 = vld [vmem:[#allocation3 + $0x138] ss:$12 sps:$4 sm:$0xff]  }
0x110b   :  { %v5348_v57 = vpop.f32.mrf.mxu0  ;;  %v5069_v4 = vmul.f32 %v14167_v55, %v5050_v59  ;;  %v11286_v35 = vmul.f32 -1.442695, %v5351_v30  ;;  %v5358_v17 = vadd.f32 %v5307_v15, %v593_v6  ;;  %12505 = vmatprep.subr.bf16.mxu0 %v16686_v0  ;;  %v13651_v59 = vld [vmem:[#allocation3 + $0x124] ss:$12 sps:$4 sm:$0xff]   ;;  %v13649_v30 = vld [vmem:[#allocation3 + $0x120] ss:$12 sps:$4 sm:$0xff]  }
0x110c   :  { %v5309_v50 = vpop.f32.mrf.mxu1  ;;  %v14169_v21 = vpop.eup %14168  ;;  %v13652_v55 = vld [vmem:[#allocation3 + $0x128] ss:$12 sps:$4 sm:$0xff]   ;;  %v13656_v57 = vld [vmem:[#allocation3 + $0x110] ss:$12 sps:$4 sm:$0xff]   ;;  %v13660_v15 = vld [vmem:[#allocation3 + $0xf8] ss:$12 sps:$4 sm:$0xff]  }
0x110d   :  { %v12500_v56 = vpop.f32.mrf.mxu0  ;;  %v5070_v16 = vadd.f32 %v5069_v4, %v4781_v49  ;;  %14170 = vpow2.f32 %v11286_v35  ;;  %v11287_v5 = vmul.f32 -1.442695, %v5358_v17  ;;  %v5072_v19 = vsub.f32 1.0, %v14169_v21  ;;  %v13655_v49 = vld [vmem:[#allocation3 + $0x10c] ss:$12 sps:$4 sm:$0xff]  }
0x110e   :  { %v5074_v20 = vmul.f32 %v14169_v21, %v15098_v42  ;;  %12506 = vmatpush3.bf16.msra.mxu0 %v13648_v39  ;;  %v13653_v47 = vld [vmem:[#allocation3 + $0x108] ss:$12 sps:$4 sm:$0xff]   ;;  %v13657_v35 = vld [vmem:[#allocation3 + $0xf0] ss:$12 sps:$4 sm:$0xff]   ;;  %v13661_v56 = vld [vmem:[#allocation3 + $0xd8] ss:$12 sps:$4 sm:$0xff]  }
0x110f   :  { %14172 = vtanh.f32 %v5070_v16  ;;  %12507 = vmatprep.subr.bf16.mxu0 %v16686_v0  ;;  %v13659_v4 = vld [vmem:[#allocation3 + $0xf4] ss:$12 sps:$4 sm:$0xff]   ;;  %v13663_v50 = vld [vmem:[#allocation3 + $0xdc] ss:$12 sps:$4 sm:$0xff]   ;;  %v13667_v16 = vld [vmem:[#allocation3 + $0xc4] ss:$12 sps:$4 sm:$0xff]  }
0x1110   :  { %14174 = vpow2.f32 %v11287_v5  ;;  %v13664_v6 = vld [vmem:[#allocation3 + $0xe0] ss:$12 sps:$4 sm:$0xff]   ;;  %v13668_v5 = vld [vmem:[#allocation3 + $0xc8] ss:$12 sps:$4 sm:$0xff]   ;;  %v13692_v32 = vld [vmem:[#allocation5 + $0xf8] ss:$12 sps:$4 sm:$0xff]  }
0x1111   :  { %v13665_v17 = vld [vmem:[#allocation3 + $0xc0] ss:$12 sps:$4 sm:$0xff]  }
0x1112   :  { %12508 = vmatpush3.bf16.msra.mxu0 %v13652_v55  ;;  %v13671_v21 = vld [vmem:[#allocation5 + $0x16c] ss:$12 sps:$4 sm:$0xff]   ;;  %v13700_v55 = vld [vmem:[#allocation5 + $0xc8] ss:$12 sps:$4 sm:$0xff]  }
0x1113   :  { %12509 = vmatprep.subr.bf16.mxu0 %v16686_v0  ;;  %v13696_v39 = vld [vmem:[#allocation5 + $0xe0] ss:$12 sps:$4 sm:$0xff]  }
0x1116   :  { %12510 = vmatpush3.bf16.msra.mxu0 %v13656_v57 }
0x1117   :  { %12511 = vmatprep.subr.bf16.mxu0 %v16686_v0 }
0x111a   :  { %v14171_v12 = vpop.eup %14170  ;;  %12512 = vmatpush3.bf16.msra.mxu0 %v13660_v15 }
0x111b   :  { %v5355_v18 = vadd.f32 1.0, %v14171_v12  ;;  %12513 = vmatprep.subr.bf16.mxu0 %v16686_v0 }
0x111c   :  { %v14173_v58 = vpop.eup %14172 }
0x111d   :  { %14176 = vrcp.f32 %v5355_v18  ;;  %v5073_v61 = vmul.f32 %v14173_v58, %v5072_v19  ;;  %v14175_v13 = vpop.eup %14174  ;;  %v5374_v58 = vld [vmem:[%s16672_s9] sm:$0x3] }
0x111e   :  { %v5362_v29 = vadd.f32 1.0, %v14175_v13  ;;  %12514 = vmatpush3.bf16.msra.mxu0 %v13664_v6  ;;  %v5394_v13 = vrot.slane %v5374_v58, %v14813_v34 }
0x111f   :  { %v15237_v25 = vadd.f32 %v5074_v20, %v5073_v61  ;;  %12515 = vmatprep.subr.bf16.mxu0 %v16686_v0  ;;  %v5389_v61 = vrot.slane %v5374_v58, %v14759_v53 }
0x1120   :  { %14178 = vrcp.f32 %v5362_v29 }
0x1121   :  { %5076 = vst [vmem:[%s16680_s17 + $0x60] sm:$0xff] %v15237_v25 }
0x1122   :  { %12516 = vmatpush3.bf16.msra.mxu0 %v13668_v5 }
0x1123   :  { %12521 = vmatprep.subr.bf16.mxu0 %v16686_v0 }
0x112a   :  { %v14177_v7 = vpop.eup %14176 }
0x112b   :  { %v5365_v24 = vmul.f32 %v14177_v7, %v5346_v52  ;;  %v13669_v7 = vld [vmem:[#allocation5 + $0x168] ss:$12 sps:$4 sm:$0xff]  }
0x112d   :  { %v5366_v43 = vadd.f32 %v5365_v24, %v14800_v22  ;;  %v14179_v42 = vpop.eup %14178  ;;  %v13643_v22 = vld [vmem:[#allocation3 + $0x154] ss:$12 sps:$4 sm:$0xff]   ;;  %v13672_v24 = vld [vmem:[#allocation5 + $0x170] ss:$12 sps:$4 sm:$0xff]  }
0x112e   :  { %v5368_v33 = vsub.f32 1.0, %v14179_v42  ;;  %v5370_v3 = vmul.f32 %v14179_v42, %v15108_v8  ;;  %5588 = vmatprep.subr.bf16.mxu1 %v13643_v22  ;;  %v13675_v42 = vld [vmem:[#allocation5 + $0x154] ss:$12 sps:$4 sm:$0xff]  }
0x112f   :  { %14180 = vtanh.f32 %v5366_v43  ;;  %5589 = vmatpush1.bf16.msra.mxu1 %v13641_v40  ;;  %v13684_v22 = vld [vmem:[#allocation5 + $0x128] ss:$12 sps:$4 sm:$0xff]   ;;  %v13687_v40 = vld [vmem:[#allocation5 + $0x10c] ss:$12 sps:$4 sm:$0xff]  }
0x1130   :  { %5590 = vmatprep.subr.bf16.mxu1 %v13647_v46  ;;  %v13695_v46 = vld [vmem:[#allocation5 + $0xdc] ss:$12 sps:$4 sm:$0xff]  }
0x1133   :  { %5591 = vmatpush1.bf16.msra.mxu1 %v13645_v48  ;;  %v13693_v48 = vld [vmem:[#allocation5 + $0xd8] ss:$12 sps:$4 sm:$0xff]  }
0x1134   :  { %5592 = vmatprep.subr.bf16.mxu1 %v13651_v59  ;;  %v13699_v59 = vld [vmem:[#allocation5 + $0xc4] ss:$12 sps:$4 sm:$0xff]  }
0x1137   :  { %5593 = vmatpush1.bf16.msra.mxu1 %v13649_v30  ;;  %v13697_v30 = vld [vmem:[#allocation5 + $0xc0] ss:$12 sps:$4 sm:$0xff]  }
0x1138   :  { %5594 = vmatprep.subr.bf16.mxu1 %v13655_v49  ;;  %v5667_v49 = vpack.c.bf16 %v15161_v37, %v15161_v37 }
0x113b   :  { %5595 = vmatpush1.bf16.msra.mxu1 %v13653_v47 }
0x113c   :  { %v14181_v10 = vpop.eup %14180  ;;  %5596 = vmatprep.subr.bf16.mxu1 %v13659_v4 }
0x113d   :  { %v5369_v11 = vmul.f32 %v14181_v10, %v5368_v33  ;;  %v13673_v33 = vld [vmem:[#allocation5 + $0x150] ss:$12 sps:$4 sm:$0xff]   ;;  %v13676_v10 = vld [vmem:[#allocation5 + $0x158] ss:$12 sps:$4 sm:$0xff]  }
0x113f   :  { %v15247_v14 = vadd.f32 %v5370_v3, %v5369_v11  ;;  %5597 = vmatpush1.bf16.msra.mxu1 %v13657_v35  ;;  %v13679_v11 = vld [vmem:[#allocation5 + $0x13c] ss:$12 sps:$4 sm:$0xff]   ;;  %v13677_v3 = vld [vmem:[#allocation5 + $0x138] ss:$12 sps:$4 sm:$0xff]  }
0x1140   :  { %5598 = vmatprep.subr.bf16.mxu1 %v13663_v50 }
0x1141   :  { %5375 = vadd.xlane.f32.xlu0 %v15247_v14  ;;  %5372 = vst [vmem:[%s16680_s17 + $0x18] sm:$0xff] %v15247_v14 }
0x1143   :  { %5599 = vmatpush1.bf16.msra.mxu1 %v13661_v56 }
0x1144   :  { %5600 = vmatprep.subr.bf16.mxu1 %v13667_v16  ;;  %v11288_v16 = vld [vmem:[%s16671_s8 + $0x6] sm:$0x3f] }
0x1145   :  { %v5703_v5 = vrot.slane %v11288_v16, %v14813_v34 }
0x1147   :  { %5601 = vmatpush1.bf16.msra.mxu1 %v13665_v17  ;;  %v5434_v17 = vrot.slane %v11288_v16, %v14759_v53 }
0x1148   :  { %5855 = vmatprep.subr.bf16.mxu1 %v13671_v21 }
0x1149   :  { %v5449_v21 = vrot.slane %v5434_v17, %v14759_v53 }
0x11ca   :  { %v5376_v8 = vpop.xlane.xlu0 %5375 }
0x11cb   :  { %v5377_v44 = vmul.f32 0.0078125, %v5376_v8  ;;  %v13685_v8 = vld [vmem:[#allocation5 + $0x108] ss:$12 sps:$4 sm:$0xff]  }
0x11cd   :  { %v5378_v45 = vsub.f32 %v15247_v14, %v5377_v44  ;;  %v13688_v44 = vld [vmem:[#allocation5 + $0x110] ss:$12 sps:$4 sm:$0xff]  }
0x11cf   :  { %v5379_v41 = vmul.f32 %v5378_v45, %v5378_v45 }
0x11d1   :  { %5380 = vadd.xlane.f32.xlu1 %v5379_v41  ;;  %v13689_v41 = vld [vmem:[#allocation5 + $0xf0] ss:$12 sps:$4 sm:$0xff]  }
0x125a   :  { %v5381_v12 = vpop.xlane.xlu1 %5380 }
0x125b   :  { %v5382_v18 = vmul.f32 0.0078125, %v5381_v12  ;;  %v5718_v12 = vrot.slane %v5703_v5, %v14813_v34 }
0x125d   :  { %v5383_v19 = vadd.f32 1e-05, %v5382_v18  ;;  %v5707_v18 = vrot.slane %v11288_v16, %v14819_v38 }
0x125f   :  { %14182 = vrsqrt.f32 %v5383_v19  ;;  %v5438_v19 = vrot.slane %v11288_v16, %v14772_v60 }
0x126c   :  { %v14183_v20 = vpop.eup %14182 }
0x126d   :  { %v5385_v26 = vmul.f32 %v14183_v20, %v5378_v45  ;;  %v13691_v45 = vld [vmem:[#allocation5 + $0xf4] ss:$12 sps:$4 sm:$0xff]  }
0x126f   :  { %v5390_v23 = vmul.f32 %v5389_v61, %v5385_v26 }
0x1271   :  { %v5395_v29 = vadd.f32 %v5394_v13, %v5390_v23  ;;  %v5722_v13 = vrot.slane %v5707_v18, %v14813_v34  ;;  %v13711_v18 = vld [vmem:[#allocation3 + $0x1fc] ss:$12 sps:$4 sm:$0xff]  }
0x1273   :  { %v5396_v52 = vmax.f32 %v5395_v29, 0.0 }
0x1275   :  { %v5397_v43 = vpack.c.bf16 %v5396_v52, %v5396_v52  ;;  %v5453_v52 = vrot.slane %v5438_v19, %v14759_v53  ;;  %v13709_v19 = vld [vmem:[#allocation3 + $0x1f8] ss:$12 sps:$4 sm:$0xff]  }
0x1277   :  { %5619 = vmatmul.mubr.bf16.vlgmr.msra.gmra.mxu1 %v5397_v43  ;;  %12518 = vmatmul.mubr.bf16.vlgmr.msra.gmra.mxu0 %v5397_v43 }
0x1278   :  { %5856 = vmatpush1.bf16.msra.mxu1 %v13669_v7  ;;  %12522 = vmatpush3.bf16.msra.mxu0 %v13672_v24 }
0x1279   :  { %5857 = vmatprep.subr.bf16.mxu1 %v13675_v42  ;;  %12523 = vmatprep.subr.bf16.mxu0 %v16686_v0 }
0x127a   :  { %5887 = vmatprep.mubr.bf16.mxu1 %v16684_v1  ;;  %12537 = vmatprep.mubr.msk.bf16.mxu0 %vm14522_vm0, %v16686_v0 }
0x127c   :  { %5858 = vmatpush1.bf16.msra.mxu1 %v13673_v33  ;;  %12524 = vmatpush3.bf16.msra.mxu0 %v13676_v10 }
0x127d   :  { %5859 = vmatprep.subr.bf16.mxu1 %v13679_v11  ;;  %12525 = vmatprep.subr.bf16.mxu0 %v16686_v0 }
0x1280   :  { %5860 = vmatpush1.bf16.msra.mxu1 %v13677_v3  ;;  %12526 = vmatpush3.bf16.msra.mxu0 %v13680_v9 }
0x1281   :  { %5861 = vmatprep.subr.bf16.mxu1 %v13683_v62  ;;  %12527 = vmatprep.subr.bf16.mxu0 %v16686_v0 }
0x1284   :  { %5862 = vmatpush1.bf16.msra.mxu1 %v13681_v36  ;;  %12528 = vmatpush3.bf16.msra.mxu0 %v13684_v22 }
0x1285   :  { %5863 = vmatprep.subr.bf16.mxu1 %v13687_v40  ;;  %12529 = vmatprep.subr.bf16.mxu0 %v16686_v0  ;;  %v5711_v40 = vrot.slane %v11288_v16, %v14827_v63 }
0x1288   :  { %5864 = vmatpush1.bf16.msra.mxu1 %v13685_v8  ;;  %12530 = vmatpush3.bf16.msra.mxu0 %v13688_v44  ;;  %v5442_v8 = vrot.slane %v11288_v16, %v14762_v54  ;;  %v13705_v16 = vld [vmem:[#allocation3 + $0x210] ss:$12 sps:$4 sm:$0xff]  }
0x1289   :  { %5865 = vmatprep.subr.bf16.mxu1 %v13691_v45  ;;  %12531 = vmatprep.subr.bf16.mxu0 %v16686_v0  ;;  %v5726_v45 = vrot.slane %v5711_v40, %v14813_v34  ;;  %v11340_v40 = vld [vmem:[%s16672_s9 + $0x2] sm:$0x3] }
0x128c   :  { %5866 = vmatpush1.bf16.msra.mxu1 %v13689_v41  ;;  %12532 = vmatpush3.bf16.msra.mxu0 %v13692_v32  ;;  %v5457_v41 = vrot.slane %v5442_v8, %v14759_v53  ;;  %v5974_v8 = vrot.slane %v11340_v40, %v14759_v53 }
0x128d   :  { %5867 = vmatprep.subr.bf16.mxu1 %v13695_v46  ;;  %12533 = vmatprep.subr.bf16.mxu0 %v16686_v0 }
0x1290   :  { %5868 = vmatpush1.bf16.msra.mxu1 %v13693_v48  ;;  %12534 = vmatpush3.bf16.msra.mxu0 %v13696_v39 }
0x1291   :  { %5869 = vmatprep.subr.bf16.mxu1 %v13699_v59  ;;  %12535 = vmatprep.subr.bf16.mxu0 %v16686_v0 }
0x1294   :  { %5870 = vmatpush1.bf16.msra.mxu1 %v13697_v30  ;;  %12536 = vmatpush3.bf16.msra.mxu0 %v13700_v55 }
0x1295   :  { %12541 = vmatprep.subr.bf16.mxu0 %v16686_v0 }
0x1297   :  { %5888 = vmatmul.mubr.bf16.vlgmr.msra.gmra.mxu1 %v5667_v49  ;;  %12538 = vmatmul.mubr.bf16.vlgmr.msra.gmra.mxu0 %v5667_v49 }
0x1298   :  { %6203 = vmatprep.mubr.bf16.mxu1 %v16684_v1  ;;  %12557 = vmatprep.mubr.msk.bf16.mxu0 %vm14522_vm0, %v16686_v0 }
0x1337   :  { %v5620_v47 = vpop.f32.mrf.mxu1  ;;  %v5661_v57 = vpop.f32.mrf.mxu0 }
0x1338   :  { %v5621_v20 = vadd.f32 %v5620_v47, %v5449_v21  ;;  %v5662_v39 = vadd.f32 %v5661_v57, %v5457_v41  ;;  %v13701_v57 = vld [vmem:[#allocation3 + $0x228] ss:$12 sps:$4 sm:$0xff]   ;;  %v5979_v41 = vrot.slane %v11340_v40, %v14813_v34 }
0x1339   :  { %v5622_v4 = vpop.f32.mrf.mxu1  ;;  %v12519_v35 = vpop.f32.mrf.mxu0  ;;  %v13787_v40 = vld [vmem:[#allocation5 + $0x34] ss:$12 sps:$4 sm:$0xff]  }
0x133a   :  { %v5623_v3 = vadd.f32 %v5622_v4, %v5453_v52  ;;  %v13723_v52 = vld [vmem:[#allocation3 + $0x1b4] ss:$12 sps:$4 sm:$0xff]  }
0x133b   :  { %v5624_v15 = vpop.f32.mrf.mxu1  ;;  %v5664_v50 = vpop.f32.mrf.mxu0 }
0x133c   :  { %v13703_v50 = vld [vmem:[#allocation3 + $0x22c] ss:$12 sps:$4 sm:$0xff]  }
0x133d   :  { %v5625_v56 = vpop.f32.mrf.mxu1  ;;  %v12520_v6 = vpop.f32.mrf.mxu0  ;;  %6171 = vmatprep.subr.bf16.mxu1 %v13703_v50  ;;  %v13747_v50 = vld [vmem:[#allocation5 + $0x1e4] ss:$12 sps:$4 sm:$0xff]  }
0x133e   :  { %v13704_v56 = vld [vmem:[#allocation3 + $0x230] ss:$12 sps:$4 sm:$0xff]   ;;  %v13707_v6 = vld [vmem:[#allocation3 + $0x214] ss:$12 sps:$4 sm:$0xff]   ;;  %6172 = vmatpush1.bf16.msra.mxu1 %v13701_v57 }
0x133f   :  { %12542 = vmatpush3.bf16.msra.mxu0 %v13704_v56  ;;  %6173 = vmatprep.subr.bf16.mxu1 %v13707_v6  ;;  %v13744_v57 = vld [vmem:[#allocation5 + $0x200] ss:$12 sps:$4 sm:$0xff]   ;;  %v13748_v6 = vld [vmem:[#allocation5 + $0x1e8] ss:$12 sps:$4 sm:$0xff]  }
0x1340   :  { %12543 = vmatprep.subr.bf16.mxu0 %v16686_v0  ;;  %v13745_v56 = vld [vmem:[#allocation5 + $0x1e0] ss:$12 sps:$4 sm:$0xff]  }
0x1342   :  { %6174 = vmatpush1.bf16.msra.mxu1 %v13705_v16  ;;  %v13751_v16 = vld [vmem:[#allocation5 + $0x1cc] ss:$12 sps:$4 sm:$0xff]  }
0x1343   :  { %6175 = vmatprep.subr.bf16.mxu1 %v13711_v18  ;;  %v13759_v18 = vld [vmem:[#allocation5 + $0x19c] ss:$12 sps:$4 sm:$0xff]  }
0x1346   :  { %6176 = vmatpush1.bf16.msra.mxu1 %v13709_v19  ;;  %v13757_v19 = vld [vmem:[#allocation5 + $0x198] ss:$12 sps:$4 sm:$0xff]  }
0x1357   :  { %v5889_v58 = vpop.f32.mrf.mxu1  ;;  %v5930_v61 = vpop.f32.mrf.mxu0 }
0x1358   :  { %v5890_v26 = vadd.f32 %v5889_v58, %v5718_v12  ;;  %v5931_v46 = vadd.f32 %v5930_v61, %v5726_v45  ;;  %v13708_v12 = vld [vmem:[#allocation3 + $0x218] ss:$12 sps:$4 sm:$0xff]   ;;  %v13712_v58 = vld [vmem:[#allocation3 + $0x200] ss:$12 sps:$4 sm:$0xff]  }
0x1359   :  { %v5891_v23 = vpop.f32.mrf.mxu1  ;;  %v12539_v29 = vpop.f32.mrf.mxu0  ;;  %12544 = vmatpush3.bf16.msra.mxu0 %v13708_v12  ;;  %v13713_v61 = vld [vmem:[#allocation3 + $0x1e0] ss:$12 sps:$4 sm:$0xff]   ;;  %v13756_v12 = vld [vmem:[#allocation5 + $0x1b8] ss:$12 sps:$4 sm:$0xff]  }
0x135a   :  { %v5936_v7 = vadd.f32 %v5890_v26, %v5621_v20  ;;  %v5892_v33 = vadd.f32 %v5891_v23, %v5722_v13  ;;  %12545 = vmatprep.subr.bf16.mxu0 %v16686_v0  ;;  %v13715_v20 = vld [vmem:[#allocation3 + $0x1e4] ss:$12 sps:$4 sm:$0xff]   ;;  %v13716_v26 = vld [vmem:[#allocation3 + $0x1e8] ss:$12 sps:$4 sm:$0xff]   ;;  %v13719_v13 = vld [vmem:[#allocation3 + $0x1cc] ss:$12 sps:$4 sm:$0xff]  }
0x135b   :  { %v5893_v24 = vpop.f32.mrf.mxu1  ;;  %v5933_v43 = vpop.f32.mrf.mxu0  ;;  %6177 = vmatprep.subr.bf16.mxu1 %v13715_v20  ;;  %v13717_v23 = vld [vmem:[#allocation3 + $0x1c8] ss:$12 sps:$4 sm:$0xff]   ;;  %v13720_v29 = vld [vmem:[#allocation3 + $0x1d0] ss:$12 sps:$4 sm:$0xff]   ;;  %v13761_v20 = vld [vmem:[#allocation5 + $0x180] ss:$12 sps:$4 sm:$0xff]  }
0x135c   :  { %v11337_v42 = vmul.f32 -1.442695, %v5936_v7  ;;  %v5943_v9 = vadd.f32 %v5892_v33, %v5623_v3  ;;  %6178 = vmatpush1.bf16.msra.mxu1 %v13713_v61  ;;  %v13721_v7 = vld [vmem:[#allocation3 + $0x1b0] ss:$12 sps:$4 sm:$0xff]   ;;  %v13724_v24 = vld [vmem:[#allocation3 + $0x1b8] ss:$12 sps:$4 sm:$0xff]  }
0x135d   :  { %v5894_v10 = vpop.f32.mrf.mxu1  ;;  %v12540_v11 = vpop.f32.mrf.mxu0  ;;  %12546 = vmatpush3.bf16.msra.mxu0 %v13712_v58  ;;  %6179 = vmatprep.subr.bf16.mxu1 %v13719_v13  ;;  %v13727_v43 = vld [vmem:[#allocation3 + $0x19c] ss:$12 sps:$4 sm:$0xff]   ;;  %v13728_v33 = vld [vmem:[#allocation3 + $0x1a0] ss:$12 sps:$4 sm:$0xff]   ;;  %v13763_v61 = vld [vmem:[#allocation5 + $0x184] ss:$12 sps:$4 sm:$0xff]  }
0x135e   :  { %14184 = vpow2.f32 %v11337_v42  ;;  %v11338_v62 = vmul.f32 -1.442695, %v5943_v9  ;;  %12547 = vmatprep.subr.bf16.mxu0 %v16686_v0  ;;  %v13725_v42 = vld [vmem:[#allocation3 + $0x198] ss:$12 sps:$4 sm:$0xff]   ;;  %v13729_v11 = vld [vmem:[#allocation3 + $0x180] ss:$12 sps:$4 sm:$0xff]  }
0x135f   :  { %v13731_v10 = vld [vmem:[#allocation3 + $0x184] ss:$12 sps:$4 sm:$0xff]   ;;  %v13732_v3 = vld [vmem:[#allocation3 + $0x188] ss:$12 sps:$4 sm:$0xff]   ;;  %v13735_v9 = vld [vmem:[#allocation5 + $0x22c] ss:$12 sps:$4 sm:$0xff]  }
0x1360   :  { %14186 = vpow2.f32 %v11338_v62  ;;  %6180 = vmatpush1.bf16.msra.mxu1 %v13717_v23  ;;  %v13760_v58 = vld [vmem:[#allocation5 + $0x1a0] ss:$12 sps:$4 sm:$0xff]   ;;  %v13765_v23 = vld [vmem:[#allocation5 + $0xa8] ss:$12 sps:$4 sm:$0xff]  }
0x1361   :  { %12548 = vmatpush3.bf16.msra.mxu0 %v13716_v26  ;;  %6181 = vmatprep.subr.bf16.mxu1 %v13723_v52  ;;  %v13764_v26 = vld [vmem:[#allocation5 + $0x188] ss:$12 sps:$4 sm:$0xff]   ;;  %v13767_v13 = vld [vmem:[#allocation5 + $0xac] ss:$12 sps:$4 sm:$0xff]   ;;  %v6252_v52 = vpack.c.bf16 %v15237_v25, %v15237_v25 }
0x1362   :  { %12549 = vmatprep.subr.bf16.mxu0 %v16686_v0 }
0x1364   :  { %6182 = vmatpush1.bf16.msra.mxu1 %v13721_v7  ;;  %v13771_v7 = vld [vmem:[#allocation5 + $0x94] ss:$12 sps:$4 sm:$0xff]  }
0x1365   :  { %12550 = vmatpush3.bf16.msra.mxu0 %v13720_v29  ;;  %6183 = vmatprep.subr.bf16.mxu1 %v13727_v43  ;;  %v13768_v29 = vld [vmem:[#allocation5 + $0xb0] ss:$12 sps:$4 sm:$0xff]   ;;  %v13772_v43 = vld [vmem:[#allocation5 + $0x98] ss:$12 sps:$4 sm:$0xff]  }
0x1366   :  { %12551 = vmatprep.subr.bf16.mxu0 %v16686_v0 }
0x1368   :  { %6184 = vmatpush1.bf16.msra.mxu1 %v13725_v42  ;;  %v13775_v42 = vld [vmem:[#allocation5 + $0x7c] ss:$12 sps:$4 sm:$0xff]  }
0x1369   :  { %12552 = vmatpush3.bf16.msra.mxu0 %v13724_v24  ;;  %6185 = vmatprep.subr.bf16.mxu1 %v13731_v10  ;;  %v13769_v24 = vld [vmem:[#allocation5 + $0x90] ss:$12 sps:$4 sm:$0xff]   ;;  %v13776_v10 = vld [vmem:[#allocation5 + $0x80] ss:$12 sps:$4 sm:$0xff]  }
0x136a   :  { %12553 = vmatprep.subr.bf16.mxu0 %v16686_v0 }
0x136b   :  { %v14185_v36 = vpop.eup %14184 }
0x136c   :  { %v5940_v22 = vadd.f32 1.0, %v14185_v36  ;;  %6186 = vmatpush1.bf16.msra.mxu1 %v13729_v11  ;;  %v13779_v11 = vld [vmem:[#allocation5 + $0x64] ss:$12 sps:$4 sm:$0xff]  }
0x136d   :  { %v14187_v44 = vpop.eup %14186  ;;  %12554 = vmatpush3.bf16.msra.mxu0 %v13728_v33  ;;  %6440 = vmatprep.subr.bf16.mxu1 %v13735_v9  ;;  %v13773_v33 = vld [vmem:[#allocation5 + $0x78] ss:$12 sps:$4 sm:$0xff]   ;;  %v13780_v9 = vld [vmem:[#allocation5 + $0x68] ss:$12 sps:$4 sm:$0xff]  }
0x136e   :  { %14188 = vrcp.f32 %v5940_v22  ;;  %v5947_v32 = vadd.f32 1.0, %v14187_v44  ;;  %12555 = vmatprep.subr.bf16.mxu0 %v16686_v0 }
0x1370   :  { %14190 = vrcp.f32 %v5947_v32 }
0x1371   :  { %12556 = vmatpush3.bf16.msra.mxu0 %v13732_v3  ;;  %v13777_v3 = vld [vmem:[#allocation5 + $0x60] ss:$12 sps:$4 sm:$0xff]  }
0x1372   :  { %12561 = vmatprep.subr.bf16.mxu0 %v16686_v0 }
0x137b   :  { %v14189_v48 = vpop.eup %14188 }
0x137c   :  { %v5950_v59 = vmul.f32 %v14189_v48, %v5931_v46 }
0x137d   :  { %v14191_v55 = vpop.eup %14190 }
0x137e   :  { %v5951_v30 = vadd.f32 %v5950_v59, %v5662_v39  ;;  %v5953_v49 = vsub.f32 1.0, %v14191_v55  ;;  %v5955_v35 = vmul.f32 %v14191_v55, %v15161_v37  ;;  %v13733_v39 = vld [vmem:[#allocation5 + $0x228] ss:$12 sps:$4 sm:$0xff]   ;;  %v13736_v59 = vld [vmem:[#allocation5 + $0x230] ss:$12 sps:$4 sm:$0xff]  }
0x137f   :  { %v13739_v55 = vld [vmem:[#allocation5 + $0x214] ss:$12 sps:$4 sm:$0xff]  }
0x1380   :  { %14192 = vtanh.f32 %v5951_v30 }
0x138d   :  { %v14193_v47 = vpop.eup %14192 }
0x138e   :  { %v5954_v4 = vmul.f32 %v14193_v47, %v5953_v49  ;;  %v13737_v49 = vld [vmem:[#allocation5 + $0x210] ss:$12 sps:$4 sm:$0xff]   ;;  %v13740_v47 = vld [vmem:[#allocation5 + $0x218] ss:$12 sps:$4 sm:$0xff]  }
0x1390   :  { %v15300_v15 = vadd.f32 %v5955_v35, %v5954_v4  ;;  %v13743_v4 = vld [vmem:[#allocation5 + $0x1fc] ss:$12 sps:$4 sm:$0xff]   ;;  %v13741_v35 = vld [vmem:[#allocation5 + $0x1f8] ss:$12 sps:$4 sm:$0xff]  }
0x1392   :  { %5960 = vadd.xlane.f32.xlu0 %v15300_v15  ;;  %5957 = vst [vmem:[%s16680_s17 + $0x40] sm:$0xff] %v15300_v15 }
0x141b   :  { %v5961_v37 = vpop.xlane.xlu0 %5960 }
0x141c   :  { %v5962_v17 = vmul.f32 0.0078125, %v5961_v37  ;;  %v13749_v37 = vld [vmem:[#allocation5 + $0x1c8] ss:$12 sps:$4 sm:$0xff]  }
0x141e   :  { %v5963_v5 = vsub.f32 %v15300_v15, %v5962_v17  ;;  %v13752_v17 = vld [vmem:[#allocation5 + $0x1d0] ss:$12 sps:$4 sm:$0xff]  }
0x1420   :  { %v5964_v21 = vmul.f32 %v5963_v5, %v5963_v5 }
0x1422   :  { %5965 = vadd.xlane.f32.xlu1 %v5964_v21  ;;  %v13753_v21 = vld [vmem:[#allocation5 + $0x1b0] ss:$12 sps:$4 sm:$0xff]  }
0x14ab   :  { %v5966_v62 = vpop.xlane.xlu1 %5965 }
0x14ac   :  { %v5967_v36 = vmul.f32 0.0078125, %v5966_v62  ;;  %v13783_v62 = vld [vmem:[#allocation5 + $0x4c] ss:$12 sps:$4 sm:$0xff]  }
0x14ae   :  { %v5968_v22 = vadd.f32 1e-05, %v5967_v36  ;;  %v13781_v36 = vld [vmem:[#allocation5 + $0x48] ss:$12 sps:$4 sm:$0xff]  }
0x14b0   :  { %14194 = vrsqrt.f32 %v5968_v22  ;;  %v13784_v22 = vld [vmem:[#allocation5 + $0x50] ss:$12 sps:$4 sm:$0xff]  }
0x14bd   :  { %v14195_v44 = vpop.eup %14194 }
0x14be   :  { %v5970_v45 = vmul.f32 %v14195_v44, %v5963_v5  ;;  %v13755_v5 = vld [vmem:[#allocation5 + $0x1b4] ss:$12 sps:$4 sm:$0xff]   ;;  %v13788_v44 = vld [vmem:[#allocation5 + $0x38] ss:$12 sps:$4 sm:$0xff]  }
0x14c0   :  { %v5975_v32 = vmul.f32 %v5974_v8, %v5970_v45  ;;  %v13785_v8 = vld [vmem:[#allocation5 + $0x30] ss:$12 sps:$4 sm:$0xff]  }
0x14c1   :  { %v13791_v45 = vld [vmem:[#allocation5 + $0x1c] ss:$12 sps:$4 sm:$0xff]  }
0x14c2   :  { %v5980_v46 = vadd.f32 %v5979_v41, %v5975_v32  ;;  %v13789_v41 = vld [vmem:[#allocation5 + $0x18] ss:$12 sps:$4 sm:$0xff]   ;;  %v13792_v32 = vld [vmem:[#allocation5 + $0x20] ss:$12 sps:$4 sm:$0xff]  }
0x14c4   :  { %v5981_v48 = vmax.f32 %v5980_v46, 0.0  ;;  %v13795_v46 = vld [vmem:[#allocation5 + $0x4] ss:$12 sps:$4 sm:$0xff]  }
0x14c6   :  { %v5982_v30 = vpack.c.bf16 %v5981_v48, %v5981_v48  ;;  %v13793_v48 = vld [vmem:[#allocation5] ss:$12 sps:$4 sm:$0xff]  }
0x14c8   :  { %6204 = vmatmul.mubr.bf16.vlgmr.msra.gmra.mxu1 %v5982_v30  ;;  %12558 = vmatmul.mubr.bf16.vlgmr.msra.gmra.mxu0 %v5982_v30 }
0x14c9   :  { %6441 = vmatpush1.bf16.msra.mxu1 %v13733_v39  ;;  %12562 = vmatpush3.bf16.msra.mxu0 %v13736_v59  ;;  %v13796_v39 = vld [vmem:[#allocation5 + $0x8] ss:$12 sps:$4 sm:$0xff]   ;;  %v6547_v59 = vpack.c.bf16 %v15247_v14, %v15247_v14 }
0x14ca   :  { %6442 = vmatprep.subr.bf16.mxu1 %v13739_v55  ;;  %12563 = vmatprep.subr.bf16.mxu0 %v16686_v0 }
0x14cb   :  { %6472 = vmatprep.mubr.bf16.mxu1 %v16684_v1  ;;  %12577 = vmatprep.mubr.msk.bf16.mxu0 %vm14522_vm0, %v16686_v0 }
0x14cd   :  { %6443 = vmatpush1.bf16.msra.mxu1 %v13737_v49  ;;  %12564 = vmatpush3.bf16.msra.mxu0 %v13740_v47 }
0x14ce   :  { %6444 = vmatprep.subr.bf16.mxu1 %v13743_v4  ;;  %12565 = vmatprep.subr.bf16.mxu0 %v16686_v0 }
0x14d1   :  { %6445 = vmatpush1.bf16.msra.mxu1 %v13741_v35  ;;  %12566 = vmatpush3.bf16.msra.mxu0 %v13744_v57 }
0x14d2   :  { %6446 = vmatprep.subr.bf16.mxu1 %v13747_v50  ;;  %12567 = vmatprep.subr.bf16.mxu0 %v16686_v0 }
0x14d5   :  { %6447 = vmatpush1.bf16.msra.mxu1 %v13745_v56  ;;  %12568 = vmatpush3.bf16.msra.mxu0 %v13748_v6  ;;  %v11339_v56 = vld [vmem:[%s16671_s8 + $0xc] sm:$0x3f] }
0x14d6   :  { %6448 = vmatprep.subr.bf16.mxu1 %v13751_v16  ;;  %12569 = vmatprep.subr.bf16.mxu0 %v16686_v0  ;;  %v6019_v6 = vrot.slane %v11339_v56, %v14759_v53  ;;  %v6288_v16 = vrot.slane %v11339_v56, %v14813_v34 }
0x14d9   :  { %6449 = vmatpush1.bf16.msra.mxu1 %v13749_v37  ;;  %12570 = vmatpush3.bf16.msra.mxu0 %v13752_v17  ;;  %v6034_v37 = vrot.slane %v6019_v6, %v14759_v53  ;;  %v6303_v17 = vrot.slane %v6288_v16, %v14813_v34 }
0x14da   :  { %6450 = vmatprep.subr.bf16.mxu1 %v13755_v5  ;;  %12571 = vmatprep.subr.bf16.mxu0 %v16686_v0  ;;  %v6292_v5 = vrot.slane %v11339_v56, %v14819_v38 }
0x14dd   :  { %6451 = vmatpush1.bf16.msra.mxu1 %v13753_v21  ;;  %12572 = vmatpush3.bf16.msra.mxu0 %v13756_v12  ;;  %v6023_v21 = vrot.slane %v11339_v56, %v14772_v60 }
0x14de   :  { %6452 = vmatprep.subr.bf16.mxu1 %v13759_v18  ;;  %12573 = vmatprep.subr.bf16.mxu0 %v16686_v0 }
0x14e1   :  { %6453 = vmatpush1.bf16.msra.mxu1 %v13757_v19  ;;  %12574 = vmatpush3.bf16.msra.mxu0 %v13760_v58 }
0x14e2   :  { %6454 = vmatprep.subr.bf16.mxu1 %v13763_v61  ;;  %12575 = vmatprep.subr.bf16.mxu0 %v16686_v0  ;;  %v6307_v61 = vrot.slane %v6292_v5, %v14813_v34 }
0x14e5   :  { %6455 = vmatpush1.bf16.msra.mxu1 %v13761_v20  ;;  %12576 = vmatpush3.bf16.msra.mxu0 %v13764_v26 }
0x14e6   :  { %6736 = vmatprep.subr.bf16.mxu1 %v13767_v13  ;;  %12581 = vmatprep.subr.bf16.mxu0 %v16686_v0  ;;  %v6038_v13 = vrot.slane %v6023_v21, %v14759_v53 }
0x14e8   :  { %6473 = vmatmul.mubr.bf16.vlgmr.msra.gmra.mxu1 %v6252_v52  ;;  %12578 = vmatmul.mubr.bf16.vlgmr.msra.gmra.mxu0 %v6252_v52 }
0x14e9   :  { %6737 = vmatpush1.bf16.msra.mxu1 %v13765_v23  ;;  %12582 = vmatpush3.bf16.msra.mxu0 %v13768_v29 }
0x14ea   :  { %6738 = vmatprep.subr.bf16.mxu1 %v13771_v7  ;;  %12583 = vmatprep.subr.bf16.mxu0 %v16686_v0 }
0x14eb   :  { %6768 = vmatprep.mubr.bf16.mxu1 %v16684_v1  ;;  %12597 = vmatprep.mubr.msk.bf16.mxu0 %vm14522_vm0, %v16686_v0 }
0x14ed   :  { %6739 = vmatpush1.bf16.msra.mxu1 %v13769_v24  ;;  %12584 = vmatpush3.bf16.msra.mxu0 %v13772_v43 }
0x14ee   :  { %6740 = vmatprep.subr.bf16.mxu1 %v13775_v42  ;;  %12585 = vmatprep.subr.bf16.mxu0 %v16686_v0 }
0x14f1   :  { %6741 = vmatpush1.bf16.msra.mxu1 %v13773_v33  ;;  %12586 = vmatpush3.bf16.msra.mxu0 %v13776_v10 }
0x14f2   :  { %6742 = vmatprep.subr.bf16.mxu1 %v13779_v11  ;;  %12587 = vmatprep.subr.bf16.mxu0 %v16686_v0 }
0x14f5   :  { %6743 = vmatpush1.bf16.msra.mxu1 %v13777_v3  ;;  %12588 = vmatpush3.bf16.msra.mxu0 %v13780_v9 }
0x14f6   :  { %6744 = vmatprep.subr.bf16.mxu1 %v13783_v62  ;;  %12589 = vmatprep.subr.bf16.mxu0 %v16686_v0  ;;  %v6543_v62 = vld [vmem:[%s16671_s8] sm:$0x3f] }
0x14f9   :  { %6745 = vmatpush1.bf16.msra.mxu1 %v13781_v36  ;;  %12590 = vmatpush3.bf16.msra.mxu0 %v13784_v22  ;;  %v6584_v36 = vrot.slane %v6543_v62, %v14813_v34  ;;  %v6296_v22 = vrot.slane %v11339_v56, %v14827_v63 }
0x14fa   :  { %6746 = vmatprep.subr.bf16.mxu1 %v13787_v40  ;;  %12591 = vmatprep.subr.bf16.mxu0 %v16686_v0  ;;  %v6027_v40 = vrot.slane %v11339_v56, %v14762_v54 }
0x14fd   :  { %6747 = vmatpush1.bf16.msra.mxu1 %v13785_v8  ;;  %12592 = vmatpush3.bf16.msra.mxu0 %v13788_v44  ;;  %v6599_v8 = vrot.slane %v6584_v36, %v14813_v34  ;;  %v6588_v44 = vrot.slane %v6543_v62, %v14819_v38  ;;  %v13797_v36 = vld [vmem:[#allocation3 + $0x168] ss:$12 sps:$4 sm:$0xff]  }
0x14fe   :  { %6748 = vmatprep.subr.bf16.mxu1 %v13791_v45  ;;  %12593 = vmatprep.subr.bf16.mxu0 %v16686_v0 }
0x1501   :  { %6749 = vmatpush1.bf16.msra.mxu1 %v13789_v41  ;;  %12594 = vmatpush3.bf16.msra.mxu0 %v13792_v32  ;;  %v6311_v41 = vrot.slane %v6296_v22, %v14813_v34  ;;  %v6042_v32 = vrot.slane %v6027_v40, %v14759_v53  ;;  %v13799_v22 = vld [vmem:[#allocation3 + $0x16c] ss:$12 sps:$4 sm:$0xff]   ;;  %v13800_v40 = vld [vmem:[#allocation3 + $0x170] ss:$12 sps:$4 sm:$0xff]  }
0x1502   :  { %6750 = vmatprep.subr.bf16.mxu1 %v13795_v46  ;;  %12595 = vmatprep.subr.bf16.mxu0 %v16686_v0 }
0x1505   :  { %6751 = vmatpush1.bf16.msra.mxu1 %v13793_v48  ;;  %12596 = vmatpush3.bf16.msra.mxu0 %v13796_v39 }
0x1506   :  { %12601 = vmatprep.subr.bf16.mxu0 %v16686_v0  ;;  %7052 = vmatprep.subr.bf16.mxu1 %v13799_v22  ;;  %v13845_v22 = vld [vmem:[#allocation5 + $0x108] ss:$12 sps:$4 sm:$0xff]  }
0x1508   :  { %6769 = vmatmul.mubr.bf16.vlgmr.msra.gmra.mxu1 %v6547_v59  ;;  %12598 = vmatmul.mubr.bf16.vlgmr.msra.gmra.mxu0 %v6547_v59 }
0x1509   :  { %7084 = vmatprep.mubr.bf16.mxu1 %v16684_v1  ;;  %12617 = vmatprep.mubr.msk.bf16.mxu0 %vm14522_vm0, %v16686_v0 }
0x150a   :  { %12602 = vmatpush3.bf16.msra.mxu0 %v13800_v40  ;;  %7053 = vmatpush1.bf16.msra.mxu1 %v13797_v36  ;;  %v13847_v36 = vld [vmem:[#allocation5 + $0x10c] ss:$12 sps:$4 sm:$0xff]   ;;  %v13848_v40 = vld [vmem:[#allocation5 + $0x110] ss:$12 sps:$4 sm:$0xff]  }
0x150b   :  { %12603 = vmatprep.subr.bf16.mxu0 %v16686_v0 }
0x1588   :  { %v6205_v30 = vpop.f32.mrf.mxu1  ;;  %v6246_v55 = vpop.f32.mrf.mxu0 }
0x1589   :  { %v6206_v19 = vadd.f32 %v6205_v30, %v6034_v37  ;;  %v6603_v30 = vrot.slane %v6588_v44, %v14813_v34 }
0x158a   :  { %v6207_v49 = vpop.f32.mrf.mxu1  ;;  %v12559_v47 = vpop.f32.mrf.mxu0 }
0x158b   :  { %v6208_v33 = vadd.f32 %v6207_v49, %v6038_v13 }
0x158c   :  { %v6209_v4 = vpop.f32.mrf.mxu1  ;;  %v6249_v35 = vpop.f32.mrf.mxu0 }
0x158e   :  { %v6210_v57 = vpop.f32.mrf.mxu1  ;;  %v12560_v50 = vpop.f32.mrf.mxu0 }
0x158f   :  { %v6247_v50 = vadd.f32 %v6246_v55, %v6042_v32  ;;  %v13804_v32 = vld [vmem:[#allocation3 + $0x158] ss:$12 sps:$4 sm:$0xff]  }
0x1590   :  { %12604 = vmatpush3.bf16.msra.mxu0 %v13804_v32  ;;  %v13859_v32 = vld [vmem:[#allocation5 + $0xc4] ss:$12 sps:$4 sm:$0xff]  }
0x1591   :  { %12605 = vmatprep.subr.bf16.mxu0 %v16686_v0 }
0x15a8   :  { %v6474_v12 = vpop.f32.mrf.mxu1  ;;  %v6515_v18 = vpop.f32.mrf.mxu0 }
0x15a9   :  { %v6475_v58 = vadd.f32 %v6474_v12, %v6303_v17  ;;  %v6516_v4 = vadd.f32 %v6515_v18, %v6311_v41 }
0x15aa   :  { %v6476_v20 = vpop.f32.mrf.mxu1  ;;  %v12579_v26 = vpop.f32.mrf.mxu0 }
0x15ab   :  { %v6521_v23 = vadd.f32 %v6475_v58, %v6206_v19  ;;  %v6477_v24 = vadd.f32 %v6476_v20, %v6307_v61 }
0x15ac   :  { %v6478_v29 = vpop.f32.mrf.mxu1  ;;  %v6518_v52 = vpop.f32.mrf.mxu0 }
0x15ad   :  { %v11389_v7 = vmul.f32 -1.442695, %v6521_v23  ;;  %v6528_v10 = vadd.f32 %v6477_v24, %v6208_v33  ;;  %v6592_v29 = vrot.slane %v6543_v62, %v14827_v63 }
0x15ae   :  { %v6479_v43 = vpop.f32.mrf.mxu1  ;;  %v12580_v42 = vpop.f32.mrf.mxu0 }
0x15af   :  { %14196 = vpow2.f32 %v11389_v7  ;;  %v11390_v11 = vmul.f32 -1.442695, %v6528_v10  ;;  %v6607_v52 = vrot.slane %v6592_v29, %v14813_v34 }
0x15b1   :  { %14198 = vpow2.f32 %v11390_v11 }
0x15bc   :  { %v14197_v3 = vpop.eup %14196 }
0x15bd   :  { %v6525_v9 = vadd.f32 1.0, %v14197_v3 }
0x15be   :  { %v14199_v45 = vpop.eup %14198 }
0x15bf   :  { %14200 = vrcp.f32 %v6525_v9  ;;  %v6532_v39 = vadd.f32 1.0, %v14199_v45 }
0x15c1   :  { %14202 = vrcp.f32 %v6532_v39  ;;  %v13808_v39 = vld [vmem:[#allocation3 + $0x140] ss:$12 sps:$4 sm:$0xff]  }
0x15c2   :  { %12606 = vmatpush3.bf16.msra.mxu0 %v13808_v39  ;;  %v7133_v39 = vpack.c.bf16 %v15300_v15, %v15300_v15 }
0x15c3   :  { %12607 = vmatprep.subr.bf16.mxu0 %v16686_v0 }
0x15c8   :  { %v6770_v46 = vpop.f32.mrf.mxu1  ;;  %v6811_v48 = vpop.f32.mrf.mxu0 }
0x15c9   :  { %v6771_v59 = vadd.f32 %v6770_v46, %v6599_v8  ;;  %v6812_v24 = vadd.f32 %v6811_v48, %v6607_v52  ;;  %v13803_v8 = vld [vmem:[#allocation3 + $0x154] ss:$12 sps:$4 sm:$0xff]   ;;  %v13807_v46 = vld [vmem:[#allocation3 + $0x13c] ss:$12 sps:$4 sm:$0xff]   ;;  %v13805_v48 = vld [vmem:[#allocation3 + $0x138] ss:$12 sps:$4 sm:$0xff]  }
0x15ca   :  { %v6772_v49 = vpop.f32.mrf.mxu1  ;;  %v12599_v47 = vpop.f32.mrf.mxu0  ;;  %7054 = vmatprep.subr.bf16.mxu1 %v13803_v8  ;;  %v13829_v52 = vld [vmem:[#allocation5 + $0x168] ss:$12 sps:$4 sm:$0xff]  }
0x15cb   :  { %v6817_v35 = vadd.f32 %v6771_v59, %v14804_v27  ;;  %v6773_v17 = vadd.f32 %v6772_v49, %v6603_v30  ;;  %v13811_v59 = vld [vmem:[#allocation3 + $0x124] ss:$12 sps:$4 sm:$0xff]   ;;  %v13809_v30 = vld [vmem:[#allocation3 + $0x120] ss:$12 sps:$4 sm:$0xff]   ;;  %v13812_v49 = vld [vmem:[#allocation3 + $0x128] ss:$12 sps:$4 sm:$0xff]  }
0x15cc   :  { %v14201_v57 = vpop.eup %14200  ;;  %v6774_v56 = vpop.f32.mrf.mxu1  ;;  %v13815_v47 = vld [vmem:[#allocation3 + $0x10c] ss:$12 sps:$4 sm:$0xff]   ;;  %12608 = vmatpush3.bf16.msra.mxu0 %v13812_v49  ;;  %v13851_v8 = vld [vmem:[#allocation5 + $0xf4] ss:$12 sps:$4 sm:$0xff]  }
0x15cd   :  { %v6814_v6 = vpop.f32.mrf.mxu0  ;;  %v6535_v16 = vmul.f32 %v14201_v57, %v6516_v4  ;;  %v11415_v37 = vmul.f32 -1.442695, %v6817_v35  ;;  %v6824_v19 = vadd.f32 %v6773_v17, %v14810_v31  ;;  %v13813_v4 = vld [vmem:[#allocation3 + $0x108] ss:$12 sps:$4 sm:$0xff]   ;;  %v13816_v35 = vld [vmem:[#allocation3 + $0x110] ss:$12 sps:$4 sm:$0xff]   ;;  %12609 = vmatprep.subr.bf16.mxu0 %v16686_v0 }
0x15ce   :  { %v6775_v5 = vpop.f32.mrf.mxu1  ;;  %v14203_v18 = vpop.eup %14202  ;;  %v13819_v57 = vld [vmem:[#allocation3 + $0xf4] ss:$12 sps:$4 sm:$0xff]   ;;  %v13820_v56 = vld [vmem:[#allocation3 + $0xf8] ss:$12 sps:$4 sm:$0xff]   ;;  %v13823_v6 = vld [vmem:[#allocation3 + $0xdc] ss:$12 sps:$4 sm:$0xff]  }
0x15cf   :  { %v12600_v21 = vpop.f32.mrf.mxu0  ;;  %v6536_v12 = vadd.f32 %v6535_v16, %v6247_v50  ;;  %14204 = vpow2.f32 %v11415_v37  ;;  %v11416_v58 = vmul.f32 -1.442695, %v6824_v19  ;;  %v6538_v20 = vsub.f32 1.0, %v14203_v18  ;;  %v13817_v50 = vld [vmem:[#allocation3 + $0xf0] ss:$12 sps:$4 sm:$0xff]  }
0x15d0   :  { %v6540_v13 = vmul.f32 %v14203_v18, %v15237_v25  ;;  %12610 = vmatpush3.bf16.msra.mxu0 %v13816_v35  ;;  %v13821_v16 = vld [vmem:[#allocation3 + $0xd8] ss:$12 sps:$4 sm:$0xff]   ;;  %v13824_v37 = vld [vmem:[#allocation3 + $0xe0] ss:$12 sps:$4 sm:$0xff]   ;;  %v13828_v21 = vld [vmem:[#allocation3 + $0xc8] ss:$12 sps:$4 sm:$0xff]  }
0x15d1   :  { %14206 = vtanh.f32 %v6536_v12  ;;  %12611 = vmatprep.subr.bf16.mxu0 %v16686_v0  ;;  %v13827_v17 = vld [vmem:[#allocation3 + $0xc4] ss:$12 sps:$4 sm:$0xff]   ;;  %v13825_v5 = vld [vmem:[#allocation3 + $0xc0] ss:$12 sps:$4 sm:$0xff]  }
0x15d2   :  { %14208 = vpow2.f32 %v11416_v58  ;;  %v13831_v12 = vld [vmem:[#allocation5 + $0x16c] ss:$12 sps:$4 sm:$0xff]  }
0x15d4   :  { %12612 = vmatpush3.bf16.msra.mxu0 %v13820_v56  ;;  %v11417_v56 = vld [vmem:[%s16671_s8 + $0x6] sm:$0x3f] }
0x15d5   :  { %12613 = vmatprep.subr.bf16.mxu0 %v16686_v0 }
0x15d8   :  { %12614 = vmatpush3.bf16.msra.mxu0 %v13824_v37 }
0x15d9   :  { %12615 = vmatprep.subr.bf16.mxu0 %v16686_v0 }
0x15dc   :  { %v14205_v61 = vpop.eup %14204  ;;  %12616 = vmatpush3.bf16.msra.mxu0 %v13828_v21  ;;  %v6904_v21 = vrot.slane %v11417_v56, %v14772_v60 }
0x15dd   :  { %v6821_v27 = vadd.f32 1.0, %v14205_v61  ;;  %12621 = vmatprep.subr.bf16.mxu0 %v16686_v0  ;;  %v6840_v61 = vld [vmem:[%s16672_s9] sm:$0x3] }
0x15de   :  { %v14207_v55 = vpop.eup %14206 }
0x15df   :  { %14210 = vrcp.f32 %v6821_v27  ;;  %v6539_v26 = vmul.f32 %v14207_v55, %v6538_v20  ;;  %v14209_v31 = vpop.eup %14208  ;;  %v6855_v27 = vrot.slane %v6840_v61, %v14759_v53 }
0x15e0   :  { %v6828_v7 = vadd.f32 1.0, %v14209_v31 }
0x15e1   :  { %v15375_v23 = vadd.f32 %v6540_v13, %v6539_v26  ;;  %v6860_v26 = vrot.slane %v6840_v61, %v14813_v34 }
0x15e2   :  { %14212 = vrcp.f32 %v6828_v7  ;;  %v13832_v7 = vld [vmem:[#allocation5 + $0x170] ss:$12 sps:$4 sm:$0xff]  }
0x15e3   :  { %6542 = vst [vmem:[%s16680_s17 + $0x68] sm:$0xff] %v15375_v23 }
0x15ec   :  { %v14211_v43 = vpop.eup %14210 }
0x15ed   :  { %v6831_v42 = vmul.f32 %v14211_v43, %v6812_v24  ;;  %v13835_v43 = vld [vmem:[#allocation5 + $0x154] ss:$12 sps:$4 sm:$0xff]  }
0x15ef   :  { %v6832_v33 = vadd.f32 %v6831_v42, %v14807_v28  ;;  %v14213_v25 = vpop.eup %14212  ;;  %v13801_v28 = vld [vmem:[#allocation3 + $0x150] ss:$12 sps:$4 sm:$0xff]  }
0x15f0   :  { %v6834_v10 = vsub.f32 1.0, %v14213_v25  ;;  %v6836_v9 = vmul.f32 %v14213_v25, %v15247_v14  ;;  %7055 = vmatpush1.bf16.msra.mxu1 %v13801_v28  ;;  %v13833_v42 = vld [vmem:[#allocation5 + $0x150] ss:$12 sps:$4 sm:$0xff]  }
0x15f1   :  { %14214 = vtanh.f32 %v6832_v33  ;;  %7056 = vmatprep.subr.bf16.mxu1 %v13807_v46  ;;  %v13836_v33 = vld [vmem:[#allocation5 + $0x158] ss:$12 sps:$4 sm:$0xff]   ;;  %v13839_v25 = vld [vmem:[#allocation5 + $0x13c] ss:$12 sps:$4 sm:$0xff]   ;;  %v13857_v46 = vld [vmem:[#allocation5 + $0xc0] ss:$12 sps:$4 sm:$0xff]  }
0x15f2   :  { %v13849_v28 = vld [vmem:[#allocation5 + $0xf0] ss:$12 sps:$4 sm:$0xff]  }
0x15f4   :  { %7057 = vmatpush1.bf16.msra.mxu1 %v13805_v48  ;;  %v13860_v48 = vld [vmem:[#allocation5 + $0xc8] ss:$12 sps:$4 sm:$0xff]  }
0x15f5   :  { %7058 = vmatprep.subr.bf16.mxu1 %v13811_v59 }
0x15f8   :  { %7059 = vmatpush1.bf16.msra.mxu1 %v13809_v30 }
0x15f9   :  { %7060 = vmatprep.subr.bf16.mxu1 %v13815_v47 }
0x15fc   :  { %7061 = vmatpush1.bf16.msra.mxu1 %v13813_v4 }
0x15fd   :  { %7062 = vmatprep.subr.bf16.mxu1 %v13819_v57 }
0x15fe   :  { %v14215_v11 = vpop.eup %14214 }
0x15ff   :  { %v6835_v3 = vmul.f32 %v14215_v11, %v6834_v10  ;;  %v13837_v10 = vld [vmem:[#allocation5 + $0x138] ss:$12 sps:$4 sm:$0xff]   ;;  %v13840_v11 = vld [vmem:[#allocation5 + $0x140] ss:$12 sps:$4 sm:$0xff]  }
0x1600   :  { %7063 = vmatpush1.bf16.msra.mxu1 %v13817_v50 }
0x1601   :  { %v6837_v62 = vadd.f32 %v6836_v9, %v6835_v3  ;;  %7064 = vmatprep.subr.bf16.mxu1 %v13823_v6  ;;  %v13843_v3 = vld [vmem:[#allocation5 + $0x124] ss:$12 sps:$4 sm:$0xff]   ;;  %v13841_v9 = vld [vmem:[#allocation5 + $0x120] ss:$12 sps:$4 sm:$0xff]   ;;  %v6900_v6 = vrot.slane %v11417_v56, %v14759_v53 }
0x1603   :  { %6841 = vadd.xlane.f32.xlu0 %v6837_v62  ;;  %6838 = vst [vmem:[%s16680_s17 + $0x20] sm:$0xff] %v6837_v62  ;;  %v6915_v37 = vrot.slane %v6900_v6, %v14759_v53  ;;  %v13871_v6 = vld [vmem:[#allocation3 + $0x1fc] ss:$12 sps:$4 sm:$0xff]  }
0x1604   :  { %7065 = vmatpush1.bf16.msra.mxu1 %v13821_v16  ;;  %v7169_v16 = vrot.slane %v11417_v56, %v14813_v34 }
0x1605   :  { %7066 = vmatprep.subr.bf16.mxu1 %v13827_v17 }
0x1606   :  { %v7184_v17 = vrot.slane %v7169_v16, %v14813_v34  ;;  %v13869_v16 = vld [vmem:[#allocation3 + $0x1f8] ss:$12 sps:$4 sm:$0xff]  }
0x1608   :  { %7067 = vmatpush1.bf16.msra.mxu1 %v13825_v5  ;;  %v7173_v5 = vrot.slane %v11417_v56, %v14819_v38 }
0x1609   :  { %7321 = vmatprep.subr.bf16.mxu1 %v13831_v12 }
0x160a   :  { %v7188_v61 = vrot.slane %v7173_v5, %v14813_v34  ;;  %v13873_v5 = vld [vmem:[#allocation3 + $0x1e0] ss:$12 sps:$4 sm:$0xff]  }
0x168c   :  { %v6842_v44 = vpop.xlane.xlu0 %6841 }
0x168d   :  { %v6843_v14 = vmul.f32 0.0078125, %v6842_v44  ;;  %v13852_v44 = vld [vmem:[#allocation5 + $0xf8] ss:$12 sps:$4 sm:$0xff]  }
0x168f   :  { %v6844_v45 = vsub.f32 %v6837_v62, %v6843_v14  ;;  %v13844_v62 = vld [vmem:[#allocation5 + $0x128] ss:$12 sps:$4 sm:$0xff]  }
0x1690   :  { %v13855_v14 = vld [vmem:[#allocation5 + $0xdc] ss:$12 sps:$4 sm:$0xff]  }
0x1691   :  { %v6845_v41 = vmul.f32 %v6844_v45, %v6844_v45 }
0x1693   :  { %6846 = vadd.xlane.f32.xlu1 %v6845_v41  ;;  %v13856_v41 = vld [vmem:[#allocation5 + $0xe0] ss:$12 sps:$4 sm:$0xff]  }
0x171c   :  { %v6847_v19 = vpop.xlane.xlu1 %6846 }
0x171d   :  { %v6848_v58 = vmul.f32 0.0078125, %v6847_v19 }
0x171f   :  { %v6849_v18 = vadd.f32 1e-05, %v6848_v58 }
0x1721   :  { %14216 = vrsqrt.f32 %v6849_v18 }
0x172e   :  { %v14217_v20 = vpop.eup %14216 }
0x172f   :  { %v6851_v55 = vmul.f32 %v14217_v20, %v6844_v45  ;;  %v13853_v45 = vld [vmem:[#allocation5 + $0xd8] ss:$12 sps:$4 sm:$0xff]  }
0x1731   :  { %v6856_v13 = vmul.f32 %v6855_v27, %v6851_v55  ;;  %v6919_v55 = vrot.slane %v6904_v21, %v14759_v53  ;;  %v13876_v21 = vld [vmem:[#allocation3 + $0x1e8] ss:$12 sps:$4 sm:$0xff]  }
0x1733   :  { %v6861_v29 = vadd.f32 %v6860_v26, %v6856_v13 }
0x1735   :  { %v6862_v31 = vmax.f32 %v6861_v29, 0.0 }
0x1737   :  { %v6863_v24 = vpack.c.bf16 %v6862_v31, %v6862_v31 }
0x1739   :  { %7085 = vmatmul.mubr.bf16.vlgmr.msra.gmra.mxu1 %v6863_v24  ;;  %12618 = vmatmul.mubr.bf16.vlgmr.msra.gmra.mxu0 %v6863_v24 }
0x173a   :  { %7322 = vmatpush1.bf16.msra.mxu1 %v13829_v52  ;;  %12622 = vmatpush3.bf16.msra.mxu0 %v13832_v7 }
0x173b   :  { %7323 = vmatprep.subr.bf16.mxu1 %v13835_v43  ;;  %12623 = vmatprep.subr.bf16.mxu0 %v16686_v0 }
0x173c   :  { %7353 = vmatprep.mubr.bf16.mxu1 %v16684_v1  ;;  %12637 = vmatprep.mubr.msk.bf16.mxu0 %vm14522_vm0, %v16686_v0 }
0x173e   :  { %7324 = vmatpush1.bf16.msra.mxu1 %v13833_v42  ;;  %12624 = vmatpush3.bf16.msra.mxu0 %v13836_v33 }
0x173f   :  { %7325 = vmatprep.subr.bf16.mxu1 %v13839_v25  ;;  %12625 = vmatprep.subr.bf16.mxu0 %v16686_v0 }
0x1742   :  { %7326 = vmatpush1.bf16.msra.mxu1 %v13837_v10  ;;  %12626 = vmatpush3.bf16.msra.mxu0 %v13840_v11  ;;  %v7177_v11 = vrot.slane %v11417_v56, %v14827_v63 }
0x1743   :  { %7327 = vmatprep.subr.bf16.mxu1 %v13843_v3  ;;  %12627 = vmatprep.subr.bf16.mxu0 %v16686_v0  ;;  %v6908_v3 = vrot.slane %v11417_v56, %v14762_v54  ;;  %v13868_v56 = vld [vmem:[#allocation3 + $0x218] ss:$12 sps:$4 sm:$0xff]  }
0x1746   :  { %7328 = vmatpush1.bf16.msra.mxu1 %v13841_v9  ;;  %12628 = vmatpush3.bf16.msra.mxu0 %v13844_v62  ;;  %v7192_v62 = vrot.slane %v7177_v11, %v14813_v34 }
0x1747   :  { %7329 = vmatprep.subr.bf16.mxu1 %v13847_v36  ;;  %12629 = vmatprep.subr.bf16.mxu0 %v16686_v0  ;;  %v6923_v36 = vrot.slane %v6908_v3, %v14759_v53 }
0x174a   :  { %7330 = vmatpush1.bf16.msra.mxu1 %v13845_v22  ;;  %12630 = vmatpush3.bf16.msra.mxu0 %v13848_v40 }
0x174b   :  { %7331 = vmatprep.subr.bf16.mxu1 %v13851_v8  ;;  %12631 = vmatprep.subr.bf16.mxu0 %v16686_v0 }
0x174e   :  { %7332 = vmatpush1.bf16.msra.mxu1 %v13849_v28  ;;  %12632 = vmatpush3.bf16.msra.mxu0 %v13852_v44 }
0x174f   :  { %7333 = vmatprep.subr.bf16.mxu1 %v13855_v14  ;;  %12633 = vmatprep.subr.bf16.mxu0 %v16686_v0 }
0x1752   :  { %7334 = vmatpush1.bf16.msra.mxu1 %v13853_v45  ;;  %12634 = vmatpush3.bf16.msra.mxu0 %v13856_v41 }
0x1753   :  { %7335 = vmatprep.subr.bf16.mxu1 %v13859_v32  ;;  %12635 = vmatprep.subr.bf16.mxu0 %v16686_v0 }
0x1756   :  { %7336 = vmatpush1.bf16.msra.mxu1 %v13857_v46  ;;  %12636 = vmatpush3.bf16.msra.mxu0 %v13860_v48 }
0x1757   :  { %12641 = vmatprep.subr.bf16.mxu0 %v16686_v0 }
0x1759   :  { %7354 = vmatmul.mubr.bf16.vlgmr.msra.gmra.mxu1 %v7133_v39  ;;  %12638 = vmatmul.mubr.bf16.vlgmr.msra.gmra.mxu0 %v7133_v39 }
0x175a   :  { %7669 = vmatprep.mubr.bf16.mxu1 %v16684_v1  ;;  %12657 = vmatprep.mubr.msk.bf16.mxu0 %vm14522_vm0, %v16686_v0 }
0x17f9   :  { %v7086_v59 = vpop.f32.mrf.mxu1  ;;  %v7127_v30 = vpop.f32.mrf.mxu0 }
0x17fa   :  { %v7087_v58 = vadd.f32 %v7086_v59, %v6915_v37  ;;  %v7128_v28 = vadd.f32 %v7127_v30, %v6923_v36  ;;  %v13861_v59 = vld [vmem:[#allocation3 + $0x228] ss:$12 sps:$4 sm:$0xff]   ;;  %v13872_v37 = vld [vmem:[#allocation3 + $0x200] ss:$12 sps:$4 sm:$0xff]  }
0x17fb   :  { %v7088_v49 = vpop.f32.mrf.mxu1  ;;  %v12619_v47 = vpop.f32.mrf.mxu0  ;;  %v13867_v30 = vld [vmem:[#allocation3 + $0x214] ss:$12 sps:$4 sm:$0xff]  }
0x17fc   :  { %v7089_v43 = vadd.f32 %v7088_v49, %v6919_v55  ;;  %v13863_v49 = vld [vmem:[#allocation3 + $0x22c] ss:$12 sps:$4 sm:$0xff]   ;;  %v13864_v47 = vld [vmem:[#allocation3 + $0x230] ss:$12 sps:$4 sm:$0xff]   ;;  %v13893_v36 = vld [vmem:[#allocation5 + $0x228] ss:$12 sps:$4 sm:$0xff]  }
0x17fd   :  { %v7090_v4 = vpop.f32.mrf.mxu1  ;;  %v7130_v35 = vpop.f32.mrf.mxu0  ;;  %7637 = vmatprep.subr.bf16.mxu1 %v13863_v49  ;;  %12642 = vmatpush3.bf16.msra.mxu0 %v13864_v47  ;;  %v13885_v55 = vld [vmem:[#allocation3 + $0x198] ss:$12 sps:$4 sm:$0xff]   ;;  %v13912_v49 = vld [vmem:[#allocation5 + $0x1d0] ss:$12 sps:$4 sm:$0xff]   ;;  %v13915_v47 = vld [vmem:[#allocation5 + $0x1b4] ss:$12 sps:$4 sm:$0xff]  }
0x17fe   :  { %7638 = vmatpush1.bf16.msra.mxu1 %v13861_v59  ;;  %v13865_v4 = vld [vmem:[#allocation3 + $0x210] ss:$12 sps:$4 sm:$0xff]   ;;  %12643 = vmatprep.subr.bf16.mxu0 %v16686_v0  ;;  %v13909_v59 = vld [vmem:[#allocation5 + $0x1c8] ss:$12 sps:$4 sm:$0xff]  }
0x17ff   :  { %v7091_v57 = vpop.f32.mrf.mxu1  ;;  %v12620_v50 = vpop.f32.mrf.mxu0  ;;  %7639 = vmatprep.subr.bf16.mxu1 %v13867_v30  ;;  %v13913_v30 = vld [vmem:[#allocation5 + $0x1b0] ss:$12 sps:$4 sm:$0xff]  }
0x1801   :  { %12644 = vmatpush3.bf16.msra.mxu0 %v13868_v56  ;;  %v13083_v56 = vld [vmem:[%s16665_s2 + $0x54] ss:$0 sps:$4 sm:$0x11]  }
0x1802   :  { %7640 = vmatpush1.bf16.msra.mxu1 %v13865_v4  ;;  %12645 = vmatprep.subr.bf16.mxu0 %v16686_v0  ;;  %v13916_v4 = vld [vmem:[#allocation5 + $0x1b8] ss:$12 sps:$4 sm:$0xff]  }
0x1803   :  { %7641 = vmatprep.subr.bf16.mxu1 %v13871_v6  ;;  %v13921_v6 = vld [vmem:[#allocation5 + $0x180] ss:$12 sps:$4 sm:$0xff]  }
0x1805   :  { %12646 = vmatpush3.bf16.msra.mxu0 %v13872_v37  ;;  %v8080_v37 = vand.u32 %v13083_v56, %v14645_v2  ;;  %v13926_v2 = vld [vmem:[%s16665_s2 + $0x44] sm:$0xff]  }
0x1806   :  { %7642 = vmatpush1.bf16.msra.mxu1 %v13869_v16  ;;  %12647 = vmatprep.subr.bf16.mxu0 %v16686_v0  ;;  %v13924_v16 = vld [vmem:[#allocation5 + $0x188] ss:$12 sps:$4 sm:$0xff]  }
0x1809   :  { %12648 = vmatpush3.bf16.msra.mxu0 %v13876_v21  ;;  %v13928_v21 = vld [vmem:[%s16665_s2 + $0x34] sm:$0xff]  }
0x180a   :  { %12649 = vmatprep.subr.bf16.mxu0 %v16686_v0 }
0x1819   :  { %v7355_v12 = vpop.f32.mrf.mxu1  ;;  %v7396_v19 = vpop.f32.mrf.mxu0 }
0x181a   :  { %v7356_v18 = vadd.f32 %v7355_v12, %v7184_v17  ;;  %v7397_v40 = vadd.f32 %v7396_v19, %v7192_v62  ;;  %v13875_v17 = vld [vmem:[#allocation3 + $0x1e4] ss:$12 sps:$4 sm:$0xff]   ;;  %v13879_v12 = vld [vmem:[#allocation3 + $0x1cc] ss:$12 sps:$4 sm:$0xff]   ;;  %v13877_v19 = vld [vmem:[#allocation3 + $0x1c8] ss:$12 sps:$4 sm:$0xff]  }
0x181b   :  { %v7357_v27 = vpop.f32.mrf.mxu1  ;;  %v12639_v20 = vpop.f32.mrf.mxu0  ;;  %7643 = vmatprep.subr.bf16.mxu1 %v13875_v17  ;;  %v7718_v17 = vpack.c.bf16 %v15375_v23, %v15375_v23  ;;  %v13927_v23 = vld [vmem:[%s16665_s2 + $0x3c] sm:$0xff]  }
0x181c   :  { %v7402_v26 = vadd.f32 %v7356_v18, %v7087_v58  ;;  %v7358_v52 = vadd.f32 %v7357_v27, %v7188_v61  ;;  %7644 = vmatpush1.bf16.msra.mxu1 %v13873_v5  ;;  %v13880_v58 = vld [vmem:[#allocation3 + $0x1d0] ss:$12 sps:$4 sm:$0xff]   ;;  %v13883_v18 = vld [vmem:[#allocation3 + $0x1b4] ss:$12 sps:$4 sm:$0xff]   ;;  %v13884_v27 = vld [vmem:[#allocation3 + $0x1b8] ss:$12 sps:$4 sm:$0xff]  }
0x181d   :  { %v7359_v13 = vpop.f32.mrf.mxu1  ;;  %v7399_v29 = vpop.f32.mrf.mxu0  ;;  %7645 = vmatprep.subr.bf16.mxu1 %v13879_v12  ;;  %12650 = vmatpush3.bf16.msra.mxu0 %v13880_v58  ;;  %v13881_v61 = vld [vmem:[#allocation3 + $0x1b0] ss:$12 sps:$4 sm:$0xff]   ;;  %v8010_v58 = vld [vmem:[%s16788_s24 + $0x8] sm:$0xff] }
0x181e   :  { %v11466_v31 = vmul.f32 -1.442695, %v7402_v26  ;;  %v7409_v42 = vadd.f32 %v7358_v52, %v7089_v43  ;;  %12651 = vmatprep.subr.bf16.mxu0 %v16686_v0  ;;  %v13887_v20 = vld [vmem:[#allocation3 + $0x19c] ss:$12 sps:$4 sm:$0xff]   ;;  %v13888_v26 = vld [vmem:[#allocation3 + $0x1a0] ss:$12 sps:$4 sm:$0xff]  }
0x181f   :  { %v7360_v7 = vpop.f32.mrf.mxu1  ;;  %v12640_v24 = vpop.f32.mrf.mxu0  ;;  %v13891_v13 = vld [vmem:[#allocation3 + $0x184] ss:$12 sps:$4 sm:$0xff]   ;;  %v13889_v29 = vld [vmem:[#allocation3 + $0x180] ss:$12 sps:$4 sm:$0xff]  }
0x1820   :  { %14218 = vpow2.f32 %v11466_v31  ;;  %v11467_v33 = vmul.f32 -1.442695, %v7409_v42  ;;  %7646 = vmatpush1.bf16.msra.mxu1 %v13877_v19  ;;  %v13892_v31 = vld [vmem:[#allocation3 + $0x188] ss:$12 sps:$4 sm:$0xff]   ;;  %v13895_v52 = vld [vmem:[#allocation5 + $0x22c] ss:$12 sps:$4 sm:$0xff]  }
0x1821   :  { %7647 = vmatprep.subr.bf16.mxu1 %v13883_v18  ;;  %12652 = vmatpush3.bf16.msra.mxu0 %v13884_v27  ;;  %v11469_v42 = vld [vmem:[%s16672_s9 + $0x2] sm:$0x3]  ;;  %v13925_v5 = vld [vmem:[%s16665_s2 + $0x4c] sm:$0xff]   ;;  %v8012_v27 = vld [vmem:[%s16788_s24 + $0x18] sm:$0xff] }
0x1822   :  { %14220 = vpow2.f32 %v11467_v33  ;;  %12653 = vmatprep.subr.bf16.mxu0 %v16686_v0  ;;  %v7440_v33 = vrot.slane %v11469_v42, %v14759_v53  ;;  %v7445_v11 = vrot.slane %v11469_v42, %v14813_v34  ;;  %v13929_v12 = vld [vmem:[%s16665_s2 + $0x2c] sm:$0xff]   ;;  %v8009_v19 = vld [vmem:[%s16788_s24] sm:$0xff] }
0x1823   :  { %v8014_v18 = vpack.c.bf16 %v8010_v58, %v8009_v19  ;;  %v13938_v42 = vld [vmem:[#allocation7 + $0x90] ss:$12 sps:$4 sm:$0xff]  }
0x1824   :  { %7648 = vmatpush1.bf16.msra.mxu1 %v13881_v61  ;;  %v8011_v61 = vld [vmem:[%s16788_s24 + $0x10] sm:$0xff] }
0x1825   :  { %7649 = vmatprep.subr.bf16.mxu1 %v13887_v20  ;;  %12654 = vmatpush3.bf16.msra.mxu0 %v13888_v26  ;;  %v8015_v20 = vpack.c.bf16 %v8012_v27, %v8011_v61 }
0x1826   :  { %12655 = vmatprep.subr.bf16.mxu0 %v16686_v0 }
0x1828   :  { %7650 = vmatpush1.bf16.msra.mxu1 %v13885_v55  ;;  %v8013_v55 = vld [vmem:[%s16788_s24 + $0x20] sm:$0xff] }
0x1829   :  { %7651 = vmatprep.subr.bf16.mxu1 %v13891_v13  ;;  %12656 = vmatpush3.bf16.msra.mxu0 %v13892_v31  ;;  %v8016_v26 = vpack.c.bf16 %v8013_v55, %v8013_v55  ;;  %v13930_v13 = vld [vmem:[%s16667_s4 + $0x38] sm:$0xff]   ;;  %v13932_v31 = vld [vmem:[%s16667_s4 + $0x28] sm:$0xff]  }
0x182a   :  { %12661 = vmatprep.subr.bf16.mxu0 %v16686_v0 }
0x182c   :  { %7652 = vmatpush1.bf16.msra.mxu1 %v13889_v29  ;;  %v13931_v29 = vld [vmem:[%s16667_s4 + $0x30] sm:$0xff]  }
0x182d   :  { %v14219_v25 = vpop.eup %14218  ;;  %7906 = vmatprep.subr.bf16.mxu1 %v13895_v52  ;;  %v13933_v52 = vld [vmem:[%s16667_s4 + $0x20] sm:$0xff]  }
0x182e   :  { %v7406_v10 = vadd.f32 1.0, %v14219_v25 }
0x182f   :  { %v14221_v9 = vpop.eup %14220 }
0x1830   :  { %14222 = vrcp.f32 %v7406_v10  ;;  %v7413_v22 = vadd.f32 1.0, %v14221_v9 }
0x1832   :  { %14224 = vrcp.f32 %v7413_v22  ;;  %v13896_v22 = vld [vmem:[#allocation5 + $0x230] ss:$12 sps:$4 sm:$0xff]  }
0x183d   :  { %v14223_v8 = vpop.eup %14222 }
0x183e   :  { %v7416_v44 = vmul.f32 %v14223_v8, %v7397_v40  ;;  %v13899_v8 = vld [vmem:[#allocation5 + $0x214] ss:$12 sps:$4 sm:$0xff]  }
0x183f   :  { %v14225_v45 = vpop.eup %14224 }
0x1840   :  { %v7417_v14 = vadd.f32 %v7416_v44, %v7128_v28  ;;  %v7419_v41 = vsub.f32 1.0, %v14225_v45  ;;  %v7421_v48 = vmul.f32 %v14225_v45, %v15300_v15  ;;  %v13897_v28 = vld [vmem:[#allocation5 + $0x210] ss:$12 sps:$4 sm:$0xff]   ;;  %v13900_v44 = vld [vmem:[#allocation5 + $0x218] ss:$12 sps:$4 sm:$0xff]  }
0x1841   :  { %v13901_v45 = vld [vmem:[#allocation5 + $0x1f8] ss:$12 sps:$4 sm:$0xff]  }
0x1842   :  { %14226 = vtanh.f32 %v7417_v14  ;;  %v13903_v14 = vld [vmem:[#allocation5 + $0x1fc] ss:$12 sps:$4 sm:$0xff]  }
0x184f   :  { %v14227_v32 = vpop.eup %14226 }
0x1850   :  { %v7420_v46 = vmul.f32 %v14227_v32, %v7419_v41  ;;  %v13904_v41 = vld [vmem:[#allocation5 + $0x200] ss:$12 sps:$4 sm:$0xff]   ;;  %v13907_v32 = vld [vmem:[#allocation5 + $0x1e4] ss:$12 sps:$4 sm:$0xff]  }
0x1852   :  { %v7422_v39 = vadd.f32 %v7421_v48, %v7420_v46  ;;  %v13905_v46 = vld [vmem:[#allocation5 + $0x1e0] ss:$12 sps:$4 sm:$0xff]   ;;  %v13908_v48 = vld [vmem:[#allocation5 + $0x1e8] ss:$12 sps:$4 sm:$0xff]  }
0x1854   :  { %7426 = vadd.xlane.f32.xlu0 %v7422_v39  ;;  %7423 = vst [vmem:[%s16680_s17 + $0x48] sm:$0xff] %v7422_v39 }
0x18dd   :  { %v7427_v35 = vpop.xlane.xlu0 %7426 }
0x18de   :  { %v7428_v15 = vmul.f32 0.0078125, %v7427_v35  ;;  %v13919_v35 = vld [vmem:[#allocation5 + $0x19c] ss:$12 sps:$4 sm:$0xff]  }
0x18e0   :  { %v7429_v57 = vsub.f32 %v7422_v39, %v7428_v15  ;;  %v13911_v39 = vld [vmem:[#allocation5 + $0x1cc] ss:$12 sps:$4 sm:$0xff]  }
0x18e1   :  { %v13917_v15 = vld [vmem:[#allocation5 + $0x198] ss:$12 sps:$4 sm:$0xff]  }
0x18e2   :  { %v7430_v50 = vmul.f32 %v7429_v57, %v7429_v57 }
0x18e4   :  { %7431 = vadd.xlane.f32.xlu1 %v7430_v50  ;;  %v13923_v50 = vld [vmem:[#allocation5 + $0x184] ss:$12 sps:$4 sm:$0xff]  }
0x196d   :  { %v7432_v7 = vpop.xlane.xlu1 %7431 }
0x196e   :  { %v7433_v24 = vmul.f32 0.0078125, %v7432_v7  ;;  %v13934_v7 = vld [vmem:[#allocation7 + $0xa8] ss:$12 sps:$4 sm:$0xff]  }
0x1970   :  { %v7434_v43 = vadd.f32 1e-05, %v7433_v24  ;;  %v13936_v24 = vld [vmem:[#allocation7 + $0xac] ss:$12 sps:$4 sm:$0xff]  }
0x1972   :  { %14228 = vrsqrt.f32 %v7434_v43  ;;  %v13940_v43 = vld [vmem:[#allocation7 + $0x94] ss:$12 sps:$4 sm:$0xff]  }
0x197f   :  { %v14229_v25 = vpop.eup %14228 }
0x1980   :  { %v7436_v10 = vmul.f32 %v14229_v25, %v7429_v57  ;;  %v13920_v57 = vld [vmem:[#allocation5 + $0x1a0] ss:$12 sps:$4 sm:$0xff]   ;;  %v13942_v25 = vld [vmem:[#allocation7 + $0x78] ss:$12 sps:$4 sm:$0xff]  }
0x1982   :  { %v7441_v3 = vmul.f32 %v7440_v33, %v7436_v10  ;;  %v13944_v33 = vld [vmem:[#allocation7 + $0x7c] ss:$12 sps:$4 sm:$0xff]   ;;  %v13948_v10 = vld [vmem:[#allocation7 + $0x64] ss:$12 sps:$4 sm:$0xff]  }
0x1984   :  { %v7446_v9 = vadd.f32 %v7445_v11, %v7441_v3  ;;  %v13946_v11 = vld [vmem:[#allocation7 + $0x60] ss:$12 sps:$4 sm:$0xff]  }
0x1985   :  { %v13952_v3 = vld [vmem:[#allocation7 + $0x4c] ss:$12 sps:$4 sm:$0xff]  }
0x1986   :  { %v7447_v62 = vmax.f32 %v7446_v9, 0.0  ;;  %v13950_v9 = vld [vmem:[#allocation7 + $0x48] ss:$12 sps:$4 sm:$0xff]  }
0x1988   :  { %v7448_v40 = vpack.c.bf16 %v7447_v62, %v7447_v62  ;;  %v13956_v62 = vld [vmem:[#allocation7 + $0x34] ss:$12 sps:$4 sm:$0xff]  }
0x198a   :  { %7670 = vmatmul.mubr.bf16.vlgmr.msra.gmra.mxu1 %v7448_v40  ;;  %12658 = vmatmul.mubr.bf16.vlgmr.msra.gmra.mxu0 %v7448_v40 }
0x198b   :  { %7907 = vmatpush1.bf16.msra.mxu1 %v13893_v36  ;;  %12662 = vmatpush3.bf16.msra.mxu0 %v13896_v22  ;;  %v13954_v36 = vld [vmem:[#allocation7 + $0x30] ss:$12 sps:$4 sm:$0xff]  }
0x198c   :  { %7908 = vmatprep.subr.bf16.mxu1 %v13899_v8  ;;  %12663 = vmatprep.subr.bf16.mxu0 %v16686_v0 }
0x198d   :  { %7938 = vmatprep.mubr.bf16.mxu1 %v16684_v1  ;;  %12677 = vmatprep.mubr.msk.bf16.mxu0 %vm14522_vm0, %v16686_v0 }
0x198f   :  { %7909 = vmatpush1.bf16.msra.mxu1 %v13897_v28  ;;  %12664 = vmatpush3.bf16.msra.mxu0 %v13900_v44 }
0x1990   :  { %7910 = vmatprep.subr.bf16.mxu1 %v13903_v14  ;;  %12665 = vmatprep.subr.bf16.mxu0 %v16686_v0 }
0x1993   :  { %7911 = vmatpush1.bf16.msra.mxu1 %v13901_v45  ;;  %12666 = vmatpush3.bf16.msra.mxu0 %v13904_v41 }
0x1994   :  { %7912 = vmatprep.subr.bf16.mxu1 %v13907_v32  ;;  %12667 = vmatprep.subr.bf16.mxu0 %v16686_v0  ;;  %v11468_v32 = vld [vmem:[%s16671_s8 + $0xc] sm:$0x3f] }
0x1997   :  { %7913 = vmatpush1.bf16.msra.mxu1 %v13905_v46  ;;  %12668 = vmatpush3.bf16.msra.mxu0 %v13908_v48  ;;  %v7485_v46 = vrot.slane %v11468_v32, %v14759_v53  ;;  %v7754_v48 = vrot.slane %v11468_v32, %v14813_v34 }
0x1998   :  { %7914 = vmatprep.subr.bf16.mxu1 %v13911_v39  ;;  %12669 = vmatprep.subr.bf16.mxu0 %v16686_v0 }
0x1999   :  { %v7500_v39 = vrot.slane %v7485_v46, %v14759_v53 }
0x199b   :  { %7915 = vmatpush1.bf16.msra.mxu1 %v13909_v59  ;;  %12670 = vmatpush3.bf16.msra.mxu0 %v13912_v49  ;;  %v7769_v59 = vrot.slane %v7754_v48, %v14813_v34  ;;  %v7758_v49 = vrot.slane %v11468_v32, %v14819_v38 }
0x199c   :  { %7916 = vmatprep.subr.bf16.mxu1 %v13915_v47  ;;  %12671 = vmatprep.subr.bf16.mxu0 %v16686_v0  ;;  %v7489_v47 = vrot.slane %v11468_v32, %v14772_v60 }
0x199f   :  { %7917 = vmatpush1.bf16.msra.mxu1 %v13913_v30  ;;  %12672 = vmatpush3.bf16.msra.mxu0 %v13916_v4 }
0x19a0   :  { %7918 = vmatprep.subr.bf16.mxu1 %v13919_v35  ;;  %12673 = vmatprep.subr.bf16.mxu0 %v16686_v0 }
0x19a3   :  { %7919 = vmatpush1.bf16.msra.mxu1 %v13917_v15  ;;  %12674 = vmatpush3.bf16.msra.mxu0 %v13920_v57  ;;  %v7773_v57 = vrot.slane %v7758_v49, %v14813_v34 }
0x19a4   :  { %7920 = vmatprep.subr.bf16.mxu1 %v13923_v50  ;;  %12675 = vmatprep.subr.bf16.mxu0 %v16686_v0 }
0x19a7   :  { %7921 = vmatpush1.bf16.msra.mxu1 %v13921_v6  ;;  %12676 = vmatpush3.bf16.msra.mxu0 %v13924_v16  ;;  %v7504_v6 = vrot.slane %v7489_v47, %v14759_v53 }
0x19a8   :  { %12681 = vmatprep.subr.bf16.mxu1 %v16686_v0  ;;  %8439 = vmatprep.subr.bf16.mxu0 %v13936_v24 }
0x19aa   :  { %7939 = vmatmul.mubr.bf16.vlgmr.msra.gmra.mxu1 %v7718_v17  ;;  %12678 = vmatmul.mubr.bf16.vlgmr.msra.gmra.mxu0 %v7718_v17 }
0x19ab   :  { %12682 = vmatpush3.bf16.msra.mxu1 %v8080_v37  ;;  %12693 = vmatprep.mubr.msk.bf16.mxu1 %vm14522_vm0, %v16686_v0 }
0x19ac   :  { %12683 = vmatprep.subr.bf16.mxu1 %v16686_v0  ;;  %8471 = vmatprep.mubr.bf16.mxu0 %v16684_v1 }
0x19ad   :  { %8440 = vmatpush1.bf16.msra.mxu0 %v13934_v7 }
0x19ae   :  { %8441 = vmatprep.subr.bf16.mxu0 %v13940_v43  ;;  %v13937_v43 = vld [vmem:[#allocation7 + $0xb0] ss:$12 sps:$4 sm:$0xff]  }
0x19af   :  { %12684 = vmatpush3.bf16.msra.mxu1 %v13925_v5 }
0x19b0   :  { %12685 = vmatprep.subr.bf16.mxu1 %v16686_v0 }
0x19b1   :  { %8442 = vmatpush1.bf16.msra.mxu0 %v13938_v42 }
0x19b2   :  { %8443 = vmatprep.subr.bf16.mxu0 %v13944_v33 }
0x19b3   :  { %12686 = vmatpush3.bf16.msra.mxu1 %v13926_v2 }
0x19b4   :  { %12687 = vmatprep.subr.bf16.mxu1 %v16686_v0 }
0x19b5   :  { %8444 = vmatpush1.bf16.msra.mxu0 %v13942_v25 }
0x19b6   :  { %8445 = vmatprep.subr.bf16.mxu0 %v13948_v10 }
0x19b7   :  { %12688 = vmatpush3.bf16.msra.mxu1 %v13927_v23 }
0x19b8   :  { %12689 = vmatprep.subr.bf16.mxu1 %v16686_v0 }
0x19b9   :  { %8446 = vmatpush1.bf16.msra.mxu0 %v13946_v11 }
0x19ba   :  { %8447 = vmatprep.subr.bf16.mxu0 %v13952_v3 }
0x19bb   :  { %12690 = vmatpush3.bf16.msra.mxu1 %v13928_v21 }
0x19bc   :  { %12691 = vmatprep.subr.bf16.mxu1 %v16686_v0 }
0x19bd   :  { %8448 = vmatpush1.bf16.msra.mxu0 %v13950_v9  ;;  %v13941_v9 = vld [vmem:[#allocation7 + $0x98] ss:$12 sps:$4 sm:$0xff]  }
0x19be   :  { %8449 = vmatprep.subr.bf16.mxu0 %v13956_v62 }
0x19bf   :  { %12692 = vmatpush3.bf16.msra.mxu1 %v13929_v12 }
0x19c0   :  { %12705 = vmatprep.subr.bf16.mxu1 %v16686_v0 }
0x19c1   :  { %8450 = vmatpush1.bf16.msra.mxu0 %v13954_v36 }
0x19c2   :  { %12694 = vmatmul.mubr.msk.bf16.vlgmr.msra.gmra.mxu1 %vm170_vm2, %v8014_v18 }
0x19c3   :  { %12697 = vmatprep.mubr.msk.bf16.mxu1 %vm14522_vm0, %v16686_v0  ;;  %12706 = vmatpush3.bf16.msra.mxu1 %v13930_v13 }
0x19c4   :  { %12707 = vmatprep.subr.bf16.mxu1 %v16686_v0 }
0x19c7   :  { %12708 = vmatpush3.bf16.msra.mxu1 %v13931_v29  ;;  %v7493_v29 = vrot.slane %v11468_v32, %v14762_v54 }
0x19c8   :  { %12709 = vmatprep.subr.bf16.mxu1 %v16686_v0 }
0x19c9   :  { %v7508_v10 = vrot.slane %v7493_v29, %v14759_v53  ;;  %v15585_v29 = vld [vmem:[#allocation8 + $0xb0] ss:$12 sps:$4 sm:$0xff]  }
0x19ca   :  { %12698 = vmatmul.mubr.msk.bf16.gmra.mxu1 %vm170_vm2, %v8015_v20  ;;  %v11532_v20 = vld [vmem:[%s16666_s3 + $0x1] ss:$0 sm:$0xff] }
0x19cb   :  { %12701 = vmatprep.mubr.msk.bf16.mxu1 %vm14522_vm0, %v16686_v0  ;;  %12710 = vmatpush3.bf16.msra.mxu1 %v13932_v31 }
0x19cc   :  { %12711 = vmatprep.subr.bf16.mxu1 %v16686_v0 }
0x19cf   :  { %12712 = vmatpush3.bf16.msra.mxu1 %v13933_v52 }
0x19d0   :  { %12725 = vmatprep.subr.bf16.mxu1 %v16686_v0 }
0x19d2   :  { %12702 = vmatmul.mubr.msk.bf16.gmra.mxu1 %vm170_vm2, %v8016_v26  ;;  %v7762_v26 = vrot.slane %v11468_v32, %v14827_v63 }
0x19d3   :  { %12713 = vmatprep.mubr.msk.bf16.mxu1 %vm14522_vm0, %v16686_v0 }
0x19d4   :  { %v7777_v42 = vrot.slane %v7762_v26, %v14813_v34 }
0x1a4a   :  { %v7671_v22 = vpop.f32.mrf.mxu1  ;;  %v15530_v40 = vpop.f32.mrf.mxu0 }
0x1a4b   :  { %v7672_v35 = vadd.f32 %v7671_v22, %v7500_v39 }
0x1a4c   :  { %v7673_v8 = vpop.f32.mrf.mxu1  ;;  %v12659_v28 = vpop.f32.mrf.mxu0 }
0x1a4d   :  { %v7674_v12 = vadd.f32 %v7673_v8, %v7504_v6  ;;  %v7713_v28 = vadd.f32 %v15530_v40, %v7508_v10  ;;  %v13949_v40 = vld [vmem:[#allocation7 + $0x68] ss:$12 sps:$4 sm:$0xff]  }
0x1a4e   :  { %v7675_v44 = vpop.f32.mrf.mxu1  ;;  %v7715_v14 = vpop.f32.mrf.mxu0  ;;  %v14356_v6 = vld [vmem:[%s16680_s17 + $0x68] sm:$0xff] }
0x1a50   :  { %v7676_v45 = vpop.f32.mrf.mxu1  ;;  %v12660_v41 = vpop.f32.mrf.mxu0 }
0x1a51   :  { %v13945_v41 = vld [vmem:[#allocation7 + $0x80] ss:$12 sps:$4 sm:$0xff]  }
0x1a6a   :  { %v7940_v30 = vpop.f32.mrf.mxu1  ;;  %v7981_v4 = vpop.f32.mrf.mxu0 }
0x1a6b   :  { %v7941_v15 = vadd.f32 %v7940_v30, %v7769_v59  ;;  %v7982_v62 = vadd.f32 %v7981_v4, %v7777_v42  ;;  %v13953_v4 = vld [vmem:[#allocation7 + $0x50] ss:$12 sps:$4 sm:$0xff]   ;;  %v15593_v42 = vld [vmem:[#allocation8 + $0x98] ss:$12 sps:$4 sm:$0xff]  }
0x1a6c   :  { %v7942_v50 = vpop.f32.mrf.mxu1  ;;  %v12679_v56 = vpop.f32.mrf.mxu0 }
0x1a6d   :  { %v7987_v16 = vadd.f32 %v7941_v15, %v7672_v35  ;;  %v7943_v2 = vadd.f32 %v7942_v50, %v7773_v57  ;;  %v13957_v15 = vld [vmem:[#allocation7 + $0x38] ss:$12 sps:$4 sm:$0xff]  }
0x1a6e   :  { %v7944_v37 = vpop.f32.mrf.mxu1  ;;  %v7984_v17 = vpop.f32.mrf.mxu0 }
0x1a6f   :  { %v11518_v5 = vmul.f32 -1.442695, %v7987_v16  ;;  %v7994_v19 = vadd.f32 %v7943_v2, %v7674_v12  ;;  %v13960_v17 = vld [vmem:[#allocation7 + $0x1c] ss:$12 sps:$4 sm:$0xff]   ;;  %v13961_v2 = vld [vmem:[#allocation7 + $0x20] ss:$12 sps:$4 sm:$0xff]  }
0x1a70   :  { %v7945_v23 = vpop.f32.mrf.mxu1  ;;  %v12680_v21 = vpop.f32.mrf.mxu0  ;;  %8451 = vmatprep.subr.bf16.mxu0 %v13960_v17  ;;  %v13965_v12 = vld [vmem:[#allocation7 + $0x8] ss:$12 sps:$4 sm:$0xff]  }
0x1a71   :  { %14230 = vpow2.f32 %v11518_v5  ;;  %v11519_v58 = vmul.f32 -1.442695, %v7994_v19  ;;  %v13958_v5 = vld [vmem:[#allocation7 + $0x18] ss:$12 sps:$4 sm:$0xff]   ;;  %v13962_v21 = vld [vmem:[#allocation7] ss:$12 sps:$4 sm:$0xff]  }
0x1a72   :  { %8452 = vmatpush1.bf16.msra.mxu0 %v13958_v5  ;;  %v13964_v23 = vld [vmem:[#allocation7 + $0x4] ss:$12 sps:$4 sm:$0xff]   ;;  %v15576_v19 = vld [vmem:[#allocation8 + $0xac] ss:$12 sps:$4 sm:$0xff]  }
0x1a73   :  { %14232 = vpow2.f32 %v11519_v58  ;;  %8453 = vmatprep.subr.bf16.mxu0 %v13964_v23 }
0x1a76   :  { %8454 = vmatpush1.bf16.msra.mxu0 %v13962_v21 }
0x1a77   :  { %8764 = vmatprep.subr.bf16.mxu0 %v15576_v19 }
0x1a7e   :  { %v14231_v18 = vpop.eup %14230 }
0x1a7f   :  { %v7991_v61 = vadd.f32 1.0, %v14231_v18  ;;  %v11551_v18 = vld [vmem:[%s16668_s5 + $0x1] ss:$0 sm:$0xff] }
0x1a80   :  { %v14233_v7 = vpop.eup %14232 }
0x1a81   :  { %14234 = vrcp.f32 %v7991_v61  ;;  %v7998_v11 = vadd.f32 1.0, %v14233_v7 }
0x1a82   :  { %v8116_v27 = vpop.f32.mrf.mxu1 }
0x1a83   :  { %v8117_v31 = vadd.f32 %v11532_v20, %v8116_v27  ;;  %14236 = vrcp.f32 %v7998_v11 }
0x1a84   :  { %v12695_v55 = vpop.f32.mrf.mxu1 }
0x1a86   :  { %v8119_v13 = vpop.f32.mrf.mxu1 }
0x1a87   :  { %v8120_v52 = vadd.f32 %v11532_v20, %v8119_v13  ;;  %v15583_v13 = vld [vmem:[#allocation8 + $0xa8] ss:$12 sps:$4 sm:$0xff]  }
0x1a88   :  { %v12696_v24 = vpop.f32.mrf.mxu1 }
0x1a89   :  { %v8138_v33 = vpack.c.bf16 %v8120_v52, %v8117_v31  ;;  %v15587_v52 = vld [vmem:[#allocation8 + $0x94] ss:$12 sps:$4 sm:$0xff]  }
0x1a8a   :  { %v8124_v25 = vpop.f32.mrf.mxu1 }
0x1a8b   :  { %12714 = vmatmul.mubr.msk.bf16.vlgmr.msra.gmra.mxu1 %vm284_vm3, %v8138_v33  ;;  %v8125_v36 = vadd.f32 %v11532_v20, %v8124_v25  ;;  %v15597_v25 = vld [vmem:[#allocation8 + $0x7c] ss:$12 sps:$4 sm:$0xff]  }
0x1a8c   :  { %v12699_v3 = vpop.f32.mrf.mxu1  ;;  %12717 = vmatprep.mubr.msk.bf16.mxu1 %vm14522_vm0, %v16686_v0  ;;  %12726 = vmatpush3.bf16.msra.mxu1 %v13937_v43  ;;  %v15591_v43 = vld [vmem:[#allocation8 + $0x90] ss:$12 sps:$4 sm:$0xff]  }
0x1a8d   :  { %12727 = vmatprep.subr.bf16.mxu1 %v16686_v0 }
0x1a8e   :  { %v14235_v22 = vpop.eup %14234  ;;  %v8127_v8 = vpop.f32.mrf.mxu1 }
0x1a8f   :  { %v8001_v44 = vmul.f32 %v14235_v22, %v7982_v62  ;;  %v8128_v14 = vadd.f32 %v11532_v20, %v8127_v8  ;;  %v15606_v62 = vld [vmem:[#allocation8 + $0x80] ss:$12 sps:$4 sm:$0xff]   ;;  %v15610_v22 = vld [vmem:[#allocation8 + $0x64] ss:$12 sps:$4 sm:$0xff]  }
0x1a90   :  { %v12700_v45 = vpop.f32.mrf.mxu1  ;;  %12728 = vmatpush3.bf16.msra.mxu1 %v13941_v9  ;;  %v14237_v35 = vpop.eup %14236  ;;  %v15604_v9 = vld [vmem:[#allocation8 + $0x78] ss:$12 sps:$4 sm:$0xff]  }
0x1a91   :  { %v8002_v32 = vadd.f32 %v8001_v44, %v7713_v28  ;;  %v8139_v46 = vpack.c.bf16 %v8128_v14, %v8125_v36  ;;  %12729 = vmatprep.subr.bf16.mxu1 %v16686_v0  ;;  %v8004_v57 = vsub.f32 1.0, %v14237_v35  ;;  %v8006_v16 = vmul.f32 %v14356_v6, %v14237_v35  ;;  %v15614_v44 = vld [vmem:[#allocation8 + $0x60] ss:$12 sps:$4 sm:$0xff]   ;;  %v15616_v14 = vld [vmem:[#allocation8 + $0x68] ss:$12 sps:$4 sm:$0xff]  }
0x1a92   :  { %v8132_v48 = vpop.f32.mrf.mxu1  ;;  %v15652_v35 = vld [vmem:[#allocation8 + $0x20] ss:$12 sps:$4 sm:$0xff]  }
0x1a93   :  { %14238 = vtanh.f32 %v8002_v32  ;;  %12718 = vmatmul.mubr.msk.bf16.gmra.mxu1 %vm284_vm3, %v8139_v46  ;;  %v8133_v39 = vadd.f32 %v11532_v20, %v8132_v48  ;;  %v15627_v48 = vld [vmem:[#allocation8 + $0x48] ss:$12 sps:$4 sm:$0xff]   ;;  %v8282_v6 = vld [vmem:[%s16675_s12] sm:$0x3f] }
0x1a94   :  { %v12703_v59 = vpop.f32.mrf.mxu1  ;;  %12721 = vmatprep.mubr.msk.bf16.mxu1 %vm14522_vm0, %v16686_v0  ;;  %12730 = vmatpush3.bf16.msra.mxu1 %v13945_v41  ;;  %v15620_v41 = vld [vmem:[#allocation8 + $0x4c] ss:$12 sps:$4 sm:$0xff]   ;;  %v8295_v17 = vrot.slane %v8282_v6, %v14762_v54  ;;  %v8291_v23 = vrot.slane %v8282_v6, %v14772_v60 }
0x1a95   :  { %12731 = vmatprep.subr.bf16.mxu1 %v16686_v0  ;;  %v8140_v47 = vpack.c.bf16 %v8133_v39, %v8133_v39  ;;  %v15629_v39 = vld [vmem:[#allocation8 + $0x50] ss:$12 sps:$4 sm:$0xff]  }
0x1a96   :  { %v8135_v49 = vpop.f32.mrf.mxu1 }
0x1a97   :  { %v15637_v49 = vld [vmem:[#allocation8 + $0x30] ss:$12 sps:$4 sm:$0xff]  }
0x1a98   :  { %v12704_v30 = vpop.f32.mrf.mxu1  ;;  %12732 = vmatpush3.bf16.msra.mxu1 %v13949_v40  ;;  %v15633_v40 = vld [vmem:[#allocation8 + $0x34] ss:$12 sps:$4 sm:$0xff]  }
0x1a99   :  { %12733 = vmatprep.subr.bf16.mxu1 %v16686_v0  ;;  %v15643_v30 = vld [vmem:[#allocation8 + $0x1c] ss:$12 sps:$4 sm:$0xff]  }
0x1a9b   :  { %12722 = vmatmul.mubr.msk.bf16.gmra.mxu1 %vm284_vm3, %v8140_v47  ;;  %v15639_v47 = vld [vmem:[#allocation8 + $0x38] ss:$12 sps:$4 sm:$0xff]  }
0x1a9c   :  { %12734 = vmatpush3.bf16.msra.mxu1 %v13953_v4  ;;  %12741 = vmatprep.mubr.msk.bf16.mxu1 %vm14522_vm0, %v16686_v0  ;;  %v15650_v4 = vld [vmem:[#allocation8 + $0x18] ss:$12 sps:$4 sm:$0xff]  }
0x1a9d   :  { %12735 = vmatprep.subr.bf16.mxu1 %v16686_v0 }
0x1aa0   :  { %v14239_v50 = vpop.eup %14238  ;;  %12736 = vmatpush3.bf16.msra.mxu1 %v13957_v15  ;;  %v15656_v15 = vld [vmem:[#allocation8 + $0x4] ss:$12 sps:$4 sm:$0xff]  }
0x1aa1   :  { %v8005_v56 = vmul.f32 %v14239_v50, %v8004_v57  ;;  %12737 = vmatprep.subr.bf16.mxu1 %v16686_v0  ;;  %v15660_v57 = vld [vmem:[#allocation8] ss:$12 sps:$4 sm:$0xff]   ;;  %v15662_v50 = vld [vmem:[#allocation8 + $0x8] ss:$12 sps:$4 sm:$0xff]  }
0x1aa3   :  { %v15569_v37 = vadd.f32 %v8006_v16, %v8005_v56  ;;  %v8287_v16 = vrot.slane %v8282_v6, %v14759_v53 }
0x1aa4   :  { %12738 = vmatpush3.bf16.msra.mxu1 %v13961_v2 }
0x1aa5   :  { %16789 = vst [vmem:[#allocation19_spill] sm:$0xff] %v15569_v37  ;;  %8008 = vst [vmem:[%s16680_s17 + $0x70] sm:$0xff] %v15569_v37  ;;  %12739 = vmatprep.subr.bf16.mxu1 %v16686_v0  ;;  %v15670_v56 = vpack.c.bf16 %v15569_v37, %v15569_v37 }
0x1aa8   :  { %12740 = vmatpush3.bf16.msra.mxu1 %v13965_v12 }
0x1aa9   :  { %12753 = vmatprep.subr.bf16.mxu1 %v16686_v0 }
0x1b4b   :  { %v8225_v58 = vpop.f32.mrf.mxu1 }
0x1b4c   :  { %v8226_v20 = vadd.f32 %v11551_v18, %v8225_v58  ;;  %v8302_v58 = vrot.slane %v8287_v16, %v14759_v53 }
0x1b4d   :  { %v12715_v61 = vpop.f32.mrf.mxu1 }
0x1b4f   :  { %v8228_v27 = vpop.f32.mrf.mxu1 }
0x1b50   :  { %v8229_v55 = vadd.f32 %v11551_v18, %v8228_v27 }
0x1b51   :  { %v12716_v26 = vpop.f32.mrf.mxu1 }
0x1b52   :  { %v8247_v31 = vpack.c.bf16 %v8229_v55, %v8226_v20  ;;  %v8306_v20 = vrot.slane %v8291_v23, %v14759_v53 }
0x1b53   :  { %v8233_v7 = vpop.f32.mrf.mxu1 }
0x1b54   :  { %8472 = vmatmul.mubr.bf16.vlgmr.msra.gmra.mxu0 %v8247_v31  ;;  %12742 = vmatmul.mubr.bf16.vlgmr.msra.gmra.mxu1 %v8247_v31  ;;  %v8234_v33 = vadd.f32 %v11551_v18, %v8233_v7 }
0x1b55   :  { %8765 = vmatpush1.bf16.msra.mxu0 %v15583_v13  ;;  %12754 = vmatpush3.bf16.msra.mxu1 %v15585_v29  ;;  %v12719_v24 = vpop.f32.mrf.mxu1 }
0x1b56   :  { %8766 = vmatprep.subr.bf16.mxu0 %v15587_v52  ;;  %12755 = vmatprep.subr.bf16.mxu1 %v16686_v0 }
0x1b57   :  { %v8236_v10 = vpop.f32.mrf.mxu1  ;;  %8481 = vmatprep.mubr.bf16.mxu0 %v16684_v1  ;;  %12745 = vmatprep.mubr.msk.bf16.mxu1 %vm14522_vm0, %v16686_v0 }
0x1b58   :  { %v8237_v11 = vadd.f32 %v11551_v18, %v8236_v10 }
0x1b59   :  { %8767 = vmatpush1.bf16.msra.mxu0 %v15591_v43  ;;  %12756 = vmatpush3.bf16.msra.mxu1 %v15593_v42  ;;  %v12720_v3 = vpop.f32.mrf.mxu1 }
0x1b5a   :  { %v8248_v36 = vpack.c.bf16 %v8237_v11, %v8234_v33  ;;  %8768 = vmatprep.subr.bf16.mxu0 %v15597_v25  ;;  %12757 = vmatprep.subr.bf16.mxu1 %v16686_v0 }
0x1b5b   :  { %v8241_v8 = vpop.f32.mrf.mxu1 }
0x1b5c   :  { %8482 = vmatmul.mubr.bf16.gmra.mxu0 %v8248_v36  ;;  %12746 = vmatmul.mubr.bf16.gmra.mxu1 %v8248_v36  ;;  %v8242_v28 = vadd.f32 %v11551_v18, %v8241_v8  ;;  %v15688_v18 = vrot.slane %v8295_v17, %v14759_v53 }
0x1b5d   :  { %8769 = vmatpush1.bf16.msra.mxu0 %v15604_v9  ;;  %12758 = vmatpush3.bf16.msra.mxu1 %v15606_v62  ;;  %v12723_v45 = vpop.f32.mrf.mxu1 }
0x1b5e   :  { %8770 = vmatprep.subr.bf16.mxu0 %v15610_v22  ;;  %12759 = vmatprep.subr.bf16.mxu1 %v16686_v0  ;;  %v8249_v46 = vpack.c.bf16 %v8242_v28, %v8242_v28 }
0x1b5f   :  { %v8244_v32 = vpop.f32.mrf.mxu1  ;;  %8491 = vmatprep.mubr.bf16.mxu0 %v16684_v1  ;;  %12749 = vmatprep.mubr.msk.bf16.mxu1 %vm14522_vm0, %v16686_v0 }
0x1b61   :  { %8771 = vmatpush1.bf16.msra.mxu0 %v15614_v44  ;;  %12760 = vmatpush3.bf16.msra.mxu1 %v15616_v14  ;;  %v12724_v59 = vpop.f32.mrf.mxu1 }
0x1b62   :  { %8772 = vmatprep.subr.bf16.mxu0 %v15620_v41  ;;  %12761 = vmatprep.subr.bf16.mxu1 %v16686_v0 }
0x1b64   :  { %8492 = vmatmul.mubr.bf16.gmra.mxu0 %v8249_v46  ;;  %12750 = vmatmul.mubr.bf16.gmra.mxu1 %v8249_v46 }
0x1b65   :  { %8773 = vmatpush1.bf16.msra.mxu0 %v15627_v48  ;;  %12762 = vmatpush3.bf16.msra.mxu1 %v15629_v39 }
0x1b66   :  { %8774 = vmatprep.subr.bf16.mxu0 %v15633_v40  ;;  %12763 = vmatprep.subr.bf16.mxu1 %v16686_v0 }
0x1b67   :  { %8796 = vmatprep.mubr.bf16.mxu0 %v16684_v1  ;;  %12769 = vmatprep.mubr.msk.bf16.mxu1 %vm14522_vm0, %v16686_v0 }
0x1b69   :  { %8775 = vmatpush1.bf16.msra.mxu0 %v15637_v49  ;;  %12764 = vmatpush3.bf16.msra.mxu1 %v15639_v47 }
0x1b6a   :  { %8776 = vmatprep.subr.bf16.mxu0 %v15643_v30  ;;  %12765 = vmatprep.subr.bf16.mxu1 %v16686_v0 }
0x1b6d   :  { %8777 = vmatpush1.bf16.msra.mxu0 %v15650_v4  ;;  %12766 = vmatpush3.bf16.msra.mxu1 %v15652_v35 }
0x1b6e   :  { %8778 = vmatprep.subr.bf16.mxu0 %v15656_v15  ;;  %12767 = vmatprep.subr.bf16.mxu1 %v16686_v0 }
0x1b71   :  { %8779 = vmatpush1.bf16.msra.mxu0 %v15660_v57  ;;  %12768 = vmatpush3.bf16.msra.mxu1 %v15662_v50 }
0x1b72   :  { %12773 = vmatprep.subr.bf16.mxu1 %v16686_v0 }
0x1b74   :  { %8797 = vmatmul.mubr.bf16.vlgmr.msra.gmra.mxu0 %v15670_v56  ;;  %12770 = vmatmul.mubr.bf16.vlgmr.msra.gmra.mxu1 %v15670_v56 }
0x1b75   :  { %9113 = vmatprep.mubr.bf16.mxu0 %v16684_v1  ;;  %12789 = vmatprep.mubr.msk.bf16.mxu1 %vm14522_vm0, %v16686_v0 }
0x1c14   :  { %v8473_v5 = vpop.f32.mrf.mxu0  ;;  %v15683_v2 = vpop.f32.mrf.mxu1 }
0x1c16   :  { %v8475_v21 = vpop.f32.mrf.mxu0  ;;  %v12743_v12 = vpop.f32.mrf.mxu1 }
0x1c18   :  { %v8477_v61 = vpop.f32.mrf.mxu0  ;;  %v8537_v27 = vpop.f32.mrf.mxu1 }
0x1c19   :  { %v15691_v55 = vadd.f32 %v8477_v61, %v8302_v58  ;;  %v15694_v26 = vadd.f32 %v8537_v27, %v15688_v18 }
0x1c1a   :  { %v8479_v31 = vpop.f32.mrf.mxu0  ;;  %v12744_v7 = vpop.f32.mrf.mxu1 }
0x1c1b   :  { %16790 = vst [vmem:[#allocation20_spill] sm:$0xff] %v15691_v55  ;;  %16791 = vst [vmem:[#allocation21_spill] sm:$0xff] %v15694_v26  ;;  %v15696_v24 = vadd.f32 %v8479_v31, %v8306_v20  ;;  %v15817_v26 = vld [vmem:[#allocation7 + $0xc8] ss:$12 sps:$4 sm:$0xff]   ;;  %v8868_v55 = vld [vmem:[%s16676_s13] sm:$0x3] }
0x1c1c   :  { %v8483_v33 = vpop.f32.mrf.mxu0  ;;  %v8542_v10 = vpop.f32.mrf.mxu1  ;;  %16822 = vst [vmem:[#allocation51_spill] sm:$0xff] %v15817_v26 }
0x1c1d   :  { %16792 = vst [vmem:[#allocation22_spill] sm:$0xff] %v15696_v24  ;;  %v15698_v11 = vadd.f32 %v8483_v33, %v8302_v58  ;;  %v15701_v3 = vadd.f32 %v8542_v10, %v15688_v18 }
0x1c1e   :  { %v8485_v36 = vpop.f32.mrf.mxu0  ;;  %v12747_v8 = vpop.f32.mrf.mxu1 }
0x1c1f   :  { %16793 = vst [vmem:[#allocation23_spill] sm:$0xff] %v15698_v11  ;;  %16794 = vst [vmem:[#allocation24_spill] sm:$0xff] %v15701_v3  ;;  %v15703_v28 = vadd.f32 %v8485_v36, %v8306_v20  ;;  %v15808_v3 = vld [vmem:[#allocation7 + $0xe0] ss:$12 sps:$4 sm:$0xff]  }
0x1c20   :  { %v8487_v45 = vpop.f32.mrf.mxu0  ;;  %v8545_v32 = vpop.f32.mrf.mxu1  ;;  %16819 = vst [vmem:[#allocation48_spill] sm:$0xff] %v15808_v3  ;;  %v15815_v11 = vld [vmem:[#allocation7 + $0xc0] ss:$12 sps:$4 sm:$0xff]  }
0x1c21   :  { %16795 = vst [vmem:[#allocation25_spill] sm:$0xff] %v15703_v28  ;;  %v15705_v46 = vadd.f32 %v8487_v45, %v8302_v58  ;;  %v15708_v59 = vadd.f32 %v8545_v32, %v15688_v18  ;;  %v8571_v32 = vld [vmem:[%s16675_s12] sm:$0x3f]  ;;  %16821 = vst [vmem:[#allocation50_spill] sm:$0xff] %v15815_v11 }
0x1c22   :  { %v8489_v6 = vpop.f32.mrf.mxu0  ;;  %v12748_v16 = vpop.f32.mrf.mxu1  ;;  %v15810_v28 = vld [vmem:[#allocation7 + $0xc4] ss:$12 sps:$4 sm:$0xff]  }
0x1c23   :  { %16796 = vst [vmem:[#allocation26_spill] sm:$0xff] %v15705_v46  ;;  %16797 = vst [vmem:[#allocation27_spill] sm:$0xff] %v15708_v59  ;;  %v15710_v17 = vadd.f32 %v8489_v6, %v8306_v20  ;;  %v8612_v6 = vrot.slane %v8571_v32, %v14813_v34  ;;  %v8476_v59 = vadd.f32 %v8475_v21, %v8306_v20 }
0x1c24   :  { %v8493_v23 = vpop.f32.mrf.mxu0  ;;  %v8550_v12 = vpop.f32.mrf.mxu1  ;;  %v8535_v21 = vadd.f32 %v15683_v2, %v15688_v18  ;;  %v15749_v2 = vld [vmem:[#allocation7 + $0x154] ss:$12 sps:$4 sm:$0xff]   ;;  %16820 = vst [vmem:[#allocation49_spill] sm:$0xff] %v15810_v28 }
0x1c25   :  { %16798 = vst [vmem:[#allocation28_spill] sm:$0xff] %v15710_v17  ;;  %v15712_v61 = vadd.f32 %v8493_v23, %v8302_v58  ;;  %v15715_v27 = vadd.f32 %v8550_v12, %v15688_v18  ;;  %v15724_v16 = vrot.slane %v8612_v6, %v14813_v34  ;;  %v8616_v23 = vrot.slane %v8571_v32, %v14819_v38 }
0x1c26   :  { %v8495_v31 = vpop.f32.mrf.mxu0  ;;  %v12751_v7 = vpop.f32.mrf.mxu1  ;;  %v16805_v18 = vmov 0.0   ;;  %v15834_v38 = vrot.slane %v8868_v55, %v14813_v34 }
0x1c27   :  { %16799 = vst [vmem:[#allocation29_spill] sm:$0xff] %v15712_v61  ;;  %16800 = vst [vmem:[#allocation30_spill] sm:$0xff] %v15715_v27  ;;  %v15717_v33 = vadd.f32 %v8495_v31, %v8306_v20  ;;  %v8474_v7 = vadd.f32 %v8473_v5, %v8302_v58 }
0x1c28   :  { %v8497_v10 = vpop.f32.mrf.mxu0  ;;  %v8553_v36 = vpop.f32.mrf.mxu1  ;;  %16802 = vst [vmem:[#allocation32_spill] sm:$0xff] %v15724_v16 }
0x1c29   :  { %16801 = vst [vmem:[#allocation31_spill] sm:$0xff] %v15717_v33  ;;  %v15729_v10 = vrot.slane %v8616_v23, %v14813_v34  ;;  %v8620_v23 = vrot.slane %v8571_v32, %v14827_v63 }
0x1c2a   :  { %v8498_v8 = vpop.f32.mrf.mxu0  ;;  %v12752_v45 = vpop.f32.mrf.mxu1 }
0x1c2b   :  { %16803 = vst [vmem:[#allocation33_spill] sm:$0xff] %v15729_v10 }
0x1c34   :  { %v8798_v12 = vpop.f32.mrf.mxu0  ;;  %v8839_v51 = vpop.f32.mrf.mxu1 }
0x1c35   :  { %v8799_v31 = vadd.f32 %v8798_v12, %v15724_v16  ;;  %v15831_v16 = vrot.slane %v8868_v55, %v14759_v53  ;;  %v15848_v55 = vld [vmem:[#allocation8 + $0x158] ss:$12 sps:$4 sm:$0xff]  }
0x1c36   :  { %v8800_v36 = vpop.f32.mrf.mxu0  ;;  %v12771_v8 = vpop.f32.mrf.mxu1  ;;  %16826 = vst [vmem:[#allocation55_spill] sm:$0xff] %v15848_v55 }
0x1c37   :  { %v8845_v45 = vadd.f32 %v8799_v31, %v8474_v7  ;;  %v8801_v33 = vadd.f32 %v8800_v36, %v15729_v10  ;;  %v15734_v7 = vrot.slane %v8620_v23, %v14813_v34  ;;  %v15743_v36 = vld [vmem:[#allocation7 + $0x16c] ss:$12 sps:$4 sm:$0xff]   ;;  %v15747_v8 = vld [vmem:[#allocation7 + $0x170] ss:$12 sps:$4 sm:$0xff]  }
0x1c38   :  { %v8802_v1 = vpop.f32.mrf.mxu0  ;;  %v8842_v0 = vpop.f32.mrf.mxu1  ;;  %9081 = vmatprep.subr.bf16.mxu0 %v15743_v36  ;;  %12774 = vmatpush3.bf16.msra.mxu1 %v15747_v8  ;;  %v15757_v23 = vld [vmem:[#allocation7 + $0x150] ss:$12 sps:$4 sm:$0xff]  }
0x1c39   :  { %v11607_v27 = vmul.f32 -1.442695, %v8845_v45  ;;  %v8852_v17 = vadd.f32 %v8801_v33, %v8476_v59  ;;  %16804 = vst [vmem:[#allocation34_spill] sm:$0xff] %v15734_v7  ;;  %v8840_v1 = vadd.f32 %v8839_v51, %v15734_v7  ;;  %v15745_v51 = vld [vmem:[#allocation7 + $0x168] ss:$12 sps:$4 sm:$0xff]   ;;  %12775 = vmatprep.subr.bf16.mxu1 %v16805_v18 }
0x1c3a   :  { %v8803_v6 = vpop.f32.mrf.mxu0  ;;  %v12772_v61 = vpop.f32.mrf.mxu1  ;;  %9082 = vmatpush1.bf16.msra.mxu0 %v15745_v51  ;;  %v15821_v7 = vld [vmem:[#allocation8 + $0x16c] ss:$12 sps:$4 sm:$0xff]  }
0x1c3b   :  { %14240 = vpow2.f32 %v11607_v27  ;;  %v11608_v46 = vmul.f32 -1.442695, %v8852_v17  ;;  %9083 = vmatprep.subr.bf16.mxu0 %v15749_v2  ;;  %16823 = vst [vmem:[#allocation52_spill] sm:$0xff] %v15821_v7 }
0x1c3d   :  { %14242 = vpow2.f32 %v11608_v46 }
0x1c3e   :  { %9084 = vmatpush1.bf16.msra.mxu0 %v15757_v23 }
0x1c48   :  { %v14241_v5 = vpop.eup %14240 }
0x1c49   :  { %v8849_v58 = vadd.f32 1.0, %v14241_v5 }
0x1c4a   :  { %v14243_v12 = vpop.eup %14242 }
0x1c4b   :  { %14244 = vrcp.f32 %v8849_v58  ;;  %v8856_v0 = vadd.f32 1.0, %v14243_v12  ;;  %v15759_v12 = vld [vmem:[#allocation7 + $0x158] ss:$12 sps:$4 sm:$0xff]  }
0x1c4c   :  { %12776 = vmatpush3.bf16.msra.mxu1 %v15759_v12 }
0x1c4d   :  { %14246 = vrcp.f32 %v8856_v0  ;;  %v15763_v0 = vld [vmem:[#allocation7 + $0x13c] ss:$12 sps:$4 sm:$0xff]   ;;  %12777 = vmatprep.subr.bf16.mxu1 %v16805_v18 }
0x1c4e   :  { %9085 = vmatprep.subr.bf16.mxu0 %v15763_v0 }
0x1c58   :  { %v14245_v31 = vpop.eup %14244 }
0x1c59   :  { %v8859_v20 = vmul.f32 %v14245_v31, %v8840_v1  ;;  %v15766_v1 = vld [vmem:[#allocation7 + $0x138] ss:$12 sps:$4 sm:$0xff]   ;;  %v15768_v31 = vld [vmem:[#allocation7 + $0x140] ss:$12 sps:$4 sm:$0xff]  }
0x1c5a   :  { %v14247_v46 = vpop.eup %14246  ;;  %16806 = vst [vmem:[#allocation35_spill] sm:$0xff] %v15766_v1  ;;  %16807 = vst [vmem:[#allocation36_spill] sm:$0xff] %v15768_v31  ;;  %9086 = vmatpush1.bf16.msra.mxu0 %v15766_v1  ;;  %12778 = vmatpush3.bf16.msra.mxu1 %v15768_v31 }
0x1c5b   :  { %v8860_v59 = vadd.f32 %v8859_v20, %v8535_v21  ;;  %v8862_v17 = vsub.f32 1.0, %v14247_v46  ;;  %v8864_v33 = vmul.f32 %v14247_v46, %v15569_v37  ;;  %v15773_v21 = vld [vmem:[#allocation7 + $0x124] ss:$12 sps:$4 sm:$0xff]   ;;  %12779 = vmatprep.subr.bf16.mxu1 %v16805_v18  ;;  %v15776_v20 = vld [vmem:[#allocation7 + $0x120] ss:$12 sps:$4 sm:$0xff]  }
0x1c5c   :  { %16808 = vst [vmem:[#allocation37_spill] sm:$0xff] %v15773_v21  ;;  %16809 = vst [vmem:[#allocation38_spill] sm:$0xff] %v15776_v20  ;;  %9087 = vmatprep.subr.bf16.mxu0 %v15773_v21  ;;  %v15783_v46 = vld [vmem:[#allocation7 + $0x10c] ss:$12 sps:$4 sm:$0xff]  }
0x1c5d   :  { %14248 = vtanh.f32 %v8860_v59  ;;  %v15778_v59 = vld [vmem:[#allocation7 + $0x128] ss:$12 sps:$4 sm:$0xff]   ;;  %16811 = vst [vmem:[#allocation40_spill] sm:$0xff] %v15783_v46 }
0x1c5e   :  { %16810 = vst [vmem:[#allocation39_spill] sm:$0xff] %v15778_v59  ;;  %9088 = vmatpush1.bf16.msra.mxu0 %v15776_v20  ;;  %12780 = vmatpush3.bf16.msra.mxu1 %v15778_v59 }
0x1c5f   :  { %12781 = vmatprep.subr.bf16.mxu1 %v16805_v18  ;;  %9089 = vmatprep.subr.bf16.mxu0 %v15783_v46 }
0x1c6a   :  { %v14249_v61 = vpop.eup %14248 }
0x1c6b   :  { %v8863_v27 = vmul.f32 %v14249_v61, %v8862_v17  ;;  %v15786_v17 = vld [vmem:[#allocation7 + $0x108] ss:$12 sps:$4 sm:$0xff]   ;;  %v15788_v61 = vld [vmem:[#allocation7 + $0x110] ss:$12 sps:$4 sm:$0xff]  }
0x1c6c   :  { %16812 = vst [vmem:[#allocation41_spill] sm:$0xff] %v15786_v17  ;;  %16813 = vst [vmem:[#allocation42_spill] sm:$0xff] %v15788_v61  ;;  %9090 = vmatpush1.bf16.msra.mxu0 %v15786_v17  ;;  %12782 = vmatpush3.bf16.msra.mxu1 %v15788_v61 }
0x1c6d   :  { %v15740_v32 = vadd.f32 %v8864_v33, %v8863_v27  ;;  %v15793_v27 = vld [vmem:[#allocation7 + $0xf4] ss:$12 sps:$4 sm:$0xff]   ;;  %12783 = vmatprep.subr.bf16.mxu1 %v16805_v18  ;;  %v15796_v33 = vld [vmem:[#allocation7 + $0xf0] ss:$12 sps:$4 sm:$0xff]  }
0x1c6e   :  { %16814 = vst [vmem:[#allocation43_spill] sm:$0xff] %v15793_v27  ;;  %16815 = vst [vmem:[#allocation44_spill] sm:$0xff] %v15796_v33  ;;  %9091 = vmatprep.subr.bf16.mxu0 %v15793_v27 }
0x1c6f   :  { %8869 = vadd.xlane.f32.xlu0 %v15740_v32 }
0x1c70   :  { %9092 = vmatpush1.bf16.msra.mxu0 %v15796_v33 }
0x1cf8   :  { %v8870_v45 = vpop.xlane.xlu0 %8869 }
0x1cf9   :  { %v8871_v6 = vmul.f32 0.0078125, %v8870_v45  ;;  %v15798_v45 = vld [vmem:[#allocation7 + $0xf8] ss:$12 sps:$4 sm:$0xff]  }
0x1cfa   :  { %16816 = vst [vmem:[#allocation45_spill] sm:$0xff] %v15798_v45  ;;  %12784 = vmatpush3.bf16.msra.mxu1 %v15798_v45 }
0x1cfb   :  { %v8872_v5 = vsub.f32 %v15740_v32, %v8871_v6  ;;  %v15803_v6 = vld [vmem:[#allocation7 + $0xdc] ss:$12 sps:$4 sm:$0xff]   ;;  %12785 = vmatprep.subr.bf16.mxu1 %v16805_v18 }
0x1cfc   :  { %16817 = vst [vmem:[#allocation46_spill] sm:$0xff] %v15803_v6  ;;  %9093 = vmatprep.subr.bf16.mxu0 %v15803_v6 }
0x1cfd   :  { %v8873_v58 = vmul.f32 %v8872_v5, %v8872_v5 }
0x1cfe   :  { %12786 = vmatpush3.bf16.msra.mxu1 %v15808_v3 }
0x1cff   :  { %8874 = vadd.xlane.f32.xlu1 %v8873_v58  ;;  %v15806_v58 = vld [vmem:[#allocation7 + $0xd8] ss:$12 sps:$4 sm:$0xff]   ;;  %12787 = vmatprep.subr.bf16.mxu1 %v16805_v18 }
0x1d00   :  { %16818 = vst [vmem:[#allocation47_spill] sm:$0xff] %v15806_v58  ;;  %9094 = vmatpush1.bf16.msra.mxu0 %v15806_v58 }
0x1d01   :  { %9095 = vmatprep.subr.bf16.mxu0 %v15810_v28 }
0x1d02   :  { %12788 = vmatpush3.bf16.msra.mxu1 %v15817_v26 }
0x1d03   :  { %12793 = vmatprep.subr.bf16.mxu1 %v16805_v18 }
0x1d04   :  { %9096 = vmatpush1.bf16.msra.mxu0 %v15815_v11  ;;  %v15842_v11 = vld [vmem:[#allocation8 + $0x154] ss:$12 sps:$4 sm:$0xff]  }
0x1d05   :  { %9350 = vmatprep.subr.bf16.mxu0 %v15821_v7  ;;  %16824 = vst [vmem:[#allocation53_spill] sm:$0xff] %v15842_v11 }
0x1d88   :  { %v8875_v37 = vpop.xlane.xlu1 %8874 }
0x1d89   :  { %v8876_v24 = vmul.f32 0.0078125, %v8875_v37  ;;  %v15838_v37 = vld [vmem:[#allocation8 + $0x168] ss:$12 sps:$4 sm:$0xff]  }
0x1d8b   :  { %v8877_v10 = vadd.f32 1e-05, %v8876_v24  ;;  %v15840_v24 = vld [vmem:[#allocation8 + $0x170] ss:$12 sps:$4 sm:$0xff]  }
0x1d8d   :  { %14250 = vrsqrt.f32 %v8877_v10 }
0x1d9a   :  { %v14251_v54 = vpop.eup %14250 }
0x1d9b   :  { %v8879_v63 = vmul.f32 %v14251_v54, %v8872_v5  ;;  %v15846_v54 = vld [vmem:[#allocation8 + $0x150] ss:$12 sps:$4 sm:$0xff]  }
0x1d9c   :  { %16825 = vst [vmem:[#allocation54_spill] sm:$0xff] %v15846_v54  ;;  %v15865_v5 = vld [vmem:[#allocation8 + $0x124] ss:$12 sps:$4 sm:$0xff]  }
0x1d9d   :  { %v8884_v60 = vmul.f32 %v15831_v16, %v8879_v63  ;;  %v16828_v63 = vmov 0   ;;  %16831 = vst [vmem:[#allocation59_spill] sm:$0xff] %v15865_v5 }
0x1d9f   :  { %v8889_v7 = vadd.f32 %v15834_v38, %v8884_v60  ;;  %v15852_v60 = vld [vmem:[#allocation8 + $0x13c] ss:$12 sps:$4 sm:$0xff]  }
0x1da0   :  { %16827 = vst [vmem:[#allocation56_spill] sm:$0xff] %v15852_v60 }
0x1da1   :  { %v8890_v26 = vmax.f32 %v8889_v7, 0.0  ;;  %v15861_v7 = vld [vmem:[#allocation8 + $0x140] ss:$12 sps:$4 sm:$0xff]  }
0x1da2   :  { %16830 = vst [vmem:[#allocation58_spill] sm:$0xff] %v15861_v7 }
0x1da3   :  { %v8891_v10 = vpack.c.bf16 %v8890_v26, %v8890_v26  ;;  %v15859_v26 = vld [vmem:[#allocation8 + $0x138] ss:$12 sps:$4 sm:$0xff]  }
0x1da4   :  { %16829 = vst [vmem:[#allocation57_spill] sm:$0xff] %v15859_v26 }
0x1da5   :  { %9114 = vmatmul.mubr.bf16.vlgmr.msra.gmra.mxu0 %v8891_v10  ;;  %12790 = vmatmul.mubr.bf16.vlgmr.msra.gmra.mxu1 %v8891_v10  ;;  %v15869_v10 = vld [vmem:[#allocation8 + $0x120] ss:$12 sps:$4 sm:$0xff]  }
0x1da6   :  { %9351 = vmatpush1.bf16.msra.mxu0 %v15838_v37  ;;  %12794 = vmatpush3.bf16.msra.mxu1 %v15840_v24  ;;  %16832 = vst [vmem:[#allocation60_spill] sm:$0xff] %v15869_v10 }
0x1da7   :  { %9352 = vmatprep.subr.bf16.mxu0 %v15842_v11  ;;  %12795 = vmatprep.subr.bf16.mxu1 %v16805_v18  ;;  %v15871_v11 = vld [vmem:[#allocation8 + $0x128] ss:$12 sps:$4 sm:$0xff]  }
0x1da8   :  { %9382 = vmatprep.mubr.bf16.mxu0 %v16828_v63  ;;  %12809 = vmatprep.mubr.msk.bf16.mxu1 %vm14522_vm0, %v16805_v18  ;;  %16833 = vst [vmem:[#allocation61_spill] sm:$0xff] %v15871_v11 }
0x1daa   :  { %9353 = vmatpush1.bf16.msra.mxu0 %v15846_v54  ;;  %12796 = vmatpush3.bf16.msra.mxu1 %v15848_v55  ;;  %v15875_v55 = vld [vmem:[#allocation8 + $0x10c] ss:$12 sps:$4 sm:$0xff]   ;;  %v15881_v54 = vld [vmem:[#allocation8 + $0x110] ss:$12 sps:$4 sm:$0xff]  }
0x1dab   :  { %9354 = vmatprep.subr.bf16.mxu0 %v15852_v60  ;;  %12797 = vmatprep.subr.bf16.mxu1 %v16805_v18  ;;  %16834 = vst [vmem:[#allocation62_spill] sm:$0xff] %v15875_v55  ;;  %v15879_v60 = vld [vmem:[#allocation8 + $0x108] ss:$12 sps:$4 sm:$0xff]   ;;  %16836 = vst [vmem:[#allocation64_spill] sm:$0xff] %v15881_v54 }
0x1dac   :  { %16835 = vst [vmem:[#allocation63_spill] sm:$0xff] %v15879_v60 }
0x1dae   :  { %9355 = vmatpush1.bf16.msra.mxu0 %v15859_v26  ;;  %12798 = vmatpush3.bf16.msra.mxu1 %v15861_v7  ;;  %v15885_v7 = vld [vmem:[#allocation8 + $0xf4] ss:$12 sps:$4 sm:$0xff]   ;;  %v15891_v26 = vld [vmem:[#allocation8 + $0xf8] ss:$12 sps:$4 sm:$0xff]  }
0x1daf   :  { %9356 = vmatprep.subr.bf16.mxu0 %v15865_v5  ;;  %12799 = vmatprep.subr.bf16.mxu1 %v16805_v18  ;;  %16837 = vst [vmem:[#allocation65_spill] sm:$0xff] %v15885_v7  ;;  %v15889_v5 = vld [vmem:[#allocation8 + $0xf0] ss:$12 sps:$4 sm:$0xff]  }
0x1db2   :  { %9357 = vmatpush1.bf16.msra.mxu0 %v15869_v10  ;;  %12800 = vmatpush3.bf16.msra.mxu1 %v15871_v11  ;;  %v15895_v11 = vld [vmem:[#allocation8 + $0xdc] ss:$12 sps:$4 sm:$0xff]   ;;  %v15901_v10 = vld [vmem:[#allocation8 + $0xe0] ss:$12 sps:$4 sm:$0xff]  }
0x1db3   :  { %9358 = vmatprep.subr.bf16.mxu0 %v15875_v55  ;;  %12801 = vmatprep.subr.bf16.mxu1 %v16805_v18  ;;  %v15899_v55 = vld [vmem:[#allocation8 + $0xd8] ss:$12 sps:$4 sm:$0xff]  }
0x1db6   :  { %9359 = vmatpush1.bf16.msra.mxu0 %v15879_v60  ;;  %12802 = vmatpush3.bf16.msra.mxu1 %v15881_v54  ;;  %v15905_v54 = vld [vmem:[#allocation8 + $0xc4] ss:$12 sps:$4 sm:$0xff]   ;;  %v15911_v60 = vld [vmem:[#allocation8 + $0xc8] ss:$12 sps:$4 sm:$0xff]  }
0x1db7   :  { %9360 = vmatprep.subr.bf16.mxu0 %v15885_v7  ;;  %12803 = vmatprep.subr.bf16.mxu1 %v16805_v18  ;;  %v15909_v7 = vld [vmem:[#allocation8 + $0xc0] ss:$12 sps:$4 sm:$0xff]  }
0x1dba   :  { %9361 = vmatpush1.bf16.msra.mxu0 %v15889_v5  ;;  %12804 = vmatpush3.bf16.msra.mxu1 %v15891_v26 }
0x1dbb   :  { %9362 = vmatprep.subr.bf16.mxu0 %v15895_v11  ;;  %12805 = vmatprep.subr.bf16.mxu1 %v16805_v18 }
0x1dbe   :  { %9363 = vmatpush1.bf16.msra.mxu0 %v15899_v55  ;;  %12806 = vmatpush3.bf16.msra.mxu1 %v15901_v10 }
0x1dbf   :  { %9364 = vmatprep.subr.bf16.mxu0 %v15905_v54  ;;  %12807 = vmatprep.subr.bf16.mxu1 %v16805_v18 }
0x1dc2   :  { %9365 = vmatpush1.bf16.msra.mxu0 %v15909_v7  ;;  %12808 = vmatpush3.bf16.msra.mxu1 %v15911_v60 }
0x1dc3   :  { %9456 = vmatprep.subr.bf16.mxu0 %v15576_v19  ;;  %12813 = vmatprep.subr.bf16.mxu1 %v16805_v18  ;;  %v9455_v19 = vpack.c.bf16 %v15740_v32, %v15740_v32 }
0x1dc5   :  { %9383 = vmatmul.mubr.bf16.vlgmr.msra.gmra.mxu0 %v15670_v56  ;;  %12810 = vmatmul.mubr.bf16.vlgmr.msra.gmra.mxu1 %v15670_v56 }
0x1dc6   :  { %9457 = vmatpush1.bf16.msra.mxu0 %v15583_v13  ;;  %12814 = vmatpush3.bf16.msra.mxu1 %v15585_v29  ;;  %v16838_v13 = vld [vmem:[#allocation50_spill] sm:$0xff]  ;;  %v16839_v29 = vld [vmem:[#allocation51_spill] sm:$0xff] }
0x1dc7   :  { %9458 = vmatprep.subr.bf16.mxu0 %v15587_v52  ;;  %12815 = vmatprep.subr.bf16.mxu1 %v16805_v18  ;;  %v16840_v52 = vld [vmem:[#allocation52_spill] sm:$0xff] }
0x1dc8   :  { %9488 = vmatprep.mubr.bf16.mxu0 %v16828_v63  ;;  %12829 = vmatprep.mubr.msk.bf16.mxu1 %vm14522_vm0, %v16805_v18 }
0x1dca   :  { %9459 = vmatpush1.bf16.msra.mxu0 %v15591_v43  ;;  %12816 = vmatpush3.bf16.msra.mxu1 %v15593_v42 }
0x1dcb   :  { %9460 = vmatprep.subr.bf16.mxu0 %v15597_v25  ;;  %12817 = vmatprep.subr.bf16.mxu1 %v16805_v18 }
0x1dce   :  { %9461 = vmatpush1.bf16.msra.mxu0 %v15604_v9  ;;  %12818 = vmatpush3.bf16.msra.mxu1 %v15606_v62 }
0x1dcf   :  { %9462 = vmatprep.subr.bf16.mxu0 %v15610_v22  ;;  %12819 = vmatprep.subr.bf16.mxu1 %v16805_v18 }
0x1dd2   :  { %9463 = vmatpush1.bf16.msra.mxu0 %v15614_v44  ;;  %12820 = vmatpush3.bf16.msra.mxu1 %v15616_v14 }
0x1dd3   :  { %9464 = vmatprep.subr.bf16.mxu0 %v15620_v41  ;;  %12821 = vmatprep.subr.bf16.mxu1 %v16805_v18 }
0x1dd6   :  { %9465 = vmatpush1.bf16.msra.mxu0 %v15627_v48  ;;  %12822 = vmatpush3.bf16.msra.mxu1 %v15629_v39 }
0x1dd7   :  { %9466 = vmatprep.subr.bf16.mxu0 %v15633_v40  ;;  %12823 = vmatprep.subr.bf16.mxu1 %v16805_v18 }
0x1dda   :  { %9467 = vmatpush1.bf16.msra.mxu0 %v15637_v49  ;;  %12824 = vmatpush3.bf16.msra.mxu1 %v15639_v47 }
0x1ddb   :  { %9468 = vmatprep.subr.bf16.mxu0 %v15643_v30  ;;  %12825 = vmatprep.subr.bf16.mxu1 %v16805_v18 }
0x1dde   :  { %9469 = vmatpush1.bf16.msra.mxu0 %v15650_v4  ;;  %12826 = vmatpush3.bf16.msra.mxu1 %v15652_v35 }
0x1ddf   :  { %9470 = vmatprep.subr.bf16.mxu0 %v15656_v15  ;;  %12827 = vmatprep.subr.bf16.mxu1 %v16805_v18 }
0x1de2   :  { %9471 = vmatpush1.bf16.msra.mxu0 %v15660_v57  ;;  %12828 = vmatpush3.bf16.msra.mxu1 %v15662_v50 }
0x1de3   :  { %9573 = vmatprep.subr.bf16.mxu0 %v15743_v36  ;;  %12833 = vmatprep.subr.bf16.mxu1 %v16805_v18 }
0x1de5   :  { %9489 = vmatmul.mubr.bf16.vlgmr.msra.gmra.mxu0 %v9455_v19  ;;  %12830 = vmatmul.mubr.bf16.vlgmr.msra.gmra.mxu1 %v9455_v19 }
0x1de6   :  { %9574 = vmatpush1.bf16.msra.mxu0 %v15745_v51  ;;  %12834 = vmatpush3.bf16.msra.mxu1 %v15747_v8 }
0x1de7   :  { %9575 = vmatprep.subr.bf16.mxu0 %v15749_v2  ;;  %12835 = vmatprep.subr.bf16.mxu1 %v16805_v18 }
0x1de8   :  { %9605 = vmatprep.mubr.bf16.mxu0 %v16828_v63  ;;  %12849 = vmatprep.mubr.msk.bf16.mxu1 %vm14522_vm0, %v16805_v18 }
0x1dea   :  { %9576 = vmatpush1.bf16.msra.mxu0 %v15757_v23  ;;  %12836 = vmatpush3.bf16.msra.mxu1 %v15759_v12 }
0x1deb   :  { %9577 = vmatprep.subr.bf16.mxu0 %v15763_v0  ;;  %12837 = vmatprep.subr.bf16.mxu1 %v16805_v18 }
0x1dee   :  { %9578 = vmatpush1.bf16.msra.mxu0 %v15766_v1  ;;  %12838 = vmatpush3.bf16.msra.mxu1 %v15768_v31 }
0x1def   :  { %9579 = vmatprep.subr.bf16.mxu0 %v15773_v21  ;;  %12839 = vmatprep.subr.bf16.mxu1 %v16805_v18 }
0x1df2   :  { %9580 = vmatpush1.bf16.msra.mxu0 %v15776_v20  ;;  %12840 = vmatpush3.bf16.msra.mxu1 %v15778_v59 }
0x1df3   :  { %9581 = vmatprep.subr.bf16.mxu0 %v15783_v46  ;;  %12841 = vmatprep.subr.bf16.mxu1 %v16805_v18 }
0x1df6   :  { %9582 = vmatpush1.bf16.msra.mxu0 %v15786_v17  ;;  %12842 = vmatpush3.bf16.msra.mxu1 %v15788_v61 }
0x1df7   :  { %9583 = vmatprep.subr.bf16.mxu0 %v15793_v27  ;;  %12843 = vmatprep.subr.bf16.mxu1 %v16805_v18 }
0x1dfa   :  { %9584 = vmatpush1.bf16.msra.mxu0 %v15796_v33  ;;  %12844 = vmatpush3.bf16.msra.mxu1 %v15798_v45 }
0x1dfb   :  { %9585 = vmatprep.subr.bf16.mxu0 %v15803_v6  ;;  %12845 = vmatprep.subr.bf16.mxu1 %v16805_v18  ;;  %v16842_v6 = vld [vmem:[#allocation17_spill] sm:$0xff] }
0x1dfe   :  { %9586 = vmatpush1.bf16.msra.mxu0 %v15806_v58  ;;  %12846 = vmatpush3.bf16.msra.mxu1 %v15808_v3  ;;  %v16841_v58 = vld [vmem:[#allocation15_spill] sm:$0xff] }
0x1dff   :  { %9587 = vmatprep.subr.bf16.mxu0 %v15810_v28  ;;  %12847 = vmatprep.subr.bf16.mxu1 %v16805_v18  ;;  %v11609_v28 = vld [vmem:[%s16675_s12 + $0x6] sm:$0x3f] }
0x1e00   :  { %v9202_v45 = vrot.slane %v11609_v28, %v16842_v6 }
0x1e02   :  { %9588 = vmatpush1.bf16.msra.mxu0 %v16838_v13  ;;  %12848 = vmatpush3.bf16.msra.mxu1 %v16839_v29  ;;  %v8929_v13 = vrot.slane %v11609_v28, %v14759_v53  ;;  %v9198_v29 = vrot.slane %v11609_v28, %v14813_v34 }
0x1e03   :  { %9655 = vmatprep.subr.bf16.mxu0 %v16840_v52  ;;  %12853 = vmatprep.subr.bf16.mxu1 %v16805_v18  ;;  %v8933_v52 = vrot.slane %v11609_v28, %v16841_v58 }
0x1e04   :  { %v16001_v33 = vrot.slane %v8929_v13, %v14759_v53 }
0x1e06   :  { %16843 = vst [vmem:[#allocation15_spill] sm:$0xff] %v16001_v33 }
0x1e65   :  { %v9115_v43 = vpop.f32.mrf.mxu0  ;;  %v9156_v42 = vpop.f32.mrf.mxu1 }
0x1e66   :  { %v9116_v27 = vadd.f32 %v9115_v43, %v16001_v33 }
0x1e67   :  { %v9117_v25 = vpop.f32.mrf.mxu0  ;;  %v12791_v9 = vpop.f32.mrf.mxu1 }
0x1e68   :  { %v16004_v9 = vrot.slane %v9198_v29, %v14813_v34 }
0x1e69   :  { %v9119_v62 = vpop.f32.mrf.mxu0  ;;  %v9159_v56 = vpop.f32.mrf.mxu1 }
0x1e6a   :  { %16844 = vst [vmem:[#allocation17_spill] sm:$0xff] %v16004_v9  ;;  %v16010_v62 = vrot.slane %v9202_v45, %v14813_v34 }
0x1e6b   :  { %v9120_v19 = vpop.f32.mrf.mxu0  ;;  %v12792_v3 = vpop.f32.mrf.mxu1 }
0x1e6c   :  { %v16007_v3 = vrot.slane %v8933_v52, %v14759_v53 }
0x1e6e   :  { %v9118_v13 = vadd.f32 %v9117_v25, %v16007_v3 }
0x1e85   :  { %v9384_v56 = vpop.f32.mrf.mxu0  ;;  %v9425_v19 = vpop.f32.mrf.mxu1 }
0x1e86   :  { %v9385_v58 = vadd.f32 %v9384_v56, %v16004_v9  ;;  %v16845_v56 = vld [vmem:[#allocation18_spill] sm:$0xff] }
0x1e87   :  { %v9386_v61 = vpop.f32.mrf.mxu0  ;;  %v12811_v6 = vpop.f32.mrf.mxu1  ;;  %v9206_v9 = vrot.slane %v11609_v28, %v16845_v56  ;;  %v16850_v56 = vld [vmem:[#allocation33_spill] sm:$0xff] }
0x1e88   :  { %v9431_v17 = vadd.f32 %v9385_v58, %v9116_v27  ;;  %v9387_v29 = vadd.f32 %v9386_v61, %v16010_v62  ;;  %v16846_v6 = vld [vmem:[#allocation14_spill] sm:$0xff]  ;;  %v16848_v61 = vld [vmem:[#allocation32_spill] sm:$0xff] }
0x1e89   :  { %v9388_v46 = vpop.f32.mrf.mxu0  ;;  %v9428_v59 = vpop.f32.mrf.mxu1  ;;  %v8937_v33 = vrot.slane %v11609_v28, %v16846_v6  ;;  %v16019_v27 = vrot.slane %v9206_v9, %v14813_v34 }
0x1e8a   :  { %v11658_v52 = vmul.f32 -1.442695, %v9431_v17  ;;  %v9438_v20 = vadd.f32 %v9387_v29, %v9118_v13  ;;  %v16849_v13 = vld [vmem:[#allocation20_spill] sm:$0xff] }
0x1e8b   :  { %v9389_v21 = vpop.f32.mrf.mxu0  ;;  %v12812_v45 = vpop.f32.mrf.mxu1  ;;  %16847 = vst [vmem:[#allocation18_spill] sm:$0xff] %v16019_v27  ;;  %v16022_v59 = vrot.slane %v8937_v33, %v14759_v53 }
0x1e8c   :  { %14252 = vpow2.f32 %v11658_v52  ;;  %v11659_v31 = vmul.f32 -1.442695, %v9438_v20 }
0x1e8d   :  { %v9157_v28 = vadd.f32 %v9156_v42, %v16022_v59 }
0x1e8e   :  { %14254 = vpow2.f32 %v11659_v31 }
0x1e99   :  { %v14253_v1 = vpop.eup %14252 }
0x1e9a   :  { %v9435_v43 = vadd.f32 1.0, %v14253_v1  ;;  %v9426_v1 = vadd.f32 %v9425_v19, %v16019_v27 }
0x1e9b   :  { %v14255_v25 = vpop.eup %14254 }
0x1e9c   :  { %14256 = vrcp.f32 %v9435_v43  ;;  %v9442_v17 = vadd.f32 1.0, %v14255_v25 }
0x1e9e   :  { %14258 = vrcp.f32 %v9442_v17  ;;  %v16852_v17 = vld [vmem:[#allocation19_spill] sm:$0xff] }
0x1ea5   :  { %v9490_v46 = vpop.f32.mrf.mxu0  ;;  %v9531_v21 = vpop.f32.mrf.mxu1 }
0x1ea6   :  { %v9491_v20 = vadd.f32 %v9490_v46, %v16848_v61  ;;  %v16851_v46 = vld [vmem:[#allocation22_spill] sm:$0xff] }
0x1ea7   :  { %v9492_v31 = vpop.f32.mrf.mxu0  ;;  %v12831_v58 = vpop.f32.mrf.mxu1 }
0x1ea8   :  { %v9537_v29 = vadd.f32 %v9491_v20, %v16849_v13  ;;  %v9493_v6 = vadd.f32 %v9492_v31, %v16850_v56 }
0x1ea9   :  { %v14257_v52 = vpop.eup %14256  ;;  %v9494_v45 = vpop.f32.mrf.mxu0 }
0x1eaa   :  { %v9534_v9 = vpop.f32.mrf.mxu1  ;;  %v9445_v43 = vmul.f32 %v14257_v52, %v9426_v1  ;;  %v11660_v33 = vmul.f32 -1.442695, %v9537_v29  ;;  %v9544_v58 = vadd.f32 %v9493_v6, %v16851_v46 }
0x1eab   :  { %v9495_v34 = vpop.f32.mrf.mxu0  ;;  %v14259_v20 = vpop.eup %14258 }
0x1eac   :  { %v12832_v25 = vpop.f32.mrf.mxu1  ;;  %v9446_v53 = vadd.f32 %v9445_v43, %v9157_v28  ;;  %14260 = vpow2.f32 %v11660_v33  ;;  %v11661_v19 = vmul.f32 -1.442695, %v9544_v58  ;;  %v9448_v42 = vsub.f32 1.0, %v14259_v20  ;;  %v16853_v28 = vld [vmem:[#allocation34_spill] sm:$0xff]  ;;  %v16854_v33 = vld [vmem:[#allocation21_spill] sm:$0xff] }
0x1ead   :  { %v9450_v29 = vmul.f32 %v14259_v20, %v16852_v17  ;;  %v9532_v9 = vadd.f32 %v9531_v21, %v16853_v28 }
0x1eae   :  { %14262 = vtanh.f32 %v9446_v53 }
0x1eaf   :  { %14264 = vpow2.f32 %v11661_v19 }
0x1eb9   :  { %v14261_v13 = vpop.eup %14260 }
0x1eba   :  { %v9541_v27 = vadd.f32 1.0, %v14261_v13 }
0x1ebb   :  { %v14263_v45 = vpop.eup %14262 }
0x1ebc   :  { %14266 = vrcp.f32 %v9541_v27  ;;  %v9449_v1 = vmul.f32 %v14263_v45, %v9448_v42  ;;  %v14265_v34 = vpop.eup %14264 }
0x1ebd   :  { %v9548_v31 = vadd.f32 1.0, %v14265_v34 }
0x1ebe   :  { %v16031_v52 = vadd.f32 %v9450_v29, %v9449_v1 }
0x1ebf   :  { %14268 = vrcp.f32 %v9548_v31 }
0x1ec9   :  { %v14267_v53 = vpop.eup %14266 }
0x1eca   :  { %v9551_v43 = vmul.f32 %v14267_v53, %v9532_v9 }
0x1ecc   :  { %v9552_v6 = vadd.f32 %v9551_v43, %v16854_v33  ;;  %v14269_v25 = vpop.eup %14268  ;;  %v16855_v33 = vld [vmem:[#allocation53_spill] sm:$0xff] }
0x1ecd   :  { %v9554_v46 = vsub.f32 1.0, %v14269_v25  ;;  %v9556_v27 = vmul.f32 %v14269_v25, %v15740_v32  ;;  %v16857_v25 = vld [vmem:[#allocation55_spill] sm:$0xff] }
0x1ece   :  { %14270 = vtanh.f32 %v9552_v6  ;;  %v16856_v6 = vld [vmem:[#allocation54_spill] sm:$0xff] }
0x1edb   :  { %v14271_v58 = vpop.eup %14270 }
0x1edc   :  { %v9555_v19 = vmul.f32 %v14271_v58, %v9554_v46  ;;  %v16858_v46 = vld [vmem:[#allocation56_spill] sm:$0xff]  ;;  %v16859_v58 = vld [vmem:[#allocation57_spill] sm:$0xff] }
0x1ede   :  { %v16036_v13 = vadd.f32 %v9556_v27, %v9555_v19  ;;  %v16860_v19 = vld [vmem:[#allocation58_spill] sm:$0xff]  ;;  %v16861_v27 = vld [vmem:[#allocation59_spill] sm:$0xff] }
0x1ee0   :  { %9558 = vadd.xlane.f32.xlu0 %v16036_v13 }
0x1f69   :  { %v9559_v20 = vpop.xlane.xlu0 %9558 }
0x1f6a   :  { %v9560_v42 = vmul.f32 0.0078125, %v9559_v20  ;;  %v16862_v20 = vld [vmem:[#allocation60_spill] sm:$0xff] }
0x1f6c   :  { %v9561_v21 = vsub.f32 %v16036_v13, %v9560_v42  ;;  %v16863_v42 = vld [vmem:[#allocation61_spill] sm:$0xff] }
0x1f6e   :  { %v9562_v45 = vmul.f32 %v9561_v21, %v9561_v21 }
0x1f70   :  { %9563 = vadd.xlane.f32.xlu1 %v9562_v45  ;;  %v16865_v45 = vld [vmem:[#allocation63_spill] sm:$0xff] }
0x1ff9   :  { %v9564_v1 = vpop.xlane.xlu1 %9563 }
0x1ffa   :  { %v9565_v17 = vmul.f32 0.0078125, %v9564_v1  ;;  %v16866_v1 = vld [vmem:[#allocation64_spill] sm:$0xff] }
0x1ffc   :  { %v9566_v29 = vadd.f32 1e-05, %v9565_v17  ;;  %v16867_v17 = vld [vmem:[#allocation65_spill] sm:$0xff] }
0x1ffe   :  { %14272 = vrsqrt.f32 %v9566_v29  ;;  %v9654_v29 = vpack.c.bf16 %v16031_v52, %v16031_v52 }
0x200b   :  { %v14273_v34 = vpop.eup %14272 }
0x200c   :  { %v9568_v31 = vmul.f32 %v14273_v34, %v9561_v21  ;;  %v16864_v21 = vld [vmem:[#allocation62_spill] sm:$0xff] }
0x200d   :  { %v16077_v34 = vld [vmem:[#allocation8 + $0xac] ss:$12 sps:$4 sm:$0xff]  }
0x200e   :  { %v9569_v9 = vmul.f32 %v9568_v31, %v15831_v16  ;;  %v16081_v31 = vld [vmem:[#allocation8 + $0xa8] ss:$12 sps:$4 sm:$0xff]  }
0x2010   :  { %v9570_v32 = vadd.f32 %v9569_v9, %v15834_v38  ;;  %v16084_v9 = vld [vmem:[#allocation8 + $0xb0] ss:$12 sps:$4 sm:$0xff]  }
0x2011   :  { %16868 = vst [vmem:[#allocation14_spill] sm:$0xff] %v16084_v9 }
0x2012   :  { %v9571_v53 = vmax.f32 %v9570_v32, 0.0  ;;  %v16087_v32 = vld [vmem:[#allocation8 + $0x94] ss:$12 sps:$4 sm:$0xff]  }
0x2013   :  { %16869 = vst [vmem:[#allocation32_spill] sm:$0xff] %v16087_v32 }
0x2014   :  { %v9572_v43 = vpack.c.bf16 %v9571_v53, %v9571_v53  ;;  %v16094_v53 = vld [vmem:[#allocation8 + $0x90] ss:$12 sps:$4 sm:$0xff]  }
0x2016   :  { %9606 = vmatmul.mubr.bf16.vlgmr.msra.gmra.mxu0 %v9572_v43  ;;  %12850 = vmatmul.mubr.bf16.vlgmr.msra.gmra.mxu1 %v9572_v43  ;;  %v16097_v43 = vld [vmem:[#allocation8 + $0x98] ss:$12 sps:$4 sm:$0xff]  }
0x2017   :  { %9656 = vmatpush1.bf16.msra.mxu0 %v15838_v37  ;;  %12854 = vmatpush3.bf16.msra.mxu1 %v15840_v24 }
0x2018   :  { %9657 = vmatprep.subr.bf16.mxu0 %v16855_v33  ;;  %12855 = vmatprep.subr.bf16.mxu1 %v16805_v18 }
0x2019   :  { %9687 = vmatprep.mubr.bf16.mxu0 %v16828_v63  ;;  %12869 = vmatprep.mubr.msk.bf16.mxu1 %vm14522_vm0, %v16805_v18 }
0x201b   :  { %9658 = vmatpush1.bf16.msra.mxu0 %v16856_v6  ;;  %12856 = vmatpush3.bf16.msra.mxu1 %v16857_v25 }
0x201c   :  { %9659 = vmatprep.subr.bf16.mxu0 %v16858_v46  ;;  %12857 = vmatprep.subr.bf16.mxu1 %v16805_v18 }
0x201f   :  { %9660 = vmatpush1.bf16.msra.mxu0 %v16859_v58  ;;  %12858 = vmatpush3.bf16.msra.mxu1 %v16860_v19 }
0x2020   :  { %9661 = vmatprep.subr.bf16.mxu0 %v16861_v27  ;;  %12859 = vmatprep.subr.bf16.mxu1 %v16805_v18 }
0x2023   :  { %9662 = vmatpush1.bf16.msra.mxu0 %v16862_v20  ;;  %12860 = vmatpush3.bf16.msra.mxu1 %v16863_v42 }
0x2024   :  { %9663 = vmatprep.subr.bf16.mxu0 %v16864_v21  ;;  %12861 = vmatprep.subr.bf16.mxu1 %v16805_v18 }
0x2027   :  { %9664 = vmatpush1.bf16.msra.mxu0 %v16865_v45  ;;  %12862 = vmatpush3.bf16.msra.mxu1 %v16866_v1 }
0x2028   :  { %9665 = vmatprep.subr.bf16.mxu0 %v16867_v17  ;;  %12863 = vmatprep.subr.bf16.mxu1 %v16805_v18 }
0x202b   :  { %9666 = vmatpush1.bf16.msra.mxu0 %v15889_v5  ;;  %12864 = vmatpush3.bf16.msra.mxu1 %v15891_v26 }
0x202c   :  { %9667 = vmatprep.subr.bf16.mxu0 %v15895_v11  ;;  %12865 = vmatprep.subr.bf16.mxu1 %v16805_v18 }
0x202f   :  { %9668 = vmatpush1.bf16.msra.mxu0 %v15899_v55  ;;  %12866 = vmatpush3.bf16.msra.mxu1 %v15901_v10 }
0x2030   :  { %9669 = vmatprep.subr.bf16.mxu0 %v15905_v54  ;;  %12867 = vmatprep.subr.bf16.mxu1 %v16805_v18 }
0x2033   :  { %9670 = vmatpush1.bf16.msra.mxu0 %v15909_v7  ;;  %12868 = vmatpush3.bf16.msra.mxu1 %v15911_v60 }
0x2034   :  { %9761 = vmatprep.subr.bf16.mxu0 %v16077_v34  ;;  %12873 = vmatprep.subr.bf16.mxu1 %v16805_v18 }
0x2036   :  { %9688 = vmatmul.mubr.bf16.vlgmr.msra.gmra.mxu0 %v9654_v29  ;;  %12870 = vmatmul.mubr.bf16.vlgmr.msra.gmra.mxu1 %v9654_v29  ;;  %v16100_v29 = vld [vmem:[#allocation8 + $0x7c] ss:$12 sps:$4 sm:$0xff]  }
0x2037   :  { %9762 = vmatpush1.bf16.msra.mxu0 %v16081_v31  ;;  %12874 = vmatpush3.bf16.msra.mxu1 %v16084_v9  ;;  %v16107_v9 = vld [vmem:[#allocation8 + $0x80] ss:$12 sps:$4 sm:$0xff]  }
0x2038   :  { %9763 = vmatprep.subr.bf16.mxu0 %v16087_v32  ;;  %12875 = vmatprep.subr.bf16.mxu1 %v16805_v18  ;;  %v16104_v32 = vld [vmem:[#allocation8 + $0x78] ss:$12 sps:$4 sm:$0xff]  }
0x2039   :  { %9793 = vmatprep.mubr.bf16.mxu0 %v16828_v63  ;;  %12889 = vmatprep.mubr.msk.bf16.mxu1 %vm14522_vm0, %v16805_v18 }
0x203b   :  { %9764 = vmatpush1.bf16.msra.mxu0 %v16094_v53  ;;  %12876 = vmatpush3.bf16.msra.mxu1 %v16097_v43 }
0x203c   :  { %9765 = vmatprep.subr.bf16.mxu0 %v16100_v29  ;;  %12877 = vmatprep.subr.bf16.mxu1 %v16805_v18 }
0x203f   :  { %9766 = vmatpush1.bf16.msra.mxu0 %v16104_v32  ;;  %12878 = vmatpush3.bf16.msra.mxu1 %v16107_v9 }
0x2040   :  { %9767 = vmatprep.subr.bf16.mxu0 %v15610_v22  ;;  %12879 = vmatprep.subr.bf16.mxu1 %v16805_v18  ;;  %v9760_v22 = vpack.c.bf16 %v16036_v13, %v16036_v13 }
0x2043   :  { %9768 = vmatpush1.bf16.msra.mxu0 %v15614_v44  ;;  %12880 = vmatpush3.bf16.msra.mxu1 %v15616_v14  ;;  %v16870_v44 = vld [vmem:[#allocation35_spill] sm:$0xff]  ;;  %v16871_v14 = vld [vmem:[#allocation36_spill] sm:$0xff] }
0x2044   :  { %9769 = vmatprep.subr.bf16.mxu0 %v15620_v41  ;;  %12881 = vmatprep.subr.bf16.mxu1 %v16805_v18  ;;  %v16872_v41 = vld [vmem:[#allocation37_spill] sm:$0xff] }
0x2047   :  { %9770 = vmatpush1.bf16.msra.mxu0 %v15627_v48  ;;  %12882 = vmatpush3.bf16.msra.mxu1 %v15629_v39  ;;  %v16873_v48 = vld [vmem:[#allocation38_spill] sm:$0xff]  ;;  %v16874_v39 = vld [vmem:[#allocation39_spill] sm:$0xff] }
0x2048   :  { %9771 = vmatprep.subr.bf16.mxu0 %v15633_v40  ;;  %12883 = vmatprep.subr.bf16.mxu1 %v16805_v18  ;;  %v16875_v40 = vld [vmem:[#allocation40_spill] sm:$0xff] }
0x204b   :  { %9772 = vmatpush1.bf16.msra.mxu0 %v15637_v49  ;;  %12884 = vmatpush3.bf16.msra.mxu1 %v15639_v47  ;;  %v16876_v49 = vld [vmem:[#allocation41_spill] sm:$0xff]  ;;  %v16877_v47 = vld [vmem:[#allocation42_spill] sm:$0xff] }
0x204c   :  { %9773 = vmatprep.subr.bf16.mxu0 %v15643_v30  ;;  %12885 = vmatprep.subr.bf16.mxu1 %v16805_v18  ;;  %v16878_v30 = vld [vmem:[#allocation43_spill] sm:$0xff] }
0x204f   :  { %9774 = vmatpush1.bf16.msra.mxu0 %v15650_v4  ;;  %12886 = vmatpush3.bf16.msra.mxu1 %v15652_v35  ;;  %v16879_v4 = vld [vmem:[#allocation44_spill] sm:$0xff]  ;;  %v16880_v35 = vld [vmem:[#allocation45_spill] sm:$0xff] }
0x2050   :  { %9775 = vmatprep.subr.bf16.mxu0 %v15656_v15  ;;  %12887 = vmatprep.subr.bf16.mxu1 %v16805_v18  ;;  %v16881_v15 = vld [vmem:[#allocation46_spill] sm:$0xff] }
0x2053   :  { %9776 = vmatpush1.bf16.msra.mxu0 %v15660_v57  ;;  %12888 = vmatpush3.bf16.msra.mxu1 %v15662_v50  ;;  %v16882_v57 = vld [vmem:[#allocation47_spill] sm:$0xff]  ;;  %v16883_v50 = vld [vmem:[#allocation48_spill] sm:$0xff] }
0x2054   :  { %9878 = vmatprep.subr.bf16.mxu0 %v15743_v36  ;;  %12893 = vmatprep.subr.bf16.mxu1 %v16805_v18  ;;  %v16884_v36 = vld [vmem:[#allocation49_spill] sm:$0xff] }
0x2056   :  { %9794 = vmatmul.mubr.bf16.vlgmr.msra.gmra.mxu0 %v9760_v22  ;;  %12890 = vmatmul.mubr.bf16.vlgmr.msra.gmra.mxu1 %v9760_v22 }
0x2057   :  { %9879 = vmatpush1.bf16.msra.mxu0 %v15745_v51  ;;  %12894 = vmatpush3.bf16.msra.mxu1 %v15747_v8  ;;  %v16885_v51 = vld [vmem:[#allocation50_spill] sm:$0xff]  ;;  %v16886_v8 = vld [vmem:[#allocation51_spill] sm:$0xff] }
0x2058   :  { %9880 = vmatprep.subr.bf16.mxu0 %v15749_v2  ;;  %12895 = vmatprep.subr.bf16.mxu1 %v16805_v18  ;;  %v16887_v2 = vld [vmem:[#allocation52_spill] sm:$0xff] }
0x2059   :  { %9910 = vmatprep.mubr.bf16.mxu0 %v16828_v63  ;;  %12909 = vmatprep.mubr.msk.bf16.mxu1 %vm14522_vm0, %v16805_v18 }
0x205b   :  { %9881 = vmatpush1.bf16.msra.mxu0 %v15757_v23  ;;  %12896 = vmatpush3.bf16.msra.mxu1 %v15759_v12 }
0x205c   :  { %9882 = vmatprep.subr.bf16.mxu0 %v15763_v0  ;;  %12897 = vmatprep.subr.bf16.mxu1 %v16805_v18 }
0x205f   :  { %9883 = vmatpush1.bf16.msra.mxu0 %v16870_v44  ;;  %12898 = vmatpush3.bf16.msra.mxu1 %v16871_v14 }
0x2060   :  { %9884 = vmatprep.subr.bf16.mxu0 %v16872_v41  ;;  %12899 = vmatprep.subr.bf16.mxu1 %v16805_v18 }
0x2063   :  { %9885 = vmatpush1.bf16.msra.mxu0 %v16873_v48  ;;  %12900 = vmatpush3.bf16.msra.mxu1 %v16874_v39 }
0x2064   :  { %9886 = vmatprep.subr.bf16.mxu0 %v16875_v40  ;;  %12901 = vmatprep.subr.bf16.mxu1 %v16805_v18 }
0x2067   :  { %9887 = vmatpush1.bf16.msra.mxu0 %v16876_v49  ;;  %12902 = vmatpush3.bf16.msra.mxu1 %v16877_v47  ;;  %v16888_v49 = vld [vmem:[#allocation15_spill] sm:$0xff] }
0x2068   :  { %9888 = vmatprep.subr.bf16.mxu0 %v16878_v30  ;;  %12903 = vmatprep.subr.bf16.mxu1 %v16805_v18  ;;  %v16889_v30 = vld [vmem:[#allocation17_spill] sm:$0xff] }
0x206b   :  { %9889 = vmatpush1.bf16.msra.mxu0 %v16879_v4  ;;  %12904 = vmatpush3.bf16.msra.mxu1 %v16880_v35 }
0x206c   :  { %9890 = vmatprep.subr.bf16.mxu0 %v16881_v15  ;;  %12905 = vmatprep.subr.bf16.mxu1 %v16805_v18 }
0x206f   :  { %9891 = vmatpush1.bf16.msra.mxu0 %v16882_v57  ;;  %12906 = vmatpush3.bf16.msra.mxu1 %v16883_v50 }
0x2070   :  { %9892 = vmatprep.subr.bf16.mxu0 %v16884_v36  ;;  %12907 = vmatprep.subr.bf16.mxu1 %v16805_v18 }
0x2073   :  { %9893 = vmatpush1.bf16.msra.mxu0 %v16885_v51  ;;  %12908 = vmatpush3.bf16.msra.mxu1 %v16886_v8 }
0x2074   :  { %9960 = vmatprep.subr.bf16.mxu0 %v16887_v2  ;;  %12913 = vmatprep.subr.bf16.mxu1 %v16805_v18 }
0x20d6   :  { %v9607_v23 = vpop.f32.mrf.mxu0  ;;  %v9648_v12 = vpop.f32.mrf.mxu1 }
0x20d7   :  { %v9608_v47 = vadd.f32 %v9607_v23, %v16888_v49 }
0x20d8   :  { %v9609_v0 = vpop.f32.mrf.mxu0  ;;  %v12851_v22 = vpop.f32.mrf.mxu1 }
0x20d9   :  { %v9610_v57 = vadd.f32 %v9609_v0, %v16007_v3 }
0x20da   :  { %v9611_v44 = vpop.f32.mrf.mxu0  ;;  %v9651_v14 = vpop.f32.mrf.mxu1 }
0x20dc   :  { %v9612_v41 = vpop.f32.mrf.mxu0  ;;  %v12852_v48 = vpop.f32.mrf.mxu1 }
0x20f6   :  { %v9689_v39 = vpop.f32.mrf.mxu0  ;;  %v9730_v40 = vpop.f32.mrf.mxu1 }
0x20f7   :  { %v9690_v4 = vadd.f32 %v9689_v39, %v16889_v30 }
0x20f8   :  { %v9691_v35 = vpop.f32.mrf.mxu0  ;;  %v12871_v15 = vpop.f32.mrf.mxu1 }
0x20f9   :  { %v9736_v50 = vadd.f32 %v9690_v4, %v9608_v47  ;;  %v9692_v36 = vadd.f32 %v9691_v35, %v16010_v62  ;;  %v16890_v35 = vld [vmem:[#allocation18_spill] sm:$0xff] }
0x20fa   :  { %v9693_v51 = vpop.f32.mrf.mxu0  ;;  %v9733_v8 = vpop.f32.mrf.mxu1 }
0x20fb   :  { %v11662_v2 = vmul.f32 -1.442695, %v9736_v50  ;;  %v9743_v22 = vadd.f32 %v9692_v36, %v9610_v57  ;;  %v9731_v51 = vadd.f32 %v9730_v40, %v16890_v35  ;;  %v16891_v50 = vld [vmem:[#allocation23_spill] sm:$0xff]  ;;  %v9649_v8 = vadd.f32 %v9648_v12, %v16022_v59 }
0x20fc   :  { %v9694_v44 = vpop.f32.mrf.mxu0  ;;  %v12872_v14 = vpop.f32.mrf.mxu1 }
0x20fd   :  { %14274 = vpow2.f32 %v11662_v2  ;;  %v11663_v41 = vmul.f32 -1.442695, %v9743_v22 }
0x20ff   :  { %14276 = vpow2.f32 %v11663_v41 }
0x210a   :  { %v14275_v48 = vpop.eup %14274 }
0x210b   :  { %v9740_v23 = vadd.f32 1.0, %v14275_v48 }
0x210c   :  { %v14277_v39 = vpop.eup %14276 }
0x210d   :  { %14278 = vrcp.f32 %v9740_v23  ;;  %v9747_v49 = vadd.f32 1.0, %v14277_v39 }
0x210f   :  { %14280 = vrcp.f32 %v9747_v49 }
0x2116   :  { %v9795_v30 = vpop.f32.mrf.mxu0  ;;  %v9836_v15 = vpop.f32.mrf.mxu1 }
0x2117   :  { %v9796_v0 = vadd.f32 %v9795_v30, %v16848_v61  ;;  %v16892_v30 = vld [vmem:[#allocation25_spill] sm:$0xff] }
0x2118   :  { %v9797_v47 = vpop.f32.mrf.mxu0  ;;  %v12891_v4 = vpop.f32.mrf.mxu1 }
0x2119   :  { %v9842_v57 = vadd.f32 %v9796_v0, %v16891_v50  ;;  %v9798_v41 = vadd.f32 %v9797_v47, %v16850_v56 }
0x211a   :  { %v14279_v36 = vpop.eup %14278  ;;  %v9799_v2 = vpop.f32.mrf.mxu0 }
0x211b   :  { %v9839_v22 = vpop.f32.mrf.mxu1  ;;  %v9750_v44 = vmul.f32 %v14279_v36, %v9731_v51  ;;  %v11664_v14 = vmul.f32 -1.442695, %v9842_v57  ;;  %v9849_v4 = vadd.f32 %v9798_v41, %v16892_v30 }
0x211c   :  { %v9800_v48 = vpop.f32.mrf.mxu0  ;;  %v14281_v0 = vpop.eup %14280 }
0x211d   :  { %v12892_v23 = vpop.f32.mrf.mxu1  ;;  %v9751_v39 = vadd.f32 %v9750_v44, %v9649_v8  ;;  %14282 = vpow2.f32 %v11664_v14  ;;  %v11665_v40 = vmul.f32 -1.442695, %v9849_v4  ;;  %v9753_v12 = vsub.f32 1.0, %v14281_v0  ;;  %v16893_v14 = vld [vmem:[#allocation24_spill] sm:$0xff] }
0x211e   :  { %v9755_v49 = vmul.f32 %v14281_v0, %v16031_v52  ;;  %v9837_v8 = vadd.f32 %v9836_v15, %v16853_v28 }
0x211f   :  { %14284 = vtanh.f32 %v9751_v39 }
0x2120   :  { %14286 = vpow2.f32 %v11665_v40 }
0x212a   :  { %v14283_v50 = vpop.eup %14282 }
0x212b   :  { %v9846_v35 = vadd.f32 1.0, %v14283_v50 }
0x212c   :  { %v14285_v2 = vpop.eup %14284 }
0x212d   :  { %14288 = vrcp.f32 %v9846_v35  ;;  %v9754_v51 = vmul.f32 %v14285_v2, %v9753_v12  ;;  %v14287_v47 = vpop.eup %14286 }
0x212e   :  { %v9853_v36 = vadd.f32 1.0, %v14287_v47 }
0x212f   :  { %v16180_v57 = vadd.f32 %v9755_v49, %v9754_v51 }
0x2130   :  { %14290 = vrcp.f32 %v9853_v36 }
0x213a   :  { %v14289_v22 = vpop.eup %14288 }
0x213b   :  { %v9856_v44 = vmul.f32 %v14289_v22, %v9837_v8  ;;  %v16310_v22 = vld [vmem:[#allocation7 + $0x150] ss:$12 sps:$4 sm:$0xff]  }
0x213d   :  { %v9857_v41 = vadd.f32 %v9856_v44, %v16893_v14  ;;  %v14291_v48 = vpop.eup %14290  ;;  %v16313_v44 = vld [vmem:[#allocation7 + $0x158] ss:$12 sps:$4 sm:$0xff]   ;;  %v16316_v14 = vld [vmem:[#allocation7 + $0x13c] ss:$12 sps:$4 sm:$0xff]  }
0x213e   :  { %v9859_v23 = vsub.f32 1.0, %v14291_v48  ;;  %v9861_v35 = vmul.f32 %v14291_v48, %v16036_v13  ;;  %16896 = vst [vmem:[#allocation20_spill] sm:$0xff] %v16316_v14  ;;  %v16323_v48 = vld [vmem:[#allocation7 + $0x140] ss:$12 sps:$4 sm:$0xff]  }
0x213f   :  { %14292 = vtanh.f32 %v9857_v41  ;;  %v16320_v41 = vld [vmem:[#allocation7 + $0x138] ss:$12 sps:$4 sm:$0xff]   ;;  %16898 = vst [vmem:[#allocation22_spill] sm:$0xff] %v16323_v48 }
0x2140   :  { %16897 = vst [vmem:[#allocation33_spill] sm:$0xff] %v16320_v41 }
0x214c   :  { %v14293_v39 = vpop.eup %14292 }
0x214d   :  { %v9860_v30 = vmul.f32 %v14293_v39, %v9859_v23  ;;  %v16326_v23 = vld [vmem:[#allocation7 + $0x124] ss:$12 sps:$4 sm:$0xff]   ;;  %v16330_v39 = vld [vmem:[#allocation7 + $0x120] ss:$12 sps:$4 sm:$0xff]  }
0x214e   :  { %16899 = vst [vmem:[#allocation19_spill] sm:$0xff] %v16326_v23  ;;  %16900 = vst [vmem:[#allocation34_spill] sm:$0xff] %v16330_v39 }
0x214f   :  { %v16185_v4 = vadd.f32 %v9861_v35, %v9860_v30  ;;  %v16333_v30 = vld [vmem:[#allocation7 + $0x128] ss:$12 sps:$4 sm:$0xff]   ;;  %v16336_v35 = vld [vmem:[#allocation7 + $0x10c] ss:$12 sps:$4 sm:$0xff]  }
0x2150   :  { %16901 = vst [vmem:[#allocation21_spill] sm:$0xff] %v16333_v30  ;;  %16902 = vst [vmem:[#allocation53_spill] sm:$0xff] %v16336_v35 }
0x2151   :  { %9863 = vadd.xlane.f32.xlu0 %v16185_v4 }
0x21da   :  { %v9864_v52 = vpop.xlane.xlu0 %9863 }
0x21db   :  { %v9865_v40 = vmul.f32 0.0078125, %v9864_v52  ;;  %v16340_v52 = vld [vmem:[#allocation7 + $0x108] ss:$12 sps:$4 sm:$0xff]  }
0x21dc   :  { %16903 = vst [vmem:[#allocation54_spill] sm:$0xff] %v16340_v52 }
0x21dd   :  { %v9866_v15 = vsub.f32 %v16185_v4, %v9865_v40  ;;  %v16343_v40 = vld [vmem:[#allocation7 + $0x110] ss:$12 sps:$4 sm:$0xff]  }
0x21de   :  { %16904 = vst [vmem:[#allocation55_spill] sm:$0xff] %v16343_v40 }
0x21df   :  { %v9867_v0 = vmul.f32 %v9866_v15, %v9866_v15 }
0x21e1   :  { %9868 = vadd.xlane.f32.xlu1 %v9867_v0  ;;  %v16350_v0 = vld [vmem:[#allocation7 + $0xf0] ss:$12 sps:$4 sm:$0xff]  }
0x21e2   :  { %16906 = vst [vmem:[#allocation57_spill] sm:$0xff] %v16350_v0 }
0x226a   :  { %v9869_v50 = vpop.xlane.xlu1 %9868 }
0x226b   :  { %v9870_v12 = vmul.f32 0.0078125, %v9869_v50  ;;  %v16353_v50 = vld [vmem:[#allocation7 + $0xf8] ss:$12 sps:$4 sm:$0xff]  }
0x226c   :  { %16907 = vst [vmem:[#allocation58_spill] sm:$0xff] %v16353_v50 }
0x226d   :  { %v9871_v2 = vadd.f32 1e-05, %v9870_v12  ;;  %v16356_v12 = vld [vmem:[#allocation7 + $0xdc] ss:$12 sps:$4 sm:$0xff]  }
0x226e   :  { %16908 = vst [vmem:[#allocation59_spill] sm:$0xff] %v16356_v12 }
0x226f   :  { %14294 = vrsqrt.f32 %v9871_v2  ;;  %v16360_v2 = vld [vmem:[#allocation7 + $0xd8] ss:$12 sps:$4 sm:$0xff]  }
0x2270   :  { %16909 = vst [vmem:[#allocation60_spill] sm:$0xff] %v16360_v2 }
0x227c   :  { %v14295_v51 = vpop.eup %14294 }
0x227d   :  { %v9873_v49 = vmul.f32 %v14295_v51, %v9866_v15  ;;  %v16346_v15 = vld [vmem:[#allocation7 + $0xf4] ss:$12 sps:$4 sm:$0xff]  }
0x227e   :  { %16905 = vst [vmem:[#allocation56_spill] sm:$0xff] %v16346_v15  ;;  %v16363_v51 = vld [vmem:[#allocation7 + $0xe0] ss:$12 sps:$4 sm:$0xff]  }
0x227f   :  { %v9874_v47 = vmul.f32 %v9873_v49, %v15831_v16  ;;  %16910 = vst [vmem:[#allocation61_spill] sm:$0xff] %v16363_v51  ;;  %v16366_v49 = vld [vmem:[#allocation7 + $0xc4] ss:$12 sps:$4 sm:$0xff]  }
0x2280   :  { %16911 = vst [vmem:[#allocation62_spill] sm:$0xff] %v16366_v49 }
0x2281   :  { %v9875_v13 = vadd.f32 %v9874_v47, %v15834_v38  ;;  %v16370_v47 = vld [vmem:[#allocation7 + $0xc0] ss:$12 sps:$4 sm:$0xff]  }
0x2282   :  { %16912 = vst [vmem:[#allocation63_spill] sm:$0xff] %v16370_v47 }
0x2283   :  { %v9876_v36 = vmax.f32 %v9875_v13, 0.0  ;;  %v16373_v13 = vld [vmem:[#allocation7 + $0xc8] ss:$12 sps:$4 sm:$0xff]  }
0x2284   :  { %16913 = vst [vmem:[#allocation64_spill] sm:$0xff] %v16373_v13 }
0x2285   :  { %v9877_v8 = vpack.c.bf16 %v9876_v36, %v9876_v36  ;;  %v16376_v36 = vld [vmem:[#allocation8 + $0x16c] ss:$12 sps:$4 sm:$0xff]  }
0x2286   :  { %16914 = vst [vmem:[#allocation65_spill] sm:$0xff] %v16376_v36 }
0x2287   :  { %9911 = vmatmul.mubr.bf16.vlgmr.msra.gmra.mxu0 %v9877_v8  ;;  %12910 = vmatmul.mubr.bf16.vlgmr.msra.gmra.mxu1 %v9877_v8 }
0x2288   :  { %9961 = vmatpush1.bf16.msra.mxu0 %v15838_v37  ;;  %12914 = vmatpush3.bf16.msra.mxu1 %v15840_v24  ;;  %v9959_v37 = vpack.c.bf16 %v16180_v57, %v16180_v57  ;;  %v16895_v24 = vld [vmem:[#allocation32_spill] sm:$0xff] }
0x2289   :  { %9962 = vmatprep.subr.bf16.mxu0 %v16855_v33  ;;  %12915 = vmatprep.subr.bf16.mxu1 %v16805_v18  ;;  %v16265_v33 = vld [vmem:[#allocation8 + $0x30] ss:$12 sps:$4 sm:$0xff]  }
0x228a   :  { %9992 = vmatprep.mubr.bf16.mxu0 %v16828_v63  ;;  %12929 = vmatprep.mubr.msk.bf16.mxu1 %vm14522_vm0, %v16805_v18 }
0x228c   :  { %9963 = vmatpush1.bf16.msra.mxu0 %v16856_v6  ;;  %12916 = vmatpush3.bf16.msra.mxu1 %v16857_v25  ;;  %v16268_v6 = vld [vmem:[#allocation8 + $0x38] ss:$12 sps:$4 sm:$0xff]   ;;  %v16271_v25 = vld [vmem:[#allocation8 + $0x1c] ss:$12 sps:$4 sm:$0xff]  }
0x228d   :  { %9964 = vmatprep.subr.bf16.mxu0 %v16858_v46  ;;  %12917 = vmatprep.subr.bf16.mxu1 %v16805_v18  ;;  %v16275_v46 = vld [vmem:[#allocation8 + $0x18] ss:$12 sps:$4 sm:$0xff]  }
0x2290   :  { %9965 = vmatpush1.bf16.msra.mxu0 %v16859_v58  ;;  %12918 = vmatpush3.bf16.msra.mxu1 %v16860_v19  ;;  %v16278_v58 = vld [vmem:[#allocation8 + $0x20] ss:$12 sps:$4 sm:$0xff]   ;;  %v16281_v19 = vld [vmem:[#allocation8 + $0x4] ss:$12 sps:$4 sm:$0xff]  }
0x2291   :  { %9966 = vmatprep.subr.bf16.mxu0 %v16861_v27  ;;  %12919 = vmatprep.subr.bf16.mxu1 %v16805_v18  ;;  %v16285_v27 = vld [vmem:[#allocation8] ss:$12 sps:$4 sm:$0xff]  }
0x2294   :  { %9967 = vmatpush1.bf16.msra.mxu0 %v16862_v20  ;;  %12920 = vmatpush3.bf16.msra.mxu1 %v16863_v42  ;;  %v16288_v20 = vld [vmem:[#allocation8 + $0x8] ss:$12 sps:$4 sm:$0xff]   ;;  %v10065_v42 = vpack.c.bf16 %v16185_v4, %v16185_v4 }
0x2295   :  { %9968 = vmatprep.subr.bf16.mxu0 %v16864_v21  ;;  %12921 = vmatprep.subr.bf16.mxu1 %v16805_v18  ;;  %v16293_v21 = vld [vmem:[#allocation7 + $0x16c] ss:$12 sps:$4 sm:$0xff]  }
0x2298   :  { %9969 = vmatpush1.bf16.msra.mxu0 %v16865_v45  ;;  %12922 = vmatpush3.bf16.msra.mxu1 %v16866_v1  ;;  %v16297_v45 = vld [vmem:[#allocation7 + $0x168] ss:$12 sps:$4 sm:$0xff]   ;;  %v16300_v1 = vld [vmem:[#allocation7 + $0x170] ss:$12 sps:$4 sm:$0xff]  }
0x2299   :  { %9970 = vmatprep.subr.bf16.mxu0 %v16867_v17  ;;  %12923 = vmatprep.subr.bf16.mxu1 %v16805_v18  ;;  %v16303_v17 = vld [vmem:[#allocation7 + $0x154] ss:$12 sps:$4 sm:$0xff]  }
0x229c   :  { %9971 = vmatpush1.bf16.msra.mxu0 %v15889_v5  ;;  %12924 = vmatpush3.bf16.msra.mxu1 %v15891_v26  ;;  %v16251_v26 = vld [vmem:[#allocation8 + $0x4c] ss:$12 sps:$4 sm:$0xff]   ;;  %v16258_v5 = vld [vmem:[#allocation8 + $0x50] ss:$12 sps:$4 sm:$0xff]  }
0x229d   :  { %9972 = vmatprep.subr.bf16.mxu0 %v15895_v11  ;;  %12925 = vmatprep.subr.bf16.mxu1 %v16805_v18  ;;  %v16894_v11 = vld [vmem:[#allocation14_spill] sm:$0xff] }
0x22a0   :  { %9973 = vmatpush1.bf16.msra.mxu0 %v15899_v55  ;;  %12926 = vmatpush3.bf16.msra.mxu1 %v15901_v10  ;;  %v16245_v55 = vld [vmem:[#allocation8 + $0x60] ss:$12 sps:$4 sm:$0xff]  }
0x22a1   :  { %9974 = vmatprep.subr.bf16.mxu0 %v15905_v54  ;;  %12927 = vmatprep.subr.bf16.mxu1 %v16805_v18  ;;  %v16241_v54 = vld [vmem:[#allocation8 + $0x64] ss:$12 sps:$4 sm:$0xff]   ;;  %v16261_v10 = vld [vmem:[#allocation8 + $0x34] ss:$12 sps:$4 sm:$0xff]  }
0x22a4   :  { %9975 = vmatpush1.bf16.msra.mxu0 %v15909_v7  ;;  %12928 = vmatpush3.bf16.msra.mxu1 %v15911_v60  ;;  %v16248_v60 = vld [vmem:[#allocation8 + $0x68] ss:$12 sps:$4 sm:$0xff]  }
0x22a5   :  { %10066 = vmatprep.subr.bf16.mxu0 %v16077_v34  ;;  %12933 = vmatprep.subr.bf16.mxu1 %v16805_v18  ;;  %v16255_v7 = vld [vmem:[#allocation8 + $0x48] ss:$12 sps:$4 sm:$0xff]  }
0x22a7   :  { %9993 = vmatmul.mubr.bf16.vlgmr.msra.gmra.mxu0 %v9959_v37  ;;  %12930 = vmatmul.mubr.bf16.vlgmr.msra.gmra.mxu1 %v9959_v37 }
0x22a8   :  { %10067 = vmatpush1.bf16.msra.mxu0 %v16081_v31  ;;  %12934 = vmatpush3.bf16.msra.mxu1 %v16894_v11 }
0x22a9   :  { %10068 = vmatprep.subr.bf16.mxu0 %v16895_v24  ;;  %12935 = vmatprep.subr.bf16.mxu1 %v16805_v18 }
0x22aa   :  { %10098 = vmatprep.mubr.bf16.mxu0 %v16828_v63  ;;  %12949 = vmatprep.mubr.msk.bf16.mxu1 %vm14522_vm0, %v16805_v18 }
0x22ac   :  { %10069 = vmatpush1.bf16.msra.mxu0 %v16094_v53  ;;  %12936 = vmatpush3.bf16.msra.mxu1 %v16097_v43 }
0x22ad   :  { %10070 = vmatprep.subr.bf16.mxu0 %v16100_v29  ;;  %12937 = vmatprep.subr.bf16.mxu1 %v16805_v18 }
0x22b0   :  { %10071 = vmatpush1.bf16.msra.mxu0 %v16104_v32  ;;  %12938 = vmatpush3.bf16.msra.mxu1 %v16107_v9 }
0x22b1   :  { %10072 = vmatprep.subr.bf16.mxu0 %v16241_v54  ;;  %12939 = vmatprep.subr.bf16.mxu1 %v16805_v18 }
0x22b4   :  { %10073 = vmatpush1.bf16.msra.mxu0 %v16245_v55  ;;  %12940 = vmatpush3.bf16.msra.mxu1 %v16248_v60 }
0x22b5   :  { %10074 = vmatprep.subr.bf16.mxu0 %v16251_v26  ;;  %12941 = vmatprep.subr.bf16.mxu1 %v16805_v18 }
0x22b8   :  { %10075 = vmatpush1.bf16.msra.mxu0 %v16255_v7  ;;  %12942 = vmatpush3.bf16.msra.mxu1 %v16258_v5 }
0x22b9   :  { %10076 = vmatprep.subr.bf16.mxu0 %v16261_v10  ;;  %12943 = vmatprep.subr.bf16.mxu1 %v16805_v18 }
0x22bc   :  { %10077 = vmatpush1.bf16.msra.mxu0 %v16265_v33  ;;  %12944 = vmatpush3.bf16.msra.mxu1 %v16268_v6 }
0x22bd   :  { %10078 = vmatprep.subr.bf16.mxu0 %v16271_v25  ;;  %12945 = vmatprep.subr.bf16.mxu1 %v16805_v18 }
0x22c0   :  { %10079 = vmatpush1.bf16.msra.mxu0 %v16275_v46  ;;  %12946 = vmatpush3.bf16.msra.mxu1 %v16278_v58 }
0x22c1   :  { %10080 = vmatprep.subr.bf16.mxu0 %v16281_v19  ;;  %12947 = vmatprep.subr.bf16.mxu1 %v16805_v18 }
0x22c4   :  { %10081 = vmatpush1.bf16.msra.mxu0 %v16285_v27  ;;  %12948 = vmatpush3.bf16.msra.mxu1 %v16288_v20 }
0x22c5   :  { %10183 = vmatprep.subr.bf16.mxu0 %v16293_v21  ;;  %12953 = vmatprep.subr.bf16.mxu1 %v16805_v18 }
0x22c7   :  { %10099 = vmatmul.mubr.bf16.vlgmr.msra.gmra.mxu0 %v10065_v42  ;;  %12950 = vmatmul.mubr.bf16.vlgmr.msra.gmra.mxu1 %v10065_v42 }
0x22c8   :  { %10184 = vmatpush1.bf16.msra.mxu0 %v16297_v45  ;;  %12954 = vmatpush3.bf16.msra.mxu1 %v16300_v1 }
0x22c9   :  { %10185 = vmatprep.subr.bf16.mxu0 %v16303_v17  ;;  %12955 = vmatprep.subr.bf16.mxu1 %v16805_v18 }
0x22ca   :  { %10215 = vmatprep.mubr.bf16.mxu0 %v16828_v63  ;;  %12969 = vmatprep.mubr.msk.bf16.mxu1 %vm14522_vm0, %v16805_v18 }
0x22cc   :  { %10186 = vmatpush1.bf16.msra.mxu0 %v16310_v22  ;;  %12956 = vmatpush3.bf16.msra.mxu1 %v16313_v44 }
0x22cd   :  { %10187 = vmatprep.subr.bf16.mxu0 %v16316_v14  ;;  %12957 = vmatprep.subr.bf16.mxu1 %v16805_v18 }
0x22d0   :  { %10188 = vmatpush1.bf16.msra.mxu0 %v16320_v41  ;;  %12958 = vmatpush3.bf16.msra.mxu1 %v16323_v48 }
0x22d1   :  { %10189 = vmatprep.subr.bf16.mxu0 %v16326_v23  ;;  %12959 = vmatprep.subr.bf16.mxu1 %v16805_v18 }
0x22d4   :  { %10190 = vmatpush1.bf16.msra.mxu0 %v16330_v39  ;;  %12960 = vmatpush3.bf16.msra.mxu1 %v16333_v30 }
0x22d5   :  { %10191 = vmatprep.subr.bf16.mxu0 %v16336_v35  ;;  %12961 = vmatprep.subr.bf16.mxu1 %v16805_v18 }
0x22d8   :  { %10192 = vmatpush1.bf16.msra.mxu0 %v16340_v52  ;;  %12962 = vmatpush3.bf16.msra.mxu1 %v16343_v40  ;;  %v16916_v52 = vld [vmem:[#allocation17_spill] sm:$0xff] }
0x22d9   :  { %10193 = vmatprep.subr.bf16.mxu0 %v16346_v15  ;;  %12963 = vmatprep.subr.bf16.mxu1 %v16805_v18  ;;  %v16915_v15 = vld [vmem:[#allocation15_spill] sm:$0xff] }
0x22dc   :  { %10194 = vmatpush1.bf16.msra.mxu0 %v16350_v0  ;;  %12964 = vmatpush3.bf16.msra.mxu1 %v16353_v50 }
0x22dd   :  { %10195 = vmatprep.subr.bf16.mxu0 %v16356_v12  ;;  %12965 = vmatprep.subr.bf16.mxu1 %v16805_v18 }
0x22e0   :  { %10196 = vmatpush1.bf16.msra.mxu0 %v16360_v2  ;;  %12966 = vmatpush3.bf16.msra.mxu1 %v16363_v51 }
0x22e1   :  { %10197 = vmatprep.subr.bf16.mxu0 %v16366_v49  ;;  %12967 = vmatprep.subr.bf16.mxu1 %v16805_v18 }
0x22e4   :  { %10198 = vmatpush1.bf16.msra.mxu0 %v16370_v47  ;;  %12968 = vmatpush3.bf16.msra.mxu1 %v16373_v13 }
0x22e5   :  { %10265 = vmatprep.subr.bf16.mxu0 %v16376_v36  ;;  %12973 = vmatprep.subr.bf16.mxu1 %v16805_v18 }
0x2347   :  { %v9912_v8 = vpop.f32.mrf.mxu0  ;;  %v9953_v37 = vpop.f32.mrf.mxu1 }
0x2348   :  { %v9913_v40 = vadd.f32 %v9912_v8, %v16915_v15 }
0x2349   :  { %v9914_v42 = vpop.f32.mrf.mxu0  ;;  %v12911_v49 = vpop.f32.mrf.mxu1 }
0x234a   :  { %v9915_v36 = vadd.f32 %v9914_v42, %v16007_v3  ;;  %v9954_v42 = vadd.f32 %v9953_v37, %v16022_v59 }
0x234b   :  { %v9916_v51 = vpop.f32.mrf.mxu0  ;;  %v9956_v2 = vpop.f32.mrf.mxu1 }
0x234d   :  { %v9917_v12 = vpop.f32.mrf.mxu0  ;;  %v12912_v50 = vpop.f32.mrf.mxu1 }
0x2367   :  { %v9994_v0 = vpop.f32.mrf.mxu0  ;;  %v10035_v47 = vpop.f32.mrf.mxu1 }
0x2368   :  { %v9995_v13 = vadd.f32 %v9994_v0, %v16916_v52 }
0x2369   :  { %v9996_v35 = vpop.f32.mrf.mxu0  ;;  %v12931_v30 = vpop.f32.mrf.mxu1 }
0x236a   :  { %v10041_v39 = vadd.f32 %v9995_v13, %v9913_v40  ;;  %v9997_v23 = vadd.f32 %v9996_v35, %v16010_v62 }
0x236b   :  { %v9998_v48 = vpop.f32.mrf.mxu0  ;;  %v10038_v41 = vpop.f32.mrf.mxu1 }
0x236c   :  { %v11666_v49 = vmul.f32 -1.442695, %v10041_v39  ;;  %v10048_v51 = vadd.f32 %v9997_v23, %v9915_v36  ;;  %v16917_v48 = vld [vmem:[#allocation18_spill] sm:$0xff] }
0x236d   :  { %v9999_v2 = vpop.f32.mrf.mxu0  ;;  %v12932_v12 = vpop.f32.mrf.mxu1  ;;  %v10036_v41 = vadd.f32 %v10035_v47, %v16917_v48  ;;  %v16918_v39 = vld [vmem:[#allocation26_spill] sm:$0xff] }
0x236e   :  { %14296 = vpow2.f32 %v11666_v49  ;;  %v11667_v50 = vmul.f32 -1.442695, %v10048_v51 }
0x2370   :  { %14298 = vpow2.f32 %v11667_v50 }
0x237b   :  { %v14297_v14 = vpop.eup %14296 }
0x237c   :  { %v10045_v8 = vadd.f32 1.0, %v14297_v14 }
0x237d   :  { %v14299_v0 = vpop.eup %14298 }
0x237e   :  { %14300 = vrcp.f32 %v10045_v8  ;;  %v10052_v15 = vadd.f32 1.0, %v14299_v0 }
0x2380   :  { %14302 = vrcp.f32 %v10052_v15 }
0x2387   :  { %v10100_v52 = vpop.f32.mrf.mxu0  ;;  %v10141_v30 = vpop.f32.mrf.mxu1 }
0x2388   :  { %v10101_v40 = vadd.f32 %v10100_v52, %v16848_v61  ;;  %v16919_v52 = vld [vmem:[#allocation28_spill] sm:$0xff] }
0x2389   :  { %v10102_v13 = vpop.f32.mrf.mxu0  ;;  %v12951_v35 = vpop.f32.mrf.mxu1 }
0x238a   :  { %v10147_v23 = vadd.f32 %v10101_v40, %v16918_v39  ;;  %v10103_v12 = vadd.f32 %v10102_v13, %v16850_v56 }
0x238b   :  { %v14301_v36 = vpop.eup %14300  ;;  %v10104_v49 = vpop.f32.mrf.mxu0 }
0x238c   :  { %v10144_v51 = vpop.f32.mrf.mxu1  ;;  %v10055_v2 = vmul.f32 %v14301_v36, %v10036_v41  ;;  %v11668_v14 = vmul.f32 -1.442695, %v10147_v23  ;;  %v10154_v35 = vadd.f32 %v10103_v12, %v16919_v52 }
0x238d   :  { %v10105_v50 = vpop.f32.mrf.mxu0  ;;  %v14303_v40 = vpop.eup %14302 }
0x238e   :  { %v12952_v8 = vpop.f32.mrf.mxu1  ;;  %v10056_v0 = vadd.f32 %v10055_v2, %v9954_v42  ;;  %14304 = vpow2.f32 %v11668_v14  ;;  %v11669_v47 = vmul.f32 -1.442695, %v10154_v35  ;;  %v10058_v37 = vsub.f32 1.0, %v14303_v40  ;;  %v16920_v14 = vld [vmem:[#allocation27_spill] sm:$0xff] }
0x238f   :  { %v10060_v15 = vmul.f32 %v14303_v40, %v16180_v57  ;;  %v10142_v42 = vadd.f32 %v10141_v30, %v16853_v28 }
0x2390   :  { %14306 = vtanh.f32 %v10056_v0 }
0x2391   :  { %14308 = vpow2.f32 %v11669_v47 }
0x239b   :  { %v14305_v39 = vpop.eup %14304 }
0x239c   :  { %v10151_v48 = vadd.f32 1.0, %v14305_v39 }
0x239d   :  { %v14307_v49 = vpop.eup %14306 }
0x239e   :  { %14310 = vrcp.f32 %v10151_v48  ;;  %v10059_v41 = vmul.f32 %v14307_v49, %v10058_v37  ;;  %v14309_v13 = vpop.eup %14308 }
0x239f   :  { %v10158_v36 = vadd.f32 1.0, %v14309_v13 }
0x23a0   :  { %v16391_v23 = vadd.f32 %v10060_v15, %v10059_v41 }
0x23a1   :  { %14312 = vrcp.f32 %v10158_v36 }
0x23ab   :  { %v14311_v51 = vpop.eup %14310 }
0x23ac   :  { %v10161_v2 = vmul.f32 %v14311_v51, %v10142_v42  ;;  %v16402_v51 = vld [vmem:[#allocation8 + $0x168] ss:$12 sps:$4 sm:$0xff]  }
0x23ae   :  { %v10162_v12 = vadd.f32 %v10161_v2, %v16920_v14  ;;  %v14313_v50 = vpop.eup %14312  ;;  %v16405_v2 = vld [vmem:[#allocation8 + $0x170] ss:$12 sps:$4 sm:$0xff]   ;;  %v16408_v14 = vld [vmem:[#allocation8 + $0x154] ss:$12 sps:$4 sm:$0xff]  }
0x23af   :  { %v10164_v8 = vsub.f32 1.0, %v14313_v50  ;;  %v10166_v48 = vmul.f32 %v14313_v50, %v16185_v4  ;;  %v16418_v50 = vld [vmem:[#allocation8 + $0x158] ss:$12 sps:$4 sm:$0xff]  }
0x23b0   :  { %14314 = vtanh.f32 %v10162_v12  ;;  %v16415_v12 = vld [vmem:[#allocation8 + $0x150] ss:$12 sps:$4 sm:$0xff]  }
0x23bd   :  { %v14315_v0 = vpop.eup %14314 }
0x23be   :  { %v10165_v52 = vmul.f32 %v14315_v0, %v10164_v8  ;;  %v16421_v8 = vld [vmem:[#allocation8 + $0x13c] ss:$12 sps:$4 sm:$0xff]   ;;  %v16425_v0 = vld [vmem:[#allocation8 + $0x138] ss:$12 sps:$4 sm:$0xff]  }
0x23c0   :  { %v16396_v35 = vadd.f32 %v10166_v48, %v10165_v52  ;;  %v16428_v52 = vld [vmem:[#allocation8 + $0x140] ss:$12 sps:$4 sm:$0xff]   ;;  %v16431_v48 = vld [vmem:[#allocation8 + $0x124] ss:$12 sps:$4 sm:$0xff]  }
0x23c2   :  { %10168 = vadd.xlane.f32.xlu0 %v16396_v35 }
0x244b   :  { %v10169_v57 = vpop.xlane.xlu0 %10168 }
0x244c   :  { %v10170_v47 = vmul.f32 0.0078125, %v10169_v57  ;;  %v16435_v57 = vld [vmem:[#allocation8 + $0x120] ss:$12 sps:$4 sm:$0xff]  }
0x244e   :  { %v10171_v30 = vsub.f32 %v16396_v35, %v10170_v47  ;;  %v16438_v47 = vld [vmem:[#allocation8 + $0x128] ss:$12 sps:$4 sm:$0xff]  }
0x2450   :  { %v10172_v40 = vmul.f32 %v10171_v30, %v10171_v30 }
0x2452   :  { %10173 = vadd.xlane.f32.xlu1 %v10172_v40  ;;  %v16445_v40 = vld [vmem:[#allocation8 + $0x108] ss:$12 sps:$4 sm:$0xff]  }
0x24db   :  { %v10174_v39 = vpop.xlane.xlu1 %10173 }
0x24dc   :  { %v10175_v37 = vmul.f32 0.0078125, %v10174_v39  ;;  %v16448_v39 = vld [vmem:[#allocation8 + $0x110] ss:$12 sps:$4 sm:$0xff]  }
0x24de   :  { %v10176_v49 = vadd.f32 1e-05, %v10175_v37  ;;  %v16451_v37 = vld [vmem:[#allocation8 + $0xf4] ss:$12 sps:$4 sm:$0xff]  }
0x24e0   :  { %14316 = vrsqrt.f32 %v10176_v49  ;;  %v16455_v49 = vld [vmem:[#allocation8 + $0xf0] ss:$12 sps:$4 sm:$0xff]  }
0x24ed   :  { %v14317_v41 = vpop.eup %14316 }
0x24ee   :  { %v10178_v15 = vmul.f32 %v14317_v41, %v10171_v30  ;;  %v16441_v30 = vld [vmem:[#allocation8 + $0x10c] ss:$12 sps:$4 sm:$0xff]  }
0x24ef   :  { %v16458_v41 = vld [vmem:[#allocation8 + $0xf8] ss:$12 sps:$4 sm:$0xff]  }
0x24f0   :  { %v10179_v13 = vmul.f32 %v10178_v15, %v15831_v16  ;;  %v16461_v15 = vld [vmem:[#allocation8 + $0xdc] ss:$12 sps:$4 sm:$0xff]  }
0x24f1   :  { %16921 = vst [vmem:[#allocation35_spill] sm:$0xff] %v16461_v15 }
0x24f2   :  { %v10180_v4 = vadd.f32 %v10179_v13, %v15834_v38  ;;  %v16465_v13 = vld [vmem:[#allocation8 + $0xd8] ss:$12 sps:$4 sm:$0xff]  }
0x24f3   :  { %16922 = vst [vmem:[#allocation36_spill] sm:$0xff] %v16465_v13 }
0x24f4   :  { %v10181_v36 = vmax.f32 %v10180_v4, 0.0  ;;  %v16468_v4 = vld [vmem:[#allocation8 + $0xe0] ss:$12 sps:$4 sm:$0xff]  }
0x24f6   :  { %v10182_v42 = vpack.c.bf16 %v10181_v36, %v10181_v36  ;;  %v16471_v36 = vld [vmem:[#allocation8 + $0xc4] ss:$12 sps:$4 sm:$0xff]  }
0x24f8   :  { %10216 = vmatmul.mubr.bf16.vlgmr.msra.gmra.mxu0 %v10182_v42  ;;  %12970 = vmatmul.mubr.bf16.vlgmr.msra.gmra.mxu1 %v10182_v42  ;;  %v16475_v42 = vld [vmem:[#allocation8 + $0xc0] ss:$12 sps:$4 sm:$0xff]  }
0x24f9   :  { %10266 = vmatpush1.bf16.msra.mxu0 %v16402_v51  ;;  %12974 = vmatpush3.bf16.msra.mxu1 %v16405_v2 }
0x24fa   :  { %10267 = vmatprep.subr.bf16.mxu0 %v16408_v14  ;;  %12975 = vmatprep.subr.bf16.mxu1 %v16805_v18 }
0x24fb   :  { %10297 = vmatprep.mubr.bf16.mxu0 %v16828_v63  ;;  %12989 = vmatprep.mubr.msk.bf16.mxu1 %vm14522_vm0, %v16805_v18 }
0x24fd   :  { %10268 = vmatpush1.bf16.msra.mxu0 %v16415_v12  ;;  %12976 = vmatpush3.bf16.msra.mxu1 %v16418_v50 }
0x24fe   :  { %10269 = vmatprep.subr.bf16.mxu0 %v16421_v8  ;;  %12977 = vmatprep.subr.bf16.mxu1 %v16805_v18 }
0x2501   :  { %10270 = vmatpush1.bf16.msra.mxu0 %v16425_v0  ;;  %12978 = vmatpush3.bf16.msra.mxu1 %v16428_v52 }
0x2502   :  { %10271 = vmatprep.subr.bf16.mxu0 %v16431_v48  ;;  %12979 = vmatprep.subr.bf16.mxu1 %v16805_v18 }
0x2505   :  { %10272 = vmatpush1.bf16.msra.mxu0 %v16435_v57  ;;  %12980 = vmatpush3.bf16.msra.mxu1 %v16438_v47 }
0x2506   :  { %10273 = vmatprep.subr.bf16.mxu0 %v16441_v30  ;;  %12981 = vmatprep.subr.bf16.mxu1 %v16805_v18 }
0x2509   :  { %10274 = vmatpush1.bf16.msra.mxu0 %v16445_v40  ;;  %12982 = vmatpush3.bf16.msra.mxu1 %v16448_v39 }
0x250a   :  { %10275 = vmatprep.subr.bf16.mxu0 %v16451_v37  ;;  %12983 = vmatprep.subr.bf16.mxu1 %v16805_v18 }
0x250d   :  { %10276 = vmatpush1.bf16.msra.mxu0 %v16455_v49  ;;  %12984 = vmatpush3.bf16.msra.mxu1 %v16458_v41 }
0x250e   :  { %10277 = vmatprep.subr.bf16.mxu0 %v16461_v15  ;;  %12985 = vmatprep.subr.bf16.mxu1 %v16805_v18  ;;  %v16478_v15 = vld [vmem:[#allocation8 + $0xc8] ss:$12 sps:$4 sm:$0xff]  }
0x2511   :  { %10278 = vmatpush1.bf16.msra.mxu0 %v16465_v13  ;;  %12986 = vmatpush3.bf16.msra.mxu1 %v16468_v4  ;;  %v10264_v13 = vpack.c.bf16 %v16391_v23, %v16391_v23 }
0x2512   :  { %10279 = vmatprep.subr.bf16.mxu0 %v16471_v36  ;;  %12987 = vmatprep.subr.bf16.mxu1 %v16805_v18 }
0x2515   :  { %10280 = vmatpush1.bf16.msra.mxu0 %v16475_v42  ;;  %12988 = vmatpush3.bf16.msra.mxu1 %v16478_v15 }
0x2516   :  { %10371 = vmatprep.subr.bf16.mxu0 %v16077_v34  ;;  %12993 = vmatprep.subr.bf16.mxu1 %v16805_v18  ;;  %v10370_v34 = vpack.c.bf16 %v16396_v35, %v16396_v35 }
0x2518   :  { %10298 = vmatmul.mubr.bf16.vlgmr.msra.gmra.mxu0 %v10264_v13  ;;  %12990 = vmatmul.mubr.bf16.vlgmr.msra.gmra.mxu1 %v10264_v13  ;;  %v16942_v13 = vld [vmem:[#allocation15_spill] sm:$0xff] }
0x2519   :  { %10372 = vmatpush1.bf16.msra.mxu0 %v16081_v31  ;;  %12994 = vmatpush3.bf16.msra.mxu1 %v16894_v11  ;;  %v16923_v31 = vld [vmem:[#allocation20_spill] sm:$0xff]  ;;  %v16929_v11 = vld [vmem:[#allocation53_spill] sm:$0xff] }
0x251a   :  { %10373 = vmatprep.subr.bf16.mxu0 %v16895_v24  ;;  %12995 = vmatprep.subr.bf16.mxu1 %v16805_v18  ;;  %v16930_v24 = vld [vmem:[#allocation54_spill] sm:$0xff] }
0x251b   :  { %10403 = vmatprep.mubr.bf16.mxu0 %v16828_v63  ;;  %13009 = vmatprep.mubr.msk.bf16.mxu1 %vm14522_vm0, %v16805_v18 }
0x251d   :  { %10374 = vmatpush1.bf16.msra.mxu0 %v16094_v53  ;;  %12996 = vmatpush3.bf16.msra.mxu1 %v16097_v43  ;;  %v16926_v53 = vld [vmem:[#allocation19_spill] sm:$0xff]  ;;  %v16927_v43 = vld [vmem:[#allocation34_spill] sm:$0xff] }
0x251e   :  { %10375 = vmatprep.subr.bf16.mxu0 %v16100_v29  ;;  %12997 = vmatprep.subr.bf16.mxu1 %v16805_v18  ;;  %v16928_v29 = vld [vmem:[#allocation21_spill] sm:$0xff] }
0x2521   :  { %10376 = vmatpush1.bf16.msra.mxu0 %v16104_v32  ;;  %12998 = vmatpush3.bf16.msra.mxu1 %v16107_v9  ;;  %v16924_v9 = vld [vmem:[#allocation33_spill] sm:$0xff]  ;;  %v16925_v32 = vld [vmem:[#allocation22_spill] sm:$0xff] }
0x2522   :  { %10377 = vmatprep.subr.bf16.mxu0 %v16241_v54  ;;  %12999 = vmatprep.subr.bf16.mxu1 %v16805_v18  ;;  %v16931_v54 = vld [vmem:[#allocation55_spill] sm:$0xff] }
0x2525   :  { %10378 = vmatpush1.bf16.msra.mxu0 %v16245_v55  ;;  %13000 = vmatpush3.bf16.msra.mxu1 %v16248_v60  ;;  %v16932_v55 = vld [vmem:[#allocation56_spill] sm:$0xff]  ;;  %v16933_v60 = vld [vmem:[#allocation57_spill] sm:$0xff] }
0x2526   :  { %10379 = vmatprep.subr.bf16.mxu0 %v16251_v26  ;;  %13001 = vmatprep.subr.bf16.mxu1 %v16805_v18  ;;  %v16934_v26 = vld [vmem:[#allocation58_spill] sm:$0xff] }
0x2529   :  { %10380 = vmatpush1.bf16.msra.mxu0 %v16255_v7  ;;  %13002 = vmatpush3.bf16.msra.mxu1 %v16258_v5  ;;  %v16935_v7 = vld [vmem:[#allocation59_spill] sm:$0xff]  ;;  %v16936_v5 = vld [vmem:[#allocation60_spill] sm:$0xff] }
0x252a   :  { %10381 = vmatprep.subr.bf16.mxu0 %v16261_v10  ;;  %13003 = vmatprep.subr.bf16.mxu1 %v16805_v18  ;;  %v16937_v10 = vld [vmem:[#allocation61_spill] sm:$0xff] }
0x252d   :  { %10382 = vmatpush1.bf16.msra.mxu0 %v16265_v33  ;;  %13004 = vmatpush3.bf16.msra.mxu1 %v16268_v6  ;;  %v16938_v33 = vld [vmem:[#allocation62_spill] sm:$0xff]  ;;  %v16939_v6 = vld [vmem:[#allocation63_spill] sm:$0xff] }
0x252e   :  { %10383 = vmatprep.subr.bf16.mxu0 %v16271_v25  ;;  %13005 = vmatprep.subr.bf16.mxu1 %v16805_v18  ;;  %v16940_v25 = vld [vmem:[#allocation64_spill] sm:$0xff] }
0x2531   :  { %10384 = vmatpush1.bf16.msra.mxu0 %v16275_v46  ;;  %13006 = vmatpush3.bf16.msra.mxu1 %v16278_v58  ;;  %v16941_v46 = vld [vmem:[#allocation65_spill] sm:$0xff] }
0x2532   :  { %10385 = vmatprep.subr.bf16.mxu0 %v16281_v19  ;;  %13007 = vmatprep.subr.bf16.mxu1 %v16805_v18 }
0x2535   :  { %10386 = vmatpush1.bf16.msra.mxu0 %v16285_v27  ;;  %13008 = vmatpush3.bf16.msra.mxu1 %v16288_v20 }
0x2536   :  { %10488 = vmatprep.subr.bf16.mxu0 %v16293_v21  ;;  %13013 = vmatprep.subr.bf16.mxu1 %v16805_v18 }
0x2538   :  { %10404 = vmatmul.mubr.bf16.vlgmr.msra.gmra.mxu0 %v10370_v34  ;;  %13010 = vmatmul.mubr.bf16.vlgmr.msra.gmra.mxu1 %v10370_v34 }
0x2539   :  { %10489 = vmatpush1.bf16.msra.mxu0 %v16297_v45  ;;  %13014 = vmatpush3.bf16.msra.mxu1 %v16300_v1 }
0x253a   :  { %10490 = vmatprep.subr.bf16.mxu0 %v16303_v17  ;;  %13015 = vmatprep.subr.bf16.mxu1 %v16805_v18 }
0x253b   :  { %10520 = vmatprep.mubr.bf16.mxu0 %v16828_v63  ;;  %13029 = vmatprep.mubr.msk.bf16.mxu1 %vm14522_vm0, %v16805_v18 }
0x253d   :  { %10491 = vmatpush1.bf16.msra.mxu0 %v16310_v22  ;;  %13016 = vmatpush3.bf16.msra.mxu1 %v16313_v44 }
0x253e   :  { %10492 = vmatprep.subr.bf16.mxu0 %v16923_v31  ;;  %13017 = vmatprep.subr.bf16.mxu1 %v16805_v18  ;;  %v16943_v31 = vld [vmem:[#allocation17_spill] sm:$0xff] }
0x2541   :  { %10493 = vmatpush1.bf16.msra.mxu0 %v16924_v9  ;;  %13018 = vmatpush3.bf16.msra.mxu1 %v16925_v32 }
0x2542   :  { %10494 = vmatprep.subr.bf16.mxu0 %v16926_v53  ;;  %13019 = vmatprep.subr.bf16.mxu1 %v16805_v18 }
0x2545   :  { %10495 = vmatpush1.bf16.msra.mxu0 %v16927_v43  ;;  %13020 = vmatpush3.bf16.msra.mxu1 %v16928_v29 }
0x2546   :  { %10496 = vmatprep.subr.bf16.mxu0 %v16929_v11  ;;  %13021 = vmatprep.subr.bf16.mxu1 %v16805_v18 }
0x2549   :  { %10497 = vmatpush1.bf16.msra.mxu0 %v16930_v24  ;;  %13022 = vmatpush3.bf16.msra.mxu1 %v16931_v54 }
0x254a   :  { %10498 = vmatprep.subr.bf16.mxu0 %v16932_v55  ;;  %13023 = vmatprep.subr.bf16.mxu1 %v16805_v18 }
0x254d   :  { %10499 = vmatpush1.bf16.msra.mxu0 %v16933_v60  ;;  %13024 = vmatpush3.bf16.msra.mxu1 %v16934_v26 }
0x254e   :  { %10500 = vmatprep.subr.bf16.mxu0 %v16935_v7  ;;  %13025 = vmatprep.subr.bf16.mxu1 %v16805_v18 }
0x2551   :  { %10501 = vmatpush1.bf16.msra.mxu0 %v16936_v5  ;;  %13026 = vmatpush3.bf16.msra.mxu1 %v16937_v10 }
0x2552   :  { %10502 = vmatprep.subr.bf16.mxu0 %v16938_v33  ;;  %13027 = vmatprep.subr.bf16.mxu1 %v16805_v18 }
0x2555   :  { %10503 = vmatpush1.bf16.msra.mxu0 %v16939_v6  ;;  %13028 = vmatpush3.bf16.msra.mxu1 %v16940_v25 }
0x2556   :  { %10570 = vmatprep.subr.bf16.mxu0 %v16941_v46  ;;  %13033 = vmatprep.subr.bf16.mxu1 %v16805_v18 }
0x25b8   :  { %v10217_v58 = vpop.f32.mrf.mxu0  ;;  %v10258_v19 = vpop.f32.mrf.mxu1 }
0x25b9   :  { %v10218_v34 = vadd.f32 %v10217_v58, %v16942_v13 }
0x25ba   :  { %v10219_v27 = vpop.f32.mrf.mxu0  ;;  %v12971_v20 = vpop.f32.mrf.mxu1 }
0x25bb   :  { %v10220_v43 = vadd.f32 %v10219_v27, %v16007_v3 }
0x25bc   :  { %v10221_v21 = vpop.f32.mrf.mxu0  ;;  %v10261_v45 = vpop.f32.mrf.mxu1 }
0x25bd   :  { %v16944_v45 = vld [vmem:[#allocation18_spill] sm:$0xff] }
0x25be   :  { %v10222_v1 = vpop.f32.mrf.mxu0  ;;  %v12972_v17 = vpop.f32.mrf.mxu1 }
0x25bf   :  { %v16945_v17 = vld [vmem:[#allocation29_spill] sm:$0xff] }
0x25d8   :  { %v10299_v22 = vpop.f32.mrf.mxu0  ;;  %v10340_v44 = vpop.f32.mrf.mxu1 }
0x25d9   :  { %v10300_v9 = vadd.f32 %v10299_v22, %v16943_v31  ;;  %v10341_v1 = vadd.f32 %v10340_v44, %v16944_v45 }
0x25da   :  { %v10301_v32 = vpop.f32.mrf.mxu0  ;;  %v12991_v53 = vpop.f32.mrf.mxu1 }
0x25db   :  { %v10346_v29 = vadd.f32 %v10300_v9, %v10218_v34  ;;  %v10302_v11 = vadd.f32 %v10301_v32, %v16010_v62  ;;  %v10259_v9 = vadd.f32 %v10258_v19, %v16022_v59 }
0x25dc   :  { %v10303_v24 = vpop.f32.mrf.mxu0  ;;  %v10343_v54 = vpop.f32.mrf.mxu1 }
0x25dd   :  { %v11670_v55 = vmul.f32 -1.442695, %v10346_v29  ;;  %v10353_v60 = vadd.f32 %v10302_v11, %v10220_v43 }
0x25de   :  { %v10304_v26 = vpop.f32.mrf.mxu0  ;;  %v12992_v7 = vpop.f32.mrf.mxu1 }
0x25df   :  { %14318 = vpow2.f32 %v11670_v55  ;;  %v11671_v5 = vmul.f32 -1.442695, %v10353_v60 }
0x25e1   :  { %14320 = vpow2.f32 %v11671_v5 }
0x25ec   :  { %v14319_v10 = vpop.eup %14318 }
0x25ed   :  { %v10350_v33 = vadd.f32 1.0, %v14319_v10 }
0x25ee   :  { %v14321_v6 = vpop.eup %14320 }
0x25ef   :  { %14322 = vrcp.f32 %v10350_v33  ;;  %v10357_v58 = vadd.f32 1.0, %v14321_v6 }
0x25f1   :  { %14324 = vrcp.f32 %v10357_v58 }
0x25f8   :  { %v10405_v25 = vpop.f32.mrf.mxu0  ;;  %v10446_v46 = vpop.f32.mrf.mxu1 }
0x25f9   :  { %v10406_v27 = vadd.f32 %v10405_v25, %v16848_v61  ;;  %v16946_v61 = vld [vmem:[#allocation31_spill] sm:$0xff] }
0x25fa   :  { %v10407_v20 = vpop.f32.mrf.mxu0  ;;  %v13011_v21 = vpop.f32.mrf.mxu1 }
0x25fb   :  { %v10452_v22 = vadd.f32 %v10406_v27, %v16945_v17  ;;  %v10408_v11 = vadd.f32 %v10407_v20, %v16850_v56  ;;  %v10447_v27 = vadd.f32 %v10446_v46, %v16853_v28 }
0x25fc   :  { %v14323_v34 = vpop.eup %14322  ;;  %v10409_v32 = vpop.f32.mrf.mxu0 }
0x25fd   :  { %v10449_v53 = vpop.f32.mrf.mxu1  ;;  %v10360_v43 = vmul.f32 %v14323_v34, %v10341_v1  ;;  %v11672_v29 = vmul.f32 -1.442695, %v10452_v22  ;;  %v10459_v60 = vadd.f32 %v10408_v11, %v16946_v61  ;;  %v16947_v1 = vld [vmem:[#allocation30_spill] sm:$0xff] }
0x25fe   :  { %v10410_v24 = vpop.f32.mrf.mxu0  ;;  %v14325_v26 = vpop.eup %14324 }
0x25ff   :  { %v13012_v54 = vpop.f32.mrf.mxu1  ;;  %v10361_v55 = vadd.f32 %v10360_v43, %v10259_v9  ;;  %14326 = vpow2.f32 %v11672_v29  ;;  %v11673_v44 = vmul.f32 -1.442695, %v10459_v60  ;;  %v10363_v19 = vsub.f32 1.0, %v14325_v26 }
0x2600   :  { %v10365_v6 = vmul.f32 %v14325_v26, %v16391_v23 }
0x2601   :  { %14328 = vtanh.f32 %v10361_v55 }
0x2602   :  { %14330 = vpow2.f32 %v11673_v44 }
0x260c   :  { %v14327_v7 = vpop.eup %14326 }
0x260d   :  { %v10456_v5 = vadd.f32 1.0, %v14327_v7 }
0x260e   :  { %v14329_v10 = vpop.eup %14328 }
0x260f   :  { %14332 = vrcp.f32 %v10456_v5  ;;  %v10364_v33 = vmul.f32 %v14329_v10, %v10363_v19  ;;  %v14331_v56 = vpop.eup %14330 }
0x2610   :  { %v10463_v58 = vadd.f32 1.0, %v14331_v56 }
0x2611   :  { %v16568_v25 = vadd.f32 %v10365_v6, %v10364_v33 }
0x2612   :  { %14334 = vrcp.f32 %v10463_v58 }
0x261c   :  { %v14333_v20 = vpop.eup %14332 }
0x261d   :  { %v10466_v21 = vmul.f32 %v14333_v20, %v10447_v27 }
0x261f   :  { %v10467_v17 = vadd.f32 %v10466_v21, %v16947_v1  ;;  %v14335_v22 = vpop.eup %14334 }
0x2620   :  { %v10469_v34 = vsub.f32 1.0, %v14335_v22  ;;  %v10471_v53 = vmul.f32 %v14335_v22, %v16396_v35 }
0x2621   :  { %14336 = vtanh.f32 %v10467_v17 }
0x262e   :  { %v14337_v9 = vpop.eup %14336 }
0x262f   :  { %v10470_v32 = vmul.f32 %v14337_v9, %v10469_v34  ;;  %v14062_v34 = vld [vmem:[%s16677_s14 + $0x38] sm:$0xff]  }
0x2631   :  { %v10472_v43 = vadd.f32 %v10471_v53, %v10470_v32  ;;  %v14063_v53 = vld [vmem:[%s16677_s14 + $0x30] sm:$0xff]  }
0x2633   :  { %10473 = vadd.xlane.f32.xlu0 %v10472_v43 }
0x26bc   :  { %v10474_v23 = vpop.xlane.xlu0 %10473 }
0x26bd   :  { %v10475_v29 = vmul.f32 0.0078125, %v10474_v23  ;;  %v14066_v23 = vld [vmem:[%s16677_s14 + $0x18] sm:$0xff]  }
0x26bf   :  { %v10476_v11 = vsub.f32 %v10472_v43, %v10475_v29  ;;  %v14065_v43 = vld [vmem:[%s16677_s14 + $0x20] sm:$0xff]   ;;  %v14067_v29 = vld [vmem:[%s16677_s14 + $0x10] sm:$0xff]  }
0x26c1   :  { %v10477_v24 = vmul.f32 %v10476_v11, %v10476_v11 }
0x26c3   :  { %10478 = vadd.xlane.f32.xlu1 %v10477_v24  ;;  %v14069_v24 = vld [vmem:[%s16677_s14] sm:$0xff]  }
0x274c   :  { %v10479_v28 = vpop.xlane.xlu1 %10478 }
0x274d   :  { %v10480_v46 = vmul.f32 0.0078125, %v10479_v28 }
0x274f   :  { %v10481_v54 = vadd.f32 1e-05, %v10480_v46 }
0x2751   :  { %14338 = vrsqrt.f32 %v10481_v54 }
0x275e   :  { %v14339_v55 = vpop.eup %14338 }
0x275f   :  { %v10483_v61 = vmul.f32 %v14339_v55, %v10476_v11  ;;  %v14068_v11 = vld [vmem:[%s16677_s14 + $0x8] sm:$0xff]   ;;  %v11676_v55 = vld [vmem:[%s16676_s13 + $0x2] sm:$0x3] }
0x2761   :  { %v10484_v60 = vmul.f32 %v10483_v61, %v15831_v16  ;;  %v16949_v16 = vld [vmem:[#allocation36_spill] sm:$0xff]  ;;  %v16950_v61 = vld [vmem:[#allocation13_spill] sm:$0xff] }
0x2763   :  { %v10485_v44 = vadd.f32 %v10484_v60, %v15834_v38  ;;  %v16948_v38 = vld [vmem:[#allocation35_spill] sm:$0xff]  ;;  %v10688_v60 = vrot.slane %v11676_v55, %v16950_v61 }
0x2765   :  { %v10486_v26 = vmax.f32 %v10485_v44, 0.0 }
0x2767   :  { %v10487_v7 = vpack.c.bf16 %v10486_v26, %v10486_v26 }
0x2769   :  { %10521 = vmatmul.mubr.bf16.vlgmr.msra.gmra.mxu0 %v10487_v7  ;;  %13030 = vmatmul.mubr.bf16.vlgmr.msra.gmra.mxu1 %v10487_v7  ;;  %v16951_v7 = vld [vmem:[#allocation16_spill] sm:$0xff] }
0x276a   :  { %10571 = vmatpush1.bf16.msra.mxu0 %v16402_v51  ;;  %13034 = vmatpush3.bf16.msra.mxu1 %v16405_v2 }
0x276b   :  { %10572 = vmatprep.subr.bf16.mxu0 %v16408_v14  ;;  %13035 = vmatprep.subr.bf16.mxu1 %v16805_v18 }
0x276c   :  { %10602 = vmatprep.mubr.bf16.mxu0 %v16828_v63  ;;  %13049 = vmatprep.mubr.msk.bf16.mxu1 %vm14522_vm0, %v16805_v18  ;;  %v10569_v63 = vpack.c.bf16 %v16568_v25, %v16568_v25 }
0x276e   :  { %10573 = vmatpush1.bf16.msra.mxu0 %v16415_v12  ;;  %13036 = vmatpush3.bf16.msra.mxu1 %v16418_v50 }
0x276f   :  { %10574 = vmatprep.subr.bf16.mxu0 %v16421_v8  ;;  %13037 = vmatprep.subr.bf16.mxu1 %v16805_v18 }
0x2772   :  { %10575 = vmatpush1.bf16.msra.mxu0 %v16425_v0  ;;  %13038 = vmatpush3.bf16.msra.mxu1 %v16428_v52 }
0x2773   :  { %10576 = vmatprep.subr.bf16.mxu0 %v16431_v48  ;;  %13039 = vmatprep.subr.bf16.mxu1 %v16805_v18 }
0x2776   :  { %10577 = vmatpush1.bf16.msra.mxu0 %v16435_v57  ;;  %13040 = vmatpush3.bf16.msra.mxu1 %v16438_v47 }
0x2777   :  { %10578 = vmatprep.subr.bf16.mxu0 %v16441_v30  ;;  %13041 = vmatprep.subr.bf16.mxu1 %v16805_v18 }
0x277a   :  { %10579 = vmatpush1.bf16.msra.mxu0 %v16445_v40  ;;  %13042 = vmatpush3.bf16.msra.mxu1 %v16448_v39 }
0x277b   :  { %10580 = vmatprep.subr.bf16.mxu0 %v16451_v37  ;;  %13043 = vmatprep.subr.bf16.mxu1 %v16805_v18 }
0x277e   :  { %10581 = vmatpush1.bf16.msra.mxu0 %v16455_v49  ;;  %13044 = vmatpush3.bf16.msra.mxu1 %v16458_v41 }
0x277f   :  { %10582 = vmatprep.subr.bf16.mxu0 %v16948_v38  ;;  %13045 = vmatprep.subr.bf16.mxu1 %v16805_v18  ;;  %v10693_v38 = vrot.slane %v11676_v55, %v16951_v7 }
0x2782   :  { %10583 = vmatpush1.bf16.msra.mxu0 %v16949_v16  ;;  %13046 = vmatpush3.bf16.msra.mxu1 %v16468_v4 }
0x2783   :  { %10584 = vmatprep.subr.bf16.mxu0 %v16471_v36  ;;  %13047 = vmatprep.subr.bf16.mxu1 %v16805_v18 }
0x2786   :  { %10585 = vmatpush1.bf16.msra.mxu0 %v16475_v42  ;;  %13048 = vmatpush3.bf16.msra.mxu1 %v16478_v15 }
0x2787   :  { %13053 = vmatprep.subr.bf16.mxu0 %v16805_v18 }
0x2789   :  { %10603 = vmatmul.mubr.bf16.vlgmr.msra.gmra.mxu0 %v10569_v63  ;;  %13050 = vmatmul.mubr.bf16.vlgmr.msra.gmra.mxu1 %v10569_v63 }
0x278a   :  { %13069 = vmatprep.mubr.msk.bf16.mxu0 %vm14522_vm0, %v16805_v18  ;;  %13054 = vmatpush3.bf16.msra.mxu0 %v14062_v34 }
0x278b   :  { %13055 = vmatprep.subr.bf16.mxu0 %v16805_v18 }
0x278e   :  { %13056 = vmatpush3.bf16.msra.mxu0 %v14063_v53 }
0x278f   :  { %13057 = vmatprep.subr.bf16.mxu0 %v16805_v18 }
0x2829   :  { %v10522_v35 = vpop.f32.mrf.mxu0  ;;  %v10563_v51 = vpop.f32.mrf.mxu1 }
0x282a   :  { %v10523_v57 = vadd.f32 %v10522_v35, %v16942_v13  ;;  %v10564_v58 = vadd.f32 %v10563_v51, %v16022_v59 }
0x282b   :  { %v10524_v2 = vpop.f32.mrf.mxu0  ;;  %v13031_v14 = vpop.f32.mrf.mxu1 }
0x282c   :  { %v10525_v42 = vadd.f32 %v10524_v2, %v16007_v3  ;;  %v11677_v14 = vld [vmem:[%s16678_s15] ss:$0 sm:$0xff] }
0x282d   :  { %v10526_v12 = vpop.f32.mrf.mxu0  ;;  %v10566_v50 = vpop.f32.mrf.mxu1 }
0x282f   :  { %v10527_v8 = vpop.f32.mrf.mxu0  ;;  %v13032_v0 = vpop.f32.mrf.mxu1 }
0x2849   :  { %v10604_v52 = vpop.f32.mrf.mxu0  ;;  %v10645_v48 = vpop.f32.mrf.mxu1 }
0x284a   :  { %v10605_v47 = vadd.f32 %v10604_v52, %v16943_v31  ;;  %v10646_v6 = vadd.f32 %v10645_v48, %v16944_v45 }
0x284b   :  { %v10606_v30 = vpop.f32.mrf.mxu0  ;;  %v13051_v40 = vpop.f32.mrf.mxu1 }
0x284c   :  { %v10651_v39 = vadd.f32 %v10605_v47, %v10523_v57  ;;  %v10607_v15 = vadd.f32 %v10606_v30, %v16010_v62 }
0x284d   :  { %v10608_v37 = vpop.f32.mrf.mxu0  ;;  %v10648_v49 = vpop.f32.mrf.mxu1 }
0x284e   :  { %v11674_v41 = vmul.f32 -1.442695, %v10651_v39  ;;  %v10658_v5 = vadd.f32 %v10607_v15, %v10525_v42 }
0x284f   :  { %v10609_v4 = vpop.f32.mrf.mxu0  ;;  %v13052_v36 = vpop.f32.mrf.mxu1 }
0x2850   :  { %14340 = vpow2.f32 %v11674_v41  ;;  %v11675_v19 = vmul.f32 -1.442695, %v10658_v5 }
0x2852   :  { %14342 = vpow2.f32 %v11675_v19 }
0x285d   :  { %v14341_v10 = vpop.eup %14340 }
0x285e   :  { %v10655_v13 = vadd.f32 1.0, %v14341_v10 }
0x285f   :  { %v14343_v31 = vpop.eup %14342 }
0x2860   :  { %14344 = vrcp.f32 %v10655_v13  ;;  %v10662_v33 = vadd.f32 1.0, %v14343_v31 }
0x2862   :  { %14346 = vrcp.f32 %v10662_v33 }
0x286d   :  { %v14345_v56 = vpop.eup %14344 }
0x286e   :  { %v10665_v27 = vmul.f32 %v14345_v56, %v10646_v6 }
0x286f   :  { %v14347_v20 = vpop.eup %14346 }
0x2870   :  { %v10666_v62 = vadd.f32 %v10665_v27, %v10564_v58  ;;  %v10668_v3 = vsub.f32 1.0, %v14347_v20  ;;  %v10670_v17 = vmul.f32 %v14347_v20, %v16568_v25  ;;  %v14064_v25 = vld [vmem:[%s16677_s14 + $0x28] sm:$0xff]  }
0x2871   :  { %13058 = vmatpush3.bf16.msra.mxu0 %v14064_v25 }
0x2872   :  { %14348 = vtanh.f32 %v10666_v62  ;;  %13059 = vmatprep.subr.bf16.mxu0 %v16805_v18 }
0x2875   :  { %13060 = vmatpush3.bf16.msra.mxu0 %v14065_v43 }
0x2876   :  { %13061 = vmatprep.subr.bf16.mxu0 %v16805_v18 }
0x2879   :  { %13062 = vmatpush3.bf16.msra.mxu0 %v14066_v23 }
0x287a   :  { %13063 = vmatprep.subr.bf16.mxu0 %v16805_v18 }
0x287d   :  { %13064 = vmatpush3.bf16.msra.mxu0 %v14067_v29 }
0x287e   :  { %13065 = vmatprep.subr.bf16.mxu0 %v16805_v18 }
0x287f   :  { %v14349_v21 = vpop.eup %14348 }
0x2880   :  { %v10669_v1 = vmul.f32 %v14349_v21, %v10668_v3 }
0x2881   :  { %13066 = vmatpush3.bf16.msra.mxu0 %v14068_v11 }
0x2882   :  { %v10671_v22 = vadd.f32 %v10670_v17, %v10669_v1  ;;  %13067 = vmatprep.subr.bf16.mxu0 %v16805_v18  ;;  %v16952_v18 = vlaneseq }
0x2884   :  { %10674 = vadd.xlane.f32.xlu0 %v10671_v22  ;;  %v10809_v2 = vand.u32 127, %v16952_v18 }
0x2885   :  { %13068 = vmatpush3.bf16.msra.mxu0 %v14069_v24 }
0x2886   :  { %vm10810_vm4 = vcmp.lt.s32.totalorder %v10809_v2, 2 }
0x290d   :  { %v10675_v59 = vpop.xlane.xlu0 %10674 }
0x290e   :  { %v10676_v45 = vmul.f32 0.0078125, %v10675_v59 }
0x2910   :  { %v10677_v9 = vsub.f32 %v10671_v22, %v10676_v45 }
0x2912   :  { %v10678_v32 = vmul.f32 %v10677_v9, %v10677_v9 }
0x2914   :  { %10679 = vadd.xlane.f32.xlu1 %v10678_v32 }
0x299d   :  { %v10680_v28 = vpop.xlane.xlu1 %10679 }
0x299e   :  { %v10681_v46 = vmul.f32 0.0078125, %v10680_v28 }
0x29a0   :  { %v10682_v54 = vadd.f32 1e-05, %v10681_v46 }
0x29a2   :  { %14350 = vrsqrt.f32 %v10682_v54 }
0x29af   :  { %v14351_v44 = vpop.eup %14350 }
0x29b0   :  { %v10684_v26 = vmul.f32 %v14351_v44, %v10677_v9 }
0x29b2   :  { %v10689_v16 = vmul.f32 %v10688_v60, %v10684_v26 }
0x29b4   :  { %v10694_v63 = vadd.f32 %v10693_v38, %v10689_v16 }
0x29b6   :  { %v10695_v35 = vmax.f32 %v10694_v63, 0.0 }
0x29b8   :  { %v10696_v51 = vpack.c.bf16 %v10695_v35, %v10695_v35 }
0x29ba   :  { %13070 = vmatmul.mubr.bf16.vlgmr.msra.gmra.mxu0 %v10696_v51 }
0x2a7a   :  { %v10802_v12 = vpop.f32.mrf.mxu0 }
0x2a7b   :  { %v10803_v50 = vadd.f32 %v11677_v14, %v10802_v12 }
0x2a7c   :  { %v13071_v8 = vpop.f32.mrf.mxu0 }
0x2a7d   :  { %v10811_v0 = vsel %vm10810_vm4, %v10803_v50, -1e+30 }
0x2a7e   :  { %10812 = vmax.xlane.f32.xlu0 %v10811_v0  ;;  %v10805_v52 = vpop.f32.mrf.mxu0 }
0x2a80   :  { %v13072_v48 = vpop.f32.mrf.mxu0 }
0x2b07   :  { %v10813_v57 = vpop.xlane.xlu0 %10812 }
0x2b08   :  { %v10814_v47 = vsub.f32 %v10811_v0, %v10813_v57 }
0x2b0a   :  { %v10815_v30 = vmul.f32 1.442695, %v10814_v47 }
0x2b0c   :  { %14352 = vpow2.f32 %v10815_v30 }
0x2b19   :  { %v14353_v40 = vpop.eup %14352 }
0x2b1a   :  { %10817 = vadd.xlane.f32.xlu1 %v14353_v40 }
0x2ba3   :  { %v10818_v39 = vpop.xlane.xlu1 %10817 }
0x2ba4   :  { %14354 = vrcp.f32 %v10818_v39 }
0x2bb1   :  { %v14355_v37 = vpop.eup %14354 }
0x2bb2   :  { %v10820_v49 = vmul.f32 %v14355_v37, %v14353_v40 }
0x2bb4   :  { %10821 = vst [vmem:[%s16679_s16] sm:$0xff] %v10820_v49 }
0x2bb5   :  { %10830 = vsyncpa [#allocation4], 1 }
0x2bb6   :  { %10831 = vsyncpa [#allocation6], 1 }
0x2bb7   :  { %10832 = vsyncpa [#allocation9], 1 }

</bundles_post_ra>
